<compile_context>
chip_gen: v7x
topology: tpu7x:2x2x1
jax: 0.10.0
libtpu: 0.0.40
codegen_flags: <defaults>
</compile_context>

<pallas_src>
import jax
import jax.numpy as jnp
from jax import lax
from jax.experimental import pallas as pl
from jax.experimental.pallas import tpu as pltpu

# ------------------------------ static sizes --------------------------------
TB = 8                 # samples per grid step (batch tile)
H1, W1 = 16, 16        # layer-1 output spatial size
H2, W2 = 8, 8          # layer-2 output spatial size
SPP = H2 * W2          # 64 spatial positions seen by the final 8x8 conv
K1 = 3 * 4 * 4         # layer-1 im2col contraction (48)
K1P = 128              # ... zero-padded to a full lane width
C1 = 64                # layer-1 out channels
C1P = 128              # ... zero-padded to a full lane width
C2 = 128               # layer-2 out channels
R1 = 4 * SPP * TB      # layer-1 patch rows per batch tile (4 phases x 8 x 8 x TB)
PR = H2 + 1            # padded phase-plane rows / cols (9)


# ----------------------------------------------------------------------------
# Fused Pallas kernel: conv1+BN+ReLU -> conv2+BN+ReLU -> conv3 (+bias)
# ----------------------------------------------------------------------------
def _encoder_kernel(p1_ref, w1_ref, s1_ref, sh1_ref,
                    w2_ref, s2_ref, sh2_ref,
                    w3_ref, b3_ref,
                    o_ref, pp_ref):
    # ---- Layer 1: one (R1 x 128) @ (128 x 128) bf16 matmul + BN / ReLU -----
    y1 = jnp.dot(p1_ref[...], w1_ref[...], preferred_element_type=jnp.float32)
    y1 = jnp.maximum(y1 * s1_ref[...] + sh1_ref[...], 0.0)        # (R1, C1P)

    # Scatter into 4 zero-padded stride-2 phase planes kept in VMEM scratch.
    # Plane ph = 2*b + bp holds a1pad[2r + b, 2c + bp] at local coords [r, c],
    # where a1pad is the spatially zero-padded (18x18) layer-1 feature map.
    pp_ref[...] = jnp.zeros_like(pp_ref)
    for ph in range(4):
        b, bp = ph >> 1, ph & 1
        r0, c0 = 1 - b, 1 - bp
        blk = y1[ph * SPP * TB:(ph + 1) * SPP * TB, :]
        blk = blk.reshape(H2, W2, TB, C1P)                        # (r, c, n, ch)
        pp_ref[ph * PR + r0:ph * PR + r0 + H2, c0:c0 + W2, :, :] = blk

    # ---- Layer 2: 4x4 stride-2 conv = 16 shifted contiguous-slice matmuls --
    acc2 = jnp.zeros((SPP * TB, C2), jnp.float32)
    for di in range(4):
        bi, ai = di & 1, di >> 1
        for dj in range(4):
            bj, aj = dj & 1, dj >> 1
            ph = 2 * bi + bj
            xs = pp_ref[ph * PR + ai:ph * PR + ai + H2, aj:aj + W2, :, :]
            xs = xs.reshape(SPP * TB, C1P).astype(jnp.bfloat16)   # rows = (s, n)
            acc2 = acc2 + jnp.dot(xs, w2_ref[4 * di + dj],
                                  preferred_element_type=jnp.float32)
    a2 = jnp.maximum(acc2 * s2_ref[...] + sh2_ref[...], 0.0)      # (SPP*TB, C2)

    # ---- Layer 3: 8x8 valid conv = batched matmul over the 64 positions ----
    a2 = a2.reshape(SPP, TB, C2).astype(jnp.bfloat16)             # (64, TB, 128)
    y3 = jnp.einsum("snc,scl->snl", a2, w3_ref[...],
                    preferred_element_type=jnp.float32)           # (64, TB, latent)
    o_ref[...] = (jnp.sum(y3, axis=0) + b3_ref[...]).astype(o_ref.dtype)


# ----------------------------------------------------------------------------
# Host-side glue: layer-1 phase-ordered im2col, weight folding, pallas_call
# ----------------------------------------------------------------------------
def _layer1_patches(x, n_tiles):
    """x: (Np, 3, 32, 32) f32 -> (n_tiles * R1, K1P) bf16 phase-ordered patches.

    Row order within a tile is (phase, r, c, n_local) so the layer-1 matmul
    output can be written into the stride-2 phase planes with contiguous
    slices only (no strided gathers inside the kernel)."""
    Np = x.shape[0]
    xp = jnp.pad(x, ((0, 0), (0, 0), (1, 1), (1, 1)))             # (Np, 3, 34, 34)
    cols = [xp[:, :, kh:kh + 2 * H1:2, kw:kw + 2 * W1:2]
            for kh in range(4) for kw in range(4)]                # each (Np, 3, 16, 16)
    pat = jnp.stack(cols, axis=2)                                 # (Np, 3, 16, 16, 16)
    pat = pat.transpose(0, 3, 4, 1, 2).reshape(Np, H1, W1, K1)    # K = c*16 + kh*4 + kw
    planes = [pat[:, (1 - b)::2, (1 - bp)::2, :]
              for b in (0, 1) for bp in (0, 1)]                   # each (Np, 8, 8, 48)
    pr = jnp.stack(planes, axis=1)                                # (Np, 4, 8, 8, 48)
    pr = pr.reshape(n_tiles, TB, 4, H2, W2, K1)
    pr = pr.transpose(0, 2, 3, 4, 1, 5).reshape(n_tiles * R1, K1)
    pr = jnp.pad(pr, ((0, 0), (0, K1P - K1)))                     # lane-pad K 48 -> 128
    return pr.astype(jnp.bfloat16)


def _fold_bn(gamma, beta, rmean, rvar, bias, eps):
    s = gamma / jnp.sqrt(rvar + eps)
    return s, bias * s + beta - rmean * s


def encoder_forward(x, p, eps=1e-5):
    """x: (N, 3, 32, 32) f32 NCHW -> (N, latent_dim)."""
    N = x.shape[0]
    latent = p["w3"].shape[0]
    n_tiles = max(1, (N + TB - 1) // TB)
    Np = n_tiles * TB
    if Np != N:
        x = jnp.pad(x, ((0, Np - N), (0, 0), (0, 0), (0, 0)))

    patches1 = _layer1_patches(x, n_tiles)                        # (T*R1, 128) bf16

    # Layer 1: weight (64, 3, 4, 4) -> (K=48, Cout=64), zero-padded to (128, 128).
    w1m = p["w1"].reshape(C1, K1).T
    w1p = jnp.zeros((K1P, C1P), jnp.float32).at[:K1, :C1].set(w1m).astype(jnp.bfloat16)
    s1, sh1 = _fold_bn(p["g1"], p["be1"], p["rm1"], p["rv1"], p["b1"], eps)
    s1p = jnp.zeros((1, C1P), jnp.float32).at[0, :C1].set(s1)
    sh1p = jnp.zeros((1, C1P), jnp.float32).at[0, :C1].set(sh1)

    # Layer 2: weight (128, 64, 4, 4) -> (16, ci, co); ci zero-padded 64 -> 128.
    w2s = jnp.transpose(p["w2"], (2, 3, 1, 0)).reshape(16, C1, C2)
    w2s = jnp.pad(w2s, ((0, 0), (0, C1P - C1), (0, 0))).astype(jnp.bfloat16)
    s2, sh2 = _fold_bn(p["g2"], p["be2"], p["rm2"], p["rv2"], p["b2"], eps)
    s2 = s2.reshape(1, C2)
    sh2 = sh2.reshape(1, C2)

    # Layer 3: weight (latent, 128, 8, 8) -> (s = kh*8+kw, ci, latent); plain bias.
    w3r = jnp.transpose(p["w3"], (2, 3, 1, 0)).reshape(SPP, C2, latent).astype(jnp.bfloat16)
    b3 = p["b3"].reshape(1, latent).astype(jnp.float32)

    out = pl.pallas_call(
        _encoder_kernel,
        out_shape=jax.ShapeDtypeStruct((Np, latent), jnp.float32),
        grid=(n_tiles,),
        in_specs=[
            pl.BlockSpec((R1, K1P), lambda t: (t, 0)),            # layer-1 patches (per tile)
            pl.BlockSpec((K1P, C1P), lambda t: (0, 0)),           # w1   (resident)
            pl.BlockSpec((1, C1P), lambda t: (0, 0)),             # scale1
            pl.BlockSpec((1, C1P), lambda t: (0, 0)),             # shift1
            pl.BlockSpec((16, C1P, C2), lambda t: (0, 0, 0)),     # w2   (resident)
            pl.BlockSpec((1, C2), lambda t: (0, 0)),              # scale2
            pl.BlockSpec((1, C2), lambda t: (0, 0)),              # shift2
            pl.BlockSpec((SPP, C2, latent), lambda t: (0, 0, 0)),  # w3  (resident)
            pl.BlockSpec((1, latent), lambda t: (0, 0)),          # bias3
        ],
        out_specs=pl.BlockSpec((TB, latent), lambda t: (t, 0)),
        scratch_shapes=[pltpu.VMEM((4 * PR, PR, TB, C1P), jnp.float32)],
        compiler_params=pltpu.CompilerParams(
            dimension_semantics=("parallel",),
            vmem_limit_bytes=32 * 1024 * 1024,
        ),
    )(patches1, w1p, s1p, sh1p, w2s, s2, sh2, w3r, b3)
    return out[:N]


# ----------------------------------------------------------------------------
# Parameters (PyTorch-style init) and plain-JAX f32 reference
# ----------------------------------------------------------------------------
def make_params(key, latent_dim=128):
    ks = jax.random.split(key, 10)

    def conv_w(k, cout, cin, kh, kw):
        bound = 1.0 / jnp.sqrt(cin * kh * kw)
        return jax.random.uniform(k, (cout, cin, kh, kw), jnp.float32, -bound, bound)

    def conv_b(k, cout, cin, kh, kw):
        bound = 1.0 / jnp.sqrt(cin * kh * kw)
        return jax.random.uniform(k, (cout,), jnp.float32, -bound, bound)

    p = {}
    p["w1"] = conv_w(ks[0], 64, 3, 4, 4)
    p["b1"] = conv_b(ks[1], 64, 3, 4, 4)
    p["g1"] = jax.random.uniform(ks[2], (64,), jnp.float32, 0.5, 1.5)
    p["be1"] = jax.random.uniform(ks[3], (64,), jnp.float32, -0.5, 0.5)
    p["w2"] = conv_w(ks[4], 128, 64, 4, 4)
    p["b2"] = conv_b(ks[5], 128, 64, 4, 4)
    p["g2"] = jax.random.uniform(ks[6], (128,), jnp.float32, 0.5, 1.5)
    p["be2"] = jax.random.uniform(ks[7], (128,), jnp.float32, -0.5, 0.5)
    p["w3"] = conv_w(ks[8], latent_dim, 128, 8, 8)
    p["b3"] = conv_b(ks[9], latent_dim, 128, 8, 8)
    # BatchNorm running stats (PyTorch init: mean=0, var=1), eval-mode semantics.
    p["rm1"] = jnp.zeros((64,), jnp.float32)
    p["rv1"] = jnp.ones((64,), jnp.float32)
    p["rm2"] = jnp.zeros((128,), jnp.float32)
    p["rv2"] = jnp.ones((128,), jnp.float32)
    return p


def _ref_conv(x, w, b, stride, pad):
    y = lax.conv_general_dilated(
        x, w, window_strides=(stride, stride),
        padding=((pad, pad), (pad, pad)),
        dimension_numbers=("NCHW", "OIHW", "NCHW"))
    return y + b[None, :, None, None]


def ref_forward(x, p, eps=1e-5):
    h = _ref_conv(x, p["w1"], p["b1"], 2, 1)
    h = p["g1"][None, :, None, None] * (h - p["rm1"][None, :, None, None]) \
        / jnp.sqrt(p["rv1"][None, :, None, None] + eps) + p["be1"][None, :, None, None]
    h = jnp.maximum(h, 0.0)
    h = _ref_conv(h, p["w2"], p["b2"], 2, 1)
    h = p["g2"][None, :, None, None] * (h - p["rm2"][None, :, None, None]) \
        / jnp.sqrt(p["rv2"][None, :, None, None] + eps) + p["be2"][None, :, None, None]
    h = jnp.maximum(h, 0.0)
    h = _ref_conv(h, p["w3"], p["b3"], 1, 0)
    return h.reshape(x.shape[0], -1)


if __name__ == "__main__":
    key = jax.random.PRNGKey(0)
    k_x, k_p = jax.random.split(key)
    # CIFAR10-shaped input: the final 8x8 conv implies 32x32 spatial input.
    x = jax.random.normal(k_x, (2, 3, 32, 32), jnp.float32)
    params = make_params(k_p, latent_dim=128)

    out = jax.block_until_ready(jax.jit(encoder_forward)(x, params))
    assert out.shape == (2, 128), out.shape

    ref = jax.block_until_ready(ref_forward(x, params))
    # MXU operands are bf16 (f32 accumulation), so compare against the f32
    # reference with a bf16-appropriate tolerance.
    assert jnp.allclose(out, ref, rtol=2e-2, atol=2e-2), \
        float(jnp.max(jnp.abs(out - ref)))

    print("KERNEL_OK")
</pallas_src>

<mosaic_0001>
module attributes {stable_mosaic.version = 11 : i64} {
  func.func @_encoder_kernel(%arg0: i32, %arg1: memref<2048x128xbf16, #tpu.memory_space<vmem>>, %arg2: memref<128x128xbf16, #tpu.memory_space<vmem>>, %arg3: memref<1x128xf32, #tpu.memory_space<vmem>>, %arg4: memref<1x128xf32, #tpu.memory_space<vmem>>, %arg5: memref<16x128x128xbf16, #tpu.memory_space<vmem>>, %arg6: memref<1x128xf32, #tpu.memory_space<vmem>>, %arg7: memref<1x128xf32, #tpu.memory_space<vmem>>, %arg8: memref<64x128x128xbf16, #tpu.memory_space<vmem>>, %arg9: memref<1x128xf32, #tpu.memory_space<vmem>>, %arg10: memref<8x128xf32, #tpu.memory_space<vmem>>, %arg11: memref<36x9x8x128xf32, #tpu.memory_space<vmem>>) attributes {dimension_semantics = [#tpu.dimension_semantics<parallel>], iteration_bounds = array<i64: 1>, scalar_prefetch = 0 : i64, scratch_operands = 1 : i64, tpu.core_type = #tpu.core_type<tc>, window_params = [{transform_indices = @transform_0, window_bounds = array<i64: 2048, 128>}, {pipeline_mode = #tpu.pipeline_mode<synchronous>, transform_indices = @transform_1, window_bounds = array<i64: 128, 128>}, {pipeline_mode = #tpu.pipeline_mode<synchronous>, transform_indices = @transform_2, window_bounds = array<i64: 1, 128>}, {pipeline_mode = #tpu.pipeline_mode<synchronous>, transform_indices = @transform_3, window_bounds = array<i64: 1, 128>}, {pipeline_mode = #tpu.pipeline_mode<synchronous>, transform_indices = @transform_4, window_bounds = array<i64: 16, 128, 128>}, {pipeline_mode = #tpu.pipeline_mode<synchronous>, transform_indices = @transform_5, window_bounds = array<i64: 1, 128>}, {pipeline_mode = #tpu.pipeline_mode<synchronous>, transform_indices = @transform_6, window_bounds = array<i64: 1, 128>}, {pipeline_mode = #tpu.pipeline_mode<synchronous>, transform_indices = @transform_7, window_bounds = array<i64: 64, 128, 128>}, {pipeline_mode = #tpu.pipeline_mode<synchronous>, transform_indices = @transform_8, window_bounds = array<i64: 1, 128>}, {transform_indices = @transform_9, window_bounds = array<i64: 8, 128>}]} {
    %c0 = arith.constant 0 : index
    %c0_0 = arith.constant 0 : index
    %0 = vector.load %arg1[%c0, %c0_0] : memref<2048x128xbf16, #tpu.memory_space<vmem>>, vector<2048x128xbf16>
    %c0_1 = arith.constant 0 : index
    %c0_2 = arith.constant 0 : index
    %1 = vector.load %arg2[%c0_1, %c0_2] : memref<128x128xbf16, #tpu.memory_space<vmem>>, vector<128x128xbf16>
    %cst = arith.constant dense<0.000000e+00> : vector<2048x128xf32>
    %2 = tpu.matmul %0, %1, %cst {dimension_numbers = #tpu.dot_dimension_numbers<[1], [0], [0], [1], [0, 0, 1, 1], [], []>} : vector<2048x128xbf16>, vector<128x128xbf16>, vector<2048x128xf32> -> vector<2048x128xf32>
    %c0_3 = arith.constant 0 : index
    %c0_4 = arith.constant 0 : index
    %3 = vector.load %arg3[%c0_3, %c0_4] : memref<1x128xf32, #tpu.memory_space<vmem>>, vector<1x128xf32>
    %4 = vector.broadcast %3 : vector<1x128xf32> to vector<2048x128xf32>
    %5 = arith.mulf %2, %4 : vector<2048x128xf32>
    %c0_5 = arith.constant 0 : index
    %c0_6 = arith.constant 0 : index
    %6 = vector.load %arg4[%c0_5, %c0_6] : memref<1x128xf32, #tpu.memory_space<vmem>>, vector<1x128xf32>
    %7 = vector.broadcast %6 : vector<1x128xf32> to vector<2048x128xf32>
    %8 = arith.addf %5, %7 : vector<2048x128xf32>
    %cst_7 = arith.constant 0.000000e+00 : f32
    %9 = vector.broadcast %cst_7 : f32 to vector<2048x128xf32>
    %10 = arith.maximumf %8, %9 : vector<2048x128xf32>
    %cst_8 = arith.constant 0.000000e+00 : f32
    %11 = vector.broadcast %cst_8 : f32 to vector<36x9x8x128xf32>
    %c0_9 = arith.constant 0 : index
    %c0_10 = arith.constant 0 : index
    %c0_11 = arith.constant 0 : index
    %c0_12 = arith.constant 0 : index
    %12 = vector.load %arg11[%c0_9, %c0_10, %c0_11, %c0_12] : memref<36x9x8x128xf32, #tpu.memory_space<vmem>>, vector<36x9x8x128xf32>
    tpu.vector_store %arg11[%c0_9, %c0_10, %c0_11, %c0_12], %11 {strides = array<i32>} : memref<36x9x8x128xf32, #tpu.memory_space<vmem>>, vector<36x9x8x128xf32>,
    %13 = vector.extract_strided_slice %10 {offsets = [0, 0], sizes = [512, 128], strides = [1, 1]} : vector<2048x128xf32> to vector<512x128xf32>
    %14 = vector.shape_cast %13 : vector<512x128xf32> to vector<8x8x8x128xf32>
    %c1 = arith.constant 1 : index
    %c1_13 = arith.constant 1 : index
    %c0_14 = arith.constant 0 : index
    %c0_15 = arith.constant 0 : index
    %15 = vector.load %arg11[%c1, %c1_13, %c0_14, %c0_15] : memref<36x9x8x128xf32, #tpu.memory_space<vmem>>, vector<8x8x8x128xf32>
    tpu.vector_store %arg11[%c1, %c1_13, %c0_14, %c0_15], %14 {strides = array<i32>} : memref<36x9x8x128xf32, #tpu.memory_space<vmem>>, vector<8x8x8x128xf32>,
    %16 = vector.extract_strided_slice %10 {offsets = [512, 0], sizes = [512, 128], strides = [1, 1]} : vector<2048x128xf32> to vector<512x128xf32>
    %17 = vector.shape_cast %16 : vector<512x128xf32> to vector<8x8x8x128xf32>
    %c10 = arith.constant 10 : index
    %c0_16 = arith.constant 0 : index
    %c0_17 = arith.constant 0 : index
    %c0_18 = arith.constant 0 : index
    %18 = vector.load %arg11[%c10, %c0_16, %c0_17, %c0_18] : memref<36x9x8x128xf32, #tpu.memory_space<vmem>>, vector<8x8x8x128xf32>
    tpu.vector_store %arg11[%c10, %c0_16, %c0_17, %c0_18], %17 {strides = array<i32>} : memref<36x9x8x128xf32, #tpu.memory_space<vmem>>, vector<8x8x8x128xf32>,
    %19 = vector.extract_strided_slice %10 {offsets = [1024, 0], sizes = [512, 128], strides = [1, 1]} : vector<2048x128xf32> to vector<512x128xf32>
    %20 = vector.shape_cast %19 : vector<512x128xf32> to vector<8x8x8x128xf32>
    %c18 = arith.constant 18 : index
    %c1_19 = arith.constant 1 : index
    %c0_20 = arith.constant 0 : index
    %c0_21 = arith.constant 0 : index
    %21 = vector.load %arg11[%c18, %c1_19, %c0_20, %c0_21] : memref<36x9x8x128xf32, #tpu.memory_space<vmem>>, vector<8x8x8x128xf32>
    tpu.vector_store %arg11[%c18, %c1_19, %c0_20, %c0_21], %20 {strides = array<i32>} : memref<36x9x8x128xf32, #tpu.memory_space<vmem>>, vector<8x8x8x128xf32>,
    %22 = vector.extract_strided_slice %10 {offsets = [1536, 0], sizes = [512, 128], strides = [1, 1]} : vector<2048x128xf32> to vector<512x128xf32>
    %23 = vector.shape_cast %22 : vector<512x128xf32> to vector<8x8x8x128xf32>
    %c27 = arith.constant 27 : index
    %c0_22 = arith.constant 0 : index
    %c0_23 = arith.constant 0 : index
    %c0_24 = arith.constant 0 : index
    %24 = vector.load %arg11[%c27, %c0_22, %c0_23, %c0_24] : memref<36x9x8x128xf32, #tpu.memory_space<vmem>>, vector<8x8x8x128xf32>
    tpu.vector_store %arg11[%c27, %c0_22, %c0_23, %c0_24], %23 {strides = array<i32>} : memref<36x9x8x128xf32, #tpu.memory_space<vmem>>, vector<8x8x8x128xf32>,
    %cst_25 = arith.constant 0.000000e+00 : f32
    %25 = vector.broadcast %cst_25 : f32 to vector<512x128xf32>
    %c0_26 = arith.constant 0 : index
    %c0_27 = arith.constant 0 : index
    %c0_28 = arith.constant 0 : index
    %c0_29 = arith.constant 0 : index
    %26 = vector.load %arg11[%c0_26, %c0_27, %c0_28, %c0_29] : memref<36x9x8x128xf32, #tpu.memory_space<vmem>>, vector<8x8x8x128xf32>
    %27 = vector.shape_cast %26 : vector<8x8x8x128xf32> to vector<512x128xf32>
    %28 = arith.truncf %27 : vector<512x128xf32> to vector<512x128xbf16>
    %c0_30 = arith.constant 0 : index
    %c0_31 = arith.constant 0 : index
    %c0_32 = arith.constant 0 : index
    %29 = vector.load %arg5[%c0_30, %c0_31, %c0_32] : memref<16x128x128xbf16, #tpu.memory_space<vmem>>, vector<1x128x128xbf16>
    %30 = vector.shape_cast %29 : vector<1x128x128xbf16> to vector<128x128xbf16>
    %cst_33 = arith.constant dense<0.000000e+00> : vector<512x128xf32>
    %31 = tpu.matmul %28, %30, %cst_33 {dimension_numbers = #tpu.dot_dimension_numbers<[1], [0], [0], [1], [0, 0, 1, 1], [], []>} : vector<512x128xbf16>, vector<128x128xbf16>, vector<512x128xf32> -> vector<512x128xf32>
    %32 = arith.addf %25, %31 : vector<512x128xf32>
    %c9 = arith.constant 9 : index
    %c0_34 = arith.constant 0 : index
    %c0_35 = arith.constant 0 : index
    %c0_36 = arith.constant 0 : index
    %33 = vector.load %arg11[%c9, %c0_34, %c0_35, %c0_36] : memref<36x9x8x128xf32, #tpu.memory_space<vmem>>, vector<8x8x8x128xf32>
    %34 = vector.shape_cast %33 : vector<8x8x8x128xf32> to vector<512x128xf32>
    %35 = arith.truncf %34 : vector<512x128xf32> to vector<512x128xbf16>
    %c1_37 = arith.constant 1 : index
    %c0_38 = arith.constant 0 : index
    %c0_39 = arith.constant 0 : index
    %36 = vector.load %arg5[%c1_37, %c0_38, %c0_39] : memref<16x128x128xbf16, #tpu.memory_space<vmem>>, vector<1x128x128xbf16>
    %37 = vector.shape_cast %36 : vector<1x128x128xbf16> to vector<128x128xbf16>
    %cst_40 = arith.constant dense<0.000000e+00> : vector<512x128xf32>
    %38 = tpu.matmul %35, %37, %cst_40 {dimension_numbers = #tpu.dot_dimension_numbers<[1], [0], [0], [1], [0, 0, 1, 1], [], []>} : vector<512x128xbf16>, vector<128x128xbf16>, vector<512x128xf32> -> vector<512x128xf32>
    %39 = arith.addf %32, %38 : vector<512x128xf32>
    %c0_41 = arith.constant 0 : index
    %c1_42 = arith.constant 1 : index
    %c0_43 = arith.constant 0 : index
    %c0_44 = arith.constant 0 : index
    %40 = vector.load %arg11[%c0_41, %c1_42, %c0_43, %c0_44] : memref<36x9x8x128xf32, #tpu.memory_space<vmem>>, vector<8x8x8x128xf32>
    %41 = vector.shape_cast %40 : vector<8x8x8x128xf32> to vector<512x128xf32>
    %42 = arith.truncf %41 : vector<512x128xf32> to vector<512x128xbf16>
    %c2 = arith.constant 2 : index
    %c0_45 = arith.constant 0 : index
    %c0_46 = arith.constant 0 : index
    %43 = vector.load %arg5[%c2, %c0_45, %c0_46] : memref<16x128x128xbf16, #tpu.memory_space<vmem>>, vector<1x128x128xbf16>
    %44 = vector.shape_cast %43 : vector<1x128x128xbf16> to vector<128x128xbf16>
    %cst_47 = arith.constant dense<0.000000e+00> : vector<512x128xf32>
    %45 = tpu.matmul %42, %44, %cst_47 {dimension_numbers = #tpu.dot_dimension_numbers<[1], [0], [0], [1], [0, 0, 1, 1], [], []>} : vector<512x128xbf16>, vector<128x128xbf16>, vector<512x128xf32> -> vector<512x128xf32>
    %46 = arith.addf %39, %45 : vector<512x128xf32>
    %c9_48 = arith.constant 9 : index
    %c1_49 = arith.constant 1 : index
    %c0_50 = arith.constant 0 : index
    %c0_51 = arith.constant 0 : index
    %47 = vector.load %arg11[%c9_48, %c1_49, %c0_50, %c0_51] : memref<36x9x8x128xf32, #tpu.memory_space<vmem>>, vector<8x8x8x128xf32>
    %48 = vector.shape_cast %47 : vector<8x8x8x128xf32> to vector<512x128xf32>
    %49 = arith.truncf %48 : vector<512x128xf32> to vector<512x128xbf16>
    %c3 = arith.constant 3 : index
    %c0_52 = arith.constant 0 : index
    %c0_53 = arith.constant 0 : index
    %50 = vector.load %arg5[%c3, %c0_52, %c0_53] : memref<16x128x128xbf16, #tpu.memory_space<vmem>>, vector<1x128x128xbf16>
    %51 = vector.shape_cast %50 : vector<1x128x128xbf16> to vector<128x128xbf16>
    %cst_54 = arith.constant dense<0.000000e+00> : vector<512x128xf32>
    %52 = tpu.matmul %49, %51, %cst_54 {dimension_numbers = #tpu.dot_dimension_numbers<[1], [0], [0], [1], [0, 0, 1, 1], [], []>} : vector<512x128xbf16>, vector<128x128xbf16>, vector<512x128xf32> -> vector<512x128xf32>
    %53 = arith.addf %46, %52 : vector<512x128xf32>
    %c18_55 = arith.constant 18 : index
    %c0_56 = arith.constant 0 : index
    %c0_57 = arith.constant 0 : index
    %c0_58 = arith.constant 0 : index
    %54 = vector.load %arg11[%c18_55, %c0_56, %c0_57, %c0_58] : memref<36x9x8x128xf32, #tpu.memory_space<vmem>>, vector<8x8x8x128xf32>
    %55 = vector.shape_cast %54 : vector<8x8x8x128xf32> to vector<512x128xf32>
    %56 = arith.truncf %55 : vector<512x128xf32> to vector<512x128xbf16>
    %c4 = arith.constant 4 : index
    %c0_59 = arith.constant 0 : index
    %c0_60 = arith.constant 0 : index
    %57 = vector.load %arg5[%c4, %c0_59, %c0_60] : memref<16x128x128xbf16, #tpu.memory_space<vmem>>, vector<1x128x128xbf16>
    %58 = vector.shape_cast %57 : vector<1x128x128xbf16> to vector<128x128xbf16>
    %cst_61 = arith.constant dense<0.000000e+00> : vector<512x128xf32>
    %59 = tpu.matmul %56, %58, %cst_61 {dimension_numbers = #tpu.dot_dimension_numbers<[1], [0], [0], [1], [0, 0, 1, 1], [], []>} : vector<512x128xbf16>, vector<128x128xbf16>, vector<512x128xf32> -> vector<512x128xf32>
    %60 = arith.addf %53, %59 : vector<512x128xf32>
    %c27_62 = arith.constant 27 : index
    %c0_63 = arith.constant 0 : index
    %c0_64 = arith.constant 0 : index
    %c0_65 = arith.constant 0 : index
    %61 = vector.load %arg11[%c27_62, %c0_63, %c0_64, %c0_65] : memref<36x9x8x128xf32, #tpu.memory_space<vmem>>, vector<8x8x8x128xf32>
    %62 = vector.shape_cast %61 : vector<8x8x8x128xf32> to vector<512x128xf32>
    %63 = arith.truncf %62 : vector<512x128xf32> to vector<512x128xbf16>
    %c5 = arith.constant 5 : index
    %c0_66 = arith.constant 0 : index
    %c0_67 = arith.constant 0 : index
    %64 = vector.load %arg5[%c5, %c0_66, %c0_67] : memref<16x128x128xbf16, #tpu.memory_space<vmem>>, vector<1x128x128xbf16>
    %65 = vector.shape_cast %64 : vector<1x128x128xbf16> to vector<128x128xbf16>
    %cst_68 = arith.constant dense<0.000000e+00> : vector<512x128xf32>
    %66 = tpu.matmul %63, %65, %cst_68 {dimension_numbers = #tpu.dot_dimension_numbers<[1], [0], [0], [1], [0, 0, 1, 1], [], []>} : vector<512x128xbf16>, vector<128x128xbf16>, vector<512x128xf32> -> vector<512x128xf32>
    %67 = arith.addf %60, %66 : vector<512x128xf32>
    %c18_69 = arith.constant 18 : index
    %c1_70 = arith.constant 1 : index
    %c0_71 = arith.constant 0 : index
    %c0_72 = arith.constant 0 : index
    %68 = vector.load %arg11[%c18_69, %c1_70, %c0_71, %c0_72] : memref<36x9x8x128xf32, #tpu.memory_space<vmem>>, vector<8x8x8x128xf32>
    %69 = vector.shape_cast %68 : vector<8x8x8x128xf32> to vector<512x128xf32>
    %70 = arith.truncf %69 : vector<512x128xf32> to vector<512x128xbf16>
    %c6 = arith.constant 6 : index
    %c0_73 = arith.constant 0 : index
    %c0_74 = arith.constant 0 : index
    %71 = vector.load %arg5[%c6, %c0_73, %c0_74] : memref<16x128x128xbf16, #tpu.memory_space<vmem>>, vector<1x128x128xbf16>
    %72 = vector.shape_cast %71 : vector<1x128x128xbf16> to vector<128x128xbf16>
    %cst_75 = arith.constant dense<0.000000e+00> : vector<512x128xf32>
    %73 = tpu.matmul %70, %72, %cst_75 {dimension_numbers = #tpu.dot_dimension_numbers<[1], [0], [0], [1], [0, 0, 1, 1], [], []>} : vector<512x128xbf16>, vector<128x128xbf16>, vector<512x128xf32> -> vector<512x128xf32>
    %74 = arith.addf %67, %73 : vector<512x128xf32>
    %c27_76 = arith.constant 27 : index
    %c1_77 = arith.constant 1 : index
    %c0_78 = arith.constant 0 : index
    %c0_79 = arith.constant 0 : index
    %75 = vector.load %arg11[%c27_76, %c1_77, %c0_78, %c0_79] : memref<36x9x8x128xf32, #tpu.memory_space<vmem>>, vector<8x8x8x128xf32>
    %76 = vector.shape_cast %75 : vector<8x8x8x128xf32> to vector<512x128xf32>
    %77 = arith.truncf %76 : vector<512x128xf32> to vector<512x128xbf16>
    %c7 = arith.constant 7 : index
    %c0_80 = arith.constant 0 : index
    %c0_81 = arith.constant 0 : index
    %78 = vector.load %arg5[%c7, %c0_80, %c0_81] : memref<16x128x128xbf16, #tpu.memory_space<vmem>>, vector<1x128x128xbf16>
    %79 = vector.shape_cast %78 : vector<1x128x128xbf16> to vector<128x128xbf16>
    %cst_82 = arith.constant dense<0.000000e+00> : vector<512x128xf32>
    %80 = tpu.matmul %77, %79, %cst_82 {dimension_numbers = #tpu.dot_dimension_numbers<[1], [0], [0], [1], [0, 0, 1, 1], [], []>} : vector<512x128xbf16>, vector<128x128xbf16>, vector<512x128xf32> -> vector<512x128xf32>
    %81 = arith.addf %74, %80 : vector<512x128xf32>
    %c1_83 = arith.constant 1 : index
    %c0_84 = arith.constant 0 : index
    %c0_85 = arith.constant 0 : index
    %c0_86 = arith.constant 0 : index
    %82 = vector.load %arg11[%c1_83, %c0_84, %c0_85, %c0_86] : memref<36x9x8x128xf32, #tpu.memory_space<vmem>>, vector<8x8x8x128xf32>
    %83 = vector.shape_cast %82 : vector<8x8x8x128xf32> to vector<512x128xf32>
    %84 = arith.truncf %83 : vector<512x128xf32> to vector<512x128xbf16>
    %c8 = arith.constant 8 : index
    %c0_87 = arith.constant 0 : index
    %c0_88 = arith.constant 0 : index
    %85 = vector.load %arg5[%c8, %c0_87, %c0_88] : memref<16x128x128xbf16, #tpu.memory_space<vmem>>, vector<1x128x128xbf16>
    %86 = vector.shape_cast %85 : vector<1x128x128xbf16> to vector<128x128xbf16>
    %cst_89 = arith.constant dense<0.000000e+00> : vector<512x128xf32>
    %87 = tpu.matmul %84, %86, %cst_89 {dimension_numbers = #tpu.dot_dimension_numbers<[1], [0], [0], [1], [0, 0, 1, 1], [], []>} : vector<512x128xbf16>, vector<128x128xbf16>, vector<512x128xf32> -> vector<512x128xf32>
    %88 = arith.addf %81, %87 : vector<512x128xf32>
    %c10_90 = arith.constant 10 : index
    %c0_91 = arith.constant 0 : index
    %c0_92 = arith.constant 0 : index
    %c0_93 = arith.constant 0 : index
    %89 = vector.load %arg11[%c10_90, %c0_91, %c0_92, %c0_93] : memref<36x9x8x128xf32, #tpu.memory_space<vmem>>, vector<8x8x8x128xf32>
    %90 = vector.shape_cast %89 : vector<8x8x8x128xf32> to vector<512x128xf32>
    %91 = arith.truncf %90 : vector<512x128xf32> to vector<512x128xbf16>
    %c9_94 = arith.constant 9 : index
    %c0_95 = arith.constant 0 : index
    %c0_96 = arith.constant 0 : index
    %92 = vector.load %arg5[%c9_94, %c0_95, %c0_96] : memref<16x128x128xbf16, #tpu.memory_space<vmem>>, vector<1x128x128xbf16>
    %93 = vector.shape_cast %92 : vector<1x128x128xbf16> to vector<128x128xbf16>
    %cst_97 = arith.constant dense<0.000000e+00> : vector<512x128xf32>
    %94 = tpu.matmul %91, %93, %cst_97 {dimension_numbers = #tpu.dot_dimension_numbers<[1], [0], [0], [1], [0, 0, 1, 1], [], []>} : vector<512x128xbf16>, vector<128x128xbf16>, vector<512x128xf32> -> vector<512x128xf32>
    %95 = arith.addf %88, %94 : vector<512x128xf32>
    %c1_98 = arith.constant 1 : index
    %c1_99 = arith.constant 1 : index
    %c0_100 = arith.constant 0 : index
    %c0_101 = arith.constant 0 : index
    %96 = vector.load %arg11[%c1_98, %c1_99, %c0_100, %c0_101] : memref<36x9x8x128xf32, #tpu.memory_space<vmem>>, vector<8x8x8x128xf32>
    %97 = vector.shape_cast %96 : vector<8x8x8x128xf32> to vector<512x128xf32>
    %98 = arith.truncf %97 : vector<512x128xf32> to vector<512x128xbf16>
    %c10_102 = arith.constant 10 : index
    %c0_103 = arith.constant 0 : index
    %c0_104 = arith.constant 0 : index
    %99 = vector.load %arg5[%c10_102, %c0_103, %c0_104] : memref<16x128x128xbf16, #tpu.memory_space<vmem>>, vector<1x128x128xbf16>
    %100 = vector.shape_cast %99 : vector<1x128x128xbf16> to vector<128x128xbf16>
    %cst_105 = arith.constant dense<0.000000e+00> : vector<512x128xf32>
    %101 = tpu.matmul %98, %100, %cst_105 {dimension_numbers = #tpu.dot_dimension_numbers<[1], [0], [0], [1], [0, 0, 1, 1], [], []>} : vector<512x128xbf16>, vector<128x128xbf16>, vector<512x128xf32> -> vector<512x128xf32>
    %102 = arith.addf %95, %101 : vector<512x128xf32>
    %c10_106 = arith.constant 10 : index
    %c1_107 = arith.constant 1 : index
    %c0_108 = arith.constant 0 : index
    %c0_109 = arith.constant 0 : index
    %103 = vector.load %arg11[%c10_106, %c1_107, %c0_108, %c0_109] : memref<36x9x8x128xf32, #tpu.memory_space<vmem>>, vector<8x8x8x128xf32>
    %104 = vector.shape_cast %103 : vector<8x8x8x128xf32> to vector<512x128xf32>
    %105 = arith.truncf %104 : vector<512x128xf32> to vector<512x128xbf16>
    %c11 = arith.constant 11 : index
    %c0_110 = arith.constant 0 : index
    %c0_111 = arith.constant 0 : index
    %106 = vector.load %arg5[%c11, %c0_110, %c0_111] : memref<16x128x128xbf16, #tpu.memory_space<vmem>>, vector<1x128x128xbf16>
    %107 = vector.shape_cast %106 : vector<1x128x128xbf16> to vector<128x128xbf16>
    %cst_112 = arith.constant dense<0.000000e+00> : vector<512x128xf32>
    %108 = tpu.matmul %105, %107, %cst_112 {dimension_numbers = #tpu.dot_dimension_numbers<[1], [0], [0], [1], [0, 0, 1, 1], [], []>} : vector<512x128xbf16>, vector<128x128xbf16>, vector<512x128xf32> -> vector<512x128xf32>
    %109 = arith.addf %102, %108 : vector<512x128xf32>
    %c19 = arith.constant 19 : index
    %c0_113 = arith.constant 0 : index
    %c0_114 = arith.constant 0 : index
    %c0_115 = arith.constant 0 : index
    %110 = vector.load %arg11[%c19, %c0_113, %c0_114, %c0_115] : memref<36x9x8x128xf32, #tpu.memory_space<vmem>>, vector<8x8x8x128xf32>
    %111 = vector.shape_cast %110 : vector<8x8x8x128xf32> to vector<512x128xf32>
    %112 = arith.truncf %111 : vector<512x128xf32> to vector<512x128xbf16>
    %c12 = arith.constant 12 : index
    %c0_116 = arith.constant 0 : index
    %c0_117 = arith.constant 0 : index
    %113 = vector.load %arg5[%c12, %c0_116, %c0_117] : memref<16x128x128xbf16, #tpu.memory_space<vmem>>, vector<1x128x128xbf16>
    %114 = vector.shape_cast %113 : vector<1x128x128xbf16> to vector<128x128xbf16>
    %cst_118 = arith.constant dense<0.000000e+00> : vector<512x128xf32>
    %115 = tpu.matmul %112, %114, %cst_118 {dimension_numbers = #tpu.dot_dimension_numbers<[1], [0], [0], [1], [0, 0, 1, 1], [], []>} : vector<512x128xbf16>, vector<128x128xbf16>, vector<512x128xf32> -> vector<512x128xf32>
    %116 = arith.addf %109, %115 : vector<512x128xf32>
    %c28 = arith.constant 28 : index
    %c0_119 = arith.constant 0 : index
    %c0_120 = arith.constant 0 : index
    %c0_121 = arith.constant 0 : index
    %117 = vector.load %arg11[%c28, %c0_119, %c0_120, %c0_121] : memref<36x9x8x128xf32, #tpu.memory_space<vmem>>, vector<8x8x8x128xf32>
    %118 = vector.shape_cast %117 : vector<8x8x8x128xf32> to vector<512x128xf32>
    %119 = arith.truncf %118 : vector<512x128xf32> to vector<512x128xbf16>
    %c13 = arith.constant 13 : index
    %c0_122 = arith.constant 0 : index
    %c0_123 = arith.constant 0 : index
    %120 = vector.load %arg5[%c13, %c0_122, %c0_123] : memref<16x128x128xbf16, #tpu.memory_space<vmem>>, vector<1x128x128xbf16>
    %121 = vector.shape_cast %120 : vector<1x128x128xbf16> to vector<128x128xbf16>
    %cst_124 = arith.constant dense<0.000000e+00> : vector<512x128xf32>
    %122 = tpu.matmul %119, %121, %cst_124 {dimension_numbers = #tpu.dot_dimension_numbers<[1], [0], [0], [1], [0, 0, 1, 1], [], []>} : vector<512x128xbf16>, vector<128x128xbf16>, vector<512x128xf32> -> vector<512x128xf32>
    %123 = arith.addf %116, %122 : vector<512x128xf32>
    %c19_125 = arith.constant 19 : index
    %c1_126 = arith.constant 1 : index
    %c0_127 = arith.constant 0 : index
    %c0_128 = arith.constant 0 : index
    %124 = vector.load %arg11[%c19_125, %c1_126, %c0_127, %c0_128] : memref<36x9x8x128xf32, #tpu.memory_space<vmem>>, vector<8x8x8x128xf32>
    %125 = vector.shape_cast %124 : vector<8x8x8x128xf32> to vector<512x128xf32>
    %126 = arith.truncf %125 : vector<512x128xf32> to vector<512x128xbf16>
    %c14 = arith.constant 14 : index
    %c0_129 = arith.constant 0 : index
    %c0_130 = arith.constant 0 : index
    %127 = vector.load %arg5[%c14, %c0_129, %c0_130] : memref<16x128x128xbf16, #tpu.memory_space<vmem>>, vector<1x128x128xbf16>
    %128 = vector.shape_cast %127 : vector<1x128x128xbf16> to vector<128x128xbf16>
    %cst_131 = arith.constant dense<0.000000e+00> : vector<512x128xf32>
    %129 = tpu.matmul %126, %128, %cst_131 {dimension_numbers = #tpu.dot_dimension_numbers<[1], [0], [0], [1], [0, 0, 1, 1], [], []>} : vector<512x128xbf16>, vector<128x128xbf16>, vector<512x128xf32> -> vector<512x128xf32>
    %130 = arith.addf %123, %129 : vector<512x128xf32>
    %c28_132 = arith.constant 28 : index
    %c1_133 = arith.constant 1 : index
    %c0_134 = arith.constant 0 : index
    %c0_135 = arith.constant 0 : index
    %131 = vector.load %arg11[%c28_132, %c1_133, %c0_134, %c0_135] : memref<36x9x8x128xf32, #tpu.memory_space<vmem>>, vector<8x8x8x128xf32>
    %132 = vector.shape_cast %131 : vector<8x8x8x128xf32> to vector<512x128xf32>
    %133 = arith.truncf %132 : vector<512x128xf32> to vector<512x128xbf16>
    %c15 = arith.constant 15 : index
    %c0_136 = arith.constant 0 : index
    %c0_137 = arith.constant 0 : index
    %134 = vector.load %arg5[%c15, %c0_136, %c0_137] : memref<16x128x128xbf16, #tpu.memory_space<vmem>>, vector<1x128x128xbf16>
    %135 = vector.shape_cast %134 : vector<1x128x128xbf16> to vector<128x128xbf16>
    %cst_138 = arith.constant dense<0.000000e+00> : vector<512x128xf32>
    %136 = tpu.matmul %133, %135, %cst_138 {dimension_numbers = #tpu.dot_dimension_numbers<[1], [0], [0], [1], [0, 0, 1, 1], [], []>} : vector<512x128xbf16>, vector<128x128xbf16>, vector<512x128xf32> -> vector<512x128xf32>
    %137 = arith.addf %130, %136 : vector<512x128xf32>
    %c0_139 = arith.constant 0 : index
    %c0_140 = arith.constant 0 : index
    %138 = vector.load %arg6[%c0_139, %c0_140] : memref<1x128xf32, #tpu.memory_space<vmem>>, vector<1x128xf32>
    %139 = vector.broadcast %138 : vector<1x128xf32> to vector<512x128xf32>
    %140 = arith.mulf %137, %139 : vector<512x128xf32>
    %c0_141 = arith.constant 0 : index
    %c0_142 = arith.constant 0 : index
    %141 = vector.load %arg7[%c0_141, %c0_142] : memref<1x128xf32, #tpu.memory_space<vmem>>, vector<1x128xf32>
    %142 = vector.broadcast %141 : vector<1x128xf32> to vector<512x128xf32>
    %143 = arith.addf %140, %142 : vector<512x128xf32>
    %cst_143 = arith.constant 0.000000e+00 : f32
    %144 = vector.broadcast %cst_143 : f32 to vector<512x128xf32>
    %145 = arith.maximumf %143, %144 : vector<512x128xf32>
    %146 = vector.shape_cast %145 : vector<512x128xf32> to vector<64x8x128xf32>
    %147 = arith.truncf %146 : vector<64x8x128xf32> to vector<64x8x128xbf16>
    %c0_144 = arith.constant 0 : index
    %c0_145 = arith.constant 0 : index
    %c0_146 = arith.constant 0 : index
    %148 = vector.load %arg8[%c0_144, %c0_145, %c0_146] : memref<64x128x128xbf16, #tpu.memory_space<vmem>>, vector<64x128x128xbf16>
    "tpu.trace_start"() <{level = 10 : i32, message = "snc,scl->snl"}> : () -> ()
    %cst_147 = arith.constant dense<0.000000e+00> : vector<64x8x128xf32>
    %149 = tpu.matmul %147, %148, %cst_147 {dimension_numbers = #tpu.dot_dimension_numbers<[2], [1], [1], [2], [0, 0, 0, 1, 1, 2], [0], [0]>} : vector<64x8x128xbf16>, vector<64x128x128xbf16>, vector<64x8x128xf32> -> vector<64x8x128xf32>
    "tpu.trace_stop"() : () -> ()
    %cst_148 = arith.constant dense<0.000000e+00> : vector<8x128xf32>
    %150 = vector.multi_reduction <add>, %149, %cst_148 [0] : vector<64x8x128xf32> to vector<8x128xf32>
    %c0_149 = arith.constant 0 : index
    %c0_150 = arith.constant 0 : index
    %151 = vector.load %arg9[%c0_149, %c0_150] : memref<1x128xf32, #tpu.memory_space<vmem>>, vector<1x128xf32>
    %152 = vector.broadcast %151 : vector<1x128xf32> to vector<8x128xf32>
    %153 = arith.addf %150, %152 : vector<8x128xf32>
    %c0_151 = arith.constant 0 : index
    %c0_152 = arith.constant 0 : index
    %154 = vector.load %arg10[%c0_151, %c0_152] : memref<8x128xf32, #tpu.memory_space<vmem>>, vector<8x128xf32>
    tpu.vector_store %arg10[%c0_151, %c0_152], %153 {strides = array<i32>} : memref<8x128xf32, #tpu.memory_space<vmem>>, vector<8x128xf32>,
    return
  }
  func.func @transform_0(%arg0: i32) -> (i32, i32) {
    %c0_i32 = arith.constant 0 : i32
    %c0_i32_0 = arith.constant 0 : i32
    return %arg0, %c0_i32 : i32, i32
  }
  func.func @transform_1(%arg0: i32) -> (i32, i32) {
    %c0_i32 = arith.constant 0 : i32
    %c0_i32_0 = arith.constant 0 : i32
    %c0_i32_1 = arith.constant 0 : i32
    return %c0_i32, %c0_i32_0 : i32, i32
  }
  func.func @transform_2(%arg0: i32) -> (i32, i32) {
    %c0_i32 = arith.constant 0 : i32
    %c0_i32_0 = arith.constant 0 : i32
    %c0_i32_1 = arith.constant 0 : i32
    return %c0_i32, %c0_i32_0 : i32, i32
  }
  func.func @transform_3(%arg0: i32) -> (i32, i32) {
    %c0_i32 = arith.constant 0 : i32
    %c0_i32_0 = arith.constant 0 : i32
    %c0_i32_1 = arith.constant 0 : i32
    return %c0_i32, %c0_i32_0 : i32, i32
  }
  func.func @transform_4(%arg0: i32) -> (i32, i32, i32) {
    %c0_i32 = arith.constant 0 : i32
    %c0_i32_0 = arith.constant 0 : i32
    %c0_i32_1 = arith.constant 0 : i32
    %c0_i32_2 = arith.constant 0 : i32
    return %c0_i32, %c0_i32_0, %c0_i32_1 : i32, i32, i32
  }
  func.func @transform_5(%arg0: i32) -> (i32, i32) {
    %c0_i32 = arith.constant 0 : i32
    %c0_i32_0 = arith.constant 0 : i32
    %c0_i32_1 = arith.constant 0 : i32
    return %c0_i32, %c0_i32_0 : i32, i32
  }
  func.func @transform_6(%arg0: i32) -> (i32, i32) {
    %c0_i32 = arith.constant 0 : i32
    %c0_i32_0 = arith.constant 0 : i32
    %c0_i32_1 = arith.constant 0 : i32
    return %c0_i32, %c0_i32_0 : i32, i32
  }
  func.func @transform_7(%arg0: i32) -> (i32, i32, i32) {
    %c0_i32 = arith.constant 0 : i32
    %c0_i32_0 = arith.constant 0 : i32
    %c0_i32_1 = arith.constant 0 : i32
    %c0_i32_2 = arith.constant 0 : i32
    return %c0_i32, %c0_i32_0, %c0_i32_1 : i32, i32, i32
  }
  func.func @transform_8(%arg0: i32) -> (i32, i32) {
    %c0_i32 = arith.constant 0 : i32
    %c0_i32_0 = arith.constant 0 : i32
    %c0_i32_1 = arith.constant 0 : i32
    return %c0_i32, %c0_i32_0 : i32, i32
  }
  func.func @transform_9(%arg0: i32) -> (i32, i32) {
    %c0_i32 = arith.constant 0 : i32
    %c0_i32_0 = arith.constant 0 : i32
    return %arg0, %c0_i32 : i32, i32
  }
}

</mosaic_0001>

<bundles_post_ra>
// kernel: encoder_forward.1
= control target key start
LH: loop header
LB: loop body
LE: loop exit
PB: predicated region body
PF: predicated region fallthrough
CT: control target
= control target key end

     0   :  { %v30880_v33 = vmov 0.0   ;;  %vm25612_vm0 = vmmov 0   ;;  %s30864_s1 = inlined_call_operand.vmem [shape: bf16[128,128], index: 1, kind: input, shape index: {}]   ;;  %s30865_s0 = inlined_call_operand.vmem [shape: bf16[2048,128], index: 0, kind: input, shape index: {}]   ;;  %s30866_s4 = inlined_call_operand.vmem [shape: bf16[16,128,128], index: 4, kind: input, shape index: {}]   ;;  %s30867_s2 = inlined_call_operand.vmem [shape: f32[1,128], index: 2, kind: input, shape index: {}]   ;;  %s30868_s3 = inlined_call_operand.vmem [shape: f32[1,128], index: 3, kind: input, shape index: {}]   ;;  %s30869_s7 = inlined_call_operand.vmem [shape: bf16[64,128,128], index: 7, kind: input, shape index: {}]   ;;  %s30870_s5 = inlined_call_operand.vmem [shape: f32[1,128], index: 5, kind: input, shape index: {}]   ;;  %s30871_s6 = inlined_call_operand.vmem [shape: f32[1,128], index: 6, kind: input, shape index: {}]   ;;  %s30872_s8 = inlined_call_operand.vmem [shape: f32[1,128], index: 8, kind: input, shape index: {}]   ;;  %s30873_s9 = inlined_call_operand.vmem [shape: f32[8,128], index: 9, kind: output, shape index: {}]  }
   0x1   :  { %v24820_v0 = vld [vmem:[%s30864_s1] sm:$0xff]   ;;  %v24821_v1 = vld [vmem:[%s30864_s1 + $0x8] sm:$0xff]   ;;  %v24822_v2 = vld [vmem:[%s30864_s1 + $0x10] sm:$0xff]  }
   0x2   :  { %21025 = vmatprep.subr.bf16.mxu0 %v24820_v0  ;;  %v24823_v3 = vld [vmem:[%s30864_s1 + $0x18] sm:$0xff]   ;;  %v24828_v4 = vld [vmem:[%s30865_s0] sm:$0xff]   ;;  %v24825_v6 = vld [vmem:[%s30864_s1 + $0x28] sm:$0xff]  }
   0x3   :  { %21026 = vmatpush3.bf16.msra.mxu0 %v24820_v0  ;;  %21041 = vmatprep.mubr.bf16.mxu0 %v24828_v4  ;;  %v24824_v5 = vld [vmem:[%s30864_s1 + $0x20] sm:$0xff]   ;;  %v24826_v7 = vld [vmem:[%s30864_s1 + $0x30] sm:$0xff]   ;;  %v24827_v8 = vld [vmem:[%s30864_s1 + $0x38] sm:$0xff]  }
   0x4   :  { %21027 = vmatprep.subr.bf16.mxu0 %v24821_v1  ;;  %v24829_v9 = vld [vmem:[%s30865_s0 + $0x8] sm:$0xff]   ;;  %v24830_v10 = vld [vmem:[%s30865_s0 + $0x10] sm:$0xff]   ;;  %v24831_v11 = vld [vmem:[%s30865_s0 + $0x18] sm:$0xff]  }
   0x5   :  { %v24832_v12 = vld [vmem:[%s30865_s0 + $0x20] sm:$0xff]   ;;  %v24833_v13 = vld [vmem:[%s30865_s0 + $0x28] sm:$0xff]   ;;  %v24834_v14 = vld [vmem:[%s30865_s0 + $0x30] sm:$0xff]  }
   0x6   :  { %v24835_v15 = vld [vmem:[%s30865_s0 + $0x38] sm:$0xff]   ;;  %v24836_v16 = vld [vmem:[%s30865_s0 + $0x40] sm:$0xff]   ;;  %v24837_v17 = vld [vmem:[%s30865_s0 + $0x48] sm:$0xff]  }
   0x7   :  { %21028 = vmatpush3.bf16.msra.mxu0 %v24821_v1  ;;  %v24838_v18 = vld [vmem:[%s30865_s0 + $0x50] sm:$0xff]   ;;  %v24839_v19 = vld [vmem:[%s30865_s0 + $0x58] sm:$0xff]   ;;  %v24840_v20 = vld [vmem:[%s30865_s0 + $0x60] sm:$0xff]  }
   0x8   :  { %21029 = vmatprep.subr.bf16.mxu0 %v24822_v2  ;;  %v24841_v21 = vld [vmem:[%s30865_s0 + $0x68] sm:$0xff]   ;;  %v24842_v22 = vld [vmem:[%s30865_s0 + $0x70] sm:$0xff]   ;;  %v24843_v23 = vld [vmem:[%s30865_s0 + $0x78] sm:$0xff]  }
   0x9   :  { %v24844_v24 = vld [vmem:[%s30865_s0 + $0x80] sm:$0xff]   ;;  %v24845_v25 = vld [vmem:[%s30865_s0 + $0x88] sm:$0xff]   ;;  %v24846_v26 = vld [vmem:[%s30865_s0 + $0x90] sm:$0xff]  }
   0xa   :  { %v24847_v27 = vld [vmem:[%s30865_s0 + $0x98] sm:$0xff]   ;;  %v24848_v28 = vld [vmem:[%s30865_s0 + $0xa0] sm:$0xff]   ;;  %v24849_v29 = vld [vmem:[%s30865_s0 + $0xa8] sm:$0xff]  }
   0xb   :  { %21030 = vmatpush3.bf16.msra.mxu0 %v24822_v2  ;;  %v24850_v30 = vld [vmem:[%s30865_s0 + $0xb0] sm:$0xff]   ;;  %v24851_v31 = vld [vmem:[%s30865_s0 + $0xb8] sm:$0xff]   ;;  %v24852_v32 = vld [vmem:[%s30865_s0 + $0xc0] sm:$0xff]  }
   0xc   :  { %21031 = vmatprep.subr.bf16.mxu0 %v24823_v3  ;;  %v24853_v34 = vld [vmem:[%s30865_s0 + $0xc8] sm:$0xff]   ;;  %v24854_v35 = vld [vmem:[%s30865_s0 + $0xd0] sm:$0xff]   ;;  %v24855_v36 = vld [vmem:[%s30865_s0 + $0xd8] sm:$0xff]  }
   0xd   :  { %v24856_v37 = vld [vmem:[%s30865_s0 + $0xe0] sm:$0xff]   ;;  %v24857_v38 = vld [vmem:[%s30865_s0 + $0xe8] sm:$0xff]   ;;  %v24858_v39 = vld [vmem:[%s30865_s0 + $0xf0] sm:$0xff]  }
   0xe   :  { %v24859_v40 = vld [vmem:[%s30865_s0 + $0xf8] sm:$0xff]   ;;  %v24860_v41 = vld [vmem:[%s30865_s0 + $0x100] sm:$0xff]   ;;  %v24861_v42 = vld [vmem:[%s30865_s0 + $0x108] sm:$0xff]  }
   0xf   :  { %21032 = vmatpush3.bf16.msra.mxu0 %v24823_v3  ;;  %v24862_v43 = vld [vmem:[%s30865_s0 + $0x110] sm:$0xff]   ;;  %v24863_v44 = vld [vmem:[%s30865_s0 + $0x118] sm:$0xff]   ;;  %v24864_v45 = vld [vmem:[%s30865_s0 + $0x120] sm:$0xff]  }
  0x10   :  { %21033 = vmatprep.subr.bf16.mxu0 %v24824_v5  ;;  %v24865_v46 = vld [vmem:[%s30865_s0 + $0x128] sm:$0xff]   ;;  %v24866_v47 = vld [vmem:[%s30865_s0 + $0x130] sm:$0xff]   ;;  %v24867_v48 = vld [vmem:[%s30865_s0 + $0x138] sm:$0xff]  }
  0x11   :  { %v24868_v49 = vld [vmem:[%s30865_s0 + $0x140] sm:$0xff]   ;;  %v24869_v50 = vld [vmem:[%s30865_s0 + $0x148] sm:$0xff]   ;;  %v24870_v51 = vld [vmem:[%s30865_s0 + $0x150] sm:$0xff]  }
  0x12   :  { %v24871_v52 = vld [vmem:[%s30865_s0 + $0x158] sm:$0xff]   ;;  %v24872_v53 = vld [vmem:[%s30865_s0 + $0x160] sm:$0xff]   ;;  %v24873_v54 = vld [vmem:[%s30865_s0 + $0x168] sm:$0xff]  }
  0x13   :  { %21034 = vmatpush3.bf16.msra.mxu0 %v24824_v5  ;;  %v24874_v55 = vld [vmem:[%s30865_s0 + $0x170] sm:$0xff]   ;;  %v24888_v56 = vld [vmem:[%s30866_s4 + $0x40] sm:$0xff]   ;;  %v24875_v57 = vld [vmem:[%s30865_s0 + $0x178] sm:$0xff]  }
  0x14   :  { %21035 = vmatprep.subr.bf16.mxu0 %v24825_v6  ;;  %21297 = vmatprep.subr.bf16.mxu1 %v24888_v56  ;;  %v24889_v58 = vld [vmem:[%s30866_s4 + $0x48] sm:$0xff]   ;;  %v24876_v59 = vld [vmem:[%s30865_s0 + $0x180] sm:$0xff]   ;;  %v24890_v60 = vld [vmem:[%s30866_s4 + $0x50] sm:$0xff]  }
  0x15   :  { %21298 = vmatpush3.bf16.msra.mxu1 %v24888_v56  ;;  %v24877_v61 = vld [vmem:[%s30865_s0 + $0x188] sm:$0xff]   ;;  %v24891_v62 = vld [vmem:[%s30866_s4 + $0x58] sm:$0xff]   ;;  %v24878_v63 = vld [vmem:[%s30865_s0 + $0x190] sm:$0xff]  }
  0x16   :  { %21299 = vmatprep.subr.bf16.mxu1 %v24889_v58  ;;  %v24892_v0 = vld [vmem:[%s30866_s4 + $0x60] sm:$0xff]   ;;  %v24879_v1 = vld [vmem:[%s30865_s0 + $0x198] sm:$0xff]   ;;  %v24893_v2 = vld [vmem:[%s30866_s4 + $0x68] sm:$0xff]  }
  0x17   :  { %21036 = vmatpush3.bf16.msra.mxu0 %v24825_v6  ;;  %v24880_v3 = vld [vmem:[%s30865_s0 + $0x1a0] sm:$0xff]   ;;  %v24894_v4 = vld [vmem:[%s30866_s4 + $0x70] sm:$0xff]   ;;  %v24881_v5 = vld [vmem:[%s30865_s0 + $0x1a8] sm:$0xff]  }
  0x18   :  { %21037 = vmatprep.subr.bf16.mxu0 %v24826_v7  ;;  %v24895_v6 = vld [vmem:[%s30866_s4 + $0x78] sm:$0xff]  }
  0x19   :  { %21300 = vmatpush3.bf16.msra.mxu1 %v24889_v58 }
  0x1a   :  { %21301 = vmatprep.subr.bf16.mxu1 %v24890_v60 }
  0x1b   :  { %21038 = vmatpush3.bf16.msra.mxu0 %v24826_v7  ;;  %v24882_v7 = vld [vmem:[%s30865_s0 + $0x1b0] sm:$0xff]  }
  0x1c   :  { %21039 = vmatprep.subr.bf16.mxu0 %v24827_v8 }
  0x1d   :  { %21302 = vmatpush3.bf16.msra.mxu1 %v24890_v60 }
  0x1e   :  { %21303 = vmatprep.subr.bf16.mxu1 %v24891_v62 }
  0x1f   :  { %21040 = vmatpush3.bf16.msra.mxu0 %v24827_v8  ;;  %v25880_v8 = vld [vmem:[%s30867_s2] ss:$0 sm:$0xff] }
  0x20   :  { %22577 = vmatprep.subr.bf16.mxu0 %v30880_v33 }
  0x21   :  { %21304 = vmatpush3.bf16.msra.mxu1 %v24891_v62 }
  0x22   :  { %21042 = vmatmul.mubr.bf16.vlgmr.msra.gmra.mrb[0].mxu0 %v24829_v9  ;;  %21305 = vmatprep.subr.bf16.mxu1 %v24892_v0  ;;  %v30882_v9 = vmov 0.0|0.0  }
  0x23   :  { %21045 = vmatprep.mubr.bf16.mxu0 %v24830_v10  ;;  %21313 = vmatprep.mubr.bf16.mxu1 %v30882_v9  ;;  %v25887_v10 = vld [vmem:[%s30868_s3] ss:$0 sm:$0xff] }
  0x25   :  { %21306 = vmatpush3.bf16.msra.mxu1 %v24892_v0 }
  0x26   :  { %21307 = vmatprep.subr.bf16.mxu1 %v24893_v2 }
  0x29   :  { %21308 = vmatpush3.bf16.msra.mxu1 %v24893_v2 }
  0x2a   :  { %21046 = vmatmul.mubr.bf16.gmra.mrb[4].mxu0 %v24831_v11  ;;  %21309 = vmatprep.subr.bf16.mxu1 %v24894_v4  ;;  %v24896_v11 = vld [vmem:[%s30866_s4] sm:$0xff]  }
  0x2b   :  { %21049 = vmatprep.mubr.bf16.mxu0 %v24832_v12 }
  0x2d   :  { %21310 = vmatpush3.bf16.msra.mxu1 %v24894_v4 }
  0x2e   :  { %21311 = vmatprep.subr.bf16.mxu1 %v24895_v6 }
  0x31   :  { %21312 = vmatpush3.bf16.msra.mxu1 %v24895_v6 }
  0x32   :  { %21050 = vmatmul.mubr.bf16.gmra.mrb[8].mxu0 %v24833_v13  ;;  %21377 = vmatprep.subr.bf16.mxu1 %v24896_v11 }
  0x33   :  { %21053 = vmatprep.mubr.bf16.mxu0 %v24834_v14 }
  0x34   :  { %21314 = vmatmul.mubr.bf16.vlgmr.msra.gmra.mrb[0].mxu1 %v30882_v9 }
  0x35   :  { %21317 = vmatprep.mubr.bf16.mxu1 %v30882_v9  ;;  %21378 = vmatpush3.bf16.msra.mxu1 %v24896_v11 }
  0x3a   :  { %21054 = vmatmul.mubr.bf16.gmra.mrb[12].mxu0 %v24835_v15  ;;  %v24883_v15 = vld [vmem:[%s30865_s0 + $0x1b8] sm:$0xff]  }
  0x3b   :  { %21057 = vmatprep.mubr.bf16.mxu0 %v24836_v16 }
  0x3c   :  { %21318 = vmatmul.mubr.bf16.gmra.mrb[4].mxu1 %v30882_v9 }
  0x42   :  { %21058 = vmatmul.mubr.bf16.gmra.mrb[16].mxu0 %v24837_v17 }
  0x43   :  { %21061 = vmatprep.mubr.bf16.mxu0 %v24838_v18  ;;  %v24884_v18 = vld [vmem:[%s30865_s0 + $0x1c0] sm:$0xff]  }
  0x4a   :  { %21062 = vmatmul.mubr.bf16.gmra.mrb[20].mxu0 %v24839_v19 }
  0x4b   :  { %21065 = vmatprep.mubr.bf16.mxu0 %v24840_v20 }
  0x52   :  { %21066 = vmatmul.mubr.bf16.gmra.mrb[24].mxu0 %v24841_v21 }
  0x53   :  { %21069 = vmatprep.mubr.bf16.mxu0 %v24842_v22 }
  0x5a   :  { %21070 = vmatmul.mubr.bf16.gmra.mrb[28].mxu0 %v24843_v23 }
  0x5b   :  { %21073 = vmatprep.mubr.bf16.mxu0 %v24844_v24 }
  0x62   :  { %21074 = vmatmul.mubr.bf16.gmra.mrb[32].mxu0 %v24845_v25 }
  0x63   :  { %21077 = vmatprep.mubr.bf16.mxu0 %v24846_v26 }
  0x6a   :  { %21078 = vmatmul.mubr.bf16.gmra.mrb[36].mxu0 %v24847_v27 }
  0x6b   :  { %21081 = vmatprep.mubr.bf16.mxu0 %v24848_v28 }
  0x72   :  { %21082 = vmatmul.mubr.bf16.gmra.mrb[40].mxu0 %v24849_v29 }
  0x73   :  { %21085 = vmatprep.mubr.bf16.mxu0 %v24850_v30 }
  0x7a   :  { %21086 = vmatmul.mubr.bf16.gmra.mrb[44].mxu0 %v24851_v31 }
  0x7b   :  { %21089 = vmatprep.mubr.bf16.mxu0 %v24852_v32 }
  0x82   :  { %21090 = vmatmul.mubr.bf16.gmra.mrb[48].mxu0 %v24853_v34  ;;  %v24885_v34 = vld [vmem:[%s30865_s0 + $0x1c8] sm:$0xff]  }
  0x83   :  { %21093 = vmatprep.mubr.bf16.mxu0 %v24854_v35 }
  0x8a   :  { %21094 = vmatmul.mubr.bf16.gmra.mrb[52].mxu0 %v24855_v36 }
  0x8b   :  { %21097 = vmatprep.mubr.bf16.mxu0 %v24856_v37 }
  0x92   :  { %21098 = vmatmul.mubr.bf16.gmra.mrb[56].mxu0 %v24857_v38  ;;  %v24886_v38 = vld [vmem:[%s30865_s0 + $0x1d0] sm:$0xff]  }
  0x93   :  { %21101 = vmatprep.mubr.bf16.mxu0 %v24858_v39 }
  0x9a   :  { %21102 = vmatmul.mubr.bf16.gmra.mrb[60].mxu0 %v24859_v40 }
  0x9b   :  { %21105 = vmatprep.mubr.bf16.mxu0 %v24860_v41 }
  0xa2   :  { %21106 = vmatmul.mubr.bf16.gmra.mrb[64].mxu0 %v24861_v42 }
  0xa3   :  { %21109 = vmatprep.mubr.bf16.mxu0 %v24862_v43 }
  0xaa   :  { %21110 = vmatmul.mubr.bf16.gmra.mrb[68].mxu0 %v24863_v44 }
  0xab   :  { %21113 = vmatprep.mubr.bf16.mxu0 %v24864_v45 }
  0xb2   :  { %21114 = vmatmul.mubr.bf16.gmra.mrb[72].mxu0 %v24865_v46 }
  0xb3   :  { %21117 = vmatprep.mubr.bf16.mxu0 %v24866_v47 }
  0xba   :  { %21118 = vmatmul.mubr.bf16.gmra.mrb[76].mxu0 %v24867_v48  ;;  %v24897_v48 = vld [vmem:[%s30866_s4 + $0x8] sm:$0xff]  }
  0xbb   :  { %21121 = vmatprep.mubr.bf16.mxu0 %v24868_v49  ;;  %21379 = vmatprep.subr.bf16.mxu1 %v24897_v48 }
  0xbc   :  { %21380 = vmatpush3.bf16.msra.mxu1 %v24897_v48 }
  0xc2   :  { %21122 = vmatmul.mubr.bf16.gmra.mrb[80].mxu0 %v24869_v50 }
  0xc3   :  { %21125 = vmatprep.mubr.bf16.mxu0 %v24870_v51 }
  0xca   :  { %21126 = vmatmul.mubr.bf16.gmra.mrb[84].mxu0 %v24871_v52 }
  0xcb   :  { %21129 = vmatprep.mubr.bf16.mxu0 %v24872_v53 }
  0xd2   :  { %21130 = vmatmul.mubr.bf16.gmra.mrb[88].mxu0 %v24873_v54 }
  0xd3   :  { %21133 = vmatprep.mubr.bf16.mxu0 %v24874_v55 }
  0xda   :  { %21134 = vmatmul.mubr.bf16.gmra.mrb[92].mxu0 %v24875_v57  ;;  %v24887_v57 = vld [vmem:[%s30865_s0 + $0x1d8] sm:$0xff]  }
  0xdb   :  { %21137 = vmatprep.mubr.bf16.mxu0 %v24876_v59 }
  0xe2   :  { %21138 = vmatmul.mubr.bf16.gmra.mrb[96].mxu0 %v24877_v61 }
  0xe3   :  { %21141 = vmatprep.mubr.bf16.mxu0 %v24878_v63 }
  0xea   :  { %21142 = vmatmul.mubr.bf16.gmra.mrb[100].mxu0 %v24879_v1 }
  0xeb   :  { %21145 = vmatprep.mubr.bf16.mxu0 %v24880_v3 }
  0xf2   :  { %21146 = vmatmul.mubr.bf16.gmra.mrb[104].mxu0 %v24881_v5 }
  0xf3   :  { %21149 = vmatprep.mubr.bf16.mxu0 %v24882_v7 }
  0xf5   :  { %v21043_v12 = vpop.f32.mrb[0].mxu0 }
  0xf6   :  { %v2187_v13 = vmul.f32 %v21043_v12, %v25880_v8  ;;  %v1155_v14 = vpop.f32.mrb[1].mxu0 }
  0xf7   :  { %v2185_v16 = vmul.f32 %v25880_v8, %v1155_v14  ;;  %v21044_v17 = vpop.f32.mrb[2].mxu0 }
  0xf8   :  { %v2450_v19 = vadd.f32 %v25887_v10, %v2187_v13  ;;  %v2188_v20 = vmul.f32 %v21044_v17, %v25880_v8  ;;  %v1158_v21 = vpop.f32.mrb[3].mxu0 }
  0xf9   :  { %v25904_v22 = vadd.f32 %v25887_v10, %v2185_v16  ;;  %v2186_v23 = vmul.f32 %v25880_v8, %v1158_v21 }
  0xfa   :  { %v2451_v24 = vadd.f32 %v25887_v10, %v2188_v20  ;;  %21150 = vmatmul.mubr.bf16.gmra.mrb[108].mxu0 %v24883_v15  ;;  %v2706_v26 = vmax.f32 %v2450_v19, 0.0 }
  0xfb   :  { %v2449_v25 = vadd.f32 %v25887_v10, %v2186_v23  ;;  %21153 = vmatprep.mubr.bf16.mxu0 %v24884_v18  ;;  %v30879_v27 = vmax.f32 %v25904_v22, 0.0 }
  0xfc   :  { %v2707_v28 = vmax.f32 %v2451_v24, 0.0 }
  0xfd   :  { %v21047_v29 = vpop.f32.mrb[4].mxu0  ;;  %v2705_v30 = vmax.f32 %v2449_v25, 0.0 }
  0xfe   :  { %v2191_v31 = vmul.f32 %v21047_v29, %v25880_v8  ;;  %v1171_v32 = vpop.f32.mrb[5].mxu0  ;;  %v25915_v35 = vpack.c.bf16 %v2707_v28, %v2706_v26 }
  0xff   :  { %v2189_v36 = vmul.f32 %v25880_v8, %v1171_v32  ;;  %v21048_v37 = vpop.f32.mrb[6].mxu0  ;;  %v25921_v39 = vpack.c.bf16 %v2706_v26, %v2705_v30  ;;  %v25925_v40 = vpack.c.bf16 %v2705_v30, %v30879_v27  ;;  %v24898_v30 = vld [vmem:[%s30866_s4 + $0x10] sm:$0xff]  }
 0x100   :  { %31113 = vst [vmem:[#allocation3_spill] sm:$0xff] %v25915_v35  ;;  %v2454_v41 = vadd.f32 %v25887_v10, %v2191_v31  ;;  %v2192_v42 = vmul.f32 %v21048_v37, %v25880_v8  ;;  %v1174_v43 = vpop.f32.mrb[7].mxu0  ;;  %21381 = vmatprep.subr.bf16.mxu1 %v24898_v30 }
 0x101   :  { %31114 = vst [vmem:[#allocation4_spill] sm:$0xff] %v25921_v39  ;;  %31115 = vst [vmem:[#allocation5_spill] sm:$0xff] %v25925_v40  ;;  %v2452_v44 = vadd.f32 %v25887_v10, %v2189_v36  ;;  %v2190_v45 = vmul.f32 %v25880_v8, %v1174_v43  ;;  %21382 = vmatpush3.bf16.msra.mxu1 %v24898_v30 }
 0x102   :  { %v2455_v46 = vadd.f32 %v25887_v10, %v2192_v42  ;;  %21154 = vmatmul.mubr.bf16.gmra.mrb[112].mxu0 %v24885_v34  ;;  %v2710_v50 = vmax.f32 %v2454_v41, 0.0 }
 0x103   :  { %v2453_v47 = vadd.f32 %v25887_v10, %v2190_v45  ;;  %21157 = vmatprep.mubr.bf16.mxu0 %v24886_v38  ;;  %v2708_v49 = vmax.f32 %v2452_v44, 0.0 }
 0x104   :  { %v2711_v51 = vmax.f32 %v2455_v46, 0.0 }
 0x105   :  { %v21051_v52 = vpop.f32.mrb[8].mxu0  ;;  %v25936_v53 = vpack.c.bf16 %v2708_v49, %v2707_v28  ;;  %v2709_v54 = vmax.f32 %v2453_v47, 0.0 }
 0x106   :  { %v2195_v55 = vmul.f32 %v21051_v52, %v25880_v8  ;;  %v1187_v56 = vpop.f32.mrb[9].mxu0  ;;  %v25942_v58 = vpack.c.bf16 %v2711_v51, %v2710_v50 }
 0x107   :  { %31116 = vst [vmem:[#allocation6_spill] sm:$0xff] %v25936_v53  ;;  %v2193_v59 = vmul.f32 %v25880_v8, %v1187_v56  ;;  %v21052_v60 = vpop.f32.mrb[10].mxu0  ;;  %v25945_v61 = vpack.c.bf16 %v2710_v50, %v2709_v54  ;;  %v25947_v62 = vpack.c.bf16 %v2709_v54, %v2708_v49 }
 0x108   :  { %31117 = vst [vmem:[#allocation7_spill] sm:$0xff] %v25942_v58  ;;  %v2458_v63 = vadd.f32 %v25887_v10, %v2195_v55  ;;  %v2196_v0 = vmul.f32 %v21052_v60, %v25880_v8  ;;  %v1190_v1 = vpop.f32.mrb[11].mxu0 }
 0x109   :  { %31118 = vst [vmem:[#allocation8_spill] sm:$0xff] %v25945_v61  ;;  %31119 = vst [vmem:[#allocation9_spill] sm:$0xff] %v25947_v62  ;;  %v25952_v2 = vadd.f32 %v25887_v10, %v2193_v59  ;;  %v2194_v3 = vmul.f32 %v25880_v8, %v1190_v1 }
 0x10a   :  { %v2459_v4 = vadd.f32 %v25887_v10, %v2196_v0  ;;  %21158 = vmatmul.mubr.bf16.gmra.mrb[116].mxu0 %v24887_v57  ;;  %v2714_v6 = vmax.f32 %v2458_v63, 0.0 }
 0x10b   :  { %v2457_v5 = vadd.f32 %v25887_v10, %v2194_v3  ;;  %v30877_v7 = vmax.f32 %v25952_v2, 0.0 }
 0x10c   :  { %v2715_v11 = vmax.f32 %v2459_v4, 0.0 }
 0x10d   :  { %v21055_v12 = vpop.f32.mrb[12].mxu0  ;;  %v2713_v13 = vmax.f32 %v2457_v5, 0.0 }
 0x10e   :  { %v2199_v14 = vmul.f32 %v21055_v12, %v25880_v8  ;;  %v1203_v15 = vpop.f32.mrb[13].mxu0  ;;  %v25959_v16 = vpack.c.bf16 %v2715_v11, %v2714_v6 }
 0x10f   :  { %v2197_v17 = vmul.f32 %v25880_v8, %v1203_v15  ;;  %v21056_v18 = vpop.f32.mrb[14].mxu0  ;;  %v25962_v19 = vpack.c.bf16 %v2714_v6, %v2713_v13  ;;  %v25966_v20 = vpack.c.bf16 %v2713_v13, %v30877_v7 }
 0x110   :  { %31120 = vst [vmem:[#allocation10_spill] sm:$0xff] %v25959_v16  ;;  %v2462_v21 = vadd.f32 %v25887_v10, %v2199_v14  ;;  %v2200_v23 = vmul.f32 %v21056_v18, %v25880_v8  ;;  %v1206_v24 = vpop.f32.mrb[15].mxu0 }
 0x111   :  { %31121 = vst [vmem:[#allocation11_spill] sm:$0xff] %v25962_v19  ;;  %31122 = vst [vmem:[#allocation12_spill] sm:$0xff] %v25966_v20  ;;  %v2460_v25 = vadd.f32 %v25887_v10, %v2197_v17  ;;  %v2198_v26 = vmul.f32 %v25880_v8, %v1206_v24 }
 0x112   :  { %v2463_v28 = vadd.f32 %v25887_v10, %v2200_v23  ;;  %v2718_v32 = vmax.f32 %v2462_v21, 0.0  ;;  %v24899_v23 = vld [vmem:[%s30866_s4 + $0x18] sm:$0xff]  }
 0x113   :  { %v2461_v29 = vadd.f32 %v25887_v10, %v2198_v26  ;;  %v2716_v31 = vmax.f32 %v2460_v25, 0.0  ;;  %21383 = vmatprep.subr.bf16.mxu1 %v24899_v23 }
 0x114   :  { %v2719_v34 = vmax.f32 %v2463_v28, 0.0  ;;  %21384 = vmatpush3.bf16.msra.mxu1 %v24899_v23 }
 0x115   :  { %v21059_v36 = vpop.f32.mrb[16].mxu0  ;;  %v25977_v37 = vpack.c.bf16 %v2716_v31, %v2715_v11  ;;  %v2717_v38 = vmax.f32 %v2461_v29, 0.0 }
 0x116   :  { %v2203_v41 = vmul.f32 %v21059_v36, %v25880_v8  ;;  %v1219_v42 = vpop.f32.mrb[17].mxu0  ;;  %v25980_v43 = vpack.c.bf16 %v2719_v34, %v2718_v32 }
 0x117   :  { %31123 = vst [vmem:[#allocation13_spill] sm:$0xff] %v25977_v37  ;;  %v2201_v44 = vmul.f32 %v25880_v8, %v1219_v42  ;;  %v21060_v45 = vpop.f32.mrb[18].mxu0  ;;  %v25983_v46 = vpack.c.bf16 %v2718_v32, %v2717_v38  ;;  %v25985_v47 = vpack.c.bf16 %v2717_v38, %v2716_v31 }
 0x118   :  { %31124 = vst [vmem:[#allocation14_spill] sm:$0xff] %v25980_v43  ;;  %v2466_v48 = vadd.f32 %v25887_v10, %v2203_v41  ;;  %v2204_v49 = vmul.f32 %v21060_v45, %v25880_v8  ;;  %v1222_v50 = vpop.f32.mrb[19].mxu0 }
 0x119   :  { %31125 = vst [vmem:[#allocation15_spill] sm:$0xff] %v25983_v46  ;;  %31126 = vst [vmem:[#allocation16_spill] sm:$0xff] %v25985_v47  ;;  %v25990_v51 = vadd.f32 %v25887_v10, %v2201_v44  ;;  %v2202_v52 = vmul.f32 %v25880_v8, %v1222_v50 }
 0x11a   :  { %v2467_v54 = vadd.f32 %v25887_v10, %v2204_v49  ;;  %v2722_v56 = vmax.f32 %v2466_v48, 0.0 }
 0x11b   :  { %v2465_v55 = vadd.f32 %v25887_v10, %v2202_v52  ;;  %v30876_v57 = vmax.f32 %v25990_v51, 0.0 }
 0x11c   :  { %v2723_v59 = vmax.f32 %v2467_v54, 0.0 }
 0x11d   :  { %v21063_v60 = vpop.f32.mrb[20].mxu0  ;;  %v2721_v63 = vmax.f32 %v2465_v55, 0.0 }
 0x11e   :  { %v2207_v0 = vmul.f32 %v21063_v60, %v25880_v8  ;;  %v1235_v1 = vpop.f32.mrb[21].mxu0  ;;  %v25997_v3 = vpack.c.bf16 %v2723_v59, %v2722_v56 }
 0x11f   :  { %v2205_v4 = vmul.f32 %v25880_v8, %v1235_v1  ;;  %v21064_v5 = vpop.f32.mrb[22].mxu0  ;;  %v26000_v6 = vpack.c.bf16 %v2722_v56, %v2721_v63  ;;  %v26004_v11 = vpack.c.bf16 %v2721_v63, %v30876_v57 }
 0x120   :  { %31127 = vst [vmem:[#allocation17_spill] sm:$0xff] %v25997_v3  ;;  %v2470_v12 = vadd.f32 %v25887_v10, %v2207_v0  ;;  %v2208_v13 = vmul.f32 %v21064_v5, %v25880_v8  ;;  %v1238_v14 = vpop.f32.mrb[23].mxu0 }
 0x121   :  { %31128 = vst [vmem:[#allocation18_spill] sm:$0xff] %v26000_v6  ;;  %31129 = vst [vmem:[#allocation19_spill] sm:$0xff] %v26004_v11  ;;  %v2468_v15 = vadd.f32 %v25887_v10, %v2205_v4  ;;  %v2206_v17 = vmul.f32 %v25880_v8, %v1238_v14 }
 0x122   :  { %v2471_v18 = vadd.f32 %v25887_v10, %v2208_v13  ;;  %v2726_v25 = vmax.f32 %v2470_v12, 0.0 }
 0x123   :  { %v2469_v21 = vadd.f32 %v25887_v10, %v2206_v17  ;;  %v2724_v24 = vmax.f32 %v2468_v15, 0.0 }
 0x124   :  { %v2727_v26 = vmax.f32 %v2471_v18, 0.0 }
 0x125   :  { %v21067_v28 = vpop.f32.mrb[24].mxu0  ;;  %v26015_v29 = vpack.c.bf16 %v2724_v24, %v2723_v59  ;;  %v2725_v30 = vmax.f32 %v2469_v21, 0.0 }
 0x126   :  { %v2211_v31 = vmul.f32 %v21067_v28, %v25880_v8  ;;  %v1251_v32 = vpop.f32.mrb[25].mxu0  ;;  %v26018_v34 = vpack.c.bf16 %v2727_v26, %v2726_v25  ;;  %v24900_v26 = vld [vmem:[%s30866_s4 + $0x20] sm:$0xff]  }
 0x127   :  { %31130 = vst [vmem:[#allocation20_spill] sm:$0xff] %v26015_v29  ;;  %v2209_v36 = vmul.f32 %v25880_v8, %v1251_v32  ;;  %v21068_v38 = vpop.f32.mrb[26].mxu0  ;;  %v26021_v41 = vpack.c.bf16 %v2726_v25, %v2725_v30  ;;  %v26023_v42 = vpack.c.bf16 %v2725_v30, %v2724_v24  ;;  %21385 = vmatprep.subr.bf16.mxu1 %v24900_v26 }
 0x128   :  { %31131 = vst [vmem:[#allocation21_spill] sm:$0xff] %v26018_v34  ;;  %v2474_v44 = vadd.f32 %v25887_v10, %v2211_v31  ;;  %v2212_v45 = vmul.f32 %v21068_v38, %v25880_v8  ;;  %v1254_v48 = vpop.f32.mrb[27].mxu0  ;;  %21386 = vmatpush3.bf16.msra.mxu1 %v24900_v26 }
 0x129   :  { %31132 = vst [vmem:[#allocation22_spill] sm:$0xff] %v26021_v41  ;;  %31133 = vst [vmem:[#allocation23_spill] sm:$0xff] %v26023_v42  ;;  %v26028_v49 = vadd.f32 %v25887_v10, %v2209_v36  ;;  %v2210_v50 = vmul.f32 %v25880_v8, %v1254_v48 }
 0x12a   :  { %v2475_v52 = vadd.f32 %v25887_v10, %v2212_v45  ;;  %v2730_v55 = vmax.f32 %v2474_v44, 0.0 }
 0x12b   :  { %v2473_v54 = vadd.f32 %v25887_v10, %v2210_v50  ;;  %v30875_v56 = vmax.f32 %v26028_v49, 0.0 }
 0x12c   :  { %v2731_v59 = vmax.f32 %v2475_v52, 0.0 }
 0x12d   :  { %v21071_v60 = vpop.f32.mrb[28].mxu0  ;;  %v2729_v63 = vmax.f32 %v2473_v54, 0.0 }
 0x12e   :  { %v2215_v0 = vmul.f32 %v21071_v60, %v25880_v8  ;;  %v1267_v1 = vpop.f32.mrb[29].mxu0  ;;  %v26035_v4 = vpack.c.bf16 %v2731_v59, %v2730_v55 }
 0x12f   :  { %v2213_v5 = vmul.f32 %v25880_v8, %v1267_v1  ;;  %v21072_v12 = vpop.f32.mrb[30].mxu0  ;;  %v26038_v13 = vpack.c.bf16 %v2730_v55, %v2729_v63  ;;  %v26042_v14 = vpack.c.bf16 %v2729_v63, %v30875_v56 }
 0x130   :  { %31134 = vst [vmem:[#allocation24_spill] sm:$0xff] %v26035_v4  ;;  %v2478_v15 = vadd.f32 %v25887_v10, %v2215_v0  ;;  %v2216_v17 = vmul.f32 %v21072_v12, %v25880_v8  ;;  %v1270_v18 = vpop.f32.mrb[31].mxu0 }
 0x131   :  { %31135 = vst [vmem:[#allocation25_spill] sm:$0xff] %v26038_v13  ;;  %31136 = vst [vmem:[#allocation26_spill] sm:$0xff] %v26042_v14  ;;  %v2476_v21 = vadd.f32 %v25887_v10, %v2213_v5  ;;  %v2214_v23 = vmul.f32 %v25880_v8, %v1270_v18 }
 0x132   :  { %v2479_v24 = vadd.f32 %v25887_v10, %v2216_v17  ;;  %v2734_v30 = vmax.f32 %v2478_v15, 0.0 }
 0x133   :  { %v2477_v25 = vadd.f32 %v25887_v10, %v2214_v23  ;;  %v2732_v28 = vmax.f32 %v2476_v21, 0.0 }
 0x134   :  { %v2735_v31 = vmax.f32 %v2479_v24, 0.0 }
 0x135   :  { %v21075_v32 = vpop.f32.mrb[32].mxu0  ;;  %v26053_v36 = vpack.c.bf16 %v2732_v28, %v2731_v59  ;;  %v2733_v38 = vmax.f32 %v2477_v25, 0.0 }
 0x136   :  { %v2219_v44 = vmul.f32 %v21075_v32, %v25880_v8  ;;  %v1283_v45 = vpop.f32.mrb[33].mxu0  ;;  %v26056_v48 = vpack.c.bf16 %v2735_v31, %v2734_v30 }
 0x137   :  { %31137 = vst [vmem:[#allocation27_spill] sm:$0xff] %v26053_v36  ;;  %v2217_v50 = vmul.f32 %v25880_v8, %v1283_v45  ;;  %v21076_v52 = vpop.f32.mrb[34].mxu0  ;;  %v26059_v54 = vpack.c.bf16 %v2734_v30, %v2733_v38  ;;  %v26061_v55 = vpack.c.bf16 %v2733_v38, %v2732_v28 }
 0x138   :  { %31138 = vst [vmem:[#allocation28_spill] sm:$0xff] %v26056_v48  ;;  %v2482_v60 = vadd.f32 %v25887_v10, %v2219_v44  ;;  %v2220_v63 = vmul.f32 %v21076_v52, %v25880_v8  ;;  %v1286_v59 = vpop.f32.mrb[35].mxu0 }
 0x139   :  { %31139 = vst [vmem:[#allocation29_spill] sm:$0xff] %v26059_v54  ;;  %31140 = vst [vmem:[#allocation30_spill] sm:$0xff] %v26061_v55  ;;  %v26066_v0 = vadd.f32 %v25887_v10, %v2217_v50  ;;  %v2218_v1 = vmul.f32 %v25880_v8, %v1286_v59  ;;  %v24901_v59 = vld [vmem:[%s30866_s4 + $0x28] sm:$0xff]  }
 0x13a   :  { %v2483_v5 = vadd.f32 %v25887_v10, %v2220_v63  ;;  %v2738_v15 = vmax.f32 %v2482_v60, 0.0  ;;  %21387 = vmatprep.subr.bf16.mxu1 %v24901_v59 }
 0x13b   :  { %v2481_v12 = vadd.f32 %v25887_v10, %v2218_v1  ;;  %v30874_v17 = vmax.f32 %v26066_v0, 0.0  ;;  %21388 = vmatpush3.bf16.msra.mxu1 %v24901_v59 }
 0x13c   :  { %v2739_v18 = vmax.f32 %v2483_v5, 0.0 }
 0x13d   :  { %v21079_v21 = vpop.f32.mrb[36].mxu0  ;;  %v2737_v23 = vmax.f32 %v2481_v12, 0.0 }
 0x13e   :  { %v2223_v24 = vmul.f32 %v21079_v21, %v25880_v8  ;;  %v1299_v25 = vpop.f32.mrb[37].mxu0  ;;  %v26073_v26 = vpack.c.bf16 %v2739_v18, %v2738_v15 }
 0x13f   :  { %v2221_v28 = vmul.f32 %v25880_v8, %v1299_v25  ;;  %v21080_v30 = vpop.f32.mrb[38].mxu0  ;;  %v26076_v31 = vpack.c.bf16 %v2738_v15, %v2737_v23  ;;  %v26080_v32 = vpack.c.bf16 %v2737_v23, %v30874_v17 }
 0x140   :  { %31141 = vst [vmem:[#allocation31_spill] sm:$0xff] %v26073_v26  ;;  %v2486_v38 = vadd.f32 %v25887_v10, %v2223_v24  ;;  %v2224_v44 = vmul.f32 %v21080_v30, %v25880_v8  ;;  %v1302_v45 = vpop.f32.mrb[39].mxu0 }
 0x141   :  { %31142 = vst [vmem:[#allocation32_spill] sm:$0xff] %v26076_v31  ;;  %31143 = vst [vmem:[#allocation33_spill] sm:$0xff] %v26080_v32  ;;  %v2484_v50 = vadd.f32 %v25887_v10, %v2221_v28  ;;  %v2222_v52 = vmul.f32 %v25880_v8, %v1302_v45 }
 0x142   :  { %v2487_v60 = vadd.f32 %v25887_v10, %v2224_v44  ;;  %v2742_v5 = vmax.f32 %v2486_v38, 0.0 }
 0x143   :  { %v2485_v63 = vadd.f32 %v25887_v10, %v2222_v52  ;;  %v2740_v1 = vmax.f32 %v2484_v50, 0.0 }
 0x144   :  { %v2743_v12 = vmax.f32 %v2487_v60, 0.0 }
 0x145   :  { %v21083_v15 = vpop.f32.mrb[40].mxu0  ;;  %v26091_v21 = vpack.c.bf16 %v2740_v1, %v2739_v18  ;;  %v2741_v23 = vmax.f32 %v2485_v63, 0.0 }
 0x146   :  { %v2227_v24 = vmul.f32 %v21083_v15, %v25880_v8  ;;  %v1315_v25 = vpop.f32.mrb[41].mxu0  ;;  %v26094_v28 = vpack.c.bf16 %v2743_v12, %v2742_v5 }
 0x147   :  { %31144 = vst [vmem:[#allocation34_spill] sm:$0xff] %v26091_v21  ;;  %v2225_v30 = vmul.f32 %v25880_v8, %v1315_v25  ;;  %v21084_v44 = vpop.f32.mrb[42].mxu0  ;;  %v26097_v45 = vpack.c.bf16 %v2742_v5, %v2741_v23  ;;  %v26099_v52 = vpack.c.bf16 %v2741_v23, %v2740_v1 }
 0x148   :  { %31145 = vst [vmem:[#allocation35_spill] sm:$0xff] %v26094_v28  ;;  %v2490_v38 = vadd.f32 %v25887_v10, %v2227_v24  ;;  %v2228_v50 = vmul.f32 %v21084_v44, %v25880_v8  ;;  %v1318_v18 = vpop.f32.mrb[43].mxu0 }
 0x149   :  { %31146 = vst [vmem:[#allocation36_spill] sm:$0xff] %v26097_v45  ;;  %31147 = vst [vmem:[#allocation37_spill] sm:$0xff] %v26099_v52  ;;  %v26104_v60 = vadd.f32 %v25887_v10, %v2225_v30  ;;  %v2226_v63 = vmul.f32 %v25880_v8, %v1318_v18 }
 0x14a   :  { %v2491_v59 = vadd.f32 %v25887_v10, %v2228_v50  ;;  %v2746_v15 = vmax.f32 %v2490_v38, 0.0 }
 0x14b   :  { %v2489_v12 = vadd.f32 %v25887_v10, %v2226_v63  ;;  %v30878_v1 = vmax.f32 %v26104_v60, 0.0 }
 0x14c   :  { %v2747_v25 = vmax.f32 %v2491_v59, 0.0 }
 0x14d   :  { %v21087_v5 = vpop.f32.mrb[44].mxu0  ;;  %v2745_v23 = vmax.f32 %v2489_v12, 0.0 }
 0x14e   :  { %v2231_v24 = vmul.f32 %v21087_v5, %v25880_v8  ;;  %v1331_v17 = vpop.f32.mrb[45].mxu0  ;;  %v26111_v44 = vpack.c.bf16 %v2747_v25, %v2746_v15 }
 0x14f   :  { %v2229_v30 = vmul.f32 %v25880_v8, %v1331_v17  ;;  %v21088_v56 = vpop.f32.mrb[46].mxu0  ;;  %v26114_v57 = vpack.c.bf16 %v2746_v15, %v2745_v23  ;;  %v26118_v50 = vpack.c.bf16 %v2745_v23, %v30878_v1  ;;  %v24902_v15 = vld [vmem:[%s30866_s4 + $0x30] sm:$0xff]  }
 0x150   :  { %31148 = vst [vmem:[#allocation38_spill] sm:$0xff] %v26111_v44  ;;  %v2494_v38 = vadd.f32 %v25887_v10, %v2231_v24  ;;  %v2232_v18 = vmul.f32 %v21088_v56, %v25880_v8  ;;  %v1334_v63 = vpop.f32.mrb[47].mxu0  ;;  %21389 = vmatprep.subr.bf16.mxu1 %v24902_v15 }
 0x151   :  { %31149 = vst [vmem:[#allocation39_spill] sm:$0xff] %v26114_v57  ;;  %31150 = vst [vmem:[#allocation40_spill] sm:$0xff] %v26118_v50  ;;  %v2492_v59 = vadd.f32 %v25887_v10, %v2229_v30  ;;  %v2230_v12 = vmul.f32 %v25880_v8, %v1334_v63  ;;  %21390 = vmatpush3.bf16.msra.mxu1 %v24902_v15 }
 0x152   :  { %v2495_v5 = vadd.f32 %v25887_v10, %v2232_v18  ;;  %v2750_v23 = vmax.f32 %v2494_v38, 0.0 }
 0x153   :  { %v2493_v17 = vadd.f32 %v25887_v10, %v2230_v12  ;;  %v2748_v7 = vmax.f32 %v2492_v59, 0.0 }
 0x154   :  { %v2751_v1 = vmax.f32 %v2495_v5, 0.0 }
 0x155   :  { %v21091_v27 = vpop.f32.mrb[48].mxu0  ;;  %v26129_v24 = vpack.c.bf16 %v2748_v7, %v2747_v25  ;;  %v2749_v56 = vmax.f32 %v2493_v17, 0.0 }
 0x156   :  { %v2235_v30 = vmul.f32 %v21091_v27, %v25880_v8  ;;  %v1347_v33 = vpop.f32.mrb[49].mxu0  ;;  %v26132_v63 = vpack.c.bf16 %v2751_v1, %v2750_v23 }
 0x157   :  { %31151 = vst [vmem:[#allocation41_spill] sm:$0xff] %v26129_v24  ;;  %v2233_v18 = vmul.f32 %v25880_v8, %v1347_v33  ;;  %v21092_v12 = vpop.f32.mrb[50].mxu0  ;;  %v26135_v9 = vpack.c.bf16 %v2750_v23, %v2749_v56  ;;  %v26137_v44 = vpack.c.bf16 %v2749_v56, %v2748_v7 }
 0x158   :  { %31152 = vst [vmem:[#allocation42_spill] sm:$0xff] %v26132_v63  ;;  %v2498_v38 = vadd.f32 %v25887_v10, %v2235_v30  ;;  %v2236_v59 = vmul.f32 %v21092_v12, %v25880_v8  ;;  %v1350_v25 = vpop.f32.mrb[51].mxu0 }
 0x159   :  { %31153 = vst [vmem:[#allocation43_spill] sm:$0xff] %v26135_v9  ;;  %31154 = vst [vmem:[#allocation44_spill] sm:$0xff] %v26137_v44  ;;  %v26142_v5 = vadd.f32 %v25887_v10, %v2233_v18  ;;  %v2234_v27 = vmul.f32 %v25880_v8, %v1350_v25 }
 0x15a   :  { %v2499_v1 = vadd.f32 %v25887_v10, %v2236_v59  ;;  %v2754_v33 = vmax.f32 %v2498_v38, 0.0 }
 0x15b   :  { %v2497_v17 = vadd.f32 %v25887_v10, %v2234_v27  ;;  %v30889_v7 = vmax.f32 %v26142_v5, 0.0 }
 0x15c   :  { %v2755_v15 = vmax.f32 %v2499_v1, 0.0 }
 0x15d   :  { %v21095_v23 = vpop.f32.mrb[52].mxu0  ;;  %v2753_v56 = vmax.f32 %v2497_v17, 0.0 }
 0x15e   :  { %v2239_v30 = vmul.f32 %v21095_v23, %v25880_v8  ;;  %v1363_v63 = vpop.f32.mrb[53].mxu0  ;;  %v26149_v12 = vpack.c.bf16 %v2755_v15, %v2754_v33 }
 0x15f   :  { %v2237_v18 = vmul.f32 %v25880_v8, %v1363_v63  ;;  %v21096_v44 = vpop.f32.mrb[54].mxu0  ;;  %v26152_v50 = vpack.c.bf16 %v2754_v33, %v2753_v56  ;;  %v26156_v59 = vpack.c.bf16 %v2753_v56, %v30889_v7  ;;  %v24903_v33 = vld [vmem:[%s30866_s4 + $0x38] sm:$0xff]  }
 0x160   :  { %31155 = vst [vmem:[#allocation45_spill] sm:$0xff] %v26149_v12  ;;  %v2502_v38 = vadd.f32 %v25887_v10, %v2239_v30  ;;  %v2240_v25 = vmul.f32 %v21096_v44, %v25880_v8  ;;  %v1366_v27 = vpop.f32.mrb[55].mxu0  ;;  %21391 = vmatprep.subr.bf16.mxu1 %v24903_v33 }
 0x161   :  { %31156 = vst [vmem:[#allocation46_spill] sm:$0xff] %v26152_v50  ;;  %31157 = vst [vmem:[#allocation47_spill] sm:$0xff] %v26156_v59  ;;  %v2500_v1 = vadd.f32 %v25887_v10, %v2237_v18  ;;  %v2238_v17 = vmul.f32 %v25880_v8, %v1366_v27  ;;  %21392 = vmatpush3.bf16.msra.mxu1 %v24903_v33 }
 0x162   :  { %v2503_v23 = vadd.f32 %v25887_v10, %v2240_v25  ;;  %v2758_v56 = vmax.f32 %v2502_v38, 0.0 }
 0x163   :  { %v2501_v63 = vadd.f32 %v25887_v10, %v2238_v17  ;;  %v2756_v12 = vmax.f32 %v2500_v1, 0.0 }
 0x164   :  { %v2759_v7 = vmax.f32 %v2503_v23, 0.0 }
 0x165   :  { %v21099_v59 = vpop.f32.mrb[56].mxu0  ;;  %v26167_v30 = vpack.c.bf16 %v2756_v12, %v2755_v15  ;;  %v2757_v44 = vmax.f32 %v2501_v63, 0.0 }
 0x166   :  { %v2243_v18 = vmul.f32 %v21099_v59, %v25880_v8  ;;  %v1379_v28 = vpop.f32.mrb[57].mxu0  ;;  %v26170_v27 = vpack.c.bf16 %v2759_v7, %v2758_v56 }
 0x167   :  { %31158 = vst [vmem:[#allocation48_spill] sm:$0xff] %v26167_v30  ;;  %v2241_v25 = vmul.f32 %v25880_v8, %v1379_v28  ;;  %v21100_v17 = vpop.f32.mrb[58].mxu0  ;;  %v26173_v52 = vpack.c.bf16 %v2758_v56, %v2757_v44  ;;  %v26175_v26 = vpack.c.bf16 %v2757_v44, %v2756_v12  ;;  %v26188_v28 = vld [vmem:[%s30866_s4 + $0x80] sm:$0xff]  }
 0x168   :  { %31159 = vst [vmem:[#allocation49_spill] sm:$0xff] %v26170_v27  ;;  %v2506_v38 = vadd.f32 %v25887_v10, %v2243_v18  ;;  %v2244_v1 = vmul.f32 %v21100_v17, %v25880_v8  ;;  %v1382_v15 = vpop.f32.mrb[59].mxu0  ;;  %21457 = vmatprep.subr.bf16.mxu1 %v26188_v28 }
 0x169   :  { %31160 = vst [vmem:[#allocation50_spill] sm:$0xff] %v26173_v52  ;;  %31161 = vst [vmem:[#allocation51_spill] sm:$0xff] %v26175_v26  ;;  %v26180_v23 = vadd.f32 %v25887_v10, %v2241_v25  ;;  %v2242_v59 = vmul.f32 %v25880_v8, %v1382_v15 }
 0x16a   :  { %v2507_v7 = vadd.f32 %v25887_v10, %v2244_v1  ;;  %v2762_v12 = vmax.f32 %v2506_v38, 0.0 }
 0x16b   :  { %31162 = vst [vmem:[#allocation52_spill] sm:$0xff] %v26180_v23  ;;  %v2505_v63 = vadd.f32 %v25887_v10, %v2242_v59  ;;  %v30900_v44 = vmax.f32 %v26180_v23, 0.0 }
 0x16c   :  { %v2763_v33 = vmax.f32 %v2507_v7, 0.0 }
 0x16d   :  { %v21103_v56 = vpop.f32.mrb[60].mxu0  ;;  %v2761_v18 = vmax.f32 %v2505_v63, 0.0 }
 0x16e   :  { %v2247_v25 = vmul.f32 %v21103_v56, %v25880_v8  ;;  %v1395_v17 = vpop.f32.mrb[61].mxu0  ;;  %v26193_v15 = vpack.c.bf16 %v2763_v33, %v2762_v12 }
 0x16f   :  { %v2245_v1 = vmul.f32 %v25880_v8, %v1395_v17  ;;  %v21104_v59 = vpop.f32.mrb[62].mxu0  ;;  %v26196_v27 = vpack.c.bf16 %v2762_v12, %v2761_v18  ;;  %v26200_v38 = vpack.c.bf16 %v2761_v18, %v30900_v44 }
 0x170   :  { %31163 = vst [vmem:[#allocation53_spill] sm:$0xff] %v26193_v15  ;;  %v2510_v7 = vadd.f32 %v25887_v10, %v2247_v25  ;;  %v2248_v26 = vmul.f32 %v21104_v59, %v25880_v8  ;;  %v1398_v32 = vpop.f32.mrb[63].mxu0  ;;  %v26213_v25 = vld [vmem:[%s30867_s2] ss:$0 sm:$0xff] }
 0x171   :  { %31164 = vst [vmem:[#allocation54_spill] sm:$0xff] %v26196_v27  ;;  %31165 = vst [vmem:[#allocation55_spill] sm:$0xff] %v26200_v38  ;;  %v2508_v63 = vadd.f32 %v25887_v10, %v2245_v1  ;;  %v2246_v56 = vmul.f32 %v25880_v8, %v1398_v32 }
 0x172   :  { %v2511_v15 = vadd.f32 %v25887_v10, %v2248_v26  ;;  %v2766_v12 = vmax.f32 %v2510_v7, 0.0 }
 0x173   :  { %v2509_v17 = vadd.f32 %v25887_v10, %v2246_v56  ;;  %v2764_v48 = vmax.f32 %v2508_v63, 0.0 }
 0x174   :  { %v2767_v27 = vmax.f32 %v2511_v15, 0.0 }
 0x175   :  { %v21107_v55 = vpop.f32.mrb[64].mxu0  ;;  %v26208_v23 = vpack.c.bf16 %v2764_v48, %v2763_v33  ;;  %v2765_v18 = vmax.f32 %v2509_v17, 0.0  ;;  %v26226_v33 = vld [vmem:[%s30868_s3] ss:$0 sm:$0xff] }
 0x176   :  { %v2251_v1 = vmul.f32 %v26213_v25, %v21107_v55  ;;  %v1411_v59 = vpop.f32.mrb[65].mxu0  ;;  %v26216_v8 = vpack.c.bf16 %v2767_v27, %v2766_v12 }
 0x177   :  { %31166 = vst [vmem:[#allocation56_spill] sm:$0xff] %v26208_v23  ;;  %v2249_v26 = vmul.f32 %v26213_v25, %v1411_v59  ;;  %v21108_v10 = vpop.f32.mrb[66].mxu0  ;;  %v26219_v32 = vpack.c.bf16 %v2766_v12, %v2765_v18  ;;  %v26221_v15 = vpack.c.bf16 %v2765_v18, %v2764_v48 }
 0x178   :  { %31167 = vst [vmem:[#allocation57_spill] sm:$0xff] %v26216_v8  ;;  %v2514_v7 = vadd.f32 %v26226_v33, %v2251_v1  ;;  %v2252_v63 = vmul.f32 %v26213_v25, %v21108_v10  ;;  %v1414_v55 = vpop.f32.mrb[67].mxu0 }
 0x179   :  { %31168 = vst [vmem:[#allocation58_spill] sm:$0xff] %v26219_v32  ;;  %31169 = vst [vmem:[#allocation59_spill] sm:$0xff] %v26221_v15  ;;  %v2512_v27 = vadd.f32 %v26226_v33, %v2249_v26  ;;  %v2250_v56 = vmul.f32 %v26213_v25, %v1414_v55 }
 0x17a   :  { %v2515_v17 = vadd.f32 %v26226_v33, %v2252_v63  ;;  %v2770_v48 = vmax.f32 %v2514_v7, 0.0 }
 0x17b   :  { %v2513_v12 = vadd.f32 %v26226_v33, %v2250_v56  ;;  %v2768_v44 = vmax.f32 %v2512_v27, 0.0 }
 0x17c   :  { %v2771_v18 = vmax.f32 %v2515_v17, 0.0 }
 0x17d   :  { %v21111_v59 = vpop.f32.mrb[68].mxu0  ;;  %v2769_v8 = vmax.f32 %v2513_v12, 0.0 }
 0x17e   :  { %v2255_v15 = vmul.f32 %v26213_v25, %v21111_v59  ;;  %v1427_v38 = vpop.f32.mrb[69].mxu0  ;;  %v26235_v1 = vpack.c.bf16 %v2771_v18, %v2770_v48 }
 0x17f   :  { %v2253_v10 = vmul.f32 %v26213_v25, %v1427_v38  ;;  %v21112_v32 = vpop.f32.mrb[70].mxu0  ;;  %v26238_v26 = vpack.c.bf16 %v2769_v8, %v2768_v44  ;;  %v26240_v55 = vpack.c.bf16 %v2770_v48, %v2769_v8 }
 0x180   :  { %31170 = vst [vmem:[#allocation60_spill] sm:$0xff] %v26235_v1  ;;  %v2518_v63 = vadd.f32 %v26226_v33, %v2255_v15  ;;  %v2256_v7 = vmul.f32 %v26213_v25, %v21112_v32  ;;  %v1430_v56 = vpop.f32.mrb[71].mxu0 }
 0x181   :  { %31171 = vst [vmem:[#allocation61_spill] sm:$0xff] %v26238_v26  ;;  %31172 = vst [vmem:[#allocation62_spill] sm:$0xff] %v26240_v55  ;;  %v2516_v27 = vadd.f32 %v26226_v33, %v2253_v10  ;;  %v2254_v17 = vmul.f32 %v26213_v25, %v1430_v56  ;;  %21321 = vmatprep.mubr.bf16.mxu1 %v26238_v26 }
 0x182   :  { %v26248_v12 = vadd.f32 %v26226_v33, %v2256_v7  ;;  %21322 = vmatmul.mubr.bf16.gmra.mrb[8].mxu1 %v26235_v1  ;;  %v2774_v8 = vmax.f32 %v2518_v63, 0.0 }
 0x183   :  { %v2517_v44 = vadd.f32 %v26226_v33, %v2254_v17  ;;  %v2772_v38 = vmax.f32 %v2516_v27, 0.0 }
 0x184   :  { %31173 = vst [vmem:[#allocation63_spill] sm:$0xff] %v26248_v12  ;;  %v30903_v15 = vmax.f32 %v26248_v12, 0.0 }
 0x185   :  { %v21115_v48 = vpop.f32.mrb[72].mxu0  ;;  %v2773_v32 = vmax.f32 %v2517_v44, 0.0  ;;  %v26253_v59 = vpack.c.bf16 %v2772_v38, %v2771_v18 }
 0x186   :  { %v2259_v10 = vmul.f32 %v26213_v25, %v21115_v48  ;;  %v1443_v56 = vpop.f32.mrb[73].mxu0  ;;  %v26258_v26 = vpack.c.bf16 %v30903_v15, %v2774_v8 }
 0x187   :  { %31174 = vst [vmem:[#allocation64_spill] sm:$0xff] %v26253_v59  ;;  %v2257_v7 = vmul.f32 %v26213_v25, %v1443_v56  ;;  %v21116_v1 = vpop.f32.mrb[74].mxu0  ;;  %v26261_v23 = vpack.c.bf16 %v2773_v32, %v2772_v38  ;;  %v26263_v27 = vpack.c.bf16 %v2774_v8, %v2773_v32 }
 0x188   :  { %31175 = vst [vmem:[#allocation65_spill] sm:$0xff] %v26258_v26  ;;  %v2522_v63 = vadd.f32 %v26226_v33, %v2259_v10  ;;  %v2260_v17 = vmul.f32 %v26213_v25, %v21116_v1  ;;  %v1446_v18 = vpop.f32.mrb[75].mxu0 }
 0x189   :  { %31176 = vst [vmem:[#allocation66_spill] sm:$0xff] %v26261_v23  ;;  %31177 = vst [vmem:[#allocation67_spill] sm:$0xff] %v26263_v27  ;;  %v2520_v44 = vadd.f32 %v26226_v33, %v2257_v7  ;;  %v2258_v48 = vmul.f32 %v26213_v25, %v1446_v18  ;;  %21325 = vmatprep.mubr.bf16.mxu1 %v26261_v23 }
 0x18a   :  { %v2523_v15 = vadd.f32 %v26226_v33, %v2260_v17  ;;  %21326 = vmatmul.mubr.bf16.gmra.mrb[12].mxu1 %v26258_v26  ;;  %v2778_v56 = vmax.f32 %v2522_v63, 0.0 }
 0x18b   :  { %v2521_v38 = vadd.f32 %v26226_v33, %v2258_v48  ;;  %v2776_v12 = vmax.f32 %v2520_v44, 0.0 }
 0x18c   :  { %v2779_v8 = vmax.f32 %v2523_v15, 0.0 }
 0x18d   :  { %v21119_v32 = vpop.f32.mrb[76].mxu0  ;;  %v2777_v10 = vmax.f32 %v2521_v38, 0.0 }
 0x18e   :  { %v2263_v1 = vmul.f32 %v26213_v25, %v21119_v32  ;;  %v1459_v27 = vpop.f32.mrb[77].mxu0  ;;  %v26274_v59 = vpack.c.bf16 %v2779_v8, %v2778_v56 }
 0x18f   :  { %v2261_v7 = vmul.f32 %v26213_v25, %v1459_v27  ;;  %v21120_v18 = vpop.f32.mrb[78].mxu0  ;;  %v26277_v23 = vpack.c.bf16 %v2777_v10, %v2776_v12  ;;  %v26279_v17 = vpack.c.bf16 %v2778_v56, %v2777_v10 }
 0x190   :  { %31178 = vst [vmem:[#allocation68_spill] sm:$0xff] %v26274_v59  ;;  %v2526_v26 = vadd.f32 %v26226_v33, %v2263_v1  ;;  %v2264_v63 = vmul.f32 %v26213_v25, %v21120_v18  ;;  %v1462_v15 = vpop.f32.mrb[79].mxu0 }
 0x191   :  { %31179 = vst [vmem:[#allocation69_spill] sm:$0xff] %v26277_v23  ;;  %31180 = vst [vmem:[#allocation70_spill] sm:$0xff] %v26279_v17  ;;  %v2524_v44 = vadd.f32 %v26226_v33, %v2261_v7  ;;  %v2262_v48 = vmul.f32 %v26213_v25, %v1462_v15  ;;  %21329 = vmatprep.mubr.bf16.mxu1 %v26277_v23 }
 0x192   :  { %v26287_v38 = vadd.f32 %v26226_v33, %v2264_v63  ;;  %21330 = vmatmul.mubr.bf16.gmra.mrb[16].mxu1 %v26274_v59  ;;  %v2782_v56 = vmax.f32 %v2526_v26, 0.0 }
 0x193   :  { %v2525_v12 = vadd.f32 %v26226_v33, %v2262_v48  ;;  %v2780_v27 = vmax.f32 %v2524_v44, 0.0 }
 0x194   :  { %31181 = vst [vmem:[#allocation71_spill] sm:$0xff] %v26287_v38  ;;  %v30912_v32 = vmax.f32 %v26287_v38, 0.0 }
 0x195   :  { %v21123_v10 = vpop.f32.mrb[80].mxu0  ;;  %v2781_v1 = vmax.f32 %v2525_v12, 0.0  ;;  %v26292_v18 = vpack.c.bf16 %v2780_v27, %v2779_v8 }
 0x196   :  { %v2267_v7 = vmul.f32 %v26213_v25, %v21123_v10  ;;  %v1475_v15 = vpop.f32.mrb[81].mxu0  ;;  %v26297_v23 = vpack.c.bf16 %v30912_v32, %v2782_v56 }
 0x197   :  { %31182 = vst [vmem:[#allocation72_spill] sm:$0xff] %v26292_v18  ;;  %v2265_v63 = vmul.f32 %v26213_v25, %v1475_v15  ;;  %v21124_v59 = vpop.f32.mrb[82].mxu0  ;;  %v26300_v17 = vpack.c.bf16 %v2781_v1, %v2780_v27  ;;  %v26302_v44 = vpack.c.bf16 %v2782_v56, %v2781_v1 }
 0x198   :  { %31183 = vst [vmem:[#allocation73_spill] sm:$0xff] %v26297_v23  ;;  %v2530_v26 = vadd.f32 %v26226_v33, %v2267_v7  ;;  %v2268_v48 = vmul.f32 %v26213_v25, %v21124_v59  ;;  %v1478_v8 = vpop.f32.mrb[83].mxu0 }
 0x199   :  { %31184 = vst [vmem:[#allocation74_spill] sm:$0xff] %v26300_v17  ;;  %31185 = vst [vmem:[#allocation75_spill] sm:$0xff] %v26302_v44  ;;  %v2528_v12 = vadd.f32 %v26226_v33, %v2265_v63  ;;  %v2266_v10 = vmul.f32 %v26213_v25, %v1478_v8  ;;  %21333 = vmatprep.mubr.bf16.mxu1 %v26300_v17 }
 0x19a   :  { %v2531_v32 = vadd.f32 %v26226_v33, %v2268_v48  ;;  %21334 = vmatmul.mubr.bf16.gmra.mrb[20].mxu1 %v26297_v23  ;;  %v2786_v15 = vmax.f32 %v2530_v26, 0.0 }
 0x19b   :  { %v2529_v27 = vadd.f32 %v26226_v33, %v2266_v10  ;;  %v2784_v38 = vmax.f32 %v2528_v12, 0.0 }
 0x19c   :  { %v2787_v56 = vmax.f32 %v2531_v32, 0.0 }
 0x19d   :  { %v21127_v1 = vpop.f32.mrb[84].mxu0  ;;  %v2785_v7 = vmax.f32 %v2529_v27, 0.0 }
 0x19e   :  { %v2271_v59 = vmul.f32 %v26213_v25, %v21127_v1  ;;  %v1491_v44 = vpop.f32.mrb[85].mxu0  ;;  %v26313_v18 = vpack.c.bf16 %v2787_v56, %v2786_v15 }
 0x19f   :  { %v2269_v63 = vmul.f32 %v26213_v25, %v1491_v44  ;;  %v21128_v8 = vpop.f32.mrb[86].mxu0  ;;  %v26316_v17 = vpack.c.bf16 %v2785_v7, %v2784_v38  ;;  %v26318_v48 = vpack.c.bf16 %v2786_v15, %v2785_v7 }
 0x1a0   :  { %31186 = vst [vmem:[#allocation76_spill] sm:$0xff] %v26313_v18  ;;  %v2534_v23 = vadd.f32 %v26226_v33, %v2271_v59  ;;  %v2272_v26 = vmul.f32 %v26213_v25, %v21128_v8  ;;  %v1494_v32 = vpop.f32.mrb[87].mxu0 }
 0x1a1   :  { %31187 = vst [vmem:[#allocation77_spill] sm:$0xff] %v26316_v17  ;;  %31188 = vst [vmem:[#allocation78_spill] sm:$0xff] %v26318_v48  ;;  %v2532_v12 = vadd.f32 %v26226_v33, %v2269_v63  ;;  %v2270_v10 = vmul.f32 %v26213_v25, %v1494_v32  ;;  %21337 = vmatprep.mubr.bf16.mxu1 %v26316_v17 }
 0x1a2   :  { %v26326_v27 = vadd.f32 %v26226_v33, %v2272_v26  ;;  %21338 = vmatmul.mubr.bf16.gmra.mrb[24].mxu1 %v26313_v18  ;;  %v2790_v15 = vmax.f32 %v2534_v23, 0.0 }
 0x1a3   :  { %v2533_v38 = vadd.f32 %v26226_v33, %v2270_v10  ;;  %v2788_v44 = vmax.f32 %v2532_v12, 0.0 }
 0x1a4   :  { %31189 = vst [vmem:[#allocation79_spill] sm:$0xff] %v26326_v27  ;;  %v30921_v1 = vmax.f32 %v26326_v27, 0.0 }
 0x1a5   :  { %v21131_v7 = vpop.f32.mrb[88].mxu0  ;;  %v2789_v59 = vmax.f32 %v2533_v38, 0.0  ;;  %v26331_v8 = vpack.c.bf16 %v2788_v44, %v2787_v56 }
 0x1a6   :  { %v2275_v63 = vmul.f32 %v26213_v25, %v21131_v7  ;;  %v1507_v32 = vpop.f32.mrb[89].mxu0  ;;  %v26336_v17 = vpack.c.bf16 %v30921_v1, %v2790_v15 }
 0x1a7   :  { %31190 = vst [vmem:[#allocation80_spill] sm:$0xff] %v26331_v8  ;;  %v2273_v26 = vmul.f32 %v26213_v25, %v1507_v32  ;;  %v21132_v18 = vpop.f32.mrb[90].mxu0  ;;  %v26339_v48 = vpack.c.bf16 %v2789_v59, %v2788_v44  ;;  %v26341_v12 = vpack.c.bf16 %v2790_v15, %v2789_v59 }
 0x1a8   :  { %31191 = vst [vmem:[#allocation81_spill] sm:$0xff] %v26336_v17  ;;  %v2538_v23 = vadd.f32 %v26226_v33, %v2275_v63  ;;  %v2276_v10 = vmul.f32 %v26213_v25, %v21132_v18  ;;  %v1510_v56 = vpop.f32.mrb[91].mxu0 }
 0x1a9   :  { %31192 = vst [vmem:[#allocation82_spill] sm:$0xff] %v26339_v48  ;;  %31193 = vst [vmem:[#allocation83_spill] sm:$0xff] %v26341_v12  ;;  %v2536_v38 = vadd.f32 %v26226_v33, %v2273_v26  ;;  %v2274_v7 = vmul.f32 %v26213_v25, %v1510_v56  ;;  %21341 = vmatprep.mubr.bf16.mxu1 %v26339_v48 }
 0x1aa   :  { %v2539_v1 = vadd.f32 %v26226_v33, %v2276_v10  ;;  %21342 = vmatmul.mubr.bf16.gmra.mrb[28].mxu1 %v26336_v17  ;;  %v2794_v32 = vmax.f32 %v2538_v23, 0.0 }
 0x1ab   :  { %v2537_v44 = vadd.f32 %v26226_v33, %v2274_v7  ;;  %v2792_v27 = vmax.f32 %v2536_v38, 0.0 }
 0x1ac   :  { %v2795_v15 = vmax.f32 %v2539_v1, 0.0 }
 0x1ad   :  { %v21135_v59 = vpop.f32.mrb[92].mxu0  ;;  %v2793_v63 = vmax.f32 %v2537_v44, 0.0 }
 0x1ae   :  { %v2279_v18 = vmul.f32 %v26213_v25, %v21135_v59  ;;  %v1523_v12 = vpop.f32.mrb[93].mxu0  ;;  %v26352_v8 = vpack.c.bf16 %v2795_v15, %v2794_v32 }
 0x1af   :  { %v2277_v26 = vmul.f32 %v26213_v25, %v1523_v12  ;;  %v21136_v56 = vpop.f32.mrb[94].mxu0  ;;  %v26355_v48 = vpack.c.bf16 %v2793_v63, %v2792_v27  ;;  %v26357_v10 = vpack.c.bf16 %v2794_v32, %v2793_v63 }
 0x1b0   :  { %31194 = vst [vmem:[#allocation84_spill] sm:$0xff] %v26352_v8  ;;  %v2542_v17 = vadd.f32 %v26226_v33, %v2279_v18  ;;  %v2280_v23 = vmul.f32 %v26213_v25, %v21136_v56  ;;  %v1526_v1 = vpop.f32.mrb[95].mxu0 }
 0x1b1   :  { %31195 = vst [vmem:[#allocation85_spill] sm:$0xff] %v26355_v48  ;;  %31196 = vst [vmem:[#allocation86_spill] sm:$0xff] %v26357_v10  ;;  %v2540_v38 = vadd.f32 %v26226_v33, %v2277_v26  ;;  %v2278_v7 = vmul.f32 %v26213_v25, %v1526_v1  ;;  %21345 = vmatprep.mubr.bf16.mxu1 %v26355_v48 }
 0x1b2   :  { %v26365_v44 = vadd.f32 %v26226_v33, %v2280_v23  ;;  %21346 = vmatmul.mubr.bf16.gmra.mrb[32].mxu1 %v26352_v8  ;;  %v2798_v32 = vmax.f32 %v2542_v17, 0.0 }
 0x1b3   :  { %v2541_v27 = vadd.f32 %v26226_v33, %v2278_v7  ;;  %v2796_v12 = vmax.f32 %v2540_v38, 0.0 }
 0x1b4   :  { %31197 = vst [vmem:[#allocation87_spill] sm:$0xff] %v26365_v44  ;;  %v30930_v59 = vmax.f32 %v26365_v44, 0.0 }
 0x1b5   :  { %v21139_v63 = vpop.f32.mrb[96].mxu0  ;;  %v2797_v18 = vmax.f32 %v2541_v27, 0.0  ;;  %v26370_v56 = vpack.c.bf16 %v2796_v12, %v2795_v15 }
 0x1b6   :  { %v2283_v26 = vmul.f32 %v26213_v25, %v21139_v63  ;;  %v1539_v1 = vpop.f32.mrb[97].mxu0  ;;  %v26375_v48 = vpack.c.bf16 %v30930_v59, %v2798_v32 }
 0x1b7   :  { %31198 = vst [vmem:[#allocation88_spill] sm:$0xff] %v26370_v56  ;;  %v2281_v23 = vmul.f32 %v26213_v25, %v1539_v1  ;;  %v21140_v8 = vpop.f32.mrb[98].mxu0  ;;  %v26378_v10 = vpack.c.bf16 %v2797_v18, %v2796_v12  ;;  %v26380_v38 = vpack.c.bf16 %v2798_v32, %v2797_v18 }
 0x1b8   :  { %31199 = vst [vmem:[#allocation89_spill] sm:$0xff] %v26375_v48  ;;  %v2546_v17 = vadd.f32 %v26226_v33, %v2283_v26  ;;  %v2284_v7 = vmul.f32 %v26213_v25, %v21140_v8  ;;  %v1542_v15 = vpop.f32.mrb[99].mxu0 }
 0x1b9   :  { %31200 = vst [vmem:[#allocation90_spill] sm:$0xff] %v26378_v10  ;;  %31201 = vst [vmem:[#allocation91_spill] sm:$0xff] %v26380_v38  ;;  %v2544_v27 = vadd.f32 %v26226_v33, %v2281_v23  ;;  %v2282_v63 = vmul.f32 %v26213_v25, %v1542_v15  ;;  %21349 = vmatprep.mubr.bf16.mxu1 %v26378_v10 }
 0x1ba   :  { %v2547_v59 = vadd.f32 %v26226_v33, %v2284_v7  ;;  %21350 = vmatmul.mubr.bf16.gmra.mrb[36].mxu1 %v26375_v48  ;;  %v2802_v1 = vmax.f32 %v2546_v17, 0.0 }
 0x1bb   :  { %v2545_v12 = vadd.f32 %v26226_v33, %v2282_v63  ;;  %v2800_v44 = vmax.f32 %v2544_v27, 0.0 }
 0x1bc   :  { %v2803_v32 = vmax.f32 %v2547_v59, 0.0 }
 0x1bd   :  { %v21143_v18 = vpop.f32.mrb[100].mxu0  ;;  %v2801_v26 = vmax.f32 %v2545_v12, 0.0 }
 0x1be   :  { %v2287_v8 = vmul.f32 %v26213_v25, %v21143_v18  ;;  %v1555_v38 = vpop.f32.mrb[101].mxu0  ;;  %v26391_v56 = vpack.c.bf16 %v2803_v32, %v2802_v1 }
 0x1bf   :  { %v2285_v23 = vmul.f32 %v26213_v25, %v1555_v38  ;;  %v21144_v15 = vpop.f32.mrb[102].mxu0  ;;  %v26394_v10 = vpack.c.bf16 %v2801_v26, %v2800_v44  ;;  %v26396_v7 = vpack.c.bf16 %v2802_v1, %v2801_v26 }
 0x1c0   :  { %31202 = vst [vmem:[#allocation92_spill] sm:$0xff] %v26391_v56  ;;  %v2550_v48 = vadd.f32 %v26226_v33, %v2287_v8  ;;  %v2288_v17 = vmul.f32 %v26213_v25, %v21144_v15  ;;  %v1558_v59 = vpop.f32.mrb[103].mxu0 }
 0x1c1   :  { %31203 = vst [vmem:[#allocation93_spill] sm:$0xff] %v26394_v10  ;;  %31204 = vst [vmem:[#allocation94_spill] sm:$0xff] %v26396_v7  ;;  %v2548_v27 = vadd.f32 %v26226_v33, %v2285_v23  ;;  %v2286_v63 = vmul.f32 %v26213_v25, %v1558_v59  ;;  %21353 = vmatprep.mubr.bf16.mxu1 %v26394_v10 }
 0x1c2   :  { %v26404_v12 = vadd.f32 %v26226_v33, %v2288_v17  ;;  %21354 = vmatmul.mubr.bf16.gmra.mrb[40].mxu1 %v26391_v56  ;;  %v2806_v1 = vmax.f32 %v2550_v48, 0.0 }
 0x1c3   :  { %v2549_v44 = vadd.f32 %v26226_v33, %v2286_v63  ;;  %v2804_v38 = vmax.f32 %v2548_v27, 0.0 }
 0x1c4   :  { %31205 = vst [vmem:[#allocation95_spill] sm:$0xff] %v26404_v12  ;;  %v30939_v18 = vmax.f32 %v26404_v12, 0.0 }
 0x1c5   :  { %v21147_v26 = vpop.f32.mrb[104].mxu0  ;;  %v2805_v8 = vmax.f32 %v2549_v44, 0.0  ;;  %v26409_v15 = vpack.c.bf16 %v2804_v38, %v2803_v32 }
 0x1c6   :  { %v2291_v23 = vmul.f32 %v26213_v25, %v21147_v26  ;;  %v1571_v59 = vpop.f32.mrb[105].mxu0  ;;  %v26414_v10 = vpack.c.bf16 %v30939_v18, %v2806_v1 }
 0x1c7   :  { %31206 = vst [vmem:[#allocation96_spill] sm:$0xff] %v26409_v15  ;;  %v2289_v17 = vmul.f32 %v26213_v25, %v1571_v59  ;;  %v21148_v56 = vpop.f32.mrb[106].mxu0  ;;  %v26417_v7 = vpack.c.bf16 %v2805_v8, %v2804_v38  ;;  %v26419_v27 = vpack.c.bf16 %v2806_v1, %v2805_v8 }
 0x1c8   :  { %31207 = vst [vmem:[#allocation97_spill] sm:$0xff] %v26414_v10  ;;  %v2554_v48 = vadd.f32 %v26226_v33, %v2291_v23  ;;  %v2292_v63 = vmul.f32 %v26213_v25, %v21148_v56  ;;  %v1574_v32 = vpop.f32.mrb[107].mxu0 }
 0x1c9   :  { %31208 = vst [vmem:[#allocation98_spill] sm:$0xff] %v26417_v7  ;;  %31209 = vst [vmem:[#allocation99_spill] sm:$0xff] %v26419_v27  ;;  %v2552_v44 = vadd.f32 %v26226_v33, %v2289_v17  ;;  %v2290_v26 = vmul.f32 %v26213_v25, %v1574_v32  ;;  %21357 = vmatprep.mubr.bf16.mxu1 %v26417_v7 }
 0x1ca   :  { %v2555_v18 = vadd.f32 %v26226_v33, %v2292_v63  ;;  %21358 = vmatmul.mubr.bf16.gmra.mrb[44].mxu1 %v26414_v10  ;;  %v2810_v59 = vmax.f32 %v2554_v48, 0.0 }
 0x1cb   :  { %v2553_v38 = vadd.f32 %v26226_v33, %v2290_v26  ;;  %v2808_v12 = vmax.f32 %v2552_v44, 0.0 }
 0x1cc   :  { %v2811_v1 = vmax.f32 %v2555_v18, 0.0 }
 0x1cd   :  { %v21151_v8 = vpop.f32.mrb[108].mxu0  ;;  %v2809_v23 = vmax.f32 %v2553_v38, 0.0 }
 0x1ce   :  { %v2295_v56 = vmul.f32 %v26213_v25, %v21151_v8  ;;  %v1587_v27 = vpop.f32.mrb[109].mxu0  ;;  %v26430_v15 = vpack.c.bf16 %v2811_v1, %v2810_v59 }
 0x1cf   :  { %v2293_v17 = vmul.f32 %v26213_v25, %v1587_v27  ;;  %v21152_v32 = vpop.f32.mrb[110].mxu0  ;;  %v26433_v7 = vpack.c.bf16 %v2809_v23, %v2808_v12  ;;  %v26435_v63 = vpack.c.bf16 %v2810_v59, %v2809_v23 }
 0x1d0   :  { %31210 = vst [vmem:[#allocation100_spill] sm:$0xff] %v26430_v15  ;;  %v2558_v10 = vadd.f32 %v26226_v33, %v2295_v56  ;;  %v2296_v48 = vmul.f32 %v26213_v25, %v21152_v32  ;;  %v1590_v18 = vpop.f32.mrb[111].mxu0 }
 0x1d1   :  { %31211 = vst [vmem:[#allocation101_spill] sm:$0xff] %v26433_v7  ;;  %31212 = vst [vmem:[#allocation102_spill] sm:$0xff] %v26435_v63  ;;  %v2556_v44 = vadd.f32 %v26226_v33, %v2293_v17  ;;  %v2294_v26 = vmul.f32 %v26213_v25, %v1590_v18  ;;  %21361 = vmatprep.mubr.bf16.mxu1 %v26433_v7 }
 0x1d2   :  { %v26443_v38 = vadd.f32 %v26226_v33, %v2296_v48  ;;  %21362 = vmatmul.mubr.bf16.gmra.mrb[48].mxu1 %v26430_v15  ;;  %v2814_v59 = vmax.f32 %v2558_v10, 0.0 }
 0x1d3   :  { %v2557_v12 = vadd.f32 %v26226_v33, %v2294_v26  ;;  %v2812_v27 = vmax.f32 %v2556_v44, 0.0 }
 0x1d4   :  { %31213 = vst [vmem:[#allocation103_spill] sm:$0xff] %v26443_v38  ;;  %v30948_v8 = vmax.f32 %v26443_v38, 0.0 }
 0x1d5   :  { %v21155_v23 = vpop.f32.mrb[112].mxu0  ;;  %v2813_v56 = vmax.f32 %v2557_v12, 0.0  ;;  %v26448_v32 = vpack.c.bf16 %v2812_v27, %v2811_v1 }
 0x1d6   :  { %v2299_v17 = vmul.f32 %v26213_v25, %v21155_v23  ;;  %v1603_v18 = vpop.f32.mrb[113].mxu0  ;;  %v26453_v7 = vpack.c.bf16 %v30948_v8, %v2814_v59 }
 0x1d7   :  { %31214 = vst [vmem:[#allocation104_spill] sm:$0xff] %v26448_v32  ;;  %v2297_v48 = vmul.f32 %v26213_v25, %v1603_v18  ;;  %v21156_v15 = vpop.f32.mrb[114].mxu0  ;;  %v26456_v63 = vpack.c.bf16 %v2813_v56, %v2812_v27  ;;  %v26458_v44 = vpack.c.bf16 %v2814_v59, %v2813_v56 }
 0x1d8   :  { %31215 = vst [vmem:[#allocation105_spill] sm:$0xff] %v26453_v7  ;;  %v2562_v10 = vadd.f32 %v26226_v33, %v2299_v17  ;;  %v2300_v26 = vmul.f32 %v26213_v25, %v21156_v15  ;;  %v1606_v1 = vpop.f32.mrb[115].mxu0 }
 0x1d9   :  { %31216 = vst [vmem:[#allocation106_spill] sm:$0xff] %v26456_v63  ;;  %31217 = vst [vmem:[#allocation107_spill] sm:$0xff] %v26458_v44  ;;  %v2560_v12 = vadd.f32 %v26226_v33, %v2297_v48  ;;  %v2298_v23 = vmul.f32 %v26213_v25, %v1606_v1  ;;  %21365 = vmatprep.mubr.bf16.mxu1 %v26456_v63 }
 0x1da   :  { %v2563_v8 = vadd.f32 %v26226_v33, %v2300_v26  ;;  %21366 = vmatmul.mubr.bf16.gmra.mrb[52].mxu1 %v26453_v7  ;;  %v2818_v18 = vmax.f32 %v2562_v10, 0.0 }
 0x1db   :  { %v2561_v27 = vadd.f32 %v26226_v33, %v2298_v23  ;;  %v2816_v38 = vmax.f32 %v2560_v12, 0.0 }
 0x1dc   :  { %v2819_v59 = vmax.f32 %v2563_v8, 0.0 }
 0x1dd   :  { %v21159_v56 = vpop.f32.mrb[116].mxu0  ;;  %v2817_v17 = vmax.f32 %v2561_v27, 0.0 }
 0x1de   :  { %v2303_v15 = vmul.f32 %v26213_v25, %v21159_v56  ;;  %v1619_v44 = vpop.f32.mrb[117].mxu0  ;;  %v26469_v32 = vpack.c.bf16 %v2819_v59, %v2818_v18 }
 0x1df   :  { %v2301_v48 = vmul.f32 %v26213_v25, %v1619_v44  ;;  %v21160_v1 = vpop.f32.mrb[118].mxu0  ;;  %v26472_v63 = vpack.c.bf16 %v2817_v17, %v2816_v38  ;;  %v26474_v26 = vpack.c.bf16 %v2818_v18, %v2817_v17 }
 0x1e0   :  { %31218 = vst [vmem:[#allocation108_spill] sm:$0xff] %v26469_v32  ;;  %v2566_v7 = vadd.f32 %v26226_v33, %v2303_v15  ;;  %v2304_v10 = vmul.f32 %v26213_v25, %v21160_v1  ;;  %v1622_v8 = vpop.f32.mrb[119].mxu0 }
 0x1e1   :  { %31219 = vst [vmem:[#allocation109_spill] sm:$0xff] %v26472_v63  ;;  %31220 = vst [vmem:[#allocation110_spill] sm:$0xff] %v26474_v26  ;;  %v2564_v12 = vadd.f32 %v26226_v33, %v2301_v48  ;;  %v2302_v23 = vmul.f32 %v26213_v25, %v1622_v8  ;;  %21369 = vmatprep.mubr.bf16.mxu1 %v26472_v63  ;;  %v24906_v8 = vld [vmem:[%s30866_s4 + $0x90] sm:$0xff]  }
 0x1e2   :  { %v26482_v27 = vadd.f32 %v26226_v33, %v2304_v10  ;;  %21370 = vmatmul.mubr.bf16.gmra.mrb[56].mxu1 %v26469_v32  ;;  %v2822_v18 = vmax.f32 %v2566_v7, 0.0  ;;  %v24905_v7 = vld [vmem:[%s30866_s4 + $0x88] sm:$0xff]  }
 0x1e3   :  { %v2565_v38 = vadd.f32 %v26226_v33, %v2302_v23  ;;  %v2820_v44 = vmax.f32 %v2564_v12, 0.0  ;;  %v31225_v33 = vmov 0.0|0.0   ;;  %v24914_v10 = vld [vmem:[%s30865_s0 + $0x1e8] sm:$0xff]   ;;  %v31226_v12 = vmov 0.0  }
 0x1e4   :  { %v30954_v56 = vmax.f32 %v26482_v27, 0.0  ;;  %v31227_v23 = vmax.f32 %v25904_v22, 0.0  ;;  %v24908_v22 = vld [vmem:[%s30866_s4 + $0xa0] sm:$0xff]  }
 0x1e5   :  { %v2821_v17 = vmax.f32 %v2565_v38, 0.0  ;;  %v26487_v15 = vpack.c.bf16 %v2820_v44, %v2819_v59  ;;  %v24913_v59 = vld [vmem:[%s30865_s0 + $0x1e0] sm:$0xff]  }
 0x1e6   :  { %v26491_v48 = vpack.c.bf16 %v30954_v56, %v2822_v18  ;;  %21161 = vmatprep.mubr.bf16.mxu0 %v24913_v59  ;;  %v26521_v38 = vpack.c.bf16 %v31227_v23, %v31226_v12  ;;  %v24919_v59 = vld [vmem:[%s30865_s0 + $0x208] sm:$0xff]   ;;  %v31246_v56 = vld [vmem:[#allocation35_spill] sm:$0xff] }
 0x1e7   :  { %31221 = vst [vmem:[#allocation111_spill] sm:$0xff] %v26487_v15  ;;  %v26493_v25 = vpack.c.bf16 %v2821_v17, %v2820_v44  ;;  %v26495_v1 = vpack.c.bf16 %v2822_v18, %v2821_v17  ;;  %21162 = vmatmul.mubr.bf16.gmra.mrb[120].mxu0 %v24914_v10  ;;  %v24915_v44 = vld [vmem:[%s30865_s0 + $0x1f0] sm:$0xff]   ;;  %v24916_v18 = vld [vmem:[%s30865_s0 + $0x1f8] sm:$0xff]   ;;  %v24909_v17 = vld [vmem:[%s30866_s4 + $0xa8] sm:$0xff]  }
 0x1e8   :  { %31222 = vst [vmem:[#allocation112_spill] sm:$0xff] %v26491_v48  ;;  %31228 = vst [vmem:[#allocation115_spill] sm:$0xff] %v26521_v38  ;;  %21165 = vmatprep.mubr.bf16.mxu0 %v24915_v44  ;;  %v24910_v10 = vld [vmem:[%s30866_s4 + $0xb0] sm:$0xff]  }
 0x1e9   :  { %31223 = vst [vmem:[#allocation113_spill] sm:$0xff] %v26493_v25  ;;  %31224 = vst [vmem:[#allocation114_spill] sm:$0xff] %v26495_v1  ;;  %21373 = vmatprep.mubr.bf16.mxu1 %v26493_v25  ;;  %v24920_v44 = vld [vmem:[%s30865_s0 + $0x210] sm:$0xff]  }
 0x1ea   :  { %21374 = vmatmul.mubr.bf16.gmra.mrb[60].mxu1 %v26491_v48 }
 0x1eb   :  { %21393 = vmatprep.mubr.bf16.mxu1 %v31225_v33 }
 0x1ef   :  { %21166 = vmatmul.mubr.bf16.gmra.mrb[124].mxu0 %v24916_v18  ;;  %v24921_v18 = vld [vmem:[%s30865_s0 + $0x218] sm:$0xff]  }
 0x1f2   :  { %21394 = vmatmul.mubr.bf16.vlgmr.msra.gmra.mrb[0].mxu1 %v31225_v33 }
 0x1f3   :  { %21458 = vmatpush3.bf16.msra.mxu1 %v26188_v28  ;;  %21397 = vmatprep.mubr.bf16.mxu1 %v31225_v33  ;;  %v24907_v28 = vld [vmem:[%s30866_s4 + $0x98] sm:$0xff]  }
 0x1f4   :  { %21459 = vmatprep.subr.bf16.mxu1 %v24905_v7 }
 0x1f7   :  { %21460 = vmatpush3.bf16.msra.mxu1 %v24905_v7  ;;  %v24918_v7 = vld [vmem:[%s30865_s0 + $0x200] sm:$0xff]  }
 0x1f8   :  { %21461 = vmatprep.subr.bf16.mxu1 %v24906_v8  ;;  %21169 = vmatprep.mubr.bf16.mxu0 %v24918_v7  ;;  %v31231_v7 = vmax.f32 %v25990_v51, 0.0  ;;  %v24928_v51 = vld [vmem:[%s30865_s0 + $0x240] sm:$0xff]  }
 0x1f9   :  { %21170 = vmatmul.mubr.bf16.gmra.mrb[128].mxu0 %v24919_v59 }
 0x1fa   :  { %21398 = vmatmul.mubr.bf16.gmra.mrb[4].mxu1 %v31225_v33  ;;  %21173 = vmatprep.mubr.bf16.mxu0 %v24920_v44  ;;  %v26581_v59 = vpack.c.bf16 %v31231_v7, %v31226_v12  ;;  %v31233_v44 = vmax.f32 %v26028_v49, 0.0  ;;  %v24933_v49 = vld [vmem:[%s30865_s0 + $0x260] sm:$0xff]   ;;  %v24934_v7 = vld [vmem:[%s30865_s0 + $0x268] sm:$0xff]  }
 0x1fb   :  { %21401 = vmatprep.mubr.bf16.mxu1 %v26521_v38  ;;  %21462 = vmatpush3.bf16.msra.mxu1 %v24906_v8  ;;  %v24911_v8 = vld [vmem:[%s30866_s4 + $0xb8] sm:$0xff]  }
 0x1fc   :  { %21463 = vmatprep.subr.bf16.mxu1 %v24907_v28  ;;  %31232 = vst [vmem:[#allocation117_spill] sm:$0xff] %v26581_v59 }
 0x1ff   :  { %21464 = vmatpush3.bf16.msra.mxu1 %v24907_v28  ;;  %v31229_v28 = vmax.f32 %v25952_v2, 0.0  ;;  %v26567_v2 = vld [vmem:[%s30866_s4 + $0xc0] sm:$0xff]  }
 0x200   :  { %21465 = vmatprep.subr.bf16.mxu1 %v24908_v22 }
 0x201   :  { %v26554_v23 = vpack.c.bf16 %v31229_v28, %v31226_v12  ;;  %21174 = vmatmul.mubr.bf16.gmra.mrb[132].mxu0 %v24921_v18  ;;  %v24929_v28 = vld [vmem:[%s30865_s0 + $0x248] sm:$0xff]   ;;  %v26602_v18 = vpack.c.bf16 %v31233_v44, %v31226_v12 }
 0x202   :  { %21402 = vmatmul.mubr.bf16.gmra.mrb[8].mxu1 %v25921_v39  ;;  %v24939_v44 = vld [vmem:[%s30865_s0 + $0x288] sm:$0xff]  }
 0x203   :  { %21405 = vmatprep.mubr.bf16.mxu1 %v25936_v53  ;;  %21466 = vmatpush3.bf16.msra.mxu1 %v24908_v22  ;;  %31230 = vst [vmem:[#allocation116_spill] sm:$0xff] %v26554_v23  ;;  %v24923_v22 = vld [vmem:[%s30865_s0 + $0x220] sm:$0xff]   ;;  %31234 = vst [vmem:[#allocation118_spill] sm:$0xff] %v26602_v18  ;;  %v31305_v53 = vld [vmem:[#allocation88_spill] sm:$0xff] }
 0x204   :  { %21467 = vmatprep.subr.bf16.mxu1 %v24909_v17  ;;  %21177 = vmatprep.mubr.bf16.mxu0 %v24923_v22  ;;  %v24930_v22 = vld [vmem:[%s30865_s0 + $0x250] sm:$0xff]  }
 0x207   :  { %21468 = vmatpush3.bf16.msra.mxu1 %v24909_v17  ;;  %v24924_v17 = vld [vmem:[%s30865_s0 + $0x228] sm:$0xff]  }
 0x208   :  { %21469 = vmatprep.subr.bf16.mxu1 %v24910_v10 }
 0x209   :  { %21178 = vmatmul.mubr.bf16.gmra.mrb[136].mxu0 %v24924_v17  ;;  %v24931_v17 = vld [vmem:[%s30865_s0 + $0x258] sm:$0xff]  }
 0x20a   :  { %21406 = vmatmul.mubr.bf16.gmra.mrb[12].mxu1 %v25945_v61 }
 0x20b   :  { %21409 = vmatprep.mubr.bf16.mxu1 %v26554_v23  ;;  %21470 = vmatpush3.bf16.msra.mxu1 %v24910_v10  ;;  %v24925_v10 = vld [vmem:[%s30865_s0 + $0x230] sm:$0xff]  }
 0x20c   :  { %21471 = vmatprep.subr.bf16.mxu1 %v24911_v8  ;;  %21181 = vmatprep.mubr.bf16.mxu0 %v24925_v10  ;;  %v31235_v10 = vmax.f32 %v26066_v0, 0.0  ;;  %v24938_v0 = vld [vmem:[%s30865_s0 + $0x280] sm:$0xff]  }
 0x20f   :  { %21472 = vmatpush3.bf16.msra.mxu1 %v24911_v8  ;;  %v24926_v8 = vld [vmem:[%s30865_s0 + $0x238] sm:$0xff]  }
 0x210   :  { %21537 = vmatprep.subr.bf16.mxu1 %v26567_v2 }
 0x211   :  { %21182 = vmatmul.mubr.bf16.gmra.mrb[140].mxu0 %v24926_v8  ;;  %v26623_v8 = vpack.c.bf16 %v31235_v10, %v31226_v12  ;;  %v24944_v10 = vld [vmem:[%s30865_s0 + $0x2a8] sm:$0xff]  }
 0x212   :  { %21410 = vmatmul.mubr.bf16.gmra.mrb[16].mxu1 %v25962_v19  ;;  %21185 = vmatprep.mubr.bf16.mxu0 %v24928_v51  ;;  %v24935_v51 = vld [vmem:[%s30865_s0 + $0x270] sm:$0xff]  }
 0x213   :  { %21413 = vmatprep.mubr.bf16.mxu1 %v25977_v37  ;;  %31236 = vst [vmem:[#allocation119_spill] sm:$0xff] %v26623_v8 }
 0x219   :  { %21186 = vmatmul.mubr.bf16.gmra.mrb[144].mxu0 %v24929_v28  ;;  %v24936_v28 = vld [vmem:[%s30865_s0 + $0x278] sm:$0xff]  }
 0x21a   :  { %21414 = vmatmul.mubr.bf16.gmra.mrb[20].mxu1 %v25983_v46  ;;  %21189 = vmatprep.mubr.bf16.mxu0 %v24930_v22  ;;  %v31237_v22 = vmax.f32 %v26104_v60, 0.0  ;;  %v24943_v60 = vld [vmem:[%s30865_s0 + $0x2a0] sm:$0xff]  }
 0x21b   :  { %21417 = vmatprep.mubr.bf16.mxu1 %v26581_v59 }
 0x221   :  { %21190 = vmatmul.mubr.bf16.gmra.mrb[148].mxu0 %v24931_v17  ;;  %v26644_v17 = vpack.c.bf16 %v31237_v22, %v31226_v12  ;;  %v24949_v22 = vld [vmem:[%s30865_s0 + $0x2c8] sm:$0xff]  }
 0x222   :  { %21418 = vmatmul.mubr.bf16.gmra.mrb[24].mxu1 %v26000_v6  ;;  %21193 = vmatprep.mubr.bf16.mxu0 %v24933_v49  ;;  %v24940_v49 = vld [vmem:[%s30865_s0 + $0x290] sm:$0xff]  }
 0x223   :  { %21421 = vmatprep.mubr.bf16.mxu1 %v26015_v29  ;;  %31238 = vst [vmem:[#allocation120_spill] sm:$0xff] %v26644_v17  ;;  %v31292_v29 = vld [vmem:[#allocation80_spill] sm:$0xff] }
 0x229   :  { %21194 = vmatmul.mubr.bf16.gmra.mrb[152].mxu0 %v24934_v7  ;;  %v24941_v7 = vld [vmem:[%s30865_s0 + $0x298] sm:$0xff]  }
 0x22a   :  { %21422 = vmatmul.mubr.bf16.gmra.mrb[28].mxu1 %v26021_v41  ;;  %21197 = vmatprep.mubr.bf16.mxu0 %v24935_v51  ;;  %v31239_v51 = vmax.f32 %v26142_v5, 0.0  ;;  %v24948_v5 = vld [vmem:[%s30865_s0 + $0x2c0] sm:$0xff]  }
 0x22b   :  { %21425 = vmatprep.mubr.bf16.mxu1 %v26602_v18 }
 0x231   :  { %21198 = vmatmul.mubr.bf16.gmra.mrb[156].mxu0 %v24936_v28  ;;  %v26665_v28 = vpack.c.bf16 %v31239_v51, %v31226_v12  ;;  %v24954_v51 = vld [vmem:[%s30865_s0 + $0x2e8] sm:$0xff]  }
 0x232   :  { %21426 = vmatmul.mubr.bf16.gmra.mrb[32].mxu1 %v26038_v13  ;;  %21201 = vmatprep.mubr.bf16.mxu0 %v24938_v0  ;;  %v24945_v0 = vld [vmem:[%s30865_s0 + $0x2b0] sm:$0xff]  }
 0x233   :  { %21429 = vmatprep.mubr.bf16.mxu1 %v26053_v36  ;;  %31240 = vst [vmem:[#allocation121_spill] sm:$0xff] %v26665_v28 }
 0x239   :  { %21202 = vmatmul.mubr.bf16.gmra.mrb[160].mxu0 %v24939_v44  ;;  %v24946_v44 = vld [vmem:[%s30865_s0 + $0x2b8] sm:$0xff]  }
 0x23a   :  { %21430 = vmatmul.mubr.bf16.gmra.mrb[36].mxu1 %v26059_v54  ;;  %21205 = vmatprep.mubr.bf16.mxu0 %v24940_v49  ;;  %v24950_v49 = vld [vmem:[%s30865_s0 + $0x2d0] sm:$0xff]  }
 0x23b   :  { %21433 = vmatprep.mubr.bf16.mxu1 %v26623_v8  ;;  %v31280_v8 = vld [vmem:[#allocation75_spill] sm:$0xff] }
 0x241   :  { %21206 = vmatmul.mubr.bf16.gmra.mrb[164].mxu0 %v24941_v7  ;;  %v24951_v7 = vld [vmem:[%s30865_s0 + $0x2d8] sm:$0xff]  }
 0x242   :  { %21434 = vmatmul.mubr.bf16.gmra.mrb[40].mxu1 %v26076_v31  ;;  %21209 = vmatprep.mubr.bf16.mxu0 %v24943_v60  ;;  %v24917_v60 = vld [vmem:[%s30866_s4 + $0xc8] sm:$0xff]  }
 0x243   :  { %21437 = vmatprep.mubr.bf16.mxu1 %v26091_v21 }
 0x249   :  { %21210 = vmatmul.mubr.bf16.gmra.mrb[168].mxu0 %v24944_v10  ;;  %v24953_v10 = vld [vmem:[%s30865_s0 + $0x2e0] sm:$0xff]  }
 0x24a   :  { %21438 = vmatmul.mubr.bf16.gmra.mrb[44].mxu1 %v26097_v45  ;;  %21213 = vmatprep.mubr.bf16.mxu0 %v24945_v0  ;;  %v24922_v0 = vld [vmem:[%s30866_s4 + $0xd0] sm:$0xff]  }
 0x24b   :  { %21441 = vmatprep.mubr.bf16.mxu1 %v26644_v17 }
 0x251   :  { %21214 = vmatmul.mubr.bf16.gmra.mrb[172].mxu0 %v24946_v44  ;;  %v24955_v44 = vld [vmem:[%s30865_s0 + $0x2f0] sm:$0xff]  }
 0x252   :  { %21442 = vmatmul.mubr.bf16.gmra.mrb[48].mxu1 %v26114_v57  ;;  %21217 = vmatprep.mubr.bf16.mxu0 %v24948_v5  ;;  %v24956_v5 = vld [vmem:[%s30865_s0 + $0x2f8] sm:$0xff]  }
 0x253   :  { %21445 = vmatprep.mubr.bf16.mxu1 %v26129_v24  ;;  %v31270_v24 = vld [vmem:[#allocation63_spill] sm:$0xff] }
 0x254   :  { %v31271_v57 = vmax.f32 %v31270_v24, 0.0 }
 0x259   :  { %21218 = vmatmul.mubr.bf16.gmra.mrb[176].mxu0 %v24949_v22  ;;  %v24932_v22 = vld [vmem:[%s30866_s4 + $0xe0] sm:$0xff]  }
 0x25a   :  { %21446 = vmatmul.mubr.bf16.gmra.mrb[52].mxu1 %v26135_v9  ;;  %21221 = vmatprep.mubr.bf16.mxu0 %v24950_v49  ;;  %v24937_v49 = vld [vmem:[%s30866_s4 + $0xe8] sm:$0xff]  }
 0x25b   :  { %21449 = vmatprep.mubr.bf16.mxu1 %v26665_v28 }
 0x261   :  { %21222 = vmatmul.mubr.bf16.gmra.mrb[180].mxu0 %v24951_v7  ;;  %v24958_v7 = vld [vmem:[%s30865_s0 + $0x300] sm:$0xff]  }
 0x262   :  { %21450 = vmatmul.mubr.bf16.gmra.mrb[56].mxu1 %v26152_v50  ;;  %21225 = vmatprep.mubr.bf16.mxu0 %v24953_v10  ;;  %v24942_v10 = vld [vmem:[%s30866_s4 + $0xf0] sm:$0xff]  }
 0x263   :  { %21453 = vmatprep.mubr.bf16.mxu1 %v26167_v30 }
 0x269   :  { %21226 = vmatmul.mubr.bf16.gmra.mrb[184].mxu0 %v24954_v51  ;;  %v24947_v51 = vld [vmem:[%s30866_s4 + $0xf8] sm:$0xff]  }
 0x26a   :  { %21454 = vmatmul.mubr.bf16.gmra.mrb[60].mxu1 %v26173_v52  ;;  %21229 = vmatprep.mubr.bf16.mxu0 %v24955_v44  ;;  %v26748_v44 = vld [vmem:[%s30866_s4 + $0x100] sm:$0xff]  }
 0x26b   :  { %21473 = vmatprep.mubr.bf16.mxu1 %v31225_v33 }
 0x271   :  { %21230 = vmatmul.mubr.bf16.gmra.mrb[188].mxu0 %v24956_v5  ;;  %v24963_v5 = vld [vmem:[%s30865_s0 + $0x320] sm:$0xff]  }
 0x272   :  { %21474 = vmatmul.mubr.bf16.vlgmr.msra.gmra.mrb[0].mxu1 %v31225_v33  ;;  %21233 = vmatprep.mubr.bf16.mxu0 %v24958_v7  ;;  %v24966_v7 = vld [vmem:[%s30865_s0 + $0x338] sm:$0xff]  }
 0x273   :  { %21538 = vmatpush3.bf16.msra.mxu1 %v26567_v2  ;;  %21477 = vmatprep.mubr.bf16.mxu1 %v31225_v33  ;;  %v24927_v2 = vld [vmem:[%s30866_s4 + $0xd8] sm:$0xff]  }
 0x274   :  { %21539 = vmatprep.subr.bf16.mxu1 %v24917_v60 }
 0x277   :  { %21540 = vmatpush3.bf16.msra.mxu1 %v24917_v60  ;;  %v24959_v60 = vld [vmem:[%s30865_s0 + $0x308] sm:$0xff]  }
 0x278   :  { %21541 = vmatprep.subr.bf16.mxu1 %v24922_v0 }
 0x279   :  { %21234 = vmatmul.mubr.bf16.gmra.mrb[192].mxu0 %v24959_v60  ;;  %v24968_v60 = vld [vmem:[%s30865_s0 + $0x340] sm:$0xff]  }
 0x27a   :  { %21478 = vmatmul.mubr.bf16.gmra.mrb[4].mxu1 %v31225_v33 }
 0x27b   :  { %21481 = vmatprep.mubr.bf16.mxu1 %v25925_v40  ;;  %21542 = vmatpush3.bf16.msra.mxu1 %v24922_v0  ;;  %v24960_v0 = vld [vmem:[%s30865_s0 + $0x310] sm:$0xff]  }
 0x27c   :  { %21543 = vmatprep.subr.bf16.mxu1 %v24927_v2  ;;  %21237 = vmatprep.mubr.bf16.mxu0 %v24960_v0  ;;  %v24971_v0 = vld [vmem:[%s30865_s0 + $0x358] sm:$0xff]  }
 0x27f   :  { %21544 = vmatpush3.bf16.msra.mxu1 %v24927_v2  ;;  %v24961_v2 = vld [vmem:[%s30865_s0 + $0x318] sm:$0xff]  }
 0x280   :  { %21545 = vmatprep.subr.bf16.mxu1 %v24932_v22 }
 0x281   :  { %21238 = vmatmul.mubr.bf16.gmra.mrb[196].mxu0 %v24961_v2  ;;  %v31241_v2 = vld [vmem:[#allocation30_spill] sm:$0xff] }
 0x282   :  { %21482 = vmatmul.mubr.bf16.gmra.mrb[8].mxu1 %v25915_v35  ;;  %21241 = vmatprep.mubr.bf16.mxu0 %v24963_v5  ;;  %v24973_v5 = vld [vmem:[%s30865_s0 + $0x360] sm:$0xff]  }
 0x283   :  { %21485 = vmatprep.mubr.bf16.mxu1 %v25947_v62  ;;  %21546 = vmatpush3.bf16.msra.mxu1 %v24932_v22  ;;  %v24964_v22 = vld [vmem:[%s30865_s0 + $0x328] sm:$0xff]  }
 0x284   :  { %21547 = vmatprep.subr.bf16.mxu1 %v24937_v49 }
 0x287   :  { %21548 = vmatpush3.bf16.msra.mxu1 %v24937_v49  ;;  %v24965_v49 = vld [vmem:[%s30865_s0 + $0x330] sm:$0xff]  }
 0x288   :  { %21549 = vmatprep.subr.bf16.mxu1 %v24942_v10 }
 0x289   :  { %21242 = vmatmul.mubr.bf16.gmra.mrb[200].mxu0 %v24964_v22  ;;  %v24974_v22 = vld [vmem:[%s30865_s0 + $0x368] sm:$0xff]  }
 0x28a   :  { %21486 = vmatmul.mubr.bf16.gmra.mrb[12].mxu1 %v25942_v58  ;;  %21245 = vmatprep.mubr.bf16.mxu0 %v24965_v49  ;;  %v31242_v49 = vld [vmem:[#allocation28_spill] sm:$0xff]  ;;  %v31251_v58 = vld [vmem:[#allocation47_spill] sm:$0xff] }
 0x28b   :  { %21489 = vmatprep.mubr.bf16.mxu1 %v25966_v20  ;;  %21550 = vmatpush3.bf16.msra.mxu1 %v24942_v10  ;;  %v24969_v10 = vld [vmem:[%s30865_s0 + $0x348] sm:$0xff]  }
 0x28c   :  { %21551 = vmatprep.subr.bf16.mxu1 %v24947_v51 }
 0x28f   :  { %21552 = vmatpush3.bf16.msra.mxu1 %v24947_v51  ;;  %v24970_v51 = vld [vmem:[%s30865_s0 + $0x350] sm:$0xff]  }
 0x290   :  { %21617 = vmatprep.subr.bf16.mxu1 %v26748_v44 }
 0x291   :  { %21246 = vmatmul.mubr.bf16.gmra.mrb[204].mxu0 %v24966_v7  ;;  %v31243_v7 = vld [vmem:[#allocation33_spill] sm:$0xff] }
 0x292   :  { %21490 = vmatmul.mubr.bf16.gmra.mrb[16].mxu1 %v25959_v16  ;;  %21249 = vmatprep.mubr.bf16.mxu0 %v24968_v60  ;;  %v24975_v60 = vld [vmem:[%s30865_s0 + $0x370] sm:$0xff]  }
 0x293   :  { %21493 = vmatprep.mubr.bf16.mxu1 %v25985_v47 }
 0x299   :  { %21250 = vmatmul.mubr.bf16.gmra.mrb[208].mxu0 %v24969_v10  ;;  %v24976_v10 = vld [vmem:[%s30865_s0 + $0x378] sm:$0xff]  }
 0x29a   :  { %21494 = vmatmul.mubr.bf16.gmra.mrb[20].mxu1 %v25980_v43  ;;  %21253 = vmatprep.mubr.bf16.mxu0 %v24970_v51  ;;  %v31244_v51 = vld [vmem:[#allocation31_spill] sm:$0xff] }
 0x29b   :  { %21497 = vmatprep.mubr.bf16.mxu1 %v26004_v11 }
 0x2a1   :  { %21254 = vmatmul.mubr.bf16.gmra.mrb[212].mxu0 %v24971_v0  ;;  %v31245_v0 = vld [vmem:[#allocation37_spill] sm:$0xff] }
 0x2a2   :  { %21498 = vmatmul.mubr.bf16.gmra.mrb[24].mxu1 %v25997_v3  ;;  %21257 = vmatprep.mubr.bf16.mxu0 %v24973_v5  ;;  %v24978_v5 = vld [vmem:[%s30865_s0 + $0x380] sm:$0xff]  }
 0x2a3   :  { %21501 = vmatprep.mubr.bf16.mxu1 %v26023_v42 }
 0x2a9   :  { %21258 = vmatmul.mubr.bf16.gmra.mrb[216].mxu0 %v24974_v22  ;;  %v24979_v22 = vld [vmem:[%s30865_s0 + $0x388] sm:$0xff]  }
 0x2aa   :  { %21502 = vmatmul.mubr.bf16.gmra.mrb[28].mxu1 %v26018_v34  ;;  %21261 = vmatprep.mubr.bf16.mxu0 %v24975_v60 }
 0x2ab   :  { %21505 = vmatprep.mubr.bf16.mxu1 %v26042_v14  ;;  %v31249_v14 = vld [vmem:[#allocation44_spill] sm:$0xff] }
 0x2b1   :  { %21262 = vmatmul.mubr.bf16.gmra.mrb[220].mxu0 %v24976_v10  ;;  %v24980_v10 = vld [vmem:[%s30865_s0 + $0x390] sm:$0xff]  }
 0x2b2   :  { %21506 = vmatmul.mubr.bf16.gmra.mrb[32].mxu1 %v26035_v4  ;;  %21265 = vmatprep.mubr.bf16.mxu0 %v24978_v5  ;;  %v26819_v5 = vld [vmem:[%s30867_s2] ss:$0 sm:$0xff] }
 0x2b3   :  { %21509 = vmatprep.mubr.bf16.mxu1 %v31241_v2  ;;  %v31248_v2 = vld [vmem:[#allocation38_spill] sm:$0xff] }
 0x2b9   :  { %21266 = vmatmul.mubr.bf16.gmra.mrb[224].mxu0 %v24979_v22 }
 0x2ba   :  { %21510 = vmatmul.mubr.bf16.gmra.mrb[36].mxu1 %v31242_v49  ;;  %v21163_v60 = vpop.f32.mrb[120].mxu0  ;;  %21269 = vmatprep.mubr.bf16.mxu0 %v24980_v10 }
 0x2bb   :  { %21513 = vmatprep.mubr.bf16.mxu1 %v31243_v7  ;;  %v31247_v7 = vld [vmem:[#allocation40_spill] sm:$0xff]  ;;  %v2307_v22 = vmul.f32 %v26819_v5, %v21163_v60 }
 0x2c2   :  { %21514 = vmatmul.mubr.bf16.gmra.mrb[40].mxu1 %v31244_v51  ;;  %v1635_v51 = vpop.f32.mrb[121].mxu0 }
 0x2c3   :  { %21517 = vmatprep.mubr.bf16.mxu1 %v31245_v0  ;;  %v24981_v0 = vld [vmem:[%s30865_s0 + $0x398] sm:$0xff]   ;;  %v21164_v49 = vpop.f32.mrb[122].mxu0 }
 0x2c4   :  { %21270 = vmatmul.mubr.bf16.gmra.mrb[228].mxu0 %v24981_v0  ;;  %v1638_v4 = vpop.f32.mrb[123].mxu0  ;;  %v24983_v0 = vld [vmem:[%s30865_s0 + $0x3a0] sm:$0xff]  }
 0x2c5   :  { %v2306_v10 = vmul.f32 %v26819_v5, %v1638_v4  ;;  %v21167_v34 = vpop.f32.mrb[124].mxu0  ;;  %21273 = vmatprep.mubr.bf16.mxu0 %v24983_v0 }
 0x2c6   :  { %v1651_v42 = vpop.f32.mrb[125].mxu0  ;;  %v2311_v43 = vmul.f32 %v26819_v5, %v21167_v34 }
 0x2c7   :  { %v2309_v60 = vmul.f32 %v26819_v5, %v1651_v42  ;;  %v31250_v42 = vld [vmem:[#allocation42_spill] sm:$0xff] }
 0x2ca   :  { %21518 = vmatmul.mubr.bf16.gmra.mrb[44].mxu1 %v31246_v56  ;;  %v2308_v56 = vmul.f32 %v26819_v5, %v21164_v49  ;;  %v26836_v49 = vld [vmem:[%s30868_s3] ss:$0 sm:$0xff] }
 0x2cb   :  { %21521 = vmatprep.mubr.bf16.mxu1 %v31247_v7  ;;  %v2305_v7 = vmul.f32 %v26819_v5, %v1635_v51  ;;  %v2570_v4 = vadd.f32 %v26836_v49, %v2307_v22  ;;  %v2569_v3 = vadd.f32 %v26836_v49, %v2306_v10  ;;  %v2572_v11 = vadd.f32 %v26836_v49, %v2309_v60  ;;  %v21168_v22 = vpop.f32.mrb[126].mxu0 }
 0x2cc   :  { %v2312_v34 = vmul.f32 %v26819_v5, %v21168_v22  ;;  %v1654_v10 = vpop.f32.mrb[127].mxu0 }
 0x2cd   :  { %v2568_v51 = vadd.f32 %v26836_v49, %v2305_v7  ;;  %v2825_v47 = vmax.f32 %v2569_v3, 0.0  ;;  %v2826_v16 = vmax.f32 %v2570_v4, 0.0  ;;  %v2828_v7 = vmax.f32 %v2572_v11, 0.0 }
 0x2ce   :  { %v2310_v4 = vmul.f32 %v26819_v5, %v1654_v10  ;;  %v26865_v22 = vadd.f32 %v26836_v49, %v2312_v34 }
 0x2cf   :  { %v2824_v0 = vmax.f32 %v2568_v51, 0.0  ;;  %v21171_v51 = vpop.f32.mrb[128].mxu0 }
 0x2d0   :  { %v2315_v62 = vmul.f32 %v26819_v5, %v21171_v51  ;;  %v1667_v11 = vpop.f32.mrb[129].mxu0  ;;  %31256 = vst [vmem:[#allocation126_spill] sm:$0xff] %v26865_v22  ;;  %v31258_v51 = vld [vmem:[#allocation51_spill] sm:$0xff] }
 0x2d1   :  { %v26853_v60 = vpack.c.bf16 %v2825_v47, %v2824_v0  ;;  %v2573_v0 = vadd.f32 %v26836_v49, %v2310_v4  ;;  %v21172_v35 = vpop.f32.mrb[130].mxu0  ;;  %v24988_v4 = vld [vmem:[%s30865_s0 + $0x3c0] sm:$0xff]  }
 0x2d2   :  { %21522 = vmatmul.mubr.bf16.gmra.mrb[48].mxu1 %v31248_v2  ;;  %v24984_v2 = vld [vmem:[%s30865_s0 + $0x3a8] sm:$0xff]   ;;  %v1670_v10 = vpop.f32.mrb[131].mxu0 }
 0x2d3   :  { %21525 = vmatprep.mubr.bf16.mxu1 %v31249_v14  ;;  %v2571_v14 = vadd.f32 %v26836_v49, %v2308_v56  ;;  %21274 = vmatmul.mubr.bf16.gmra.mrb[232].mxu0 %v24984_v2  ;;  %v24985_v56 = vld [vmem:[%s30865_s0 + $0x3b0] sm:$0xff]   ;;  %v24986_v2 = vld [vmem:[%s30865_s0 + $0x3b8] sm:$0xff]   ;;  %31252 = vst [vmem:[#allocation122_spill] sm:$0xff] %v26853_v60 }
 0x2d4   :  { %21277 = vmatprep.mubr.bf16.mxu0 %v24985_v56  ;;  %v2313_v56 = vmul.f32 %v26819_v5, %v1667_v11  ;;  %v21175_v34 = vpop.f32.mrb[132].mxu0  ;;  %v30969_v11 = vmax.f32 %v26865_v22, 0.0 }
 0x2d5   :  { %v2827_v20 = vmax.f32 %v2571_v14, 0.0  ;;  %v26857_v14 = vpack.c.bf16 %v2826_v16, %v2825_v47  ;;  %v31257_v47 = vld [vmem:[#allocation45_spill] sm:$0xff] }
 0x2d6   :  { %v26892_v40 = vadd.f32 %v26836_v49, %v2313_v56 }
 0x2d7   :  { %v26855_v3 = vpack.c.bf16 %v2827_v20, %v2826_v16  ;;  %31254 = vst [vmem:[#allocation124_spill] sm:$0xff] %v26857_v14  ;;  %v2578_v16 = vadd.f32 %v26836_v49, %v2315_v62  ;;  %v24989_v62 = vld [vmem:[%s30865_s0 + $0x3c8] sm:$0xff]   ;;  %v1683_v14 = vpop.f32.mrb[133].mxu0 }
 0x2d9   :  { %31253 = vst [vmem:[#allocation123_spill] sm:$0xff] %v26855_v3 }
 0x2da   :  { %21526 = vmatmul.mubr.bf16.gmra.mrb[52].mxu1 %v31250_v42  ;;  %v2574_v42 = vadd.f32 %v26836_v49, %v2311_v43  ;;  %v2829_v43 = vmax.f32 %v2573_v0, 0.0 }
 0x2db   :  { %21529 = vmatprep.mubr.bf16.mxu1 %v31251_v58  ;;  %v26860_v58 = vpack.c.bf16 %v2828_v7, %v2827_v20  ;;  %21278 = vmatmul.mubr.bf16.gmra.mrb[236].mxu0 %v24986_v2  ;;  %v2316_v20 = vmul.f32 %v26819_v5, %v21172_v35  ;;  %v2314_v2 = vmul.f32 %v26819_v5, %v1670_v10 }
 0x2dc   :  { %v26881_v35 = vpack.c.bf16 %v2829_v43, %v2828_v7  ;;  %v2317_v10 = vmul.f32 %v26819_v5, %v1683_v14  ;;  %21281 = vmatprep.mubr.bf16.mxu0 %v24988_v4  ;;  %v2319_v14 = vmul.f32 %v26819_v5, %v21175_v34  ;;  %v30971_v4 = vmax.f32 %v26892_v40, 0.0 }
 0x2dd   :  { %31255 = vst [vmem:[#allocation125_spill] sm:$0xff] %v26860_v58  ;;  %v2830_v58 = vmax.f32 %v2574_v42, 0.0  ;;  %v2834_v42 = vmax.f32 %v2578_v16, 0.0  ;;  %v2579_v3 = vadd.f32 %v26836_v49, %v2316_v20  ;;  %v31262_v16 = vld [vmem:[#allocation49_spill] sm:$0xff] }
 0x2de   :  { %31259 = vst [vmem:[#allocation127_spill] sm:$0xff] %v26881_v35 }
 0x2df   :  { %v26883_v0 = vpack.c.bf16 %v2830_v58, %v2829_v43  ;;  %v2580_v43 = vadd.f32 %v26836_v49, %v2317_v10 }
 0x2e1   :  { %31260 = vst [vmem:[#allocation128_spill] sm:$0xff] %v26883_v0 }
 0x2e2   :  { %21530 = vmatmul.mubr.bf16.gmra.mrb[56].mxu1 %v31257_v47  ;;  %v26889_v47 = vpack.c.bf16 %v30969_v11, %v2830_v58  ;;  %v2835_v58 = vmax.f32 %v2579_v3, 0.0  ;;  %v2836_v11 = vmax.f32 %v2580_v43, 0.0 }
 0x2e3   :  { %21533 = vmatprep.mubr.bf16.mxu1 %v31258_v51  ;;  %v2577_v51 = vadd.f32 %v26836_v49, %v2314_v2  ;;  %21282 = vmatmul.mubr.bf16.gmra.mrb[240].mxu0 %v24989_v62  ;;  %v21176_v2 = vpop.f32.mrb[134].mxu0  ;;  %v24991_v62 = vld [vmem:[%s30865_s0 + $0x3d8] sm:$0xff]  }
 0x2e4   :  { %31261 = vst [vmem:[#allocation129_spill] sm:$0xff] %v26889_v47  ;;  %v2320_v56 = vmul.f32 %v26819_v5, %v21176_v2  ;;  %v1686_v20 = vpop.f32.mrb[135].mxu0  ;;  %v26910_v22 = vpack.c.bf16 %v2836_v11, %v2835_v58  ;;  %v26912_v3 = vpack.c.bf16 %v2835_v58, %v2834_v42 }
 0x2e5   :  { %v2833_v7 = vmax.f32 %v2577_v51, 0.0  ;;  %v24990_v51 = vld [vmem:[%s30865_s0 + $0x3d0] sm:$0xff]   ;;  %v2318_v34 = vmul.f32 %v26819_v5, %v1686_v20  ;;  %v21179_v10 = vpop.f32.mrb[136].mxu0  ;;  %v24957_v20 = vld [vmem:[%s30866_s4 + $0x108] sm:$0xff]  }
 0x2e6   :  { %21285 = vmatprep.mubr.bf16.mxu0 %v24990_v51  ;;  %v1699_v43 = vpop.f32.mrb[137].mxu0  ;;  %v2583_v47 = vadd.f32 %v26836_v49, %v2320_v56 }
 0x2e7   :  { %v26896_v0 = vpack.c.bf16 %v2834_v42, %v2833_v7  ;;  %v26916_v2 = vpack.c.bf16 %v2833_v7, %v30971_v4  ;;  %v2581_v35 = vadd.f32 %v26836_v49, %v2318_v34  ;;  %v21180_v60 = vpop.f32.mrb[138].mxu0  ;;  %v2323_v42 = vmul.f32 %v26819_v5, %v21179_v10  ;;  %v24994_v34 = vld [vmem:[%s30865_s0 + $0x3e8] sm:$0xff]  }
 0x2e8   :  { %v2321_v58 = vmul.f32 %v26819_v5, %v1699_v43  ;;  %v2324_v7 = vmul.f32 %v26819_v5, %v21180_v60  ;;  %v2839_v4 = vmax.f32 %v2583_v47, 0.0  ;;  %v1702_v56 = vpop.f32.mrb[139].mxu0  ;;  %v24962_v60 = vld [vmem:[%s30866_s4 + $0x110] sm:$0xff]  }
 0x2e9   :  { %v2837_v51 = vmax.f32 %v2581_v35, 0.0  ;;  %v2322_v47 = vmul.f32 %v26819_v5, %v1702_v56  ;;  %v21183_v35 = vpop.f32.mrb[140].mxu0  ;;  %v2586_v43 = vadd.f32 %v26836_v49, %v2323_v42 }
 0x2ea   :  { %21534 = vmatmul.mubr.bf16.gmra.mrb[60].mxu1 %v31262_v16  ;;  %v2582_v16 = vadd.f32 %v26836_v49, %v2319_v14  ;;  %v1715_v48 = vpop.f32.mrb[141].mxu0  ;;  %v26948_v25 = vadd.f32 %v26836_v49, %v2321_v58  ;;  %v2587_v32 = vadd.f32 %v26836_v49, %v2324_v7  ;;  %v2327_v42 = vmul.f32 %v26819_v5, %v21183_v35 }
 0x2eb   :  { %21553 = vmatprep.mubr.bf16.mxu1 %v31225_v33  ;;  %21286 = vmatmul.mubr.bf16.gmra.mrb[244].mxu0 %v24991_v62  ;;  %v24993_v62 = vld [vmem:[%s30865_s0 + $0x3e0] sm:$0xff]   ;;  %v2585_v63 = vadd.f32 %v26836_v49, %v2322_v47  ;;  %v2325_v56 = vmul.f32 %v26819_v5, %v1715_v48  ;;  %v21184_v58 = vpop.f32.mrb[142].mxu0  ;;  %v24996_v47 = vld [vmem:[%s30865_s0 + $0x3f8] sm:$0xff]  }
 0x2ec   :  { %v2838_v14 = vmax.f32 %v2582_v16, 0.0  ;;  %v26942_v16 = vpack.c.bf16 %v2837_v51, %v2836_v11  ;;  %21289 = vmatprep.mubr.bf16.mxu0 %v24993_v62  ;;  %v24967_v11 = vld [vmem:[%s30866_s4 + $0x118] sm:$0xff]   ;;  %v30980_v7 = vmax.f32 %v26948_v25, 0.0  ;;  %v2843_v62 = vmax.f32 %v2587_v32, 0.0 }
 0x2ed   :  { %v2328_v48 = vmul.f32 %v26819_v5, %v21184_v58 }
 0x2ee   :  { %v26944_v10 = vpack.c.bf16 %v2839_v4, %v2838_v14  ;;  %v2588_v4 = vadd.f32 %v26836_v49, %v2325_v56 }
 0x2ef   :  { %v2591_v52 = vadd.f32 %v26836_v49, %v2328_v48 }
 0x2f0   :  { %v2844_v35 = vmax.f32 %v2588_v4, 0.0  ;;  %v2590_v4 = vadd.f32 %v26836_v49, %v2327_v42 }
 0x2f2   :  { %21554 = vmatmul.mubr.bf16.vlgmr.msra.gmra.mrb[0].mxu1 %v31225_v33  ;;  %v2846_v50 = vmax.f32 %v2590_v4, 0.0 }
 0x2f3   :  { %21618 = vmatpush3.bf16.msra.mxu1 %v26748_v44  ;;  %21557 = vmatprep.mubr.bf16.mxu1 %v31225_v33  ;;  %v26940_v44 = vpack.c.bf16 %v2838_v14, %v2837_v51  ;;  %v2841_v51 = vmax.f32 %v2585_v63, 0.0  ;;  %v2842_v14 = vmax.f32 %v2586_v43, 0.0  ;;  %v24972_v63 = vld [vmem:[%s30866_s4 + $0x120] sm:$0xff]  }
 0x2f4   :  { %21619 = vmatprep.subr.bf16.mxu1 %v24957_v20  ;;  %21290 = vmatmul.mubr.bf16.gmra.mrb[248].mxu0 %v24994_v34  ;;  %v24995_v34 = vld [vmem:[%s30865_s0 + $0x3f0] sm:$0xff]  }
 0x2f5   :  { %v26972_v43 = vpack.c.bf16 %v2842_v14, %v2841_v51  ;;  %v26976_v56 = vpack.c.bf16 %v2841_v51, %v30980_v7  ;;  %21293 = vmatprep.mubr.bf16.mxu0 %v24995_v34  ;;  %v24977_v51 = vld [vmem:[%s30866_s4 + $0x128] sm:$0xff]  }
 0x2f7   :  { %21620 = vmatpush3.bf16.msra.mxu1 %v24957_v20  ;;  %v1718_v20 = vpop.f32.mrb[143].mxu0  ;;  %31263 = vst [vmem:[#allocation130_spill] sm:$0xff] %v26972_v43 }
 0x2f8   :  { %21621 = vmatprep.subr.bf16.mxu1 %v24962_v60  ;;  %v2326_v32 = vmul.f32 %v26819_v5, %v1718_v20 }
 0x2fa   :  { %21558 = vmatmul.mubr.bf16.gmra.mrb[4].mxu1 %v31225_v33  ;;  %v26978_v33 = vpack.c.bf16 %v2844_v35, %v2843_v62  ;;  %v2589_v30 = vadd.f32 %v26836_v49, %v2326_v32  ;;  %v2847_v32 = vmax.f32 %v2591_v52, 0.0 }
 0x2fb   :  { %21561 = vmatprep.mubr.bf16.mxu1 %v26240_v55  ;;  %21622 = vmatpush3.bf16.msra.mxu1 %v24962_v60  ;;  %v21187_v60 = vpop.f32.mrb[144].mxu0  ;;  %v26980_v55 = vpack.c.bf16 %v2843_v62, %v2842_v14  ;;  %v31265_v14 = vld [vmem:[#allocation64_spill] sm:$0xff] }
 0x2fc   :  { %21623 = vmatprep.subr.bf16.mxu1 %v24967_v11  ;;  %v1731_v58 = vpop.f32.mrb[145].mxu0  ;;  %31264 = vst [vmem:[#allocation131_spill] sm:$0xff] %v26978_v33  ;;  %21294 = vmatmul.mubr.bf16.gmra.mrb[252].mxu0 %v24996_v47  ;;  %v2331_v34 = vmul.f32 %v26819_v5, %v21187_v60  ;;  %v2845_v48 = vmax.f32 %v2589_v30, 0.0  ;;  %v31266_v47 = vld [vmem:[#allocation67_spill] sm:$0xff]  ;;  %v24982_v60 = vld [vmem:[%s30866_s4 + $0x130] sm:$0xff]  }
 0x2fd   :  { %v21188_v20 = vpop.f32.mrb[146].mxu0  ;;  %v2329_v7 = vmul.f32 %v26819_v5, %v1731_v58  ;;  %22593 = vmatprep.mubr.msk.bf16.mxu0 %vm25612_vm0, %v31226_v12 }
 0x2fe   :  { %v2332_v42 = vmul.f32 %v26819_v5, %v21188_v20  ;;  %v1734_v62 = vpop.f32.mrb[147].mxu0  ;;  %v26997_v9 = vpack.c.bf16 %v2846_v50, %v2845_v48  ;;  %v27001_v20 = vpack.c.bf16 %v2847_v32, %v2846_v50  ;;  %v2594_v30 = vadd.f32 %v26836_v49, %v2331_v34  ;;  %v24987_v50 = vld [vmem:[%s30866_s4 + $0x138] sm:$0xff]  }
 0x2ff   :  { %21624 = vmatpush3.bf16.msra.mxu1 %v24967_v11  ;;  %v2330_v11 = vmul.f32 %v26819_v5, %v1734_v62  ;;  %v21191_v28 = vpop.f32.mrb[148].mxu0 }
 0x300   :  { %21625 = vmatprep.subr.bf16.mxu1 %v24972_v63  ;;  %v1747_v58 = vpop.f32.mrb[149].mxu0  ;;  %31267 = vst [vmem:[#allocation132_spill] sm:$0xff] %v26997_v9  ;;  %31269 = vst [vmem:[#allocation134_spill] sm:$0xff] %v27001_v20  ;;  %v2595_v4 = vadd.f32 %v26836_v49, %v2332_v42 }
 0x301   :  { %v2333_v52 = vmul.f32 %v26819_v5, %v1747_v58  ;;  %v2593_v62 = vadd.f32 %v26836_v49, %v2330_v11  ;;  %v21192_v34 = vpop.f32.mrb[150].mxu0  ;;  %v31273_v11 = vld [vmem:[#allocation70_spill] sm:$0xff] }
 0x302   :  { %21562 = vmatmul.mubr.bf16.gmra.mrb[8].mxu1 %v31265_v14  ;;  %v26999_v14 = vpack.c.bf16 %v2845_v48, %v2844_v35  ;;  %v27014_v35 = vpack.c.bf16 %v31226_v12, %v31271_v57  ;;  %v2850_v48 = vmax.f32 %v2594_v30, 0.0  ;;  %v2851_v32 = vmax.f32 %v2595_v4, 0.0  ;;  %v1750_v24 = vpop.f32.mrb[151].mxu0 }
 0x303   :  { %21565 = vmatprep.mubr.bf16.mxu1 %v31266_v47  ;;  %21626 = vmatpush3.bf16.msra.mxu1 %v24972_v63  ;;  %v27006_v63 = vadd.f32 %v26836_v49, %v2329_v7  ;;  %v2596_v47 = vadd.f32 %v26836_v49, %v2333_v52  ;;  %v2335_v7 = vmul.f32 %v26819_v5, %v21191_v28  ;;  %v27027_v28 = vld [vmem:[%s30866_s4 + $0x140] sm:$0xff]  }
 0x304   :  { %21627 = vmatprep.subr.bf16.mxu1 %v24977_v51  ;;  %31268 = vst [vmem:[#allocation133_spill] sm:$0xff] %v26999_v14  ;;  %31272 = vst [vmem:[#allocation63_spill] sm:$0xff] %v27014_v35  ;;  %v2336_v57 = vmul.f32 %v26819_v5, %v21192_v34  ;;  %v2334_v52 = vmul.f32 %v26819_v5, %v1750_v24  ;;  %v27038_v34 = vpack.c.bf16 %v2851_v32, %v2850_v48 }
 0x305   :  { %v2852_v58 = vmax.f32 %v2596_v47, 0.0  ;;  %v31275_v30 = vmax.f32 %v27006_v63, 0.0  ;;  %v2598_v47 = vadd.f32 %v26836_v49, %v2335_v7 }
 0x306   :  { %31278 = vst [vmem:[#allocation138_spill] sm:$0xff] %v27038_v34  ;;  %v2597_v17 = vadd.f32 %v26836_v49, %v2334_v52 }
 0x307   :  { %21628 = vmatpush3.bf16.msra.mxu1 %v24977_v51  ;;  %v2849_v51 = vmax.f32 %v2593_v62, 0.0  ;;  %v27036_v62 = vpack.c.bf16 %v2852_v58, %v2851_v32  ;;  %v2854_v31 = vmax.f32 %v2598_v47, 0.0 }
 0x308   :  { %21629 = vmatprep.subr.bf16.mxu1 %v24982_v60  ;;  %v2853_v32 = vmax.f32 %v2597_v17, 0.0 }
 0x309   :  { %v27030_v42 = vpack.c.bf16 %v2850_v48, %v2849_v51  ;;  %v27034_v4 = vpack.c.bf16 %v2849_v51, %v31275_v30  ;;  %31277 = vst [vmem:[#allocation137_spill] sm:$0xff] %v27036_v62  ;;  %v31279_v30 = vld [vmem:[#allocation72_spill] sm:$0xff] }
 0x30a   :  { %21566 = vmatmul.mubr.bf16.gmra.mrb[12].mxu1 %v27014_v35  ;;  %v21195_v35 = vpop.f32.mrb[152].mxu0  ;;  %v27050_v54 = vpack.c.bf16 %v2854_v31, %v2853_v32  ;;  %v27052_v36 = vpack.c.bf16 %v2853_v32, %v2852_v58 }
 0x30b   :  { %21569 = vmatprep.mubr.bf16.mxu1 %v31273_v11  ;;  %21630 = vmatpush3.bf16.msra.mxu1 %v24982_v60  ;;  %31274 = vst [vmem:[#allocation135_spill] sm:$0xff] %v27030_v42  ;;  %31276 = vst [vmem:[#allocation136_spill] sm:$0xff] %v27034_v4  ;;  %v1763_v60 = vpop.f32.mrb[153].mxu0  ;;  %v2599_v11 = vadd.f32 %v26836_v49, %v2336_v57  ;;  %v2339_v24 = vmul.f32 %v26819_v5, %v21195_v35 }
 0x30c   :  { %21631 = vmatprep.subr.bf16.mxu1 %v24987_v50  ;;  %v21196_v45 = vpop.f32.mrb[154].mxu0  ;;  %v2337_v51 = vmul.f32 %v26819_v5, %v1763_v60  ;;  %31281 = vst [vmem:[#allocation139_spill] sm:$0xff] %v27050_v54  ;;  %31282 = vst [vmem:[#allocation140_spill] sm:$0xff] %v27052_v36  ;;  %v31331_v36 = vld [vmem:[#allocation104_spill] sm:$0xff] }
 0x30d   :  { %v2340_v21 = vmul.f32 %v26819_v5, %v21196_v45  ;;  %v1766_v48 = vpop.f32.mrb[155].mxu0  ;;  %v2855_v7 = vmax.f32 %v2599_v11, 0.0  ;;  %v2602_v45 = vadd.f32 %v26836_v49, %v2339_v24 }
 0x30e   :  { %v2338_v57 = vmul.f32 %v26819_v5, %v1766_v48  ;;  %v21199_v52 = vpop.f32.mrb[156].mxu0  ;;  %v27059_v17 = vadd.f32 %v26836_v49, %v2337_v51 }
 0x30f   :  { %21632 = vmatpush3.bf16.msra.mxu1 %v24987_v50  ;;  %v1779_v50 = vpop.f32.mrb[157].mxu0  ;;  %v27054_v35 = vpack.c.bf16 %v2855_v7, %v2854_v31  ;;  %v2603_v11 = vadd.f32 %v26836_v49, %v2340_v21  ;;  %v2343_v31 = vmul.f32 %v26819_v5, %v21199_v52  ;;  %v2858_v7 = vmax.f32 %v2602_v45, 0.0  ;;  %v31287_v21 = vld [vmem:[#allocation78_spill] sm:$0xff] }
 0x310   :  { %21697 = vmatprep.subr.bf16.mxu1 %v27027_v28  ;;  %v2341_v60 = vmul.f32 %v26819_v5, %v1779_v50  ;;  %v2601_v47 = vadd.f32 %v26836_v49, %v2338_v57  ;;  %v21200_v32 = vpop.f32.mrb[158].mxu0  ;;  %v30999_v24 = vmax.f32 %v27059_v17, 0.0 }
 0x311   :  { %31283 = vst [vmem:[#allocation141_spill] sm:$0xff] %v27054_v35  ;;  %v2859_v50 = vmax.f32 %v2603_v11, 0.0  ;;  %v2344_v57 = vmul.f32 %v26819_v5, %v21200_v32  ;;  %v2606_v11 = vadd.f32 %v26836_v49, %v2343_v31 }
 0x312   :  { %21570 = vmatmul.mubr.bf16.gmra.mrb[16].mxu1 %v31279_v30  ;;  %v2604_v48 = vadd.f32 %v26836_v49, %v2341_v60  ;;  %v2857_v51 = vmax.f32 %v2601_v47, 0.0  ;;  %v1782_v60 = vpop.f32.mrb[159].mxu0 }
 0x313   :  { %21573 = vmatprep.mubr.bf16.mxu1 %v31280_v8  ;;  %v31284_v8 = vld [vmem:[#allocation71_spill] sm:$0xff]  ;;  %v27083_v45 = vpack.c.bf16 %v2859_v50, %v2858_v7  ;;  %v2607_v47 = vadd.f32 %v26836_v49, %v2344_v57  ;;  %v2862_v59 = vmax.f32 %v2606_v11, 0.0 }
 0x314   :  { %v31285_v30 = vmax.f32 %v31284_v8, 0.0  ;;  %v2860_v13 = vmax.f32 %v2604_v48, 0.0  ;;  %v2342_v8 = vmul.f32 %v26819_v5, %v1782_v60  ;;  %v27075_v18 = vpack.c.bf16 %v2858_v7, %v2857_v51 }
 0x315   :  { %v27079_v52 = vpack.c.bf16 %v2857_v51, %v30999_v24  ;;  %31291 = vst [vmem:[#allocation145_spill] sm:$0xff] %v27083_v45  ;;  %v2863_v7 = vmax.f32 %v2607_v47, 0.0 }
 0x316   :  { %v27067_v58 = vpack.c.bf16 %v31226_v12, %v31285_v30  ;;  %v21203_v30 = vpop.f32.mrb[160].mxu0  ;;  %31288 = vst [vmem:[#allocation142_spill] sm:$0xff] %v27075_v18  ;;  %v27081_v41 = vpack.c.bf16 %v2860_v13, %v2859_v50  ;;  %v2605_v48 = vadd.f32 %v26836_v49, %v2342_v8  ;;  %v31293_v50 = vld [vmem:[#allocation83_spill] sm:$0xff] }
 0x317   :  { %31289 = vst [vmem:[#allocation143_spill] sm:$0xff] %v27079_v52  ;;  %v2347_v60 = vmul.f32 %v26819_v5, %v21203_v30  ;;  %v27098_v30 = vpack.c.bf16 %v2863_v7, %v2862_v59 }
 0x318   :  { %31286 = vst [vmem:[#allocation71_spill] sm:$0xff] %v27067_v58  ;;  %31290 = vst [vmem:[#allocation144_spill] sm:$0xff] %v27081_v41  ;;  %v2861_v6 = vmax.f32 %v2605_v48, 0.0 }
 0x319   :  { %31296 = vst [vmem:[#allocation148_spill] sm:$0xff] %v27098_v30 }
 0x31a   :  { %21574 = vmatmul.mubr.bf16.gmra.mrb[20].mxu1 %v27067_v58  ;;  %v1795_v58 = vpop.f32.mrb[161].mxu0  ;;  %v27094_v8 = vpack.c.bf16 %v2862_v59, %v2861_v6  ;;  %v27096_v37 = vpack.c.bf16 %v2861_v6, %v2860_v13 }
 0x31b   :  { %21577 = vmatprep.mubr.bf16.mxu1 %v31287_v21  ;;  %v21204_v32 = vpop.f32.mrb[162].mxu0  ;;  %v2345_v21 = vmul.f32 %v26819_v5, %v1795_v58 }
 0x31c   :  { %v2348_v51 = vmul.f32 %v26819_v5, %v21204_v32  ;;  %v1798_v24 = vpop.f32.mrb[163].mxu0  ;;  %31294 = vst [vmem:[#allocation146_spill] sm:$0xff] %v27094_v8  ;;  %31295 = vst [vmem:[#allocation147_spill] sm:$0xff] %v27096_v37  ;;  %v2610_v32 = vadd.f32 %v26836_v49, %v2347_v60  ;;  %v31318_v37 = vld [vmem:[#allocation96_spill] sm:$0xff] }
 0x31d   :  { %v2346_v31 = vmul.f32 %v26819_v5, %v1798_v24  ;;  %v21207_v57 = vpop.f32.mrb[164].mxu0  ;;  %v27103_v48 = vadd.f32 %v26836_v49, %v2345_v21 }
 0x31e   :  { %v1811_v46 = vpop.f32.mrb[165].mxu0  ;;  %v2611_v11 = vadd.f32 %v26836_v49, %v2348_v51  ;;  %v2351_v13 = vmul.f32 %v26819_v5, %v21207_v57  ;;  %v2866_v60 = vmax.f32 %v2610_v32, 0.0  ;;  %v31300_v51 = vld [vmem:[#allocation86_spill] sm:$0xff] }
 0x31f   :  { %v2349_v58 = vmul.f32 %v26819_v5, %v1811_v46  ;;  %v2609_v47 = vadd.f32 %v26836_v49, %v2346_v31  ;;  %v21208_v46 = vpop.f32.mrb[166].mxu0  ;;  %v31009_v59 = vmax.f32 %v27103_v48, 0.0 }
 0x320   :  { %v2867_v7 = vmax.f32 %v2611_v11, 0.0  ;;  %v2352_v31 = vmul.f32 %v26819_v5, %v21208_v46  ;;  %v2614_v11 = vadd.f32 %v26836_v49, %v2351_v13 }
 0x321   :  { %v2612_v24 = vadd.f32 %v26836_v49, %v2349_v58  ;;  %v2865_v21 = vmax.f32 %v2609_v47, 0.0  ;;  %v1814_v58 = vpop.f32.mrb[167].mxu0 }
 0x322   :  { %21578 = vmatmul.mubr.bf16.gmra.mrb[24].mxu1 %v31292_v29  ;;  %v27127_v32 = vpack.c.bf16 %v2867_v7, %v2866_v60  ;;  %v2615_v47 = vadd.f32 %v26836_v49, %v2352_v31  ;;  %v2870_v38 = vmax.f32 %v2614_v11, 0.0 }
 0x323   :  { %21581 = vmatprep.mubr.bf16.mxu1 %v31293_v50  ;;  %v31297_v50 = vld [vmem:[#allocation79_spill] sm:$0xff]  ;;  %v2868_v19 = vmax.f32 %v2612_v24, 0.0  ;;  %v27119_v23 = vpack.c.bf16 %v2866_v60, %v2865_v21  ;;  %v27123_v57 = vpack.c.bf16 %v2865_v21, %v31009_v59 }
 0x324   :  { %v31298_v29 = vmax.f32 %v31297_v50, 0.0  ;;  %v2350_v50 = vmul.f32 %v26819_v5, %v1814_v58  ;;  %31304 = vst [vmem:[#allocation152_spill] sm:$0xff] %v27127_v32  ;;  %v2871_v60 = vmax.f32 %v2615_v47, 0.0 }
 0x325   :  { %31301 = vst [vmem:[#allocation149_spill] sm:$0xff] %v27119_v23  ;;  %31302 = vst [vmem:[#allocation150_spill] sm:$0xff] %v27123_v57  ;;  %v27125_v61 = vpack.c.bf16 %v2868_v19, %v2867_v7  ;;  %v31306_v7 = vld [vmem:[#allocation91_spill] sm:$0xff] }
 0x326   :  { %v27111_v6 = vpack.c.bf16 %v31226_v12, %v31298_v29  ;;  %v21211_v29 = vpop.f32.mrb[168].mxu0  ;;  %v2613_v24 = vadd.f32 %v26836_v49, %v2350_v50 }
 0x327   :  { %31303 = vst [vmem:[#allocation151_spill] sm:$0xff] %v27125_v61  ;;  %v2355_v58 = vmul.f32 %v26819_v5, %v21211_v29  ;;  %v27142_v29 = vpack.c.bf16 %v2871_v60, %v2870_v38 }
 0x328   :  { %31299 = vst [vmem:[#allocation79_spill] sm:$0xff] %v27111_v6  ;;  %v2869_v39 = vmax.f32 %v2613_v24, 0.0 }
 0x329   :  { %31309 = vst [vmem:[#allocation155_spill] sm:$0xff] %v27142_v29 }
 0x32a   :  { %21582 = vmatmul.mubr.bf16.gmra.mrb[28].mxu1 %v27111_v6  ;;  %v1827_v6 = vpop.f32.mrb[169].mxu0  ;;  %v27138_v50 = vpack.c.bf16 %v2870_v38, %v2869_v39  ;;  %v27140_v57 = vpack.c.bf16 %v2869_v39, %v2868_v19 }
 0x32b   :  { %21585 = vmatprep.mubr.bf16.mxu1 %v31300_v51  ;;  %v21212_v46 = vpop.f32.mrb[170].mxu0  ;;  %v2353_v51 = vmul.f32 %v26819_v5, %v1827_v6 }
 0x32c   :  { %v2356_v21 = vmul.f32 %v26819_v5, %v21212_v46  ;;  %v1830_v59 = vpop.f32.mrb[171].mxu0  ;;  %31307 = vst [vmem:[#allocation153_spill] sm:$0xff] %v27138_v50  ;;  %31308 = vst [vmem:[#allocation154_spill] sm:$0xff] %v27140_v57  ;;  %v2618_v46 = vadd.f32 %v26836_v49, %v2355_v58 }
 0x32d   :  { %v2354_v13 = vmul.f32 %v26819_v5, %v1830_v59  ;;  %v21215_v31 = vpop.f32.mrb[172].mxu0  ;;  %v27147_v24 = vadd.f32 %v26836_v49, %v2353_v51 }
 0x32e   :  { %v1843_v32 = vpop.f32.mrb[173].mxu0  ;;  %v2619_v11 = vadd.f32 %v26836_v49, %v2356_v21  ;;  %v2359_v19 = vmul.f32 %v26819_v5, %v21215_v31  ;;  %v2874_v58 = vmax.f32 %v2618_v46, 0.0  ;;  %v31313_v21 = vld [vmem:[#allocation94_spill] sm:$0xff] }
 0x32f   :  { %v2357_v6 = vmul.f32 %v26819_v5, %v1843_v32  ;;  %v2617_v47 = vadd.f32 %v26836_v49, %v2354_v13  ;;  %v21216_v38 = vpop.f32.mrb[174].mxu0  ;;  %v31019_v32 = vmax.f32 %v27147_v24, 0.0 }
 0x330   :  { %v2875_v60 = vmax.f32 %v2619_v11, 0.0  ;;  %v2360_v13 = vmul.f32 %v26819_v5, %v21216_v38  ;;  %v2622_v11 = vadd.f32 %v26836_v49, %v2359_v19 }
 0x331   :  { %v2620_v59 = vadd.f32 %v26836_v49, %v2357_v6  ;;  %v2873_v51 = vmax.f32 %v2617_v47, 0.0  ;;  %v1846_v6 = vpop.f32.mrb[175].mxu0 }
 0x332   :  { %21586 = vmatmul.mubr.bf16.gmra.mrb[32].mxu1 %v31305_v53  ;;  %v27171_v46 = vpack.c.bf16 %v2875_v60, %v2874_v58  ;;  %v2623_v47 = vadd.f32 %v26836_v49, %v2360_v13  ;;  %v2878_v45 = vmax.f32 %v2622_v11, 0.0 }
 0x333   :  { %21589 = vmatprep.mubr.bf16.mxu1 %v31306_v7  ;;  %v31310_v7 = vld [vmem:[#allocation87_spill] sm:$0xff]  ;;  %v2876_v29 = vmax.f32 %v2620_v59, 0.0  ;;  %v27163_v57 = vpack.c.bf16 %v2874_v58, %v2873_v51  ;;  %v27167_v31 = vpack.c.bf16 %v2873_v51, %v31019_v32 }
 0x334   :  { %v31311_v53 = vmax.f32 %v31310_v7, 0.0  ;;  %v2358_v7 = vmul.f32 %v26819_v5, %v1846_v6  ;;  %31317 = vst [vmem:[#allocation159_spill] sm:$0xff] %v27171_v46  ;;  %v2879_v58 = vmax.f32 %v2623_v47, 0.0 }
 0x335   :  { %31314 = vst [vmem:[#allocation156_spill] sm:$0xff] %v27163_v57  ;;  %31315 = vst [vmem:[#allocation157_spill] sm:$0xff] %v27167_v31  ;;  %v27169_v30 = vpack.c.bf16 %v2876_v29, %v2875_v60  ;;  %v31319_v60 = vld [vmem:[#allocation99_spill] sm:$0xff] }
 0x336   :  { %v27155_v39 = vpack.c.bf16 %v31226_v12, %v31311_v53  ;;  %v21219_v53 = vpop.f32.mrb[176].mxu0  ;;  %v2621_v59 = vadd.f32 %v26836_v49, %v2358_v7 }
 0x337   :  { %31316 = vst [vmem:[#allocation158_spill] sm:$0xff] %v27169_v30  ;;  %v2363_v6 = vmul.f32 %v26819_v5, %v21219_v53  ;;  %v27186_v53 = vpack.c.bf16 %v2879_v58, %v2878_v45 }
 0x338   :  { %31312 = vst [vmem:[#allocation87_spill] sm:$0xff] %v27155_v39  ;;  %v2877_v31 = vmax.f32 %v2621_v59, 0.0 }
 0x339   :  { %31322 = vst [vmem:[#allocation162_spill] sm:$0xff] %v27186_v53 }
 0x33a   :  { %21590 = vmatmul.mubr.bf16.gmra.mrb[36].mxu1 %v27155_v39  ;;  %v1859_v39 = vpop.f32.mrb[177].mxu0  ;;  %v27182_v7 = vpack.c.bf16 %v2878_v45, %v2877_v31  ;;  %v27184_v52 = vpack.c.bf16 %v2877_v31, %v2876_v29 }
 0x33b   :  { %21593 = vmatprep.mubr.bf16.mxu1 %v31313_v21  ;;  %v21220_v38 = vpop.f32.mrb[178].mxu0  ;;  %v2361_v21 = vmul.f32 %v26819_v5, %v1859_v39 }
 0x33c   :  { %v2364_v51 = vmul.f32 %v26819_v5, %v21220_v38  ;;  %v1862_v32 = vpop.f32.mrb[179].mxu0  ;;  %31320 = vst [vmem:[#allocation160_spill] sm:$0xff] %v27182_v7  ;;  %31321 = vst [vmem:[#allocation161_spill] sm:$0xff] %v27184_v52  ;;  %v2626_v38 = vadd.f32 %v26836_v49, %v2363_v6 }
 0x33d   :  { %v2362_v19 = vmul.f32 %v26819_v5, %v1862_v32  ;;  %v21223_v13 = vpop.f32.mrb[180].mxu0  ;;  %v27191_v59 = vadd.f32 %v26836_v49, %v2361_v21 }
 0x33e   :  { %v1875_v46 = vpop.f32.mrb[181].mxu0  ;;  %v2627_v11 = vadd.f32 %v26836_v49, %v2364_v51  ;;  %v2367_v45 = vmul.f32 %v26819_v5, %v21223_v13  ;;  %v2882_v6 = vmax.f32 %v2626_v38, 0.0  ;;  %v31326_v51 = vld [vmem:[#allocation102_spill] sm:$0xff] }
 0x33f   :  { %v2365_v39 = vmul.f32 %v26819_v5, %v1875_v46  ;;  %v2625_v47 = vadd.f32 %v26836_v49, %v2362_v19  ;;  %v21224_v31 = vpop.f32.mrb[182].mxu0  ;;  %v31029_v46 = vmax.f32 %v27191_v59, 0.0 }
 0x340   :  { %v2883_v58 = vmax.f32 %v2627_v11, 0.0  ;;  %v2368_v19 = vmul.f32 %v26819_v5, %v21224_v31  ;;  %v2630_v11 = vadd.f32 %v26836_v49, %v2367_v45 }
 0x341   :  { %v2628_v32 = vadd.f32 %v26836_v49, %v2365_v39  ;;  %v2881_v21 = vmax.f32 %v2625_v47, 0.0  ;;  %v1878_v39 = vpop.f32.mrb[183].mxu0 }
 0x342   :  { %21594 = vmatmul.mubr.bf16.gmra.mrb[40].mxu1 %v31318_v37  ;;  %v27215_v38 = vpack.c.bf16 %v2883_v58, %v2882_v6  ;;  %v2631_v47 = vadd.f32 %v26836_v49, %v2368_v19  ;;  %v2886_v34 = vmax.f32 %v2630_v11, 0.0 }
 0x343   :  { %21597 = vmatprep.mubr.bf16.mxu1 %v31319_v60  ;;  %v31323_v60 = vld [vmem:[#allocation95_spill] sm:$0xff]  ;;  %v2884_v53 = vmax.f32 %v2628_v32, 0.0  ;;  %v27207_v52 = vpack.c.bf16 %v2882_v6, %v2881_v21  ;;  %v27211_v13 = vpack.c.bf16 %v2881_v21, %v31029_v46 }
 0x344   :  { %v31324_v37 = vmax.f32 %v31323_v60, 0.0  ;;  %v2366_v60 = vmul.f32 %v26819_v5, %v1878_v39  ;;  %31330 = vst [vmem:[#allocation166_spill] sm:$0xff] %v27215_v38  ;;  %v2887_v6 = vmax.f32 %v2631_v47, 0.0 }
 0x345   :  { %31327 = vst [vmem:[#allocation163_spill] sm:$0xff] %v27207_v52  ;;  %31328 = vst [vmem:[#allocation164_spill] sm:$0xff] %v27211_v13  ;;  %v27213_v35 = vpack.c.bf16 %v2884_v53, %v2883_v58  ;;  %v31332_v58 = vld [vmem:[#allocation107_spill] sm:$0xff] }
 0x346   :  { %v27199_v29 = vpack.c.bf16 %v31226_v12, %v31324_v37  ;;  %v21227_v37 = vpop.f32.mrb[184].mxu0  ;;  %v2629_v32 = vadd.f32 %v26836_v49, %v2366_v60 }
 0x347   :  { %31329 = vst [vmem:[#allocation165_spill] sm:$0xff] %v27213_v35  ;;  %v2371_v39 = vmul.f32 %v26819_v5, %v21227_v37  ;;  %v27230_v37 = vpack.c.bf16 %v2887_v6, %v2886_v34 }
 0x348   :  { %31325 = vst [vmem:[#allocation95_spill] sm:$0xff] %v27199_v29  ;;  %v2885_v13 = vmax.f32 %v2629_v32, 0.0 }
 0x349   :  { %31334 = vst [vmem:[#allocation168_spill] sm:$0xff] %v27230_v37 }
 0x34a   :  { %21598 = vmatmul.mubr.bf16.gmra.mrb[44].mxu1 %v27199_v29  ;;  %v1891_v29 = vpop.f32.mrb[185].mxu0  ;;  %v27226_v60 = vpack.c.bf16 %v2886_v34, %v2885_v13  ;;  %v27228_v4 = vpack.c.bf16 %v2885_v13, %v2884_v53 }
 0x34b   :  { %21601 = vmatprep.mubr.bf16.mxu1 %v31326_v51  ;;  %v21228_v31 = vpop.f32.mrb[186].mxu0  ;;  %v2369_v51 = vmul.f32 %v26819_v5, %v1891_v29 }
 0x34c   :  { %v2372_v21 = vmul.f32 %v26819_v5, %v21228_v31  ;;  %v1894_v46 = vpop.f32.mrb[187].mxu0  ;;  %31333 = vst [vmem:[#allocation167_spill] sm:$0xff] %v27228_v4  ;;  %v2634_v31 = vadd.f32 %v26836_v49, %v2371_v39 }
 0x34d   :  { %v2370_v45 = vmul.f32 %v26819_v5, %v1894_v46  ;;  %v21231_v19 = vpop.f32.mrb[188].mxu0  ;;  %v27235_v32 = vadd.f32 %v26836_v49, %v2369_v51 }
 0x34e   :  { %v1907_v38 = vpop.f32.mrb[189].mxu0  ;;  %v2635_v11 = vadd.f32 %v26836_v49, %v2372_v21  ;;  %v2375_v34 = vmul.f32 %v26819_v5, %v21231_v19  ;;  %v2890_v39 = vmax.f32 %v2634_v31, 0.0 }
 0x34f   :  { %v2373_v29 = vmul.f32 %v26819_v5, %v1907_v38  ;;  %v2633_v47 = vadd.f32 %v26836_v49, %v2370_v45  ;;  %v21232_v13 = vpop.f32.mrb[190].mxu0  ;;  %v31039_v38 = vmax.f32 %v27235_v32, 0.0 }
 0x350   :  { %v2891_v6 = vmax.f32 %v2635_v11, 0.0  ;;  %v2376_v21 = vmul.f32 %v26819_v5, %v21232_v13  ;;  %v1910_v45 = vpop.f32.mrb[191].mxu0  ;;  %v2638_v13 = vadd.f32 %v26836_v49, %v2375_v34 }
 0x351   :  { %v2636_v46 = vadd.f32 %v26836_v49, %v2373_v29  ;;  %v2889_v51 = vmax.f32 %v2633_v47, 0.0 }
 0x352   :  { %21602 = vmatmul.mubr.bf16.gmra.mrb[48].mxu1 %v31331_v36  ;;  %v27260_v11 = vpack.c.bf16 %v2891_v6, %v2890_v39 }
 0x353   :  { %21605 = vmatprep.mubr.bf16.mxu1 %v31332_v58  ;;  %v31335_v58 = vld [vmem:[#allocation103_spill] sm:$0xff]  ;;  %v2892_v29 = vmax.f32 %v2636_v46, 0.0  ;;  %v27251_v37 = vpack.c.bf16 %v2890_v39, %v2889_v51  ;;  %v27255_v19 = vpack.c.bf16 %v2889_v51, %v31039_v38  ;;  %v2639_v46 = vadd.f32 %v26836_v49, %v2376_v21 }
 0x354   :  { %v31336_v36 = vmax.f32 %v31335_v58, 0.0  ;;  %v2374_v58 = vmul.f32 %v26819_v5, %v1910_v45  ;;  %31339 = vst [vmem:[#allocation170_spill] sm:$0xff] %v27260_v11  ;;  %v2894_v11 = vmax.f32 %v2638_v13, 0.0 }
 0x355   :  { %31338 = vst [vmem:[#allocation169_spill] sm:$0xff] %v27255_v19  ;;  %v27258_v31 = vpack.c.bf16 %v2892_v29, %v2891_v6  ;;  %v2895_v34 = vmax.f32 %v2639_v46, 0.0 }
 0x356   :  { %v27243_v53 = vpack.c.bf16 %v31226_v12, %v31336_v36  ;;  %v21235_v36 = vpop.f32.mrb[192].mxu0  ;;  %v2637_v45 = vadd.f32 %v26836_v49, %v2374_v58 }
 0x357   :  { %v1923_v47 = vpop.f32.mrb[193].mxu0 }
 0x358   :  { %31337 = vst [vmem:[#allocation103_spill] sm:$0xff] %v27243_v53  ;;  %v2893_v6 = vmax.f32 %v2637_v45, 0.0 }
 0x35a   :  { %21606 = vmatmul.mubr.bf16.gmra.mrb[52].mxu1 %v27243_v53  ;;  %v2379_v53 = vmul.f32 %v26819_v5, %v21235_v36  ;;  %v2377_v36 = vmul.f32 %v26819_v5, %v1923_v47  ;;  %v27272_v14 = vpack.c.bf16 %v2894_v11, %v2893_v6 }
 0x35b   :  { %21609 = vmatprep.mubr.bf16.mxu1 %v26474_v26  ;;  %v21236_v26 = vpop.f32.mrb[194].mxu0 }
 0x35c   :  { %v2642_v4 = vadd.f32 %v26836_v49, %v2379_v53  ;;  %v2380_v20 = vmul.f32 %v26819_v5, %v21236_v26  ;;  %v1926_v39 = vpop.f32.mrb[195].mxu0  ;;  %v27274_v26 = vpack.c.bf16 %v2893_v6, %v2892_v29  ;;  %v2640_v13 = vadd.f32 %v26836_v49, %v2377_v36 }
 0x35d   :  { %v2378_v58 = vmul.f32 %v26819_v5, %v1926_v39  ;;  %v21239_v19 = vpop.f32.mrb[196].mxu0 }
 0x35e   :  { %v2898_v51 = vmax.f32 %v2642_v4, 0.0  ;;  %v2643_v38 = vadd.f32 %v26836_v49, %v2380_v20  ;;  %v1939_v53 = vpop.f32.mrb[197].mxu0  ;;  %31340 = vst [vmem:[#allocation171_spill] sm:$0xff] %v27274_v26  ;;  %v27276_v20 = vpack.c.bf16 %v2895_v34, %v2894_v11  ;;  %v2383_v11 = vmul.f32 %v26819_v5, %v21239_v19 }
 0x35f   :  { %v2381_v47 = vmul.f32 %v26819_v5, %v1939_v53  ;;  %v2641_v46 = vadd.f32 %v26836_v49, %v2378_v58  ;;  %v21240_v6 = vpop.f32.mrb[198].mxu0  ;;  %v2896_v34 = vmax.f32 %v2640_v13, 0.0 }
 0x360   :  { %v2899_v21 = vmax.f32 %v2643_v38, 0.0  ;;  %31341 = vst [vmem:[#allocation172_spill] sm:$0xff] %v27276_v20  ;;  %v31342_v38 = vmax.f32 %v26892_v40, 0.0  ;;  %v2384_v58 = vmul.f32 %v26819_v5, %v21240_v6  ;;  %v1942_v40 = vpop.f32.mrb[199].mxu0  ;;  %v2646_v19 = vadd.f32 %v26836_v49, %v2383_v11 }
 0x361   :  { %v2644_v39 = vadd.f32 %v26836_v49, %v2381_v47  ;;  %v2897_v36 = vmax.f32 %v2641_v46, 0.0 }
 0x362   :  { %21610 = vmatmul.mubr.bf16.gmra.mrb[56].mxu1 %v26487_v15  ;;  %v27278_v4 = vpack.c.bf16 %v2899_v21, %v2898_v51  ;;  %v5539_v45 = vpack.c.bf16 %v31342_v38, %v31226_v12  ;;  %v2382_v38 = vmul.f32 %v26819_v5, %v1942_v40  ;;  %v27304_v13 = vadd.f32 %v26836_v49, %v2384_v58  ;;  %v24998_v40 = vld [vmem:[%s30866_s4 + $0x150] sm:$0xff]  }
 0x363   :  { %21613 = vmatprep.mubr.bf16.mxu1 %v26495_v1  ;;  %v31343_v1 = vmax.f32 %v26482_v27, 0.0  ;;  %v2900_v53 = vmax.f32 %v2644_v39, 0.0  ;;  %v27296_v47 = vpack.c.bf16 %v2897_v36, %v2896_v34  ;;  %v21243_v27 = vpop.f32.mrb[200].mxu0  ;;  %v24997_v39 = vld [vmem:[%s30866_s4 + $0x148] sm:$0xff]   ;;  %v2902_v11 = vmax.f32 %v2646_v19, 0.0 }
 0x364   :  { %31347 = vst [vmem:[#allocation176_spill] sm:$0xff] %v27304_v13  ;;  %v2645_v46 = vadd.f32 %v26836_v49, %v2382_v38  ;;  %v2387_v6 = vmul.f32 %v26819_v5, %v21243_v27 }
 0x365   :  { %v27290_v29 = vpack.c.bf16 %v31226_v12, %v31343_v1  ;;  %v27298_v15 = vpack.c.bf16 %v2900_v53, %v2899_v21  ;;  %v27300_v1 = vpack.c.bf16 %v2898_v51, %v2897_v36  ;;  %v31046_v36 = vmax.f32 %v27304_v13, 0.0 }
 0x366   :  { %v2901_v34 = vmax.f32 %v2645_v46, 0.0 }
 0x367   :  { %31344 = vst [vmem:[#allocation173_spill] sm:$0xff] %v27290_v29  ;;  %31345 = vst [vmem:[#allocation174_spill] sm:$0xff] %v27298_v15  ;;  %v27325_v27 = vpack.c.bf16 %v31046_v36, %v2902_v11 }
 0x368   :  { %31346 = vst [vmem:[#allocation175_spill] sm:$0xff] %v27300_v1  ;;  %v27327_v19 = vpack.c.bf16 %v2902_v11, %v2901_v34 }
 0x36a   :  { %21614 = vmatmul.mubr.bf16.gmra.mrb[60].mxu1 %v27290_v29  ;;  %v1955_v29 = vpop.f32.mrb[201].mxu0  ;;  %31348 = vst [vmem:[#allocation177_spill] sm:$0xff] %v27327_v19 }
 0x36b   :  { %21633 = vmatprep.mubr.bf16.mxu1 %v5539_v45  ;;  %v21244_v45 = vpop.f32.mrb[202].mxu0  ;;  %v2385_v21 = vmul.f32 %v26819_v5, %v1955_v29 }
 0x36c   :  { %v2388_v51 = vmul.f32 %v26819_v5, %v21244_v45  ;;  %v1958_v58 = vpop.f32.mrb[203].mxu0 }
 0x36d   :  { %v2386_v29 = vmul.f32 %v26819_v5, %v1958_v58  ;;  %v21247_v38 = vpop.f32.mrb[204].mxu0  ;;  %v2648_v46 = vadd.f32 %v26836_v49, %v2385_v21 }
 0x36e   :  { %v2651_v45 = vadd.f32 %v26836_v49, %v2388_v51  ;;  %v2391_v21 = vmul.f32 %v26819_v5, %v21247_v38 }
 0x36f   :  { %v2649_v15 = vadd.f32 %v26836_v49, %v2386_v29  ;;  %v2904_v11 = vmax.f32 %v2648_v46, 0.0 }
 0x370   :  { %v2907_v36 = vmax.f32 %v2651_v45, 0.0 }
 0x371   :  { %v2905_v29 = vmax.f32 %v2649_v15, 0.0 }
 0x372   :  { %21634 = vmatmul.mubr.bf16.vlgmr.msra.gmra.mrb[0].mxu1 %v26896_v0  ;;  %v27321_v0 = vpack.c.bf16 %v2901_v34, %v2900_v53  ;;  %v31349_v53 = vmax.f32 %v26948_v25, 0.0  ;;  %v27349_v25 = vld [vmem:[%s30867_s2] ss:$0 sm:$0xff] }
 0x373   :  { %21698 = vmatpush3.bf16.msra.mxu1 %v27027_v28  ;;  %21637 = vmatprep.mubr.bf16.mxu1 %v26910_v22  ;;  %v2650_v28 = vadd.f32 %v26836_v49, %v2387_v6  ;;  %v1971_v22 = vpop.f32.mrb[205].mxu0  ;;  %v24999_v6 = vld [vmem:[%s30866_s4 + $0x158] sm:$0xff]  }
 0x374   :  { %21699 = vmatprep.subr.bf16.mxu1 %v24997_v39  ;;  %v2389_v58 = vmul.f32 %v26819_v5, %v1971_v22  ;;  %v27337_v1 = vpack.c.bf16 %v31349_v53, %v31226_v12  ;;  %v21248_v51 = vpop.f32.mrb[206].mxu0  ;;  %v25000_v5 = vld [vmem:[%s30866_s4 + $0x160] sm:$0xff]  }
 0x375   :  { %v2906_v22 = vmax.f32 %v2650_v28, 0.0  ;;  %v27367_v53 = vld [vmem:[%s30868_s3] ss:$0 sm:$0xff] }
 0x376   :  { %31350 = vst [vmem:[#allocation178_spill] sm:$0xff] %v27337_v1  ;;  %v2652_v34 = vadd.f32 %v26836_v49, %v2389_v58  ;;  %v1974_v49 = vpop.f32.mrb[207].mxu0 }
 0x377   :  { %21700 = vmatpush3.bf16.msra.mxu1 %v24997_v39  ;;  %v2392_v39 = vmul.f32 %v27349_v25, %v21248_v51  ;;  %v2390_v15 = vmul.f32 %v27349_v25, %v1974_v49  ;;  %v21251_v38 = vpop.f32.mrb[208].mxu0  ;;  %v27360_v28 = vpack.c.bf16 %v2906_v22, %v2905_v29 }
 0x378   :  { %21701 = vmatprep.subr.bf16.mxu1 %v24998_v40  ;;  %v2908_v58 = vmax.f32 %v2652_v34, 0.0  ;;  %v1987_v46 = vpop.f32.mrb[209].mxu0  ;;  %v2654_v34 = vadd.f32 %v27367_v53, %v2391_v21 }
 0x379   :  { %31351 = vst [vmem:[#allocation179_spill] sm:$0xff] %v27360_v28  ;;  %v27371_v51 = vadd.f32 %v27367_v53, %v2392_v39  ;;  %v21252_v49 = vpop.f32.mrb[210].mxu0 }
 0x37a   :  { %21638 = vmatmul.mubr.bf16.gmra.mrb[4].mxu1 %v26940_v44  ;;  %v27356_v44 = vpack.c.bf16 %v2905_v29, %v2904_v11  ;;  %v27362_v45 = vpack.c.bf16 %v2908_v58, %v2907_v36  ;;  %v2653_v11 = vadd.f32 %v27367_v53, %v2390_v15  ;;  %v2395_v29 = vmul.f32 %v27349_v25, %v21251_v38  ;;  %v25002_v38 = vld [vmem:[%s30866_s4 + $0x170] sm:$0xff]  }
 0x37b   :  { %21641 = vmatprep.mubr.bf16.mxu1 %v27337_v1  ;;  %21702 = vmatpush3.bf16.msra.mxu1 %v24998_v40  ;;  %v27358_v40 = vpack.c.bf16 %v2907_v36, %v2906_v22  ;;  %31353 = vst [vmem:[#allocation181_spill] sm:$0xff] %v27371_v51  ;;  %v25001_v36 = vld [vmem:[%s30866_s4 + $0x168] sm:$0xff]   ;;  %v2393_v22 = vmul.f32 %v27349_v25, %v1987_v46  ;;  %v1990_v1 = vpop.f32.mrb[211].mxu0  ;;  %v31053_v15 = vmax.f32 %v27371_v51, 0.0 }
 0x37c   :  { %21703 = vmatprep.subr.bf16.mxu1 %v24999_v6  ;;  %31352 = vst [vmem:[#allocation180_spill] sm:$0xff] %v27362_v45  ;;  %v2396_v21 = vmul.f32 %v27349_v25, %v21252_v49  ;;  %v2909_v39 = vmax.f32 %v2653_v11, 0.0  ;;  %v2910_v45 = vmax.f32 %v2654_v34, 0.0  ;;  %v21255_v28 = vpop.f32.mrb[212].mxu0 }
 0x37d   :  { %v2003_v46 = vpop.f32.mrb[213].mxu0 }
 0x37e   :  { %v27391_v11 = vpack.c.bf16 %v31053_v15, %v2910_v45  ;;  %v27393_v34 = vpack.c.bf16 %v2910_v45, %v2909_v39  ;;  %v2397_v49 = vmul.f32 %v27349_v25, %v2003_v46  ;;  %v25003_v45 = vld [vmem:[%s30866_s4 + $0x178] sm:$0xff]  }
 0x37f   :  { %21704 = vmatpush3.bf16.msra.mxu1 %v24999_v6  ;;  %v2394_v6 = vmul.f32 %v27349_v25, %v1990_v1  ;;  %v2656_v1 = vadd.f32 %v27367_v53, %v2393_v22  ;;  %v21256_v22 = vpop.f32.mrb[214].mxu0 }
 0x380   :  { %21705 = vmatprep.subr.bf16.mxu1 %v25000_v5  ;;  %31354 = vst [vmem:[#allocation182_spill] sm:$0xff] %v27393_v34  ;;  %v2660_v15 = vadd.f32 %v27367_v53, %v2397_v49 }
 0x381   :  { %v2657_v13 = vadd.f32 %v27367_v53, %v2394_v6 }
 0x382   :  { %21642 = vmatmul.mubr.bf16.gmra.mrb[8].mxu1 %v26972_v43  ;;  %v27387_v43 = vpack.c.bf16 %v2909_v39, %v2908_v58  ;;  %v31355_v58 = vmax.f32 %v27006_v63, 0.0  ;;  %v2400_v63 = vmul.f32 %v27349_v25, %v21256_v22  ;;  %v2916_v49 = vmax.f32 %v2660_v15, 0.0 }
 0x383   :  { %21645 = vmatprep.mubr.bf16.mxu1 %v26978_v33  ;;  %21706 = vmatpush3.bf16.msra.mxu1 %v25000_v5  ;;  %v2658_v5 = vadd.f32 %v27367_v53, %v2395_v29  ;;  %v2659_v33 = vadd.f32 %v27367_v53, %v2396_v21  ;;  %v2399_v29 = vmul.f32 %v27349_v25, %v21255_v28  ;;  %v2912_v21 = vmax.f32 %v2656_v1, 0.0 }
 0x384   :  { %21707 = vmatprep.subr.bf16.mxu1 %v25001_v36  ;;  %v27403_v19 = vpack.c.bf16 %v31355_v58, %v31226_v12  ;;  %v2913_v39 = vmax.f32 %v2657_v13, 0.0  ;;  %v27416_v58 = vld [vmem:[%s30866_s4 + $0x180] sm:$0xff]   ;;  %v27429_v22 = vadd.f32 %v27367_v53, %v2400_v63 }
 0x385   :  { %v2914_v6 = vmax.f32 %v2658_v5, 0.0  ;;  %v2915_v46 = vmax.f32 %v2659_v33, 0.0  ;;  %v2662_v15 = vadd.f32 %v27367_v53, %v2399_v29 }
 0x386   :  { %31356 = vst [vmem:[#allocation183_spill] sm:$0xff] %v27403_v19  ;;  %31359 = vst [vmem:[#allocation186_spill] sm:$0xff] %v27429_v22  ;;  %v31061_v63 = vmax.f32 %v27429_v22, 0.0 }
 0x387   :  { %21708 = vmatpush3.bf16.msra.mxu1 %v25001_v36  ;;  %v2006_v36 = vpop.f32.mrb[215].mxu0  ;;  %v27421_v5 = vpack.c.bf16 %v2915_v46, %v2914_v6  ;;  %v27423_v33 = vpack.c.bf16 %v2914_v6, %v2913_v39  ;;  %v27425_v1 = vpack.c.bf16 %v2916_v49, %v2915_v46  ;;  %v2918_v29 = vmax.f32 %v2662_v15, 0.0 }
 0x388   :  { %21709 = vmatprep.subr.bf16.mxu1 %v25002_v38  ;;  %v2398_v28 = vmul.f32 %v27349_v25, %v2006_v36  ;;  %v21259_v13 = vpop.f32.mrb[216].mxu0 }
 0x389   :  { %31357 = vst [vmem:[#allocation184_spill] sm:$0xff] %v27423_v33  ;;  %31358 = vst [vmem:[#allocation185_spill] sm:$0xff] %v27425_v1 }
 0x38a   :  { %21646 = vmatmul.mubr.bf16.gmra.mrb[12].mxu1 %v26997_v9  ;;  %v27419_v9 = vpack.c.bf16 %v2913_v39, %v2912_v21  ;;  %v2403_v21 = vmul.f32 %v27349_v25, %v21259_v13  ;;  %v27444_v13 = vpack.c.bf16 %v31061_v63, %v2918_v29 }
 0x38b   :  { %21649 = vmatprep.mubr.bf16.mxu1 %v27403_v19  ;;  %21710 = vmatpush3.bf16.msra.mxu1 %v25002_v38  ;;  %v2019_v38 = vpop.f32.mrb[217].mxu0  ;;  %v2661_v19 = vadd.f32 %v27367_v53, %v2398_v28 }
 0x38c   :  { %21711 = vmatprep.subr.bf16.mxu1 %v25003_v45  ;;  %v21260_v51 = vpop.f32.mrb[218].mxu0  ;;  %v2401_v36 = vmul.f32 %v27349_v25, %v2019_v38 }
 0x38d   :  { %v2404_v39 = vmul.f32 %v27349_v25, %v21260_v51  ;;  %v2022_v6 = vpop.f32.mrb[219].mxu0  ;;  %v2917_v46 = vmax.f32 %v2661_v19, 0.0  ;;  %v2666_v19 = vadd.f32 %v27367_v53, %v2403_v21 }
 0x38e   :  { %v2402_v28 = vmul.f32 %v27349_v25, %v2022_v6  ;;  %v2664_v15 = vadd.f32 %v27367_v53, %v2401_v36 }
 0x38f   :  { %21712 = vmatpush3.bf16.msra.mxu1 %v25003_v45  ;;  %v21263_v45 = vpop.f32.mrb[220].mxu0  ;;  %v27440_v33 = vpack.c.bf16 %v2917_v46, %v2916_v49  ;;  %v27446_v38 = vpack.c.bf16 %v2918_v29, %v2917_v46  ;;  %v31361_v49 = vmax.f32 %v27059_v17, 0.0  ;;  %v2922_v22 = vmax.f32 %v2666_v19, 0.0 }
 0x390   :  { %21777 = vmatprep.subr.bf16.mxu1 %v27416_v58  ;;  %v2035_v1 = vpop.f32.mrb[221].mxu0  ;;  %v2665_v6 = vadd.f32 %v27367_v53, %v2402_v28  ;;  %v2407_v46 = vmul.f32 %v27349_v25, %v21263_v45  ;;  %v2920_v29 = vmax.f32 %v2664_v15, 0.0 }
 0x391   :  { %31360 = vst [vmem:[#allocation187_spill] sm:$0xff] %v27446_v38  ;;  %v2405_v51 = vmul.f32 %v27349_v25, %v2035_v1  ;;  %v21264_v1 = vpop.f32.mrb[222].mxu0 }
 0x392   :  { %21650 = vmatmul.mubr.bf16.gmra.mrb[16].mxu1 %v27030_v42  ;;  %v27456_v42 = vpack.c.bf16 %v31361_v49, %v31226_v12  ;;  %v2921_v21 = vmax.f32 %v2665_v6, 0.0  ;;  %v2038_v28 = vpop.f32.mrb[223].mxu0 }
 0x393   :  { %21653 = vmatprep.mubr.bf16.mxu1 %v27036_v62  ;;  %v2667_v62 = vadd.f32 %v27367_v53, %v2404_v39  ;;  %v2668_v63 = vadd.f32 %v27367_v53, %v2405_v51  ;;  %v2408_v39 = vmul.f32 %v27349_v25, %v21264_v1  ;;  %v2406_v17 = vmul.f32 %v27349_v25, %v2038_v28  ;;  %v21267_v51 = vpop.f32.mrb[224].mxu0 }
 0x394   :  { %31362 = vst [vmem:[#allocation188_spill] sm:$0xff] %v27456_v42  ;;  %v27464_v49 = vpack.c.bf16 %v2921_v21, %v2920_v29  ;;  %v27468_v45 = vpack.c.bf16 %v2922_v22, %v2921_v21  ;;  %v2411_v15 = vmul.f32 %v27349_v25, %v21267_v51  ;;  %v2051_v6 = vpop.f32.mrb[225].mxu0 }
 0x395   :  { %v2923_v36 = vmax.f32 %v2667_v62, 0.0  ;;  %v2924_v38 = vmax.f32 %v2668_v63, 0.0  ;;  %v2670_v62 = vadd.f32 %v27367_v53, %v2407_v46  ;;  %v27475_v1 = vadd.f32 %v27367_v53, %v2408_v39  ;;  %v21268_v28 = vpop.f32.mrb[226].mxu0 }
 0x396   :  { %31363 = vst [vmem:[#allocation189_spill] sm:$0xff] %v27468_v45  ;;  %v2669_v63 = vadd.f32 %v27367_v53, %v2406_v17  ;;  %v2409_v29 = vmul.f32 %v27349_v25, %v2051_v6 }
 0x397   :  { %v27466_v34 = vpack.c.bf16 %v2923_v36, %v2922_v22  ;;  %v27471_v19 = vpack.c.bf16 %v2924_v38, %v2923_v36  ;;  %31365 = vst [vmem:[#allocation191_spill] sm:$0xff] %v27475_v1  ;;  %v2674_v22 = vadd.f32 %v27367_v53, %v2411_v15  ;;  %v2054_v36 = vpop.f32.mrb[227].mxu0  ;;  %v31072_v46 = vmax.f32 %v27475_v1, 0.0 }
 0x398   :  { %v2672_v21 = vadd.f32 %v27367_v53, %v2409_v29  ;;  %v2925_v51 = vmax.f32 %v2669_v63, 0.0  ;;  %v2410_v17 = vmul.f32 %v27349_v25, %v2054_v36  ;;  %v21271_v6 = vpop.f32.mrb[228].mxu0 }
 0x399   :  { %31364 = vst [vmem:[#allocation190_spill] sm:$0xff] %v27471_v19  ;;  %v2067_v19 = vpop.f32.mrb[229].mxu0  ;;  %v2930_v36 = vmax.f32 %v2674_v22, 0.0  ;;  %v2415_v20 = vmul.f32 %v27349_v25, %v21271_v6 }
 0x39a   :  { %21654 = vmatmul.mubr.bf16.gmra.mrb[20].mxu1 %v27050_v54  ;;  %v2926_v54 = vmax.f32 %v2670_v62, 0.0  ;;  %v2673_v62 = vadd.f32 %v27367_v53, %v2410_v17  ;;  %v2413_v63 = vmul.f32 %v27349_v25, %v2067_v19 }
 0x39b   :  { %21657 = vmatprep.mubr.bf16.mxu1 %v27456_v42  ;;  %v2412_v42 = vmul.f32 %v27349_v25, %v21268_v28  ;;  %v27487_v28 = vpack.c.bf16 %v2925_v51, %v2924_v38 }
 0x39c   :  { %v27491_v15 = vpack.c.bf16 %v31072_v46, %v2926_v54  ;;  %v27493_v29 = vpack.c.bf16 %v2926_v54, %v2925_v51  ;;  %v2929_v38 = vmax.f32 %v2673_v62, 0.0  ;;  %v2676_v46 = vadd.f32 %v27367_v53, %v2413_v63  ;;  %v21272_v54 = vpop.f32.mrb[230].mxu0 }
 0x39d   :  { %v2675_v39 = vadd.f32 %v27367_v53, %v2412_v42  ;;  %v2070_v19 = vpop.f32.mrb[231].mxu0 }
 0x39e   :  { %31366 = vst [vmem:[#allocation192_spill] sm:$0xff] %v27493_v29  ;;  %v2932_v1 = vmax.f32 %v2676_v46, 0.0  ;;  %v27513_v17 = vpack.c.bf16 %v2930_v36, %v2929_v38 }
 0x39f   :  { %v2931_v45 = vmax.f32 %v2675_v39, 0.0 }
 0x3a0   :  { %31369 = vst [vmem:[#allocation194_spill] sm:$0xff] %v27513_v17 }
 0x3a1   :  { %v27510_v22 = vpack.c.bf16 %v2931_v45, %v2930_v36  ;;  %v27515_v46 = vpack.c.bf16 %v2932_v1, %v2931_v45 }
 0x3a2   :  { %21658 = vmatmul.mubr.bf16.gmra.mrb[24].mxu1 %v27075_v18  ;;  %v2928_v18 = vmax.f32 %v2672_v21, 0.0  ;;  %v2414_v21 = vmul.f32 %v27349_v25, %v2070_v19 }
 0x3a3   :  { %21661 = vmatprep.mubr.bf16.mxu1 %v27081_v41  ;;  %v31367_v41 = vmax.f32 %v27103_v48, 0.0  ;;  %v2678_v48 = vadd.f32 %v27367_v53, %v2415_v20  ;;  %31370 = vst [vmem:[#allocation195_spill] sm:$0xff] %v27515_v46 }
 0x3a4   :  { %v27505_v51 = vpack.c.bf16 %v2929_v38, %v2928_v18  ;;  %v2677_v62 = vadd.f32 %v27367_v53, %v2414_v21 }
 0x3a5   :  { %v27500_v42 = vpack.c.bf16 %v31367_v41, %v31226_v12  ;;  %v2416_v41 = vmul.f32 %v27349_v25, %v21272_v54 }
 0x3a6   :  { %v21275_v39 = vpop.f32.mrb[232].mxu0  ;;  %v2933_v36 = vmax.f32 %v2677_v62, 0.0 }
 0x3a7   :  { %31368 = vst [vmem:[#allocation193_spill] sm:$0xff] %v27500_v42  ;;  %v27518_v6 = vadd.f32 %v27367_v53, %v2416_v41  ;;  %v2083_v18 = vpop.f32.mrb[233].mxu0  ;;  %v2419_v20 = vmul.f32 %v27349_v25, %v21275_v39 }
 0x3a8   :  { %v2417_v63 = vmul.f32 %v27349_v25, %v2083_v18  ;;  %v21276_v54 = vpop.f32.mrb[234].mxu0  ;;  %v27528_v46 = vpack.c.bf16 %v2933_v36, %v2932_v1  ;;  %v31373_v1 = vmax.f32 %v27147_v24, 0.0 }
 0x3a9   :  { %31371 = vst [vmem:[#allocation196_spill] sm:$0xff] %v27518_v6  ;;  %v2420_v19 = vmul.f32 %v27349_v25, %v21276_v54  ;;  %v2682_v45 = vadd.f32 %v27367_v53, %v2419_v20  ;;  %v2086_v41 = vpop.f32.mrb[235].mxu0 }
 0x3aa   :  { %21662 = vmatmul.mubr.bf16.gmra.mrb[28].mxu1 %v27094_v8  ;;  %v31081_v8 = vmax.f32 %v27518_v6, 0.0  ;;  %v2680_v38 = vadd.f32 %v27367_v53, %v2417_v63 }
 0x3ab   :  { %21665 = vmatprep.mubr.bf16.mxu1 %v27500_v42  ;;  %v2934_v42 = vmax.f32 %v2678_v48, 0.0  ;;  %v2683_v21 = vadd.f32 %v27367_v53, %v2420_v19  ;;  %v2418_v48 = vmul.f32 %v27349_v25, %v2086_v41  ;;  %v2938_v19 = vmax.f32 %v2682_v45, 0.0 }
 0x3ad   :  { %v27535_v18 = vpack.c.bf16 %v31081_v8, %v2934_v42  ;;  %v27537_v54 = vpack.c.bf16 %v2934_v42, %v2933_v36  ;;  %v2681_v20 = vadd.f32 %v27367_v53, %v2418_v48  ;;  %v2939_v41 = vmax.f32 %v2683_v21, 0.0 }
 0x3ae   :  { %v21279_v39 = vpop.f32.mrb[236].mxu0 }
 0x3af   :  { %v2099_v62 = vpop.f32.mrb[237].mxu0  ;;  %31372 = vst [vmem:[#allocation197_spill] sm:$0xff] %v27537_v54  ;;  %v2937_v17 = vmax.f32 %v2681_v20, 0.0  ;;  %v2423_v6 = vmul.f32 %v27349_v25, %v21279_v39 }
 0x3b0   :  { %v2421_v63 = vmul.f32 %v27349_v25, %v2099_v62  ;;  %v21280_v42 = vpop.f32.mrb[238].mxu0 }
 0x3b1   :  { %v2686_v24 = vadd.f32 %v27367_v53, %v2423_v6  ;;  %v2424_v48 = vmul.f32 %v27349_v25, %v21280_v42  ;;  %v2102_v45 = vpop.f32.mrb[239].mxu0  ;;  %v27557_v62 = vpack.c.bf16 %v2938_v19, %v2937_v17 }
 0x3b2   :  { %21666 = vmatmul.mubr.bf16.gmra.mrb[32].mxu1 %v27119_v23  ;;  %v2936_v23 = vmax.f32 %v2680_v38, 0.0  ;;  %v2684_v8 = vadd.f32 %v27367_v53, %v2421_v63  ;;  %v27554_v38 = vpack.c.bf16 %v2939_v41, %v2938_v19  ;;  %v2422_v21 = vmul.f32 %v27349_v25, %v2102_v45 }
 0x3b3   :  { %21669 = vmatprep.mubr.bf16.mxu1 %v27125_v61  ;;  %v27544_v61 = vpack.c.bf16 %v31373_v1, %v31226_v12  ;;  %31375 = vst [vmem:[#allocation199_spill] sm:$0xff] %v27557_v62  ;;  %v27562_v20 = vadd.f32 %v27367_v53, %v2424_v48 }
 0x3b4   :  { %v2940_v29 = vmax.f32 %v2684_v8, 0.0  ;;  %v27549_v36 = vpack.c.bf16 %v2937_v17, %v2936_v23  ;;  %v2685_v63 = vadd.f32 %v27367_v53, %v2422_v21 }
 0x3b5   :  { %31374 = vst [vmem:[#allocation198_spill] sm:$0xff] %v27544_v61  ;;  %31377 = vst [vmem:[#allocation201_spill] sm:$0xff] %v27562_v20 }
 0x3b6   :  { %v21283_v39 = vpop.f32.mrb[240].mxu0  ;;  %v27559_v8 = vpack.c.bf16 %v2940_v29, %v2939_v41  ;;  %v2941_v17 = vmax.f32 %v2685_v63, 0.0 }
 0x3b7   :  { %v2115_v23 = vpop.f32.mrb[241].mxu0  ;;  %v2427_v6 = vmul.f32 %v27349_v25, %v21283_v39 }
 0x3b8   :  { %31376 = vst [vmem:[#allocation200_spill] sm:$0xff] %v27559_v8  ;;  %v2425_v1 = vmul.f32 %v27349_v25, %v2115_v23  ;;  %v21284_v42 = vpop.f32.mrb[242].mxu0  ;;  %v27572_v8 = vpack.c.bf16 %v2941_v17, %v2940_v29  ;;  %v31379_v29 = vmax.f32 %v27191_v59, 0.0 }
 0x3b9   :  { %v2428_v45 = vmul.f32 %v27349_v25, %v21284_v42  ;;  %v2690_v19 = vadd.f32 %v27367_v53, %v2427_v6  ;;  %v2118_v48 = vpop.f32.mrb[243].mxu0 }
 0x3ba   :  { %21670 = vmatmul.mubr.bf16.gmra.mrb[36].mxu1 %v27138_v50  ;;  %v31090_v50 = vmax.f32 %v27562_v20, 0.0  ;;  %v2688_v41 = vadd.f32 %v27367_v53, %v2425_v1 }
 0x3bb   :  { %21673 = vmatprep.mubr.bf16.mxu1 %v27544_v61  ;;  %v2942_v61 = vmax.f32 %v2686_v24, 0.0  ;;  %v2691_v21 = vadd.f32 %v27367_v53, %v2428_v45  ;;  %v2426_v24 = vmul.f32 %v27349_v25, %v2118_v48  ;;  %v2946_v45 = vmax.f32 %v2690_v19, 0.0 }
 0x3bd   :  { %v27579_v23 = vpack.c.bf16 %v31090_v50, %v2942_v61  ;;  %v27581_v42 = vpack.c.bf16 %v2942_v61, %v2941_v17  ;;  %v2689_v6 = vadd.f32 %v27367_v53, %v2426_v24  ;;  %v2947_v48 = vmax.f32 %v2691_v21, 0.0 }
 0x3be   :  { %v21287_v39 = vpop.f32.mrb[244].mxu0 }
 0x3bf   :  { %v2131_v63 = vpop.f32.mrb[245].mxu0  ;;  %31378 = vst [vmem:[#allocation202_spill] sm:$0xff] %v27581_v42  ;;  %v2945_v62 = vmax.f32 %v2689_v6, 0.0  ;;  %v2431_v20 = vmul.f32 %v27349_v25, %v21287_v39 }
 0x3c0   :  { %v2429_v1 = vmul.f32 %v27349_v25, %v2131_v63  ;;  %v21288_v61 = vpop.f32.mrb[246].mxu0 }
 0x3c1   :  { %v2694_v59 = vadd.f32 %v27367_v53, %v2431_v20  ;;  %v2432_v24 = vmul.f32 %v27349_v25, %v21288_v61  ;;  %v2134_v19 = vpop.f32.mrb[247].mxu0  ;;  %v27601_v63 = vpack.c.bf16 %v2946_v45, %v2945_v62 }
 0x3c2   :  { %21674 = vmatmul.mubr.bf16.gmra.mrb[40].mxu1 %v27163_v57  ;;  %v2944_v57 = vmax.f32 %v2688_v41, 0.0  ;;  %v2692_v50 = vadd.f32 %v27367_v53, %v2429_v1  ;;  %v27598_v41 = vpack.c.bf16 %v2947_v48, %v2946_v45  ;;  %v2430_v21 = vmul.f32 %v27349_v25, %v2134_v19 }
 0x3c3   :  { %21677 = vmatprep.mubr.bf16.mxu1 %v27169_v30  ;;  %v27588_v30 = vpack.c.bf16 %v31379_v29, %v31226_v12  ;;  %31381 = vst [vmem:[#allocation204_spill] sm:$0xff] %v27601_v63  ;;  %v27606_v6 = vadd.f32 %v27367_v53, %v2432_v24 }
 0x3c4   :  { %v2948_v54 = vmax.f32 %v2692_v50, 0.0  ;;  %v27593_v17 = vpack.c.bf16 %v2945_v62, %v2944_v57  ;;  %v2693_v1 = vadd.f32 %v27367_v53, %v2430_v21 }
 0x3c5   :  { %31380 = vst [vmem:[#allocation203_spill] sm:$0xff] %v27588_v30  ;;  %31383 = vst [vmem:[#allocation206_spill] sm:$0xff] %v27606_v6 }
 0x3c6   :  { %v27603_v50 = vpack.c.bf16 %v2948_v54, %v2947_v48  ;;  %v2949_v62 = vmax.f32 %v2693_v1, 0.0 }
 0x3c7   :  { %v21291_v39 = vpop.f32.mrb[248].mxu0 }
 0x3c8   :  { %31382 = vst [vmem:[#allocation205_spill] sm:$0xff] %v27603_v50  ;;  %v2147_v57 = vpop.f32.mrb[249].mxu0  ;;  %v2435_v20 = vmul.f32 %v27349_v25, %v21291_v39  ;;  %v27616_v50 = vpack.c.bf16 %v2949_v62, %v2948_v54  ;;  %v31385_v54 = vmax.f32 %v27235_v32, 0.0 }
 0x3c9   :  { %v2433_v29 = vmul.f32 %v27349_v25, %v2147_v57  ;;  %v21292_v61 = vpop.f32.mrb[250].mxu0 }
 0x3ca   :  { %21678 = vmatmul.mubr.bf16.gmra.mrb[44].mxu1 %v27182_v7  ;;  %v31099_v7 = vmax.f32 %v27606_v6, 0.0  ;;  %v2436_v19 = vmul.f32 %v27349_v25, %v21292_v61  ;;  %v2698_v45 = vadd.f32 %v27367_v53, %v2435_v20  ;;  %v2150_v24 = vpop.f32.mrb[251].mxu0 }
 0x3cb   :  { %21681 = vmatprep.mubr.bf16.mxu1 %v27588_v30  ;;  %v2950_v30 = vmax.f32 %v2694_v59, 0.0  ;;  %v2696_v48 = vadd.f32 %v27367_v53, %v2433_v29  ;;  %v2434_v59 = vmul.f32 %v27349_v25, %v2150_v24 }
 0x3cc   :  { %v2699_v21 = vadd.f32 %v27367_v53, %v2436_v19  ;;  %v2954_v19 = vmax.f32 %v2698_v45, 0.0 }
 0x3cd   :  { %v27623_v57 = vpack.c.bf16 %v31099_v7, %v2950_v30  ;;  %v27625_v61 = vpack.c.bf16 %v2950_v30, %v2949_v62  ;;  %v2697_v20 = vadd.f32 %v27367_v53, %v2434_v59 }
 0x3ce   :  { %v2955_v24 = vmax.f32 %v2699_v21, 0.0 }
 0x3cf   :  { %v21295_v39 = vpop.f32.mrb[252].mxu0  ;;  %31384 = vst [vmem:[#allocation207_spill] sm:$0xff] %v27625_v61  ;;  %v2953_v63 = vmax.f32 %v2697_v20, 0.0 }
 0x3d0   :  { %v2163_v1 = vpop.f32.mrb[253].mxu0  ;;  %v2439_v6 = vmul.f32 %v27349_v25, %v21295_v39 }
 0x3d1   :  { %v2437_v29 = vmul.f32 %v27349_v25, %v2163_v1  ;;  %v21296_v30 = vpop.f32.mrb[254].mxu0  ;;  %v27645_v39 = vpack.c.bf16 %v2954_v19, %v2953_v63 }
 0x3d2   :  { %21682 = vmatmul.mubr.bf16.gmra.mrb[48].mxu1 %v27207_v52  ;;  %v2952_v52 = vmax.f32 %v2696_v48, 0.0  ;;  %v2702_v32 = vadd.f32 %v27367_v53, %v2439_v6  ;;  %v2440_v59 = vmul.f32 %v27349_v25, %v21296_v30  ;;  %v2166_v45 = vpop.f32.mrb[255].mxu0  ;;  %v27642_v48 = vpack.c.bf16 %v2955_v24, %v2954_v19  ;;  %v25012_v19 = vld [vmem:[%s30866_s4 + $0x1c0] sm:$0xff]   ;;  %v25014_v30 = vld [vmem:[%s30866_s4 + $0x1d0] sm:$0xff]  }
 0x3d3   :  { %21685 = vmatprep.mubr.bf16.mxu1 %v27213_v35  ;;  %v27632_v35 = vpack.c.bf16 %v31385_v54, %v31226_v12  ;;  %v2700_v7 = vadd.f32 %v27367_v53, %v2437_v29  ;;  %v2438_v21 = vmul.f32 %v27349_v25, %v2166_v45  ;;  %31386 = vst [vmem:[#allocation208_spill] sm:$0xff] %v27645_v39  ;;  %v31390_v45 = vld [vmem:[#allocation134_spill] sm:$0xff] }
 0x3d4   :  { %v27637_v62 = vpack.c.bf16 %v2953_v63, %v2952_v52  ;;  %v2958_v20 = vmax.f32 %v2702_v32, 0.0  ;;  %v31389_v32 = vld [vmem:[#allocation133_spill] sm:$0xff] }
 0x3d5   :  { %v2956_v42 = vmax.f32 %v2700_v7, 0.0  ;;  %v27650_v7 = vadd.f32 %v27367_v53, %v2440_v59  ;;  %v2701_v52 = vadd.f32 %v27367_v53, %v2438_v21  ;;  %v25005_v53 = vld [vmem:[%s30866_s4 + $0x188] sm:$0xff]   ;;  %v25019_v59 = vld [vmem:[%s30866_s4 + $0x1f8] sm:$0xff]  }
 0x3d6   :  { %v31391_v21 = vld [vmem:[#allocation136_spill] sm:$0xff] }
 0x3d7   :  { %v27647_v1 = vpack.c.bf16 %v2956_v42, %v2955_v24  ;;  %v31101_v29 = vmax.f32 %v27650_v7, 0.0  ;;  %v2957_v6 = vmax.f32 %v2701_v52, 0.0  ;;  %v25013_v24 = vld [vmem:[%s30866_s4 + $0x1c8] sm:$0xff]   ;;  %v25020_v52 = vld [vmem:[%s30866_s4 + $0x200] sm:$0xff]  }
 0x3d9   :  { %31387 = vst [vmem:[#allocation209_spill] sm:$0xff] %v27647_v1  ;;  %v27655_v54 = vpack.c.bf16 %v2957_v6, %v2956_v42  ;;  %v27660_v25 = vpack.c.bf16 %v31101_v29, %v2958_v20  ;;  %v27662_v63 = vpack.c.bf16 %v2958_v20, %v2957_v6  ;;  %v25006_v42 = vld [vmem:[%s30866_s4 + $0x190] sm:$0xff]   ;;  %v31392_v20 = vld [vmem:[#allocation138_spill] sm:$0xff]  ;;  %v31393_v6 = vld [vmem:[#allocation140_spill] sm:$0xff] }
 0x3da   :  { %21686 = vmatmul.mubr.bf16.gmra.mrb[52].mxu1 %v27226_v60  ;;  %v31409_v29 = vld [vmem:[#allocation167_spill] sm:$0xff] }
 0x3db   :  { %21689 = vmatprep.mubr.bf16.mxu1 %v27632_v35  ;;  %31388 = vst [vmem:[#allocation210_spill] sm:$0xff] %v27662_v63 }
 0x3e2   :  { %21690 = vmatmul.mubr.bf16.gmra.mrb[56].mxu1 %v27251_v37 }
 0x3e3   :  { %21693 = vmatprep.mubr.bf16.mxu1 %v27258_v31 }
 0x3ea   :  { %21694 = vmatmul.mubr.bf16.gmra.mrb[60].mxu1 %v27272_v14 }
 0x3eb   :  { %21713 = vmatprep.mubr.bf16.mxu1 %v27296_v47  ;;  %v25007_v47 = vld [vmem:[%s30866_s4 + $0x198] sm:$0xff]  }
 0x3f2   :  { %21714 = vmatmul.mubr.bf16.vlgmr.msra.gmra.mrb[0].mxu1 %v27278_v4  ;;  %v25008_v4 = vld [vmem:[%s30866_s4 + $0x1a0] sm:$0xff]  }
 0x3f3   :  { %21778 = vmatpush3.bf16.msra.mxu1 %v27416_v58  ;;  %21717 = vmatprep.mubr.bf16.mxu1 %v27321_v0  ;;  %v25009_v0 = vld [vmem:[%s30866_s4 + $0x1a8] sm:$0xff]   ;;  %v25011_v58 = vld [vmem:[%s30866_s4 + $0x1b8] sm:$0xff]  }
 0x3f4   :  { %21779 = vmatprep.subr.bf16.mxu1 %v25005_v53 }
 0x3f7   :  { %21780 = vmatpush3.bf16.msra.mxu1 %v25005_v53  ;;  %v31394_v53 = vld [vmem:[#allocation141_spill] sm:$0xff] }
 0x3f8   :  { %21781 = vmatprep.subr.bf16.mxu1 %v25006_v42 }
 0x3fa   :  { %21718 = vmatmul.mubr.bf16.gmra.mrb[4].mxu1 %v27325_v27  ;;  %v25010_v27 = vld [vmem:[%s30866_s4 + $0x1b0] sm:$0xff]  }
 0x3fb   :  { %21721 = vmatprep.mubr.bf16.mxu1 %v27356_v44  ;;  %21782 = vmatpush3.bf16.msra.mxu1 %v25006_v42  ;;  %v31395_v42 = vld [vmem:[#allocation143_spill] sm:$0xff] }
 0x3fc   :  { %21783 = vmatprep.subr.bf16.mxu1 %v25007_v47 }
 0x3ff   :  { %21784 = vmatpush3.bf16.msra.mxu1 %v25007_v47  ;;  %v31396_v47 = vld [vmem:[#allocation145_spill] sm:$0xff] }
 0x400   :  { %21785 = vmatprep.subr.bf16.mxu1 %v25008_v4 }
 0x402   :  { %21722 = vmatmul.mubr.bf16.gmra.mrb[8].mxu1 %v27358_v40 }
 0x403   :  { %21725 = vmatprep.mubr.bf16.mxu1 %v27387_v43  ;;  %21786 = vmatpush3.bf16.msra.mxu1 %v25008_v4  ;;  %v31397_v4 = vld [vmem:[#allocation147_spill] sm:$0xff] }
 0x404   :  { %21787 = vmatprep.subr.bf16.mxu1 %v25009_v0 }
 0x407   :  { %21788 = vmatpush3.bf16.msra.mxu1 %v25009_v0  ;;  %v31398_v0 = vld [vmem:[#allocation148_spill] sm:$0xff] }
 0x408   :  { %21789 = vmatprep.subr.bf16.mxu1 %v25010_v27 }
 0x40a   :  { %21726 = vmatmul.mubr.bf16.gmra.mrb[12].mxu1 %v27391_v11 }
 0x40b   :  { %21729 = vmatprep.mubr.bf16.mxu1 %v27419_v9  ;;  %21790 = vmatpush3.bf16.msra.mxu1 %v25010_v27  ;;  %v31399_v27 = vld [vmem:[#allocation150_spill] sm:$0xff] }
 0x40c   :  { %21791 = vmatprep.subr.bf16.mxu1 %v25011_v58 }
 0x40f   :  { %21792 = vmatpush3.bf16.msra.mxu1 %v25011_v58  ;;  %v31400_v58 = vld [vmem:[#allocation152_spill] sm:$0xff] }
 0x410   :  { %21857 = vmatprep.subr.bf16.mxu1 %v25012_v19 }
 0x412   :  { %21730 = vmatmul.mubr.bf16.gmra.mrb[16].mxu1 %v27421_v5 }
 0x413   :  { %21733 = vmatprep.mubr.bf16.mxu1 %v27440_v33 }
 0x41a   :  { %21734 = vmatmul.mubr.bf16.gmra.mrb[20].mxu1 %v27444_v13 }
 0x41b   :  { %21737 = vmatprep.mubr.bf16.mxu1 %v27464_v49 }
 0x422   :  { %21738 = vmatmul.mubr.bf16.gmra.mrb[24].mxu1 %v27466_v34 }
 0x423   :  { %21741 = vmatprep.mubr.bf16.mxu1 %v27487_v28 }
 0x42a   :  { %21742 = vmatmul.mubr.bf16.gmra.mrb[28].mxu1 %v27491_v15 }
 0x42b   :  { %21745 = vmatprep.mubr.bf16.mxu1 %v27505_v51 }
 0x432   :  { %21746 = vmatmul.mubr.bf16.gmra.mrb[32].mxu1 %v27510_v22 }
 0x433   :  { %21749 = vmatprep.mubr.bf16.mxu1 %v27528_v46 }
 0x43a   :  { %21750 = vmatmul.mubr.bf16.gmra.mrb[36].mxu1 %v27535_v18 }
 0x43b   :  { %21753 = vmatprep.mubr.bf16.mxu1 %v27549_v36 }
 0x442   :  { %21754 = vmatmul.mubr.bf16.gmra.mrb[40].mxu1 %v27554_v38 }
 0x443   :  { %21757 = vmatprep.mubr.bf16.mxu1 %v27572_v8 }
 0x44a   :  { %21758 = vmatmul.mubr.bf16.gmra.mrb[44].mxu1 %v27579_v23 }
 0x44b   :  { %21761 = vmatprep.mubr.bf16.mxu1 %v27593_v17 }
 0x452   :  { %21762 = vmatmul.mubr.bf16.gmra.mrb[48].mxu1 %v27598_v41 }
 0x453   :  { %21765 = vmatprep.mubr.bf16.mxu1 %v27616_v50 }
 0x45a   :  { %21766 = vmatmul.mubr.bf16.gmra.mrb[52].mxu1 %v27623_v57 }
 0x45b   :  { %21769 = vmatprep.mubr.bf16.mxu1 %v27637_v62 }
 0x462   :  { %21770 = vmatmul.mubr.bf16.gmra.mrb[56].mxu1 %v27642_v48 }
 0x463   :  { %21773 = vmatprep.mubr.bf16.mxu1 %v27655_v54 }
 0x46a   :  { %21774 = vmatmul.mubr.bf16.gmra.mrb[60].mxu1 %v27660_v25 }
 0x46b   :  { %21793 = vmatprep.mubr.bf16.mxu1 %v26916_v2  ;;  %v25015_v2 = vld [vmem:[%s30866_s4 + $0x1d8] sm:$0xff]  }
 0x472   :  { %21794 = vmatmul.mubr.bf16.vlgmr.msra.gmra.mrb[0].mxu1 %v26912_v3  ;;  %v25016_v3 = vld [vmem:[%s30866_s4 + $0x1e0] sm:$0xff]  }
 0x473   :  { %21858 = vmatpush3.bf16.msra.mxu1 %v25012_v19  ;;  %21797 = vmatprep.mubr.bf16.mxu1 %v26942_v16  ;;  %v25017_v16 = vld [vmem:[%s30866_s4 + $0x1e8] sm:$0xff]   ;;  %v31401_v19 = vld [vmem:[#allocation154_spill] sm:$0xff] }
 0x474   :  { %21859 = vmatprep.subr.bf16.mxu1 %v25013_v24 }
 0x477   :  { %21860 = vmatpush3.bf16.msra.mxu1 %v25013_v24  ;;  %v31402_v24 = vld [vmem:[#allocation155_spill] sm:$0xff] }
 0x478   :  { %21861 = vmatprep.subr.bf16.mxu1 %v25014_v30 }
 0x47a   :  { %21798 = vmatmul.mubr.bf16.gmra.mrb[4].mxu1 %v26944_v10  ;;  %v25018_v10 = vld [vmem:[%s30866_s4 + $0x1f0] sm:$0xff]  }
 0x47b   :  { %21801 = vmatprep.mubr.bf16.mxu1 %v26976_v56  ;;  %21862 = vmatpush3.bf16.msra.mxu1 %v25014_v30  ;;  %v31403_v30 = vld [vmem:[#allocation157_spill] sm:$0xff] }
 0x47c   :  { %21863 = vmatprep.subr.bf16.mxu1 %v25015_v2 }
 0x47f   :  { %21864 = vmatpush3.bf16.msra.mxu1 %v25015_v2  ;;  %v31404_v2 = vld [vmem:[#allocation159_spill] sm:$0xff] }
 0x480   :  { %21865 = vmatprep.subr.bf16.mxu1 %v25016_v3 }
 0x482   :  { %21802 = vmatmul.mubr.bf16.gmra.mrb[8].mxu1 %v26980_v55 }
 0x483   :  { %21805 = vmatprep.mubr.bf16.mxu1 %v31389_v32  ;;  %21866 = vmatpush3.bf16.msra.mxu1 %v25016_v3  ;;  %v31405_v3 = vld [vmem:[#allocation161_spill] sm:$0xff] }
 0x484   :  { %21867 = vmatprep.subr.bf16.mxu1 %v25017_v16 }
 0x487   :  { %21868 = vmatpush3.bf16.msra.mxu1 %v25017_v16  ;;  %v31406_v16 = vld [vmem:[#allocation162_spill] sm:$0xff] }
 0x488   :  { %21869 = vmatprep.subr.bf16.mxu1 %v25018_v10 }
 0x48a   :  { %21806 = vmatmul.mubr.bf16.gmra.mrb[12].mxu1 %v31390_v45 }
 0x48b   :  { %21809 = vmatprep.mubr.bf16.mxu1 %v31391_v21  ;;  %21870 = vmatpush3.bf16.msra.mxu1 %v25018_v10  ;;  %v31407_v10 = vld [vmem:[#allocation164_spill] sm:$0xff] }
 0x48c   :  { %21871 = vmatprep.subr.bf16.mxu1 %v25019_v59 }
 0x48f   :  { %21872 = vmatpush3.bf16.msra.mxu1 %v25019_v59  ;;  %v31408_v59 = vld [vmem:[#allocation166_spill] sm:$0xff] }
 0x490   :  { %21937 = vmatprep.subr.bf16.mxu1 %v25020_v52 }
 0x492   :  { %21810 = vmatmul.mubr.bf16.gmra.mrb[16].mxu1 %v31392_v20 }
 0x493   :  { %21813 = vmatprep.mubr.bf16.mxu1 %v31393_v6 }
 0x49a   :  { %21814 = vmatmul.mubr.bf16.gmra.mrb[20].mxu1 %v31394_v53 }
 0x49b   :  { %21817 = vmatprep.mubr.bf16.mxu1 %v31395_v42 }
 0x4a2   :  { %21818 = vmatmul.mubr.bf16.gmra.mrb[24].mxu1 %v31396_v47 }
 0x4a3   :  { %21821 = vmatprep.mubr.bf16.mxu1 %v31397_v4 }
 0x4aa   :  { %21822 = vmatmul.mubr.bf16.gmra.mrb[28].mxu1 %v31398_v0 }
 0x4ab   :  { %21825 = vmatprep.mubr.bf16.mxu1 %v31399_v27  ;;  %v31410_v27 = vld [vmem:[#allocation168_spill] sm:$0xff] }
 0x4b2   :  { %21826 = vmatmul.mubr.bf16.gmra.mrb[32].mxu1 %v31400_v58  ;;  %v31411_v58 = vld [vmem:[#allocation169_spill] sm:$0xff] }
 0x4b3   :  { %21829 = vmatprep.mubr.bf16.mxu1 %v31401_v19  ;;  %v31412_v19 = vld [vmem:[#allocation170_spill] sm:$0xff] }
 0x4ba   :  { %21830 = vmatmul.mubr.bf16.gmra.mrb[36].mxu1 %v31402_v24 }
 0x4bb   :  { %21833 = vmatprep.mubr.bf16.mxu1 %v31403_v30  ;;  %v31413_v30 = vld [vmem:[#allocation172_spill] sm:$0xff] }
 0x4c2   :  { %21834 = vmatmul.mubr.bf16.gmra.mrb[40].mxu1 %v31404_v2  ;;  %v31414_v2 = vld [vmem:[#allocation175_spill] sm:$0xff] }
 0x4c3   :  { %21837 = vmatprep.mubr.bf16.mxu1 %v31405_v3 }
 0x4ca   :  { %21838 = vmatmul.mubr.bf16.gmra.mrb[44].mxu1 %v31406_v16  ;;  %v31415_v16 = vld [vmem:[#allocation174_spill] sm:$0xff] }
 0x4cb   :  { %21841 = vmatprep.mubr.bf16.mxu1 %v31407_v10  ;;  %v25021_v10 = vld [vmem:[%s30866_s4 + $0x208] sm:$0xff]  }
 0x4d2   :  { %21842 = vmatmul.mubr.bf16.gmra.mrb[48].mxu1 %v31408_v59  ;;  %v31434_v59 = vld [vmem:[#allocation191_spill] sm:$0xff] }
 0x4d3   :  { %21845 = vmatprep.mubr.bf16.mxu1 %v31409_v29  ;;  %v31416_v29 = vld [vmem:[#allocation177_spill] sm:$0xff] }
 0x4da   :  { %21846 = vmatmul.mubr.bf16.gmra.mrb[52].mxu1 %v31410_v27 }
 0x4db   :  { %21849 = vmatprep.mubr.bf16.mxu1 %v31411_v58 }
 0x4e2   :  { %21850 = vmatmul.mubr.bf16.gmra.mrb[56].mxu1 %v31412_v19  ;;  %v25022_v19 = vld [vmem:[%s30866_s4 + $0x210] sm:$0xff]  }
 0x4e3   :  { %21853 = vmatprep.mubr.bf16.mxu1 %v27274_v26  ;;  %v31417_v26 = vld [vmem:[#allocation176_spill] sm:$0xff] }
 0x4e4   :  { %v31418_v58 = vmax.f32 %v31417_v26, 0.0  ;;  %v25025_v26 = vld [vmem:[%s30866_s4 + $0x228] sm:$0xff]  }
 0x4ea   :  { %21854 = vmatmul.mubr.bf16.gmra.mrb[60].mxu1 %v31413_v30  ;;  %v7085_v30 = vpack.c.bf16 %v31226_v12, %v31418_v58  ;;  %v31421_v58 = vld [vmem:[#allocation182_spill] sm:$0xff] }
 0x4eb   :  { %21873 = vmatprep.mubr.bf16.mxu1 %v31414_v2  ;;  %v25023_v2 = vld [vmem:[%s30866_s4 + $0x218] sm:$0xff]  }
 0x4f2   :  { %21874 = vmatmul.mubr.bf16.vlgmr.msra.gmra.mrb[0].mxu1 %v31415_v16  ;;  %v31419_v16 = vld [vmem:[#allocation179_spill] sm:$0xff] }
 0x4f3   :  { %21938 = vmatpush3.bf16.msra.mxu1 %v25020_v52  ;;  %21877 = vmatprep.mubr.bf16.mxu1 %v31416_v29  ;;  %v25024_v29 = vld [vmem:[%s30866_s4 + $0x220] sm:$0xff]   ;;  %v31420_v52 = vld [vmem:[#allocation180_spill] sm:$0xff] }
 0x4f4   :  { %21939 = vmatprep.subr.bf16.mxu1 %v25021_v10 }
 0x4f7   :  { %21940 = vmatpush3.bf16.msra.mxu1 %v25021_v10 }
 0x4f8   :  { %21941 = vmatprep.subr.bf16.mxu1 %v25022_v19 }
 0x4fa   :  { %21878 = vmatmul.mubr.bf16.gmra.mrb[4].mxu1 %v7085_v30  ;;  %v31422_v30 = vld [vmem:[#allocation181_spill] sm:$0xff] }
 0x4fb   :  { %21881 = vmatprep.mubr.bf16.mxu1 %v31419_v16  ;;  %21942 = vmatpush3.bf16.msra.mxu1 %v25022_v19  ;;  %v25026_v19 = vld [vmem:[%s30866_s4 + $0x230] sm:$0xff]   ;;  %v31423_v10 = vmax.f32 %v31422_v30, 0.0  ;;  %v25027_v16 = vld [vmem:[%s30866_s4 + $0x238] sm:$0xff]   ;;  %v31427_v30 = vld [vmem:[#allocation187_spill] sm:$0xff] }
 0x4fc   :  { %21943 = vmatprep.subr.bf16.mxu1 %v25023_v2 }
 0x4ff   :  { %21944 = vmatpush3.bf16.msra.mxu1 %v25023_v2  ;;  %v27808_v2 = vpack.c.bf16 %v31226_v12, %v31423_v10  ;;  %v31428_v10 = vld [vmem:[#allocation186_spill] sm:$0xff] }
 0x500   :  { %21945 = vmatprep.subr.bf16.mxu1 %v25024_v29 }
 0x501   :  { %31424 = vst [vmem:[#allocation133_spill] sm:$0xff] %v27808_v2 }
 0x502   :  { %21882 = vmatmul.mubr.bf16.gmra.mrb[8].mxu1 %v31420_v52  ;;  %v31429_v52 = vmax.f32 %v31428_v10, 0.0  ;;  %v31438_v10 = vld [vmem:[#allocation195_spill] sm:$0xff] }
 0x503   :  { %21885 = vmatprep.mubr.bf16.mxu1 %v31421_v58  ;;  %21946 = vmatpush3.bf16.msra.mxu1 %v25024_v29  ;;  %v31425_v58 = vld [vmem:[#allocation184_spill] sm:$0xff]  ;;  %v25028_v29 = vld [vmem:[%s30866_s4 + $0x240] sm:$0xff]  }
 0x504   :  { %21947 = vmatprep.subr.bf16.mxu1 %v25025_v26  ;;  %v27823_v27 = vpack.c.bf16 %v31226_v12, %v31429_v52  ;;  %v31439_v52 = vld [vmem:[#allocation197_spill] sm:$0xff] }
 0x506   :  { %31430 = vst [vmem:[#allocation134_spill] sm:$0xff] %v27823_v27 }
 0x507   :  { %21948 = vmatpush3.bf16.msra.mxu1 %v25025_v26  ;;  %v31426_v26 = vld [vmem:[#allocation185_spill] sm:$0xff] }
 0x508   :  { %21949 = vmatprep.subr.bf16.mxu1 %v25026_v19 }
 0x50a   :  { %21886 = vmatmul.mubr.bf16.gmra.mrb[12].mxu1 %v27808_v2  ;;  %v31433_v2 = vld [vmem:[#allocation192_spill] sm:$0xff] }
 0x50b   :  { %21889 = vmatprep.mubr.bf16.mxu1 %v31425_v58  ;;  %21950 = vmatpush3.bf16.msra.mxu1 %v25026_v19  ;;  %v31431_v58 = vld [vmem:[#allocation189_spill] sm:$0xff]  ;;  %v31432_v19 = vld [vmem:[#allocation190_spill] sm:$0xff] }
 0x50c   :  { %21951 = vmatprep.subr.bf16.mxu1 %v25027_v16 }
 0x50f   :  { %21952 = vmatpush3.bf16.msra.mxu1 %v25027_v16  ;;  %v31435_v16 = vmax.f32 %v31434_v59, 0.0  ;;  %v31444_v59 = vld [vmem:[#allocation200_spill] sm:$0xff] }
 0x510   :  { %22017 = vmatprep.subr.bf16.mxu1 %v25028_v29 }
 0x511   :  { %v27832_v3 = vpack.c.bf16 %v31226_v12, %v31435_v16  ;;  %v31445_v16 = vld [vmem:[#allocation202_spill] sm:$0xff] }
 0x512   :  { %21890 = vmatmul.mubr.bf16.gmra.mrb[16].mxu1 %v31426_v26 }
 0x513   :  { %21893 = vmatprep.mubr.bf16.mxu1 %v31427_v30  ;;  %31436 = vst [vmem:[#allocation136_spill] sm:$0xff] %v27832_v3  ;;  %v31437_v30 = vld [vmem:[#allocation194_spill] sm:$0xff] }
 0x51a   :  { %21894 = vmatmul.mubr.bf16.gmra.mrb[20].mxu1 %v27823_v27  ;;  %v31440_v27 = vld [vmem:[#allocation196_spill] sm:$0xff] }
 0x51b   :  { %21897 = vmatprep.mubr.bf16.mxu1 %v31431_v58  ;;  %v31441_v26 = vmax.f32 %v31440_v27, 0.0  ;;  %v31449_v27 = vld [vmem:[#allocation205_spill] sm:$0xff] }
 0x51d   :  { %v27841_v58 = vpack.c.bf16 %v31226_v12, %v31441_v26  ;;  %v31450_v26 = vld [vmem:[#allocation206_spill] sm:$0xff] }
 0x51f   :  { %31442 = vst [vmem:[#allocation138_spill] sm:$0xff] %v27841_v58 }
 0x522   :  { %21898 = vmatmul.mubr.bf16.gmra.mrb[24].mxu1 %v31432_v19 }
 0x523   :  { %21901 = vmatprep.mubr.bf16.mxu1 %v31433_v2  ;;  %v31443_v2 = vld [vmem:[#allocation199_spill] sm:$0xff] }
 0x52a   :  { %21902 = vmatmul.mubr.bf16.gmra.mrb[28].mxu1 %v27832_v3  ;;  %v31446_v3 = vld [vmem:[#allocation201_spill] sm:$0xff] }
 0x52b   :  { %21905 = vmatprep.mubr.bf16.mxu1 %v31437_v30  ;;  %v31447_v19 = vmax.f32 %v31446_v3, 0.0  ;;  %v31453_v3 = vmax.f32 %v27650_v7, 0.0  ;;  %v25030_v7 = vld [vmem:[%s30866_s4 + $0x250] sm:$0xff]  }
 0x52d   :  { %v27850_v30 = vpack.c.bf16 %v31226_v12, %v31447_v19  ;;  %v27868_v19 = vpack.c.bf16 %v31226_v12, %v31453_v3  ;;  %v31458_v3 = vld [vmem:[#allocation8_spill] sm:$0xff] }
 0x52f   :  { %31454 = vst [vmem:[#allocation141_spill] sm:$0xff] %v27868_v19 }
 0x532   :  { %21906 = vmatmul.mubr.bf16.gmra.mrb[32].mxu1 %v31438_v10 }
 0x533   :  { %21909 = vmatprep.mubr.bf16.mxu1 %v31439_v52  ;;  %v31448_v52 = vld [vmem:[#allocation204_spill] sm:$0xff] }
 0x53a   :  { %21910 = vmatmul.mubr.bf16.gmra.mrb[36].mxu1 %v27841_v58  ;;  %v31451_v58 = vmax.f32 %v31450_v26, 0.0  ;;  %v31456_v26 = vld [vmem:[#allocation4_spill] sm:$0xff] }
 0x53b   :  { %21913 = vmatprep.mubr.bf16.mxu1 %v31443_v2 }
 0x53c   :  { %v27859_v2 = vpack.c.bf16 %v31226_v12, %v31451_v58  ;;  %v25029_v58 = vld [vmem:[%s30866_s4 + $0x248] sm:$0xff]  }
 0x53e   :  { %31452 = vst [vmem:[#allocation140_spill] sm:$0xff] %v27859_v2 }
 0x542   :  { %21914 = vmatmul.mubr.bf16.gmra.mrb[40].mxu1 %v31444_v59 }
 0x543   :  { %21917 = vmatprep.mubr.bf16.mxu1 %v31445_v16 }
 0x54a   :  { %21918 = vmatmul.mubr.bf16.gmra.mrb[44].mxu1 %v27850_v30 }
 0x54b   :  { %21921 = vmatprep.mubr.bf16.mxu1 %v31448_v52  ;;  %v31484_v52 = vld [vmem:[#allocation50_spill] sm:$0xff] }
 0x552   :  { %21922 = vmatmul.mubr.bf16.gmra.mrb[48].mxu1 %v31449_v27  ;;  %v31474_v27 = vld [vmem:[#allocation36_spill] sm:$0xff] }
 0x553   :  { %21925 = vmatprep.mubr.bf16.mxu1 %v27625_v61  ;;  %v31455_v61 = vld [vmem:[#allocation115_spill] sm:$0xff] }
 0x55a   :  { %21926 = vmatmul.mubr.bf16.gmra.mrb[52].mxu1 %v27859_v2  ;;  %v31472_v2 = vld [vmem:[#allocation32_spill] sm:$0xff] }
 0x55b   :  { %21929 = vmatprep.mubr.bf16.mxu1 %v27645_v39  ;;  %v31457_v39 = vld [vmem:[#allocation6_spill] sm:$0xff] }
 0x562   :  { %21930 = vmatmul.mubr.bf16.gmra.mrb[56].mxu1 %v27647_v1  ;;  %v31468_v1 = vld [vmem:[#allocation25_spill] sm:$0xff] }
 0x563   :  { %21933 = vmatprep.mubr.bf16.mxu1 %v27662_v63  ;;  %v31467_v63 = vld [vmem:[#allocation118_spill] sm:$0xff] }
 0x56a   :  { %21934 = vmatmul.mubr.bf16.gmra.mrb[60].mxu1 %v27868_v19  ;;  %v31459_v19 = vld [vmem:[#allocation116_spill] sm:$0xff] }
 0x56b   :  { %21953 = vmatprep.mubr.bf16.mxu1 %v31455_v61  ;;  %v25031_v61 = vld [vmem:[%s30866_s4 + $0x258] sm:$0xff]  }
 0x572   :  { %21954 = vmatmul.mubr.bf16.vlgmr.msra.gmra.mrb[0].mxu1 %v31456_v26  ;;  %v31461_v26 = vld [vmem:[#allocation13_spill] sm:$0xff] }
 0x573   :  { %22018 = vmatpush3.bf16.msra.mxu1 %v25028_v29  ;;  %21957 = vmatprep.mubr.bf16.mxu1 %v31457_v39  ;;  %v25032_v39 = vld [vmem:[%s30866_s4 + $0x260] sm:$0xff]   ;;  %v25033_v29 = vld [vmem:[%s30866_s4 + $0x268] sm:$0xff]  }
 0x574   :  { %22019 = vmatprep.subr.bf16.mxu1 %v25029_v58 }
 0x577   :  { %22020 = vmatpush3.bf16.msra.mxu1 %v25029_v58  ;;  %v31460_v58 = vld [vmem:[#allocation11_spill] sm:$0xff] }
 0x578   :  { %22021 = vmatprep.subr.bf16.mxu1 %v25030_v7 }
 0x57a   :  { %21958 = vmatmul.mubr.bf16.gmra.mrb[4].mxu1 %v31458_v3  ;;  %v31463_v3 = vld [vmem:[#allocation117_spill] sm:$0xff] }
 0x57b   :  { %21961 = vmatprep.mubr.bf16.mxu1 %v31459_v19  ;;  %22022 = vmatpush3.bf16.msra.mxu1 %v25030_v7  ;;  %v25034_v19 = vld [vmem:[%s30866_s4 + $0x270] sm:$0xff]   ;;  %v25035_v7 = vld [vmem:[%s30866_s4 + $0x278] sm:$0xff]  }
 0x57c   :  { %22023 = vmatprep.subr.bf16.mxu1 %v25031_v61 }
 0x57f   :  { %22024 = vmatpush3.bf16.msra.mxu1 %v25031_v61  ;;  %v31462_v61 = vld [vmem:[#allocation15_spill] sm:$0xff] }
 0x580   :  { %22025 = vmatprep.subr.bf16.mxu1 %v25032_v39 }
 0x582   :  { %21962 = vmatmul.mubr.bf16.gmra.mrb[8].mxu1 %v31460_v58  ;;  %v31464_v58 = vld [vmem:[#allocation18_spill] sm:$0xff] }
 0x583   :  { %21965 = vmatprep.mubr.bf16.mxu1 %v31461_v26  ;;  %22026 = vmatpush3.bf16.msra.mxu1 %v25032_v39  ;;  %v25036_v39 = vld [vmem:[%s30866_s4 + $0x280] sm:$0xff]   ;;  %v31466_v26 = vld [vmem:[#allocation22_spill] sm:$0xff] }
 0x584   :  { %22027 = vmatprep.subr.bf16.mxu1 %v25033_v29 }
 0x587   :  { %22028 = vmatpush3.bf16.msra.mxu1 %v25033_v29  ;;  %v31465_v29 = vld [vmem:[#allocation20_spill] sm:$0xff] }
 0x588   :  { %22029 = vmatprep.subr.bf16.mxu1 %v25034_v19 }
 0x58a   :  { %21966 = vmatmul.mubr.bf16.gmra.mrb[12].mxu1 %v31462_v61  ;;  %v31469_v61 = vld [vmem:[#allocation27_spill] sm:$0xff] }
 0x58b   :  { %21969 = vmatprep.mubr.bf16.mxu1 %v31463_v3  ;;  %22030 = vmatpush3.bf16.msra.mxu1 %v25034_v19  ;;  %v31470_v19 = vld [vmem:[#allocation29_spill] sm:$0xff]  ;;  %v31471_v3 = vld [vmem:[#allocation119_spill] sm:$0xff] }
 0x58c   :  { %22031 = vmatprep.subr.bf16.mxu1 %v25035_v7 }
 0x58f   :  { %22032 = vmatpush3.bf16.msra.mxu1 %v25035_v7  ;;  %v31473_v7 = vld [vmem:[#allocation34_spill] sm:$0xff] }
 0x590   :  { %22097 = vmatprep.subr.bf16.mxu1 %v25036_v39 }
 0x592   :  { %21970 = vmatmul.mubr.bf16.gmra.mrb[16].mxu1 %v31464_v58  ;;  %v31475_v58 = vld [vmem:[#allocation120_spill] sm:$0xff] }
 0x593   :  { %21973 = vmatprep.mubr.bf16.mxu1 %v31465_v29  ;;  %v31476_v29 = vld [vmem:[#allocation39_spill] sm:$0xff] }
 0x59a   :  { %21974 = vmatmul.mubr.bf16.gmra.mrb[20].mxu1 %v31466_v26  ;;  %v31477_v26 = vld [vmem:[#allocation41_spill] sm:$0xff] }
 0x59b   :  { %21977 = vmatprep.mubr.bf16.mxu1 %v31467_v63  ;;  %v31478_v63 = vld [vmem:[#allocation43_spill] sm:$0xff] }
 0x5a2   :  { %21978 = vmatmul.mubr.bf16.gmra.mrb[24].mxu1 %v31468_v1  ;;  %v31479_v1 = vld [vmem:[#allocation121_spill] sm:$0xff] }
 0x5a3   :  { %21981 = vmatprep.mubr.bf16.mxu1 %v31469_v61  ;;  %v31480_v61 = vld [vmem:[#allocation46_spill] sm:$0xff] }
 0x5aa   :  { %21982 = vmatmul.mubr.bf16.gmra.mrb[28].mxu1 %v31470_v19  ;;  %v31481_v19 = vld [vmem:[#allocation48_spill] sm:$0xff] }
 0x5ab   :  { %21985 = vmatprep.mubr.bf16.mxu1 %v31471_v3 }
 0x5b2   :  { %21986 = vmatmul.mubr.bf16.gmra.mrb[32].mxu1 %v31472_v2  ;;  %v31482_v2 = vld [vmem:[#allocation52_spill] sm:$0xff] }
 0x5b3   :  { %21989 = vmatprep.mubr.bf16.mxu1 %v31473_v7  ;;  %v31483_v3 = vmax.f32 %v31482_v2, 0.0  ;;  %v31491_v2 = vld [vmem:[#allocation65_spill] sm:$0xff] }
 0x5b5   :  { %v7625_v7 = vpack.c.bf16 %v31483_v3, %v31226_v12  ;;  %v31492_v3 = vld [vmem:[#allocation69_spill] sm:$0xff] }
 0x5ba   :  { %21990 = vmatmul.mubr.bf16.gmra.mrb[36].mxu1 %v31474_v27  ;;  %v31485_v27 = vld [vmem:[#allocation54_spill] sm:$0xff] }
 0x5bb   :  { %21993 = vmatprep.mubr.bf16.mxu1 %v31475_v58  ;;  %v31486_v58 = vld [vmem:[#allocation56_spill] sm:$0xff] }
 0x5c2   :  { %21994 = vmatmul.mubr.bf16.gmra.mrb[40].mxu1 %v31476_v29  ;;  %v31487_v29 = vld [vmem:[#allocation58_spill] sm:$0xff] }
 0x5c3   :  { %21997 = vmatprep.mubr.bf16.mxu1 %v31477_v26  ;;  %v31488_v26 = vld [vmem:[#allocation61_spill] sm:$0xff] }
 0x5ca   :  { %21998 = vmatmul.mubr.bf16.gmra.mrb[44].mxu1 %v31478_v63  ;;  %v25037_v63 = vld [vmem:[%s30866_s4 + $0x288] sm:$0xff]  }
 0x5cb   :  { %22001 = vmatprep.mubr.bf16.mxu1 %v31479_v1  ;;  %v31489_v1 = vld [vmem:[#allocation60_spill] sm:$0xff] }
 0x5d2   :  { %22002 = vmatmul.mubr.bf16.gmra.mrb[48].mxu1 %v31480_v61  ;;  %v31490_v61 = vld [vmem:[#allocation66_spill] sm:$0xff] }
 0x5d3   :  { %22005 = vmatprep.mubr.bf16.mxu1 %v31481_v19  ;;  %v25039_v19 = vld [vmem:[%s30866_s4 + $0x298] sm:$0xff]  }
 0x5da   :  { %22006 = vmatmul.mubr.bf16.gmra.mrb[52].mxu1 %v31484_v52  ;;  %v25038_v52 = vld [vmem:[%s30866_s4 + $0x290] sm:$0xff]  }
 0x5db   :  { %22009 = vmatprep.mubr.bf16.mxu1 %v7625_v7  ;;  %v25041_v7 = vld [vmem:[%s30866_s4 + $0x2a8] sm:$0xff]  }
 0x5e2   :  { %22010 = vmatmul.mubr.bf16.gmra.mrb[56].mxu1 %v31485_v27  ;;  %v31493_v27 = vld [vmem:[#allocation68_spill] sm:$0xff] }
 0x5e3   :  { %22013 = vmatprep.mubr.bf16.mxu1 %v31486_v58  ;;  %v31494_v58 = vld [vmem:[#allocation74_spill] sm:$0xff] }
 0x5ea   :  { %22014 = vmatmul.mubr.bf16.gmra.mrb[60].mxu1 %v31487_v29  ;;  %v25042_v29 = vld [vmem:[%s30866_s4 + $0x2b0] sm:$0xff]  }
 0x5eb   :  { %22033 = vmatprep.mubr.bf16.mxu1 %v31488_v26  ;;  %v25043_v26 = vld [vmem:[%s30866_s4 + $0x2b8] sm:$0xff]  }
 0x5f2   :  { %22034 = vmatmul.mubr.bf16.vlgmr.msra.gmra.mrb[0].mxu1 %v31489_v1  ;;  %v31496_v1 = vld [vmem:[#allocation77_spill] sm:$0xff] }
 0x5f3   :  { %22098 = vmatpush3.bf16.msra.mxu1 %v25036_v39  ;;  %22037 = vmatprep.mubr.bf16.mxu1 %v31490_v61  ;;  %v25040_v39 = vld [vmem:[%s30866_s4 + $0x2a0] sm:$0xff]  }
 0x5f4   :  { %22099 = vmatprep.subr.bf16.mxu1 %v25037_v63  ;;  %v25044_v61 = vld [vmem:[%s30866_s4 + $0x2c0] sm:$0xff]  }
 0x5f7   :  { %22100 = vmatpush3.bf16.msra.mxu1 %v25037_v63  ;;  %v31495_v63 = vld [vmem:[#allocation73_spill] sm:$0xff] }
 0x5f8   :  { %22101 = vmatprep.subr.bf16.mxu1 %v25038_v52 }
 0x5fa   :  { %22038 = vmatmul.mubr.bf16.gmra.mrb[4].mxu1 %v31491_v2  ;;  %v31499_v2 = vld [vmem:[#allocation81_spill] sm:$0xff] }
 0x5fb   :  { %22041 = vmatprep.mubr.bf16.mxu1 %v31492_v3  ;;  %22102 = vmatpush3.bf16.msra.mxu1 %v25038_v52  ;;  %v31497_v52 = vld [vmem:[#allocation76_spill] sm:$0xff]  ;;  %v31500_v3 = vld [vmem:[#allocation85_spill] sm:$0xff] }
 0x5fc   :  { %22103 = vmatprep.subr.bf16.mxu1 %v25039_v19 }
 0x5ff   :  { %22104 = vmatpush3.bf16.msra.mxu1 %v25039_v19  ;;  %v31498_v19 = vld [vmem:[#allocation82_spill] sm:$0xff] }
 0x600   :  { %22105 = vmatprep.subr.bf16.mxu1 %v25040_v39 }
 0x602   :  { %22042 = vmatmul.mubr.bf16.gmra.mrb[8].mxu1 %v31493_v27  ;;  %v31503_v27 = vld [vmem:[#allocation89_spill] sm:$0xff] }
 0x603   :  { %22045 = vmatprep.mubr.bf16.mxu1 %v31494_v58  ;;  %22106 = vmatpush3.bf16.msra.mxu1 %v25040_v39  ;;  %v31501_v39 = vld [vmem:[#allocation84_spill] sm:$0xff]  ;;  %v31504_v58 = vld [vmem:[#allocation93_spill] sm:$0xff] }
 0x604   :  { %22107 = vmatprep.subr.bf16.mxu1 %v25041_v7 }
 0x607   :  { %22108 = vmatpush3.bf16.msra.mxu1 %v25041_v7  ;;  %v31502_v7 = vld [vmem:[#allocation90_spill] sm:$0xff] }
 0x608   :  { %22109 = vmatprep.subr.bf16.mxu1 %v25042_v29 }
 0x60a   :  { %22046 = vmatmul.mubr.bf16.gmra.mrb[12].mxu1 %v31495_v63  ;;  %v31507_v63 = vld [vmem:[#allocation97_spill] sm:$0xff] }
 0x60b   :  { %22049 = vmatprep.mubr.bf16.mxu1 %v31496_v1  ;;  %22110 = vmatpush3.bf16.msra.mxu1 %v25042_v29  ;;  %v31505_v29 = vld [vmem:[#allocation92_spill] sm:$0xff]  ;;  %v31508_v1 = vld [vmem:[#allocation101_spill] sm:$0xff] }
 0x60c   :  { %22111 = vmatprep.subr.bf16.mxu1 %v25043_v26 }
 0x60f   :  { %22112 = vmatpush3.bf16.msra.mxu1 %v25043_v26  ;;  %v31506_v26 = vld [vmem:[#allocation98_spill] sm:$0xff] }
 0x610   :  { %22177 = vmatprep.subr.bf16.mxu1 %v25044_v61 }
 0x612   :  { %22050 = vmatmul.mubr.bf16.gmra.mrb[16].mxu1 %v31497_v52  ;;  %v31509_v52 = vld [vmem:[#allocation100_spill] sm:$0xff] }
 0x613   :  { %22053 = vmatprep.mubr.bf16.mxu1 %v31498_v19  ;;  %v31510_v19 = vld [vmem:[#allocation106_spill] sm:$0xff] }
 0x61a   :  { %22054 = vmatmul.mubr.bf16.gmra.mrb[20].mxu1 %v31499_v2  ;;  %v31511_v2 = vld [vmem:[#allocation105_spill] sm:$0xff] }
 0x61b   :  { %22057 = vmatprep.mubr.bf16.mxu1 %v31500_v3  ;;  %v31512_v3 = vld [vmem:[#allocation109_spill] sm:$0xff] }
 0x622   :  { %22058 = vmatmul.mubr.bf16.gmra.mrb[24].mxu1 %v31501_v39  ;;  %v31513_v39 = vld [vmem:[#allocation108_spill] sm:$0xff] }
 0x623   :  { %22061 = vmatprep.mubr.bf16.mxu1 %v31502_v7  ;;  %v31514_v7 = vld [vmem:[#allocation113_spill] sm:$0xff] }
 0x62a   :  { %22062 = vmatmul.mubr.bf16.gmra.mrb[28].mxu1 %v31503_v27  ;;  %v31515_v27 = vld [vmem:[#allocation112_spill] sm:$0xff] }
 0x62b   :  { %22065 = vmatprep.mubr.bf16.mxu1 %v31504_v58  ;;  %v31516_v58 = vld [vmem:[#allocation122_spill] sm:$0xff] }
 0x632   :  { %22066 = vmatmul.mubr.bf16.gmra.mrb[32].mxu1 %v31505_v29  ;;  %v31517_v29 = vld [vmem:[#allocation123_spill] sm:$0xff] }
 0x633   :  { %22069 = vmatprep.mubr.bf16.mxu1 %v31506_v26  ;;  %v31518_v26 = vld [vmem:[#allocation127_spill] sm:$0xff] }
 0x63a   :  { %22070 = vmatmul.mubr.bf16.gmra.mrb[36].mxu1 %v31507_v63  ;;  %v31519_v63 = vld [vmem:[#allocation129_spill] sm:$0xff] }
 0x63b   :  { %22073 = vmatprep.mubr.bf16.mxu1 %v31508_v1  ;;  %v31520_v1 = vld [vmem:[#allocation5_spill] sm:$0xff] }
 0x642   :  { %22074 = vmatmul.mubr.bf16.gmra.mrb[40].mxu1 %v31509_v52  ;;  %v25045_v52 = vld [vmem:[%s30866_s4 + $0x2c8] sm:$0xff]  }
 0x643   :  { %22077 = vmatprep.mubr.bf16.mxu1 %v31510_v19  ;;  %v31521_v19 = vld [vmem:[#allocation3_spill] sm:$0xff] }
 0x64a   :  { %22078 = vmatmul.mubr.bf16.gmra.mrb[44].mxu1 %v31511_v2  ;;  %v31522_v2 = vld [vmem:[#allocation9_spill] sm:$0xff] }
 0x64b   :  { %22081 = vmatprep.mubr.bf16.mxu1 %v31512_v3  ;;  %v25046_v3 = vld [vmem:[%s30866_s4 + $0x2d0] sm:$0xff]  }
 0x652   :  { %22082 = vmatmul.mubr.bf16.gmra.mrb[48].mxu1 %v31513_v39  ;;  %v25047_v39 = vld [vmem:[%s30866_s4 + $0x2d8] sm:$0xff]  }
 0x653   :  { %22085 = vmatprep.mubr.bf16.mxu1 %v31514_v7  ;;  %v31523_v7 = vld [vmem:[#allocation7_spill] sm:$0xff] }
 0x65a   :  { %22086 = vmatmul.mubr.bf16.gmra.mrb[52].mxu1 %v31515_v27  ;;  %v31524_v27 = vld [vmem:[#allocation12_spill] sm:$0xff] }
 0x65b   :  { %22089 = vmatprep.mubr.bf16.mxu1 %v31516_v58  ;;  %v25049_v58 = vld [vmem:[%s30866_s4 + $0x2e8] sm:$0xff]  }
 0x662   :  { %22090 = vmatmul.mubr.bf16.gmra.mrb[56].mxu1 %v31517_v29  ;;  %v31525_v29 = vld [vmem:[#allocation10_spill] sm:$0xff] }
 0x663   :  { %22093 = vmatprep.mubr.bf16.mxu1 %v31518_v26  ;;  %v31526_v26 = vld [vmem:[#allocation16_spill] sm:$0xff] }
 0x66a   :  { %22094 = vmatmul.mubr.bf16.gmra.mrb[60].mxu1 %v31519_v63  ;;  %v25050_v63 = vld [vmem:[%s30866_s4 + $0x2f0] sm:$0xff]  }
 0x66b   :  { %22113 = vmatprep.mubr.bf16.mxu1 %v31520_v1  ;;  %v25051_v1 = vld [vmem:[%s30866_s4 + $0x2f8] sm:$0xff]  }
 0x672   :  { %22114 = vmatmul.mubr.bf16.vlgmr.msra.gmra.mrb[0].mxu1 %v31521_v19  ;;  %v31528_v19 = vld [vmem:[#allocation19_spill] sm:$0xff] }
 0x673   :  { %22178 = vmatpush3.bf16.msra.mxu1 %v25044_v61  ;;  %22117 = vmatprep.mubr.bf16.mxu1 %v31522_v2  ;;  %v25048_v61 = vld [vmem:[%s30866_s4 + $0x2e0] sm:$0xff]  }
 0x674   :  { %22179 = vmatprep.subr.bf16.mxu1 %v25045_v52  ;;  %v25052_v2 = vld [vmem:[%s30866_s4 + $0x300] sm:$0xff]  }
 0x677   :  { %22180 = vmatpush3.bf16.msra.mxu1 %v25045_v52  ;;  %v31527_v52 = vld [vmem:[#allocation14_spill] sm:$0xff] }
 0x678   :  { %22181 = vmatprep.subr.bf16.mxu1 %v25046_v3 }
 0x67a   :  { %22118 = vmatmul.mubr.bf16.gmra.mrb[4].mxu1 %v31523_v7  ;;  %v31531_v7 = vld [vmem:[#allocation21_spill] sm:$0xff] }
 0x67b   :  { %22121 = vmatprep.mubr.bf16.mxu1 %v31524_v27  ;;  %22182 = vmatpush3.bf16.msra.mxu1 %v25046_v3  ;;  %v31529_v3 = vld [vmem:[#allocation17_spill] sm:$0xff]  ;;  %v31532_v27 = vld [vmem:[#allocation26_spill] sm:$0xff] }
 0x67c   :  { %22183 = vmatprep.subr.bf16.mxu1 %v25047_v39 }
 0x67f   :  { %22184 = vmatpush3.bf16.msra.mxu1 %v25047_v39  ;;  %v31530_v39 = vld [vmem:[#allocation23_spill] sm:$0xff] }
 0x680   :  { %22185 = vmatprep.subr.bf16.mxu1 %v25048_v61 }
 0x682   :  { %22122 = vmatmul.mubr.bf16.gmra.mrb[8].mxu1 %v31525_v29  ;;  %v31535_v29 = vld [vmem:[#allocation28_spill] sm:$0xff] }
 0x683   :  { %22125 = vmatprep.mubr.bf16.mxu1 %v31526_v26  ;;  %22186 = vmatpush3.bf16.msra.mxu1 %v25048_v61  ;;  %v31533_v61 = vld [vmem:[#allocation24_spill] sm:$0xff]  ;;  %v31536_v26 = vld [vmem:[#allocation33_spill] sm:$0xff] }
 0x684   :  { %22187 = vmatprep.subr.bf16.mxu1 %v25049_v58 }
 0x687   :  { %22188 = vmatpush3.bf16.msra.mxu1 %v25049_v58  ;;  %v31534_v58 = vld [vmem:[#allocation30_spill] sm:$0xff] }
 0x688   :  { %22189 = vmatprep.subr.bf16.mxu1 %v25050_v63 }
 0x68a   :  { %22126 = vmatmul.mubr.bf16.gmra.mrb[12].mxu1 %v31527_v52  ;;  %v31539_v52 = vld [vmem:[#allocation35_spill] sm:$0xff] }
 0x68b   :  { %22129 = vmatprep.mubr.bf16.mxu1 %v31528_v19  ;;  %22190 = vmatpush3.bf16.msra.mxu1 %v25050_v63  ;;  %v31537_v63 = vld [vmem:[#allocation31_spill] sm:$0xff]  ;;  %v31540_v19 = vld [vmem:[#allocation40_spill] sm:$0xff] }
 0x68c   :  { %22191 = vmatprep.subr.bf16.mxu1 %v25051_v1 }
 0x68f   :  { %22192 = vmatpush3.bf16.msra.mxu1 %v25051_v1  ;;  %v31538_v1 = vld [vmem:[#allocation37_spill] sm:$0xff] }
 0x690   :  { %22257 = vmatprep.subr.bf16.mxu1 %v25052_v2 }
 0x692   :  { %22130 = vmatmul.mubr.bf16.gmra.mrb[16].mxu1 %v31529_v3  ;;  %v31541_v3 = vld [vmem:[#allocation38_spill] sm:$0xff] }
 0x693   :  { %22133 = vmatprep.mubr.bf16.mxu1 %v31530_v39  ;;  %v31542_v39 = vld [vmem:[#allocation44_spill] sm:$0xff] }
 0x69a   :  { %22134 = vmatmul.mubr.bf16.gmra.mrb[20].mxu1 %v31531_v7  ;;  %v31543_v7 = vld [vmem:[#allocation42_spill] sm:$0xff] }
 0x69b   :  { %22137 = vmatprep.mubr.bf16.mxu1 %v31532_v27  ;;  %v31544_v27 = vld [vmem:[#allocation47_spill] sm:$0xff] }
 0x6a2   :  { %22138 = vmatmul.mubr.bf16.gmra.mrb[24].mxu1 %v31533_v61  ;;  %v31545_v61 = vld [vmem:[#allocation45_spill] sm:$0xff] }
 0x6a3   :  { %22141 = vmatprep.mubr.bf16.mxu1 %v31534_v58  ;;  %v31546_v58 = vld [vmem:[#allocation51_spill] sm:$0xff] }
 0x6aa   :  { %22142 = vmatmul.mubr.bf16.gmra.mrb[28].mxu1 %v31535_v29  ;;  %v31547_v29 = vld [vmem:[#allocation49_spill] sm:$0xff] }
 0x6ab   :  { %22145 = vmatprep.mubr.bf16.mxu1 %v31536_v26  ;;  %v31548_v26 = vld [vmem:[#allocation55_spill] sm:$0xff] }
 0x6b2   :  { %22146 = vmatmul.mubr.bf16.gmra.mrb[32].mxu1 %v31537_v63  ;;  %v31549_v63 = vld [vmem:[#allocation53_spill] sm:$0xff] }
 0x6b3   :  { %22149 = vmatprep.mubr.bf16.mxu1 %v31538_v1  ;;  %v31550_v1 = vld [vmem:[#allocation59_spill] sm:$0xff] }
 0x6ba   :  { %22150 = vmatmul.mubr.bf16.gmra.mrb[36].mxu1 %v31539_v52  ;;  %v31551_v52 = vld [vmem:[#allocation57_spill] sm:$0xff] }
 0x6bb   :  { %22153 = vmatprep.mubr.bf16.mxu1 %v31540_v19  ;;  %v31552_v19 = vld [vmem:[#allocation62_spill] sm:$0xff] }
 0x6c2   :  { %22154 = vmatmul.mubr.bf16.gmra.mrb[40].mxu1 %v31541_v3  ;;  %v25053_v3 = vld [vmem:[%s30866_s4 + $0x308] sm:$0xff]  }
 0x6c3   :  { %22157 = vmatprep.mubr.bf16.mxu1 %v31542_v39  ;;  %v31553_v39 = vld [vmem:[#allocation64_spill] sm:$0xff] }
 0x6ca   :  { %22158 = vmatmul.mubr.bf16.gmra.mrb[44].mxu1 %v31543_v7  ;;  %v31554_v7 = vld [vmem:[#allocation67_spill] sm:$0xff] }
 0x6cb   :  { %22161 = vmatprep.mubr.bf16.mxu1 %v31544_v27  ;;  %v25054_v27 = vld [vmem:[%s30866_s4 + $0x310] sm:$0xff]  }
 0x6d2   :  { %22162 = vmatmul.mubr.bf16.gmra.mrb[48].mxu1 %v31545_v61  ;;  %v25055_v61 = vld [vmem:[%s30866_s4 + $0x318] sm:$0xff]  }
 0x6d3   :  { %22165 = vmatprep.mubr.bf16.mxu1 %v31546_v58  ;;  %v31555_v58 = vld [vmem:[#allocation63_spill] sm:$0xff] }
 0x6da   :  { %22166 = vmatmul.mubr.bf16.gmra.mrb[52].mxu1 %v31547_v29  ;;  %v31556_v29 = vld [vmem:[#allocation70_spill] sm:$0xff] }
 0x6db   :  { %22169 = vmatprep.mubr.bf16.mxu1 %v31548_v26  ;;  %v25057_v26 = vld [vmem:[%s30866_s4 + $0x328] sm:$0xff]  }
 0x6e2   :  { %22170 = vmatmul.mubr.bf16.gmra.mrb[56].mxu1 %v31549_v63  ;;  %v31557_v63 = vld [vmem:[#allocation72_spill] sm:$0xff] }
 0x6e3   :  { %22173 = vmatprep.mubr.bf16.mxu1 %v31550_v1  ;;  %v31558_v1 = vld [vmem:[#allocation75_spill] sm:$0xff] }
 0x6ea   :  { %22174 = vmatmul.mubr.bf16.gmra.mrb[60].mxu1 %v31551_v52  ;;  %v25058_v52 = vld [vmem:[%s30866_s4 + $0x330] sm:$0xff]  }
 0x6eb   :  { %22193 = vmatprep.mubr.bf16.mxu1 %v31552_v19  ;;  %v25059_v19 = vld [vmem:[%s30866_s4 + $0x338] sm:$0xff]  }
 0x6f2   :  { %22194 = vmatmul.mubr.bf16.vlgmr.msra.gmra.mrb[0].mxu1 %v31553_v39  ;;  %v31560_v39 = vld [vmem:[#allocation78_spill] sm:$0xff] }
 0x6f3   :  { %22258 = vmatpush3.bf16.msra.mxu1 %v25052_v2  ;;  %22197 = vmatprep.mubr.bf16.mxu1 %v31554_v7  ;;  %v25056_v2 = vld [vmem:[%s30866_s4 + $0x320] sm:$0xff]  }
 0x6f4   :  { %22259 = vmatprep.subr.bf16.mxu1 %v25053_v3  ;;  %v25060_v7 = vld [vmem:[%s30866_s4 + $0x340] sm:$0xff]  }
 0x6f7   :  { %22260 = vmatpush3.bf16.msra.mxu1 %v25053_v3  ;;  %v31559_v3 = vld [vmem:[#allocation71_spill] sm:$0xff] }
 0x6f8   :  { %22261 = vmatprep.subr.bf16.mxu1 %v25054_v27 }
 0x6fa   :  { %22198 = vmatmul.mubr.bf16.gmra.mrb[4].mxu1 %v31555_v58  ;;  %v31563_v58 = vld [vmem:[#allocation79_spill] sm:$0xff] }
 0x6fb   :  { %22201 = vmatprep.mubr.bf16.mxu1 %v31556_v29  ;;  %22262 = vmatpush3.bf16.msra.mxu1 %v25054_v27  ;;  %v31561_v27 = vld [vmem:[#allocation80_spill] sm:$0xff]  ;;  %v31564_v29 = vld [vmem:[#allocation86_spill] sm:$0xff] }
 0x6fc   :  { %22263 = vmatprep.subr.bf16.mxu1 %v25055_v61 }
 0x6ff   :  { %22264 = vmatpush3.bf16.msra.mxu1 %v25055_v61  ;;  %v31562_v61 = vld [vmem:[#allocation83_spill] sm:$0xff] }
 0x700   :  { %22265 = vmatprep.subr.bf16.mxu1 %v25056_v2 }
 0x702   :  { %22202 = vmatmul.mubr.bf16.gmra.mrb[8].mxu1 %v31557_v63  ;;  %v31567_v63 = vld [vmem:[#allocation87_spill] sm:$0xff] }
 0x703   :  { %22205 = vmatprep.mubr.bf16.mxu1 %v31558_v1  ;;  %22266 = vmatpush3.bf16.msra.mxu1 %v25056_v2  ;;  %v31565_v2 = vld [vmem:[#allocation88_spill] sm:$0xff]  ;;  %v31568_v1 = vld [vmem:[#allocation94_spill] sm:$0xff] }
 0x704   :  { %22267 = vmatprep.subr.bf16.mxu1 %v25057_v26 }
 0x707   :  { %22268 = vmatpush3.bf16.msra.mxu1 %v25057_v26  ;;  %v31566_v26 = vld [vmem:[#allocation91_spill] sm:$0xff] }
 0x708   :  { %22269 = vmatprep.subr.bf16.mxu1 %v25058_v52 }
 0x70a   :  { %22206 = vmatmul.mubr.bf16.gmra.mrb[12].mxu1 %v31559_v3  ;;  %v31571_v3 = vld [vmem:[#allocation95_spill] sm:$0xff] }
 0x70b   :  { %22209 = vmatprep.mubr.bf16.mxu1 %v31560_v39  ;;  %22270 = vmatpush3.bf16.msra.mxu1 %v25058_v52  ;;  %v31569_v52 = vld [vmem:[#allocation96_spill] sm:$0xff]  ;;  %v31572_v39 = vld [vmem:[#allocation102_spill] sm:$0xff] }
 0x70c   :  { %22271 = vmatprep.subr.bf16.mxu1 %v25059_v19 }
 0x70f   :  { %22272 = vmatpush3.bf16.msra.mxu1 %v25059_v19  ;;  %v31570_v19 = vld [vmem:[#allocation99_spill] sm:$0xff] }
 0x710   :  { %22337 = vmatprep.subr.bf16.mxu1 %v25060_v7 }
 0x712   :  { %22210 = vmatmul.mubr.bf16.gmra.mrb[16].mxu1 %v31561_v27  ;;  %v31573_v27 = vld [vmem:[#allocation104_spill] sm:$0xff] }
 0x713   :  { %22213 = vmatprep.mubr.bf16.mxu1 %v31562_v61  ;;  %v31574_v61 = vld [vmem:[#allocation107_spill] sm:$0xff] }
 0x71a   :  { %22214 = vmatmul.mubr.bf16.gmra.mrb[20].mxu1 %v31563_v58  ;;  %v31575_v58 = vld [vmem:[#allocation103_spill] sm:$0xff] }
 0x71b   :  { %22217 = vmatprep.mubr.bf16.mxu1 %v31564_v29  ;;  %v31576_v29 = vld [vmem:[#allocation110_spill] sm:$0xff] }
 0x722   :  { %22218 = vmatmul.mubr.bf16.gmra.mrb[24].mxu1 %v31565_v2  ;;  %v25066_v2 = vld [vmem:[%s30869_s7] sm:$0xff]  }
 0x723   :  { %22221 = vmatprep.mubr.bf16.mxu1 %v31566_v26  ;;  %22578 = vmatpush3.bf16.msra.mxu0 %v25066_v2  ;;  %v31577_v26 = vld [vmem:[#allocation111_spill] sm:$0xff]  ;;  %v31586_v2 = vld [vmem:[#allocation130_spill] sm:$0xff] }
 0x724   :  { %22579 = vmatprep.subr.bf16.mxu0 %v31226_v12 }
 0x72a   :  { %22222 = vmatmul.mubr.bf16.gmra.mrb[28].mxu1 %v31567_v63  ;;  %v31578_v63 = vld [vmem:[#allocation114_spill] sm:$0xff] }
 0x72b   :  { %22225 = vmatprep.mubr.bf16.mxu1 %v31568_v1  ;;  %v31579_v1 = vld [vmem:[#allocation173_spill] sm:$0xff] }
 0x732   :  { %22226 = vmatmul.mubr.bf16.gmra.mrb[32].mxu1 %v31569_v52  ;;  %v31580_v52 = vld [vmem:[#allocation124_spill] sm:$0xff] }
 0x733   :  { %22229 = vmatprep.mubr.bf16.mxu1 %v31570_v19  ;;  %v31581_v19 = vld [vmem:[#allocation125_spill] sm:$0xff] }
 0x73a   :  { %22230 = vmatmul.mubr.bf16.gmra.mrb[36].mxu1 %v31571_v3  ;;  %v31582_v3 = vld [vmem:[#allocation128_spill] sm:$0xff] }
 0x73b   :  { %22233 = vmatprep.mubr.bf16.mxu1 %v31572_v39  ;;  %v31583_v39 = vld [vmem:[#allocation126_spill] sm:$0xff] }
 0x742   :  { %22234 = vmatmul.mubr.bf16.gmra.mrb[40].mxu1 %v31573_v27  ;;  %v31584_v27 = vmax.f32 %v31583_v39, 0.0  ;;  %v31590_v39 = vld [vmem:[#allocation135_spill] sm:$0xff] }
 0x743   :  { %22237 = vmatprep.mubr.bf16.mxu1 %v31574_v61 }
 0x744   :  { %v9171_v61 = vpack.c.bf16 %v31226_v12, %v31584_v27  ;;  %v25067_v27 = vld [vmem:[%s30866_s4 + $0x370] sm:$0xff]  }
 0x74a   :  { %22238 = vmatmul.mubr.bf16.gmra.mrb[44].mxu1 %v31575_v58  ;;  %v31585_v58 = vld [vmem:[#allocation178_spill] sm:$0xff] }
 0x74b   :  { %22241 = vmatprep.mubr.bf16.mxu1 %v31576_v29  ;;  %v25061_v29 = vld [vmem:[%s30866_s4 + $0x348] sm:$0xff]  }
 0x752   :  { %22242 = vmatmul.mubr.bf16.gmra.mrb[48].mxu1 %v31577_v26  ;;  %v25062_v26 = vld [vmem:[%s30866_s4 + $0x350] sm:$0xff]  }
 0x753   :  { %22245 = vmatprep.mubr.bf16.mxu1 %v31578_v63  ;;  %v31587_v63 = vld [vmem:[#allocation131_spill] sm:$0xff] }
 0x75a   :  { %22246 = vmatmul.mubr.bf16.gmra.mrb[52].mxu1 %v31579_v1  ;;  %v25063_v1 = vld [vmem:[%s30866_s4 + $0x358] sm:$0xff]  }
 0x75b   :  { %22249 = vmatprep.mubr.bf16.mxu1 %v31580_v52  ;;  %v31588_v52 = vld [vmem:[#allocation132_spill] sm:$0xff] }
 0x762   :  { %22250 = vmatmul.mubr.bf16.gmra.mrb[56].mxu1 %v31581_v19  ;;  %v31589_v19 = vld [vmem:[#allocation183_spill] sm:$0xff] }
 0x763   :  { %22253 = vmatprep.mubr.bf16.mxu1 %v31582_v3  ;;  %v25064_v3 = vld [vmem:[%s30866_s4 + $0x360] sm:$0xff]  }
 0x76a   :  { %22254 = vmatmul.mubr.bf16.gmra.mrb[60].mxu1 %v9171_v61  ;;  %v31591_v61 = vld [vmem:[#allocation137_spill] sm:$0xff] }
 0x76b   :  { %22273 = vmatprep.mubr.bf16.mxu1 %v31585_v58  ;;  %v25068_v58 = vld [vmem:[%s30866_s4 + $0x378] sm:$0xff]  }
 0x772   :  { %22274 = vmatmul.mubr.bf16.vlgmr.msra.gmra.mrb[0].mxu1 %v31586_v2  ;;  %v31593_v2 = vld [vmem:[#allocation188_spill] sm:$0xff] }
 0x773   :  { %22338 = vmatpush3.bf16.msra.mxu1 %v25060_v7  ;;  %22277 = vmatprep.mubr.bf16.mxu1 %v31587_v63  ;;  %v25065_v7 = vld [vmem:[%s30866_s4 + $0x368] sm:$0xff]  }
 0x774   :  { %22339 = vmatprep.subr.bf16.mxu1 %v25061_v29  ;;  %v25071_v63 = vld [vmem:[%s30869_s7 + $0x8] sm:$0xff]  }
 0x775   :  { %22580 = vmatpush3.bf16.msra.mxu0 %v25071_v63  ;;  %v31605_v63 = vld [vmem:[#allocation203_spill] sm:$0xff] }
 0x776   :  { %22581 = vmatprep.subr.bf16.mxu0 %v31226_v12 }
 0x777   :  { %22340 = vmatpush3.bf16.msra.mxu1 %v25061_v29  ;;  %v31592_v29 = vld [vmem:[#allocation139_spill] sm:$0xff] }
 0x778   :  { %22341 = vmatprep.subr.bf16.mxu1 %v25062_v26 }
 0x77a   :  { %22278 = vmatmul.mubr.bf16.gmra.mrb[4].mxu1 %v31588_v52  ;;  %v31595_v52 = vld [vmem:[#allocation144_spill] sm:$0xff] }
 0x77b   :  { %22281 = vmatprep.mubr.bf16.mxu1 %v31589_v19  ;;  %22342 = vmatpush3.bf16.msra.mxu1 %v25062_v26  ;;  %v25069_v26 = vld [vmem:[%s30866_s4 + $0x380] sm:$0xff]   ;;  %v31596_v19 = vld [vmem:[#allocation146_spill] sm:$0xff] }
 0x77c   :  { %22343 = vmatprep.subr.bf16.mxu1 %v25063_v1 }
 0x77f   :  { %22344 = vmatpush3.bf16.msra.mxu1 %v25063_v1  ;;  %v31594_v1 = vld [vmem:[#allocation142_spill] sm:$0xff] }
 0x780   :  { %22345 = vmatprep.subr.bf16.mxu1 %v25064_v3 }
 0x782   :  { %22282 = vmatmul.mubr.bf16.gmra.mrb[8].mxu1 %v31590_v39  ;;  %v31599_v39 = vld [vmem:[#allocation151_spill] sm:$0xff] }
 0x783   :  { %22285 = vmatprep.mubr.bf16.mxu1 %v31591_v61  ;;  %22346 = vmatpush3.bf16.msra.mxu1 %v25064_v3  ;;  %v31597_v3 = vld [vmem:[#allocation193_spill] sm:$0xff]  ;;  %v31601_v61 = vld [vmem:[#allocation198_spill] sm:$0xff] }
 0x784   :  { %22347 = vmatprep.subr.bf16.mxu1 %v25065_v7 }
 0x787   :  { %22348 = vmatpush3.bf16.msra.mxu1 %v25065_v7  ;;  %v31598_v7 = vld [vmem:[#allocation149_spill] sm:$0xff] }
 0x788   :  { %22349 = vmatprep.subr.bf16.mxu1 %v25067_v27 }
 0x78a   :  { %22286 = vmatmul.mubr.bf16.gmra.mrb[12].mxu1 %v31592_v29  ;;  %v31602_v29 = vld [vmem:[#allocation156_spill] sm:$0xff] }
 0x78b   :  { %22289 = vmatprep.mubr.bf16.mxu1 %v31593_v2  ;;  %22350 = vmatpush3.bf16.msra.mxu1 %v25067_v27  ;;  %v31600_v27 = vld [vmem:[#allocation153_spill] sm:$0xff]  ;;  %v31604_v2 = vld [vmem:[#allocation160_spill] sm:$0xff] }
 0x78c   :  { %22351 = vmatprep.subr.bf16.mxu1 %v25068_v58 }
 0x78f   :  { %22352 = vmatpush3.bf16.msra.mxu1 %v25068_v58  ;;  %v31603_v58 = vld [vmem:[#allocation158_spill] sm:$0xff] }
 0x790   :  { %22417 = vmatprep.subr.bf16.mxu1 %v25069_v26 }
 0x792   :  { %22290 = vmatmul.mubr.bf16.gmra.mrb[16].mxu1 %v31594_v1  ;;  %v31606_v1 = vld [vmem:[#allocation163_spill] sm:$0xff] }
 0x793   :  { %22293 = vmatprep.mubr.bf16.mxu1 %v31595_v52  ;;  %v31607_v52 = vld [vmem:[#allocation165_spill] sm:$0xff] }
 0x79a   :  { %22294 = vmatmul.mubr.bf16.gmra.mrb[20].mxu1 %v31596_v19  ;;  %v25076_v19 = vld [vmem:[%s30869_s7 + $0x10] sm:$0xff]  }
 0x79b   :  { %22297 = vmatprep.mubr.bf16.mxu1 %v31597_v3  ;;  %22582 = vmatpush3.bf16.msra.mxu0 %v25076_v19  ;;  %v31608_v3 = vmov 0.0|0.0   ;;  %v25113_v19 = vld [vmem:[%s30869_s7 + $0xc50] sm:$0xff]  }
 0x79c   :  { %22583 = vmatprep.subr.bf16.mxu0 %v31226_v12 }
 0x7a2   :  { %22298 = vmatmul.mubr.bf16.gmra.mrb[24].mxu1 %v31598_v7  ;;  %v31636_v7 = vld [vmem:[#allocation194_spill] sm:$0xff] }
 0x7a3   :  { %22301 = vmatprep.mubr.bf16.mxu1 %v31599_v39  ;;  %v31637_v39 = vld [vmem:[#allocation197_spill] sm:$0xff] }
 0x7aa   :  { %22302 = vmatmul.mubr.bf16.gmra.mrb[28].mxu1 %v31600_v27  ;;  %v31638_v27 = vld [vmem:[#allocation138_spill] sm:$0xff] }
 0x7ab   :  { %22305 = vmatprep.mubr.bf16.mxu1 %v31601_v61  ;;  %v31639_v61 = vld [vmem:[#allocation199_spill] sm:$0xff] }
 0x7b2   :  { %22306 = vmatmul.mubr.bf16.gmra.mrb[32].mxu1 %v31602_v29  ;;  %v31640_v29 = vld [vmem:[#allocation204_spill] sm:$0xff] }
 0x7b3   :  { %22309 = vmatprep.mubr.bf16.mxu1 %v31603_v58  ;;  %v31641_v58 = vld [vmem:[#allocation205_spill] sm:$0xff] }
 0x7ba   :  { %22310 = vmatmul.mubr.bf16.gmra.mrb[36].mxu1 %v31604_v2  ;;  %v31642_v2 = vld [vmem:[#allocation207_spill] sm:$0xff] }
 0x7bb   :  { %22313 = vmatprep.mubr.bf16.mxu1 %v31605_v63  ;;  %v31643_v63 = vld [vmem:[#allocation140_spill] sm:$0xff] }
 0x7c2   :  { %22314 = vmatmul.mubr.bf16.gmra.mrb[40].mxu1 %v31606_v1  ;;  %v31645_v1 = vld [vmem:[#allocation209_spill] sm:$0xff] }
 0x7c3   :  { %22317 = vmatprep.mubr.bf16.mxu1 %v31607_v52  ;;  %v25111_v52 = vld [vmem:[%s30869_s7 + $0xc48] sm:$0xff]  }
 0x7ca   :  { %22318 = vmatmul.mubr.bf16.gmra.mrb[44].mxu1 %v27226_v60  ;;  %v25073_v60 = vld [vmem:[%s30866_s4 + $0x398] sm:$0xff]  }
 0x7cb   :  { %22321 = vmatprep.mubr.bf16.mxu1 %v27632_v35  ;;  %v25070_v35 = vld [vmem:[%s30866_s4 + $0x388] sm:$0xff]  }
 0x7d2   :  { %22322 = vmatmul.mubr.bf16.gmra.mrb[48].mxu1 %v27251_v37  ;;  %v25074_v37 = vld [vmem:[%s30866_s4 + $0x3a0] sm:$0xff]  }
 0x7d3   :  { %22325 = vmatprep.mubr.bf16.mxu1 %v27258_v31  ;;  %v25077_v31 = vld [vmem:[%s30866_s4 + $0x3b0] sm:$0xff]  }
 0x7da   :  { %22326 = vmatmul.mubr.bf16.gmra.mrb[52].mxu1 %v27272_v14  ;;  %v25072_v14 = vld [vmem:[%s30866_s4 + $0x390] sm:$0xff]  }
 0x7db   :  { %22329 = vmatprep.mubr.bf16.mxu1 %v31608_v3 }
 0x7e2   :  { %22330 = vmatmul.mubr.bf16.gmra.mrb[56].mxu1 %v31608_v3 }
 0x7e3   :  { %22333 = vmatprep.mubr.bf16.mxu1 %v31608_v3 }
 0x7ea   :  { %22334 = vmatmul.mubr.bf16.gmra.mrb[60].mxu1 %v31608_v3 }
 0x7eb   :  { %22353 = vmatprep.mubr.bf16.mxu1 %v27356_v44  ;;  %v25079_v44 = vld [vmem:[%s30866_s4 + $0x3c0] sm:$0xff]  }
 0x7f2   :  { %22354 = vmatmul.mubr.bf16.vlgmr.msra.gmra.mrb[0].mxu1 %v27358_v40  ;;  %v25081_v40 = vld [vmem:[%s30869_s7 + $0x18] sm:$0xff]  }
 0x7f3   :  { %22418 = vmatpush3.bf16.msra.mxu1 %v25069_v26  ;;  %22357 = vmatprep.mubr.bf16.mxu1 %v27387_v43  ;;  %v25075_v43 = vld [vmem:[%s30866_s4 + $0x3a8] sm:$0xff]  }
 0x7f4   :  { %22419 = vmatprep.subr.bf16.mxu1 %v25070_v35  ;;  %22584 = vmatpush3.bf16.msra.mxu0 %v25081_v40  ;;  %v31635_v26 = vld [vmem:[#allocation136_spill] sm:$0xff] }
 0x7f5   :  { %22585 = vmatprep.subr.bf16.mxu0 %v31226_v12 }
 0x7f7   :  { %22420 = vmatpush3.bf16.msra.mxu1 %v25070_v35  ;;  %v25117_v35 = vld [vmem:[%s30869_s7 + $0xc60] sm:$0xff]  }
 0x7f8   :  { %22421 = vmatprep.subr.bf16.mxu1 %v25072_v14 }
 0x7fa   :  { %22358 = vmatmul.mubr.bf16.gmra.mrb[4].mxu1 %v27391_v11  ;;  %v25086_v11 = vld [vmem:[%s30869_s7 + $0x20] sm:$0xff]  }
 0x7fb   :  { %22361 = vmatprep.mubr.bf16.mxu1 %v27419_v9  ;;  %22422 = vmatpush3.bf16.msra.mxu1 %v25072_v14  ;;  %v25078_v9 = vld [vmem:[%s30866_s4 + $0x3b8] sm:$0xff]   ;;  %v25119_v14 = vld [vmem:[%s30869_s7 + $0xc68] sm:$0xff]  }
 0x7fc   :  { %22423 = vmatprep.subr.bf16.mxu1 %v25073_v60  ;;  %22586 = vmatpush3.bf16.msra.mxu0 %v25086_v11 }
 0x7fd   :  { %22587 = vmatprep.subr.bf16.mxu0 %v31226_v12 }
 0x7ff   :  { %22424 = vmatpush3.bf16.msra.mxu1 %v25073_v60  ;;  %v25121_v60 = vld [vmem:[%s30869_s7 + $0xc70] sm:$0xff]  }
 0x800   :  { %22425 = vmatprep.subr.bf16.mxu1 %v25074_v37 }
 0x802   :  { %22362 = vmatmul.mubr.bf16.gmra.mrb[8].mxu1 %v27421_v5  ;;  %v25082_v5 = vld [vmem:[%s30866_s4 + $0x3d0] sm:$0xff]  }
 0x803   :  { %22365 = vmatprep.mubr.bf16.mxu1 %v27440_v33  ;;  %22426 = vmatpush3.bf16.msra.mxu1 %v25074_v37  ;;  %v25083_v33 = vld [vmem:[%s30866_s4 + $0x3d8] sm:$0xff]  }
 0x804   :  { %22427 = vmatprep.subr.bf16.mxu1 %v25075_v43  ;;  %v25123_v37 = vld [vmem:[%s30869_s7 + $0xc78] sm:$0xff]  }
 0x807   :  { %22428 = vmatpush3.bf16.msra.mxu1 %v25075_v43  ;;  %v28368_v43 = vld [vmem:[%s30870_s5] ss:$0 sm:$0xff] }
 0x808   :  { %22429 = vmatprep.subr.bf16.mxu1 %v25077_v31 }
 0x80a   :  { %22366 = vmatmul.mubr.bf16.gmra.mrb[12].mxu1 %v27444_v13  ;;  %v25087_v13 = vld [vmem:[%s30866_s4 + $0x3f0] sm:$0xff]  }
 0x80b   :  { %22369 = vmatprep.mubr.bf16.mxu1 %v27464_v49  ;;  %22430 = vmatpush3.bf16.msra.mxu1 %v25077_v31  ;;  %v25088_v49 = vld [vmem:[%s30866_s4 + $0x3f8] sm:$0xff]  }
 0x80c   :  { %22431 = vmatprep.subr.bf16.mxu1 %v25078_v9 }
 0x80f   :  { %22432 = vmatpush3.bf16.msra.mxu1 %v25078_v9  ;;  %v28375_v9 = vld [vmem:[%s30871_s6] ss:$0 sm:$0xff] }
 0x810   :  { %22497 = vmatprep.subr.bf16.mxu1 %v25079_v44 }
 0x812   :  { %22370 = vmatmul.mubr.bf16.gmra.mrb[16].mxu1 %v27466_v34  ;;  %v25080_v34 = vld [vmem:[%s30866_s4 + $0x3c8] sm:$0xff]  }
 0x813   :  { %22373 = vmatprep.mubr.bf16.mxu1 %v27487_v28  ;;  %v25089_v28 = vld [vmem:[%s30869_s7 + $0x28] sm:$0xff]  }
 0x814   :  { %22588 = vmatpush3.bf16.msra.mxu0 %v25089_v28 }
 0x815   :  { %22589 = vmatprep.subr.bf16.mxu0 %v31226_v12 }
 0x81a   :  { %22374 = vmatmul.mubr.bf16.gmra.mrb[20].mxu1 %v27491_v15  ;;  %v31609_v15 = vld [vmem:[#allocation150_spill] sm:$0xff] }
 0x81b   :  { %22377 = vmatprep.mubr.bf16.mxu1 %v27505_v51  ;;  %v31610_v51 = vld [vmem:[#allocation152_spill] sm:$0xff] }
 0x822   :  { %22378 = vmatmul.mubr.bf16.gmra.mrb[24].mxu1 %v27510_v22  ;;  %v31611_v22 = vld [vmem:[#allocation154_spill] sm:$0xff] }
 0x823   :  { %22381 = vmatprep.mubr.bf16.mxu1 %v27528_v46  ;;  %v31612_v46 = vld [vmem:[#allocation157_spill] sm:$0xff] }
 0x82a   :  { %22382 = vmatmul.mubr.bf16.gmra.mrb[28].mxu1 %v27535_v18  ;;  %v31613_v18 = vld [vmem:[#allocation159_spill] sm:$0xff] }
 0x82b   :  { %22385 = vmatprep.mubr.bf16.mxu1 %v27549_v36  ;;  %v31614_v36 = vld [vmem:[#allocation161_spill] sm:$0xff] }
 0x832   :  { %22386 = vmatmul.mubr.bf16.gmra.mrb[32].mxu1 %v27554_v38  ;;  %v31615_v38 = vld [vmem:[#allocation162_spill] sm:$0xff] }
 0x833   :  { %22389 = vmatprep.mubr.bf16.mxu1 %v27572_v8  ;;  %v31616_v8 = vld [vmem:[#allocation164_spill] sm:$0xff] }
 0x83a   :  { %22390 = vmatmul.mubr.bf16.gmra.mrb[36].mxu1 %v27579_v23  ;;  %v31617_v23 = vld [vmem:[#allocation166_spill] sm:$0xff] }
 0x83b   :  { %22393 = vmatprep.mubr.bf16.mxu1 %v27593_v17  ;;  %v31618_v17 = vld [vmem:[#allocation167_spill] sm:$0xff] }
 0x842   :  { %22394 = vmatmul.mubr.bf16.gmra.mrb[40].mxu1 %v27598_v41  ;;  %v31619_v41 = vld [vmem:[#allocation168_spill] sm:$0xff] }
 0x843   :  { %22397 = vmatprep.mubr.bf16.mxu1 %v27616_v50  ;;  %v31620_v50 = vld [vmem:[#allocation169_spill] sm:$0xff] }
 0x84a   :  { %22398 = vmatmul.mubr.bf16.gmra.mrb[44].mxu1 %v27623_v57  ;;  %v25090_v57 = vld [vmem:[%s30869_s7 + $0x30] sm:$0xff]  }
 0x84b   :  { %22401 = vmatprep.mubr.bf16.mxu1 %v27637_v62  ;;  %22590 = vmatpush3.bf16.msra.mxu0 %v25090_v57  ;;  %v31621_v62 = vld [vmem:[#allocation170_spill] sm:$0xff] }
 0x84c   :  { %22591 = vmatprep.subr.bf16.mxu0 %v31226_v12 }
 0x852   :  { %22402 = vmatmul.mubr.bf16.gmra.mrb[48].mxu1 %v27642_v48  ;;  %v31622_v48 = vld [vmem:[#allocation171_spill] sm:$0xff] }
 0x853   :  { %22405 = vmatprep.mubr.bf16.mxu1 %v27655_v54  ;;  %v31623_v54 = vld [vmem:[#allocation172_spill] sm:$0xff] }
 0x85a   :  { %22406 = vmatmul.mubr.bf16.gmra.mrb[52].mxu1 %v27660_v25  ;;  %v25091_v25 = vld [vmem:[%s30869_s7 + $0x38] sm:$0xff]  }
 0x85b   :  { %22409 = vmatprep.mubr.bf16.mxu1 %v31608_v3  ;;  %22592 = vmatpush3.bf16.msra.mxu0 %v25091_v25 }
 0x85c   :  { %22597 = vmatprep.subr.bf16.mxu0 %v31226_v12 }
 0x862   :  { %22410 = vmatmul.mubr.bf16.gmra.mrb[56].mxu1 %v31608_v3 }
 0x863   :  { %22413 = vmatprep.mubr.bf16.mxu1 %v31608_v3 }
 0x86a   :  { %22414 = vmatmul.mubr.bf16.gmra.mrb[60].mxu1 %v31608_v3 }
 0x86b   :  { %22433 = vmatprep.mubr.bf16.mxu1 %v26976_v56  ;;  %v25085_v56 = vld [vmem:[%s30866_s4 + $0x3e8] sm:$0xff]  }
 0x872   :  { %22434 = vmatmul.mubr.bf16.vlgmr.msra.gmra.mrb[0].mxu1 %v26980_v55  ;;  %v25084_v55 = vld [vmem:[%s30866_s4 + $0x3e0] sm:$0xff]  }
 0x873   :  { %22498 = vmatpush3.bf16.msra.mxu1 %v25079_v44  ;;  %22437 = vmatprep.mubr.bf16.mxu1 %v31389_v32  ;;  %v31624_v32 = vld [vmem:[#allocation179_spill] sm:$0xff] }
 0x874   :  { %22499 = vmatprep.subr.bf16.mxu1 %v25080_v34 }
 0x877   :  { %22500 = vmatpush3.bf16.msra.mxu1 %v25080_v34 }
 0x878   :  { %22501 = vmatprep.subr.bf16.mxu1 %v25082_v5 }
 0x87a   :  { %22438 = vmatmul.mubr.bf16.gmra.mrb[4].mxu1 %v31390_v45  ;;  %v31625_v45 = vld [vmem:[#allocation180_spill] sm:$0xff] }
 0x87b   :  { %22441 = vmatprep.mubr.bf16.mxu1 %v31391_v21  ;;  %22502 = vmatpush3.bf16.msra.mxu1 %v25082_v5  ;;  %v31626_v21 = vld [vmem:[#allocation182_spill] sm:$0xff] }
 0x87c   :  { %22503 = vmatprep.subr.bf16.mxu1 %v25083_v33 }
 0x87f   :  { %22504 = vmatpush3.bf16.msra.mxu1 %v25083_v33 }
 0x880   :  { %22505 = vmatprep.subr.bf16.mxu1 %v25084_v55 }
 0x882   :  { %22442 = vmatmul.mubr.bf16.gmra.mrb[8].mxu1 %v31392_v20  ;;  %v31627_v20 = vld [vmem:[#allocation133_spill] sm:$0xff] }
 0x883   :  { %22445 = vmatprep.mubr.bf16.mxu1 %v31393_v6  ;;  %22506 = vmatpush3.bf16.msra.mxu1 %v25084_v55  ;;  %v31628_v6 = vld [vmem:[#allocation184_spill] sm:$0xff]  ;;  %v25092_v55 = vld [vmem:[%s30869_s7 + $0x40] sm:$0xff]  }
 0x884   :  { %22507 = vmatprep.subr.bf16.mxu1 %v25085_v56 }
 0x887   :  { %22508 = vmatpush3.bf16.msra.mxu1 %v25085_v56 }
 0x888   :  { %22509 = vmatprep.subr.bf16.mxu1 %v25087_v13 }
 0x88a   :  { %22446 = vmatmul.mubr.bf16.gmra.mrb[12].mxu1 %v31394_v53  ;;  %v31629_v53 = vld [vmem:[#allocation185_spill] sm:$0xff] }
 0x88b   :  { %22449 = vmatprep.mubr.bf16.mxu1 %v31395_v42  ;;  %22510 = vmatpush3.bf16.msra.mxu1 %v25087_v13  ;;  %v31630_v42 = vld [vmem:[#allocation187_spill] sm:$0xff] }
 0x88c   :  { %22511 = vmatprep.subr.bf16.mxu1 %v25088_v49 }
 0x88f   :  { %22512 = vmatpush3.bf16.msra.mxu1 %v25088_v49 }
 0x890   :  { %23557 = vmatprep.subr.bf16.mxu1 %v31226_v12 }
 0x892   :  { %22450 = vmatmul.mubr.bf16.gmra.mrb[16].mxu1 %v31396_v47  ;;  %v31631_v47 = vld [vmem:[#allocation134_spill] sm:$0xff] }
 0x893   :  { %22453 = vmatprep.mubr.bf16.mxu1 %v31397_v4  ;;  %v31632_v4 = vld [vmem:[#allocation189_spill] sm:$0xff] }
 0x89a   :  { %22454 = vmatmul.mubr.bf16.gmra.mrb[20].mxu1 %v31398_v0  ;;  %v31633_v0 = vld [vmem:[#allocation190_spill] sm:$0xff] }
 0x89b   :  { %22457 = vmatprep.mubr.bf16.mxu1 %v31609_v15 }
 0x8a2   :  { %22458 = vmatmul.mubr.bf16.gmra.mrb[24].mxu1 %v31610_v51  ;;  %v25093_v51 = vld [vmem:[%s30869_s7 + $0x48] sm:$0xff]  }
 0x8a3   :  { %22461 = vmatprep.mubr.bf16.mxu1 %v31611_v22  ;;  %v25094_v22 = vld [vmem:[%s30869_s7 + $0x50] sm:$0xff]  }
 0x8aa   :  { %22462 = vmatmul.mubr.bf16.gmra.mrb[28].mxu1 %v31402_v24  ;;  %v31634_v24 = vld [vmem:[#allocation192_spill] sm:$0xff] }
 0x8ab   :  { %22465 = vmatprep.mubr.bf16.mxu1 %v31612_v46 }
 0x8b2   :  { %22466 = vmatmul.mubr.bf16.gmra.mrb[32].mxu1 %v31613_v18 }
 0x8b3   :  { %22469 = vmatprep.mubr.bf16.mxu1 %v31614_v36 }
 0x8ba   :  { %22470 = vmatmul.mubr.bf16.gmra.mrb[36].mxu1 %v31615_v38 }
 0x8bb   :  { %22473 = vmatprep.mubr.bf16.mxu1 %v31616_v8  ;;  %v25095_v8 = vld [vmem:[%s30869_s7 + $0x58] sm:$0xff]  }
 0x8c2   :  { %22474 = vmatmul.mubr.bf16.gmra.mrb[40].mxu1 %v31617_v23  ;;  %v25096_v23 = vld [vmem:[%s30869_s7 + $0x60] sm:$0xff]  }
 0x8c3   :  { %22477 = vmatprep.mubr.bf16.mxu1 %v31618_v17 }
 0x8ca   :  { %22478 = vmatmul.mubr.bf16.gmra.mrb[44].mxu1 %v31619_v41 }
 0x8cb   :  { %22481 = vmatprep.mubr.bf16.mxu1 %v31620_v50 }
 0x8d2   :  { %22482 = vmatmul.mubr.bf16.gmra.mrb[48].mxu1 %v31621_v62  ;;  %v25097_v62 = vld [vmem:[%s30869_s7 + $0x68] sm:$0xff]  }
 0x8d3   :  { %22485 = vmatprep.mubr.bf16.mxu1 %v31622_v48 }
 0x8da   :  { %22486 = vmatmul.mubr.bf16.gmra.mrb[52].mxu1 %v31623_v54  ;;  %v25098_v54 = vld [vmem:[%s30869_s7 + $0x70] sm:$0xff]  }
 0x8db   :  { %22489 = vmatprep.mubr.bf16.mxu1 %v31608_v3 }
 0x8e2   :  { %22490 = vmatmul.mubr.bf16.gmra.mrb[56].mxu1 %v31608_v3 }
 0x8e3   :  { %22493 = vmatprep.mubr.bf16.mxu1 %v31608_v3 }
 0x8ea   :  { %22494 = vmatmul.mubr.bf16.gmra.mrb[60].mxu1 %v31608_v3 }
 0x8eb   :  { %22513 = vmatprep.mubr.bf16.mxu1 %v31624_v32 }
 0x8f2   :  { %22514 = vmatmul.mubr.bf16.vlgmr.msra.gmra.mrb[0].mxu1 %v31625_v45 }
 0x8f3   :  { %22517 = vmatprep.mubr.bf16.mxu1 %v31626_v21 }
 0x8fa   :  { %22518 = vmatmul.mubr.bf16.gmra.mrb[4].mxu1 %v31627_v20 }
 0x8fb   :  { %22521 = vmatprep.mubr.bf16.mxu1 %v31628_v6  ;;  %v25099_v6 = vld [vmem:[%s30869_s7 + $0x78] sm:$0xff]  }
 0x902   :  { %22522 = vmatmul.mubr.bf16.gmra.mrb[8].mxu1 %v31629_v53 }
 0x903   :  { %22525 = vmatprep.mubr.bf16.mxu1 %v31630_v42  ;;  %v25100_v42 = vld [vmem:[%s30869_s7 + $0x80] sm:$0xff]  }
 0x90a   :  { %22526 = vmatmul.mubr.bf16.gmra.mrb[12].mxu1 %v31631_v47 }
 0x90b   :  { %22529 = vmatprep.mubr.bf16.mxu1 %v31632_v4 }
 0x912   :  { %22530 = vmatmul.mubr.bf16.gmra.mrb[16].mxu1 %v31633_v0 }
 0x913   :  { %22533 = vmatprep.mubr.bf16.mxu1 %v31634_v24 }
 0x91a   :  { %22534 = vmatmul.mubr.bf16.gmra.mrb[20].mxu1 %v31635_v26 }
 0x91b   :  { %22537 = vmatprep.mubr.bf16.mxu1 %v31636_v7  ;;  %v25101_v7 = vld [vmem:[%s30869_s7 + $0x88] sm:$0xff]  }
 0x922   :  { %22538 = vmatmul.mubr.bf16.gmra.mrb[24].mxu1 %v31438_v10  ;;  %v31644_v10 = vld [vmem:[#allocation208_spill] sm:$0xff] }
 0x923   :  { %22541 = vmatprep.mubr.bf16.mxu1 %v31637_v39  ;;  %v25102_v39 = vld [vmem:[%s30869_s7 + $0x90] sm:$0xff]  }
 0x92a   :  { %22542 = vmatmul.mubr.bf16.gmra.mrb[28].mxu1 %v31638_v27 }
 0x92b   :  { %22545 = vmatprep.mubr.bf16.mxu1 %v31639_v61 }
 0x932   :  { %22546 = vmatmul.mubr.bf16.gmra.mrb[32].mxu1 %v31444_v59  ;;  %v31646_v59 = vld [vmem:[#allocation210_spill] sm:$0xff] }
 0x933   :  { %22549 = vmatprep.mubr.bf16.mxu1 %v31445_v16  ;;  %v31647_v16 = vld [vmem:[#allocation141_spill] sm:$0xff] }
 0x93a   :  { %22550 = vmatmul.mubr.bf16.gmra.mrb[36].mxu1 %v27850_v30  ;;  %v25109_v30 = vld [vmem:[%s30869_s7 + $0xc40] sm:$0xff]  }
 0x93b   :  { %22553 = vmatprep.mubr.bf16.mxu1 %v31640_v29  ;;  %23558 = vmatpush3.bf16.msra.mxu1 %v25109_v30  ;;  %v25105_v30 = vld [vmem:[%s30869_s7 + $0xa8] sm:$0xff]  }
 0x93c   :  { %23559 = vmatprep.subr.bf16.mxu1 %v31226_v12 }
 0x93f   :  { %23560 = vmatpush3.bf16.msra.mxu1 %v25111_v52 }
 0x940   :  { %23561 = vmatprep.subr.bf16.mxu1 %v31226_v12 }
 0x942   :  { %22554 = vmatmul.mubr.bf16.gmra.mrb[40].mxu1 %v31641_v58 }
 0x943   :  { %22557 = vmatprep.mubr.bf16.mxu1 %v31642_v2  ;;  %23562 = vmatpush3.bf16.msra.mxu1 %v25113_v19  ;;  %v25103_v2 = vld [vmem:[%s30869_s7 + $0x98] sm:$0xff]   ;;  %v25106_v19 = vld [vmem:[%s30869_s7 + $0xb0] sm:$0xff]  }
 0x944   :  { %23563 = vmatprep.subr.bf16.mxu1 %v31226_v12 }
 0x94a   :  { %22558 = vmatmul.mubr.bf16.gmra.mrb[44].mxu1 %v31643_v63  ;;  %v25104_v63 = vld [vmem:[%s30869_s7 + $0xa0] sm:$0xff]  }
 0x94b   :  { %22561 = vmatprep.mubr.bf16.mxu1 %v31644_v10 }
 0x952   :  { %22562 = vmatmul.mubr.bf16.gmra.mrb[48].mxu1 %v31645_v1 }
 0x953   :  { %22565 = vmatprep.mubr.bf16.mxu1 %v31646_v59 }
 0x95a   :  { %22566 = vmatmul.mubr.bf16.gmra.mrb[52].mxu1 %v31647_v16 }
 0x95b   :  { %22569 = vmatprep.mubr.bf16.mxu1 %v31608_v3 }
 0x962   :  { %22570 = vmatmul.mubr.bf16.gmra.mrb[56].mxu1 %v31608_v3 }
 0x963   :  { %22573 = vmatprep.mubr.bf16.mxu1 %v31608_v3 }
 0x96a   :  { %22574 = vmatmul.mubr.bf16.gmra.mrb[60].mxu1 %v31608_v3  ;;  %v25115_v3 = vld [vmem:[%s30869_s7 + $0xc58] sm:$0xff]  }
 0x96b   :  { %23573 = vmatprep.mubr.msk.bf16.mxu1 %vm25612_vm0, %v31226_v12  ;;  %23564 = vmatpush3.bf16.msra.mxu1 %v25115_v3 }
 0x96c   :  { %23565 = vmatprep.subr.bf16.mxu1 %v31226_v12 }
 0x96f   :  { %23566 = vmatpush3.bf16.msra.mxu1 %v25117_v35 }
 0x970   :  { %23567 = vmatprep.subr.bf16.mxu1 %v31226_v12 }
 0x973   :  { %23568 = vmatpush3.bf16.msra.mxu1 %v25119_v14 }
 0x974   :  { %23569 = vmatprep.subr.bf16.mxu1 %v31226_v12 }
 0x977   :  { %23570 = vmatpush3.bf16.msra.mxu1 %v25121_v60 }
 0x978   :  { %23571 = vmatprep.subr.bf16.mxu1 %v31226_v12 }
 0x97b   :  { %23572 = vmatpush3.bf16.msra.mxu1 %v25123_v37 }
 0x97c   :  { %23597 = vmatprep.subr.bf16.mxu1 %v31226_v12 }
 0x9c5   :  { %v28370_v31 = vpop.f32.mrb[0].mxu1 }
 0x9c6   :  { %v11331_v44 = vpop.f32.mrb[1].mxu1  ;;  %v11659_v52 = vmul.f32 %v28370_v31, %v28368_v43  ;;  %v25107_v31 = vld [vmem:[%s30869_s7 + $0xb8] sm:$0xff]  }
 0x9c7   :  { %v11657_v40 = vmul.f32 %v28368_v43, %v11331_v44  ;;  %v28378_v11 = vpop.f32.mrb[2].mxu1 }
 0x9c8   :  { %v11334_v34 = vpop.f32.mrb[3].mxu1  ;;  %v11730_v3 = vadd.f32 %v28375_v9, %v11659_v52 }
 0x9c9   :  { %v11728_v5 = vadd.f32 %v28375_v9, %v11657_v40  ;;  %v11658_v48 = vmul.f32 %v28368_v43, %v11334_v34  ;;  %v25108_v40 = vld [vmem:[%s30869_s7 + $0xc0] sm:$0xff]  }
 0x9ca   :  { %v11794_v44 = vmax.f32 %v11730_v3, 0.0 }
 0x9cb   :  { %v11792_v33 = vmax.f32 %v11728_v5, 0.0  ;;  %v11729_v25 = vadd.f32 %v28375_v9, %v11658_v48 }
 0x9cc   :  { %v11858_v34 = vpack.c.bf16 %v11794_v44, %v11794_v44 }
 0x9cd   :  { %v11856_v56 = vpack.c.bf16 %v11792_v33, %v11792_v33  ;;  %v28384_v13 = vpop.f32.mrb[4].mxu1  ;;  %v11793_v53 = vmax.f32 %v11729_v25, 0.0  ;;  %v25116_v25 = vld [vmem:[%s30869_s7 + $0xe0] sm:$0xff]  }
 0x9ce   :  { %v28386_v49 = vpop.f32.mrb[5].mxu1 }
 0x9cf   :  { %v28388_v28 = vpop.f32.mrb[6].mxu1  ;;  %22594 = vmatmul.mubr.bf16.vlgmr.msra.gmra.mrb[0].mxu0 %v11856_v56  ;;  %v11857_v47 = vpack.c.bf16 %v11793_v53, %v11793_v53 }
 0x9d0   :  { %22598 = vmatpush3.bf16.msra.mxu0 %v25092_v55  ;;  %v28390_v15 = vpop.f32.mrb[7].mxu1  ;;  %22613 = vmatprep.mubr.msk.bf16.mxu0 %vm25612_vm0, %v31226_v12 }
 0x9d1   :  { %22599 = vmatprep.subr.bf16.mxu0 %v31226_v12 }
 0x9d4   :  { %22600 = vmatpush3.bf16.msra.mxu0 %v25093_v51  ;;  %v25110_v51 = vld [vmem:[%s30869_s7 + $0xc8] sm:$0xff]  }
 0x9d5   :  { %v28401_v46 = vpop.f32.mrb[8].mxu1  ;;  %22601 = vmatprep.subr.bf16.mxu0 %v31226_v12 }
 0x9d6   :  { %v28404_v18 = vpop.f32.mrb[9].mxu1 }
 0x9d7   :  { %v28406_v36 = vpop.f32.mrb[10].mxu1 }
 0x9d8   :  { %22602 = vmatpush3.bf16.msra.mxu0 %v25094_v22  ;;  %v28408_v38 = vpop.f32.mrb[11].mxu1  ;;  %v25112_v22 = vld [vmem:[%s30869_s7 + $0xd0] sm:$0xff]  }
 0x9d9   :  { %22603 = vmatprep.subr.bf16.mxu0 %v31226_v12 }
 0x9dc   :  { %22604 = vmatpush3.bf16.msra.mxu0 %v25095_v8 }
 0x9dd   :  { %v28417_v17 = vpop.f32.mrb[12].mxu1  ;;  %22605 = vmatprep.subr.bf16.mxu0 %v31226_v12 }
 0x9de   :  { %v28420_v41 = vpop.f32.mrb[13].mxu1 }
 0x9df   :  { %v28422_v50 = vpop.f32.mrb[14].mxu1 }
 0x9e0   :  { %22606 = vmatpush3.bf16.msra.mxu0 %v25096_v23  ;;  %v28424_v57 = vpop.f32.mrb[15].mxu1 }
 0x9e1   :  { %22607 = vmatprep.subr.bf16.mxu0 %v31226_v12 }
 0x9e4   :  { %22608 = vmatpush3.bf16.msra.mxu0 %v25097_v62 }
 0x9e5   :  { %v28435_v32 = vpop.f32.mrb[16].mxu1  ;;  %22609 = vmatprep.subr.bf16.mxu0 %v31226_v12 }
 0x9e6   :  { %v28438_v45 = vpop.f32.mrb[17].mxu1 }
 0x9e7   :  { %v28440_v21 = vpop.f32.mrb[18].mxu1 }
 0x9e8   :  { %22610 = vmatpush3.bf16.msra.mxu0 %v25098_v54  ;;  %v28442_v20 = vpop.f32.mrb[19].mxu1  ;;  %v25114_v54 = vld [vmem:[%s30869_s7 + $0xd8] sm:$0xff]  }
 0x9e9   :  { %22611 = vmatprep.subr.bf16.mxu0 %v31226_v12 }
 0x9ec   :  { %22612 = vmatpush3.bf16.msra.mxu0 %v25099_v6 }
 0x9ed   :  { %v28451_v4 = vpop.f32.mrb[20].mxu1  ;;  %22617 = vmatprep.subr.bf16.mxu0 %v31226_v12 }
 0x9ee   :  { %v28454_v0 = vpop.f32.mrb[21].mxu1 }
 0x9ef   :  { %22614 = vmatmul.mubr.bf16.vlgmr.msra.gmra.mrb[4].mxu0 %v11857_v47  ;;  %v28456_v24 = vpop.f32.mrb[22].mxu1 }
 0x9f0   :  { %22618 = vmatpush3.bf16.msra.mxu0 %v25100_v42  ;;  %v28458_v26 = vpop.f32.mrb[23].mxu1  ;;  %22633 = vmatprep.mubr.msk.bf16.mxu0 %vm25612_vm0, %v31226_v12 }
 0x9f1   :  { %22619 = vmatprep.subr.bf16.mxu0 %v31226_v12 }
 0x9f4   :  { %22620 = vmatpush3.bf16.msra.mxu0 %v25101_v7  ;;  %v25118_v7 = vld [vmem:[%s30869_s7 + $0xe8] sm:$0xff]  }
 0x9f5   :  { %v28469_v27 = vpop.f32.mrb[24].mxu1  ;;  %22621 = vmatprep.subr.bf16.mxu0 %v31226_v12 }
 0x9f6   :  { %v28472_v61 = vpop.f32.mrb[25].mxu1 }
 0x9f7   :  { %v28474_v29 = vpop.f32.mrb[26].mxu1 }
 0x9f8   :  { %22622 = vmatpush3.bf16.msra.mxu0 %v25102_v39  ;;  %v28476_v58 = vpop.f32.mrb[27].mxu1  ;;  %v11660_v39 = vmul.f32 %v28378_v11, %v28368_v43  ;;  %v25122_v11 = vld [vmem:[%s30869_s7 + $0xf8] sm:$0xff]  }
 0x9f9   :  { %22623 = vmatprep.subr.bf16.mxu0 %v31226_v12 }
 0x9fc   :  { %22624 = vmatpush3.bf16.msra.mxu0 %v25103_v2  ;;  %v25120_v2 = vld [vmem:[%s30869_s7 + $0xf0] sm:$0xff]  }
 0x9fd   :  { %v28485_v10 = vpop.f32.mrb[28].mxu1  ;;  %22625 = vmatprep.subr.bf16.mxu0 %v31226_v12 }
 0x9fe   :  { %v28488_v1 = vpop.f32.mrb[29].mxu1 }
 0x9ff   :  { %v28490_v59 = vpop.f32.mrb[30].mxu1 }
 0xa00   :  { %22626 = vmatpush3.bf16.msra.mxu0 %v25104_v63  ;;  %v28492_v16 = vpop.f32.mrb[31].mxu1  ;;  %v11731_v63 = vadd.f32 %v28375_v9, %v11660_v39 }
 0xa01   :  { %22627 = vmatprep.subr.bf16.mxu0 %v31226_v12 }
 0xa04   :  { %22628 = vmatpush3.bf16.msra.mxu0 %v25105_v30 }
 0xa05   :  { %v28504_v35 = vpop.f32.mrb[32].mxu1  ;;  %22629 = vmatprep.subr.bf16.mxu0 %v31226_v12 }
 0xa06   :  { %v28507_v14 = vpop.f32.mrb[33].mxu1 }
 0xa07   :  { %v28509_v60 = vpop.f32.mrb[34].mxu1 }
 0xa08   :  { %22630 = vmatpush3.bf16.msra.mxu0 %v25106_v19  ;;  %v28511_v37 = vpop.f32.mrb[35].mxu1 }
 0xa09   :  { %22631 = vmatprep.subr.bf16.mxu0 %v31226_v12 }
 0xa0c   :  { %22632 = vmatpush3.bf16.msra.mxu0 %v25107_v31  ;;  %v11795_v31 = vmax.f32 %v11731_v63, 0.0 }
 0xa0d   :  { %v28520_v5 = vpop.f32.mrb[36].mxu1  ;;  %22637 = vmatprep.subr.bf16.mxu0 %v31226_v12 }
 0xa0e   :  { %v28523_v33 = vpop.f32.mrb[37].mxu1 }
 0xa0f   :  { %22634 = vmatmul.mubr.bf16.vlgmr.msra.gmra.mrb[8].mxu0 %v11858_v34  ;;  %v28525_v55 = vpop.f32.mrb[38].mxu1  ;;  %v25124_v34 = vld [vmem:[%s30869_s7 + $0x100] sm:$0xff]  }
 0xa10   :  { %22638 = vmatpush3.bf16.msra.mxu0 %v25108_v40  ;;  %v28527_v56 = vpop.f32.mrb[39].mxu1  ;;  %22653 = vmatprep.mubr.msk.bf16.mxu0 %vm25612_vm0, %v31226_v12 }
 0xa11   :  { %22639 = vmatprep.subr.bf16.mxu0 %v31226_v12 }
 0xa14   :  { %22640 = vmatpush3.bf16.msra.mxu0 %v25110_v51  ;;  %v11859_v51 = vpack.c.bf16 %v11795_v31, %v11795_v31  ;;  %v25128_v31 = vld [vmem:[%s30869_s7 + $0x110] sm:$0xff]  }
 0xa15   :  { %v28538_v8 = vpop.f32.mrb[40].mxu1  ;;  %22641 = vmatprep.subr.bf16.mxu0 %v31226_v12 }
 0xa16   :  { %v28541_v23 = vpop.f32.mrb[41].mxu1 }
 0xa17   :  { %v28543_v62 = vpop.f32.mrb[42].mxu1 }
 0xa18   :  { %22642 = vmatpush3.bf16.msra.mxu0 %v25112_v22  ;;  %v28545_v48 = vpop.f32.mrb[43].mxu1 }
 0xa19   :  { %22643 = vmatprep.subr.bf16.mxu0 %v31226_v12 }
 0xa1c   :  { %22644 = vmatpush3.bf16.msra.mxu0 %v25114_v54 }
 0xa1d   :  { %v28554_v6 = vpop.f32.mrb[44].mxu1  ;;  %22645 = vmatprep.subr.bf16.mxu0 %v31226_v12 }
 0xa1e   :  { %v28557_v53 = vpop.f32.mrb[45].mxu1 }
 0xa1f   :  { %v28559_v42 = vpop.f32.mrb[46].mxu1 }
 0xa20   :  { %22646 = vmatpush3.bf16.msra.mxu0 %v25116_v25  ;;  %v28561_v47 = vpop.f32.mrb[47].mxu1 }
 0xa21   :  { %22647 = vmatprep.subr.bf16.mxu0 %v31226_v12 }
 0xa24   :  { %22648 = vmatpush3.bf16.msra.mxu0 %v25118_v7  ;;  %v25125_v7 = vld [vmem:[%s30869_s7 + $0xcc0] sm:$0xff]  }
 0xa25   :  { %v28573_v30 = vpop.f32.mrb[48].mxu1  ;;  %22649 = vmatprep.subr.bf16.mxu0 %v31226_v12 }
 0xa26   :  { %v28576_v52 = vpop.f32.mrb[49].mxu1 }
 0xa27   :  { %v22564_v19 = vpop.f32.mrb[50].mxu1 }
 0xa28   :  { %22650 = vmatpush3.bf16.msra.mxu0 %v25120_v2  ;;  %v11526_v3 = vpop.f32.mrb[51].mxu1 }
 0xa29   :  { %v11706_v44 = vmul.f32 %v28368_v43, %v11526_v3  ;;  %22651 = vmatprep.subr.bf16.mxu0 %v31226_v12  ;;  %v25126_v3 = vld [vmem:[%s30869_s7 + $0x108] sm:$0xff]  }
 0xa2b   :  { %v11777_v40 = vadd.f32 %v28375_v9, %v11706_v44 }
 0xa2c   :  { %22652 = vmatpush3.bf16.msra.mxu0 %v25122_v11  ;;  %v25127_v11 = vld [vmem:[%s30869_s7 + $0xcc8] sm:$0xff]  }
 0xa2d   :  { %v11841_v22 = vmax.f32 %v11777_v40, 0.0  ;;  %v28587_v54 = vpop.f32.mrb[52].mxu1  ;;  %22657 = vmatprep.subr.bf16.mxu0 %v31226_v12 }
 0xa2e   :  { %31648 = vst [vmem:[#allocation143_spill] sm:$0xff] %v28587_v54  ;;  %v28590_v25 = vpop.f32.mrb[53].mxu1 }
 0xa2f   :  { %v11905_v39 = vpack.c.bf16 %v11841_v22, %v11841_v22  ;;  %22654 = vmatmul.mubr.bf16.vlgmr.msra.gmra.mrb[12].mxu0 %v11859_v51  ;;  %v28595_v2 = vpop.f32.mrb[54].mxu1 }
 0xa30   :  { %22658 = vmatpush3.bf16.msra.mxu0 %v25124_v34  ;;  %v28597_v63 = vpop.f32.mrb[55].mxu1  ;;  %22673 = vmatprep.mubr.msk.bf16.mxu0 %vm25612_vm0, %v31226_v12  ;;  %v25129_v34 = vld [vmem:[%s30869_s7 + $0xcd0] sm:$0xff]  }
 0xa31   :  { %23574 = vmatmul.mubr.bf16.vlgmr.msra.gmra.mrb[64].mxu1 %v11905_v39  ;;  %22659 = vmatprep.subr.bf16.mxu0 %v31226_v12  ;;  %v25131_v39 = vld [vmem:[%s30869_s7 + $0xcd8] sm:$0xff]  }
 0xa32   :  { %23598 = vmatpush3.bf16.msra.mxu1 %v25125_v7  ;;  %23613 = vmatprep.mubr.msk.bf16.mxu1 %vm25612_vm0, %v31226_v12  ;;  %v25130_v7 = vld [vmem:[%s30869_s7 + $0x118] sm:$0xff]  }
 0xa33   :  { %23599 = vmatprep.subr.bf16.mxu1 %v31226_v12 }
 0xa34   :  { %22660 = vmatpush3.bf16.msra.mxu0 %v25126_v3  ;;  %v25132_v3 = vld [vmem:[%s30869_s7 + $0x120] sm:$0xff]  }
 0xa35   :  { %v28614_v44 = vpop.f32.mrb[56].mxu1  ;;  %22661 = vmatprep.subr.bf16.mxu0 %v31226_v12 }
 0xa36   :  { %31649 = vst [vmem:[#allocation145_spill] sm:$0xff] %v28614_v44  ;;  %23600 = vmatpush3.bf16.msra.mxu1 %v25127_v11  ;;  %v28617_v40 = vpop.f32.mrb[57].mxu1 }
 0xa37   :  { %31650 = vst [vmem:[#allocation147_spill] sm:$0xff] %v28617_v40  ;;  %v28622_v51 = vpop.f32.mrb[58].mxu1  ;;  %23601 = vmatprep.subr.bf16.mxu1 %v31226_v12  ;;  %v11708_v40 = vmul.f32 %v22564_v19, %v28368_v43  ;;  %v25138_v19 = vld [vmem:[%s30869_s7 + $0x138] sm:$0xff]  }
 0xa38   :  { %22662 = vmatpush3.bf16.msra.mxu0 %v25128_v31  ;;  %v28625_v22 = vpop.f32.mrb[59].mxu1 }
 0xa39   :  { %22663 = vmatprep.subr.bf16.mxu0 %v31226_v12 }
 0xa3a   :  { %23602 = vmatpush3.bf16.msra.mxu1 %v25129_v34  ;;  %v25133_v34 = vld [vmem:[%s30869_s7 + $0xce0] sm:$0xff]  }
 0xa3b   :  { %23603 = vmatprep.subr.bf16.mxu1 %v31226_v12 }
 0xa3c   :  { %22664 = vmatpush3.bf16.msra.mxu0 %v25130_v7 }
 0xa3d   :  { %v28638_v11 = vpop.f32.mrb[60].mxu1  ;;  %22665 = vmatprep.subr.bf16.mxu0 %v31226_v12 }
 0xa3e   :  { %31651 = vst [vmem:[#allocation148_spill] sm:$0xff] %v28638_v11  ;;  %23604 = vmatpush3.bf16.msra.mxu1 %v25131_v39  ;;  %v28641_v31 = vpop.f32.mrb[61].mxu1  ;;  %v25134_v11 = vld [vmem:[%s30869_s7 + $0x128] sm:$0xff]   ;;  %v11661_v39 = vmul.f32 %v28368_v43, %v28386_v49  ;;  %v25137_v49 = vld [vmem:[%s30869_s7 + $0xcf0] sm:$0xff]  }
 0xa3f   :  { %31652 = vst [vmem:[#allocation155_spill] sm:$0xff] %v28641_v31  ;;  %v28646_v44 = vpop.f32.mrb[62].mxu1  ;;  %23605 = vmatprep.subr.bf16.mxu1 %v31226_v12  ;;  %v25135_v31 = vld [vmem:[%s30869_s7 + $0xce8] sm:$0xff]  }
 0xa40   :  { %22666 = vmatpush3.bf16.msra.mxu0 %v25132_v3  ;;  %v28649_v7 = vpop.f32.mrb[63].mxu1  ;;  %v25136_v3 = vld [vmem:[%s30869_s7 + $0x130] sm:$0xff]   ;;  %v11732_v54 = vadd.f32 %v28375_v9, %v11661_v39 }
 0xa41   :  { %22667 = vmatprep.subr.bf16.mxu0 %v31226_v12 }
 0xa42   :  { %23606 = vmatpush3.bf16.msra.mxu1 %v25133_v34  ;;  %v11779_v34 = vadd.f32 %v28375_v9, %v11708_v40  ;;  %v25140_v40 = vld [vmem:[%s30869_s7 + $0x140] sm:$0xff]  }
 0xa43   :  { %23607 = vmatprep.subr.bf16.mxu1 %v31226_v12 }
 0xa44   :  { %22668 = vmatpush3.bf16.msra.mxu0 %v25134_v11  ;;  %v11796_v11 = vmax.f32 %v11732_v54, 0.0  ;;  %v11843_v39 = vmax.f32 %v11779_v34, 0.0  ;;  %v25141_v54 = vld [vmem:[%s30869_s7 + $0xd40] sm:$0xff]   ;;  %v25142_v34 = vld [vmem:[%s30869_s7 + $0x148] sm:$0xff]  }
 0xa45   :  { %22669 = vmatprep.subr.bf16.mxu0 %v31226_v12 }
 0xa46   :  { %23608 = vmatpush3.bf16.msra.mxu1 %v25135_v31  ;;  %v25139_v31 = vld [vmem:[%s30869_s7 + $0xcf8] sm:$0xff]  }
 0xa47   :  { %23609 = vmatprep.subr.bf16.mxu1 %v31226_v12 }
 0xa48   :  { %22670 = vmatpush3.bf16.msra.mxu0 %v25136_v3  ;;  %v11860_v3 = vpack.c.bf16 %v11796_v11, %v11796_v11  ;;  %v25144_v11 = vld [vmem:[%s30869_s7 + $0x150] sm:$0xff]  }
 0xa49   :  { %22671 = vmatprep.subr.bf16.mxu0 %v31226_v12 }
 0xa4a   :  { %23610 = vmatpush3.bf16.msra.mxu1 %v25137_v49  ;;  %v11907_v49 = vpack.c.bf16 %v11843_v39, %v11843_v39  ;;  %v25146_v39 = vld [vmem:[%s30869_s7 + $0x158] sm:$0xff]  }
 0xa4b   :  { %23611 = vmatprep.subr.bf16.mxu1 %v31226_v12 }
 0xa4c   :  { %22672 = vmatpush3.bf16.msra.mxu0 %v25138_v19  ;;  %v25143_v19 = vld [vmem:[%s30869_s7 + $0xd48] sm:$0xff]  }
 0xa4d   :  { %22677 = vmatprep.subr.bf16.mxu0 %v31226_v12 }
 0xa4e   :  { %23612 = vmatpush3.bf16.msra.mxu1 %v25139_v31  ;;  %v25145_v31 = vld [vmem:[%s30869_s7 + $0xd50] sm:$0xff]  }
 0xa4f   :  { %22674 = vmatmul.mubr.bf16.vlgmr.msra.gmra.mrb[16].mxu0 %v11860_v3  ;;  %23637 = vmatprep.subr.bf16.mxu1 %v31226_v12  ;;  %v25148_v3 = vld [vmem:[%s30869_s7 + $0x160] sm:$0xff]  }
 0xa50   :  { %22678 = vmatpush3.bf16.msra.mxu0 %v25140_v40  ;;  %22693 = vmatprep.mubr.msk.bf16.mxu0 %vm25612_vm0, %v31226_v12  ;;  %v25147_v40 = vld [vmem:[%s30869_s7 + $0xd58] sm:$0xff]  }
 0xa51   :  { %23614 = vmatmul.mubr.bf16.vlgmr.msra.gmra.mrb[68].mxu1 %v11907_v49  ;;  %22679 = vmatprep.subr.bf16.mxu0 %v31226_v12  ;;  %v25150_v49 = vld [vmem:[%s30869_s7 + $0x168] sm:$0xff]  }
 0xa52   :  { %23638 = vmatpush3.bf16.msra.mxu1 %v25141_v54  ;;  %23653 = vmatprep.mubr.msk.bf16.mxu1 %vm25612_vm0, %v31226_v12  ;;  %v25149_v54 = vld [vmem:[%s30869_s7 + $0xd60] sm:$0xff]  }
 0xa53   :  { %23639 = vmatprep.subr.bf16.mxu1 %v31226_v12 }
 0xa54   :  { %22680 = vmatpush3.bf16.msra.mxu0 %v25142_v34  ;;  %v11662_v34 = vmul.f32 %v28368_v43, %v28390_v15  ;;  %v25153_v15 = vld [vmem:[%s30869_s7 + $0xd70] sm:$0xff]  }
 0xa55   :  { %22681 = vmatprep.subr.bf16.mxu0 %v31226_v12 }
 0xa56   :  { %23640 = vmatpush3.bf16.msra.mxu1 %v25143_v19  ;;  %v25151_v19 = vld [vmem:[%s30869_s7 + $0xd68] sm:$0xff]  }
 0xa57   :  { %23641 = vmatprep.subr.bf16.mxu1 %v31226_v12 }
 0xa58   :  { %22682 = vmatpush3.bf16.msra.mxu0 %v25144_v11  ;;  %v11710_v11 = vmul.f32 %v28368_v43, %v28597_v63  ;;  %v25154_v63 = vld [vmem:[%s30869_s7 + $0x178] sm:$0xff]  }
 0xa59   :  { %22683 = vmatprep.subr.bf16.mxu0 %v31226_v12 }
 0xa5a   :  { %23642 = vmatpush3.bf16.msra.mxu1 %v25145_v31  ;;  %v25152_v31 = vld [vmem:[%s30869_s7 + $0x170] sm:$0xff]  }
 0xa5b   :  { %23643 = vmatprep.subr.bf16.mxu1 %v31226_v12 }
 0xa5c   :  { %22684 = vmatpush3.bf16.msra.mxu0 %v25146_v39  ;;  %v11733_v39 = vadd.f32 %v28375_v9, %v11662_v34  ;;  %v25156_v34 = vld [vmem:[%s30869_s7 + $0x180] sm:$0xff]  }
 0xa5d   :  { %22685 = vmatprep.subr.bf16.mxu0 %v31226_v12 }
 0xa5e   :  { %23644 = vmatpush3.bf16.msra.mxu1 %v25147_v40  ;;  %v11781_v40 = vadd.f32 %v28375_v9, %v11710_v11  ;;  %v25157_v11 = vld [vmem:[%s30869_s7 + $0xdc0] sm:$0xff]  }
 0xa5f   :  { %23645 = vmatprep.subr.bf16.mxu1 %v31226_v12 }
 0xa60   :  { %22686 = vmatpush3.bf16.msra.mxu0 %v25148_v3  ;;  %v11797_v3 = vmax.f32 %v11733_v39, 0.0  ;;  %v25158_v39 = vld [vmem:[%s30869_s7 + $0x188] sm:$0xff]  }
 0xa61   :  { %22687 = vmatprep.subr.bf16.mxu0 %v31226_v12 }
 0xa62   :  { %23646 = vmatpush3.bf16.msra.mxu1 %v25149_v54  ;;  %v25155_v54 = vld [vmem:[%s30869_s7 + $0xd78] sm:$0xff]  }
 0xa63   :  { %23647 = vmatprep.subr.bf16.mxu1 %v31226_v12 }
 0xa64   :  { %22688 = vmatpush3.bf16.msra.mxu0 %v25150_v49  ;;  %v11845_v49 = vmax.f32 %v11781_v40, 0.0  ;;  %v25160_v40 = vld [vmem:[%s30869_s7 + $0x190] sm:$0xff]  }
 0xa65   :  { %22689 = vmatprep.subr.bf16.mxu0 %v31226_v12 }
 0xa66   :  { %23648 = vmatpush3.bf16.msra.mxu1 %v25151_v19  ;;  %v11861_v19 = vpack.c.bf16 %v11797_v3, %v11797_v3  ;;  %v25162_v3 = vld [vmem:[%s30869_s7 + $0x198] sm:$0xff]  }
 0xa67   :  { %23649 = vmatprep.subr.bf16.mxu1 %v31226_v12 }
 0xa68   :  { %22690 = vmatpush3.bf16.msra.mxu0 %v25152_v31  ;;  %v11909_v31 = vpack.c.bf16 %v11845_v49, %v11845_v49  ;;  %v25164_v49 = vld [vmem:[%s30869_s7 + $0x1a0] sm:$0xff]  }
 0xa69   :  { %22691 = vmatprep.subr.bf16.mxu0 %v31226_v12 }
 0xa6a   :  { %23650 = vmatpush3.bf16.msra.mxu1 %v25153_v15  ;;  %v25159_v15 = vld [vmem:[%s30869_s7 + $0xdc8] sm:$0xff]  }
 0xa6b   :  { %23651 = vmatprep.subr.bf16.mxu1 %v31226_v12 }
 0xa6c   :  { %22692 = vmatpush3.bf16.msra.mxu0 %v25154_v63  ;;  %v25161_v63 = vld [vmem:[%s30869_s7 + $0xdd0] sm:$0xff]  }
 0xa6d   :  { %22697 = vmatprep.subr.bf16.mxu0 %v31226_v12 }
 0xa6e   :  { %23652 = vmatpush3.bf16.msra.mxu1 %v25155_v54  ;;  %v25163_v54 = vld [vmem:[%s30869_s7 + $0xdd8] sm:$0xff]  }
 0xa6f   :  { %22694 = vmatmul.mubr.bf16.vlgmr.msra.gmra.mrb[20].mxu0 %v11861_v19  ;;  %23677 = vmatprep.subr.bf16.mxu1 %v31226_v12  ;;  %v25166_v19 = vld [vmem:[%s30869_s7 + $0x1a8] sm:$0xff]  }
 0xa70   :  { %22698 = vmatpush3.bf16.msra.mxu0 %v25156_v34  ;;  %22713 = vmatprep.mubr.msk.bf16.mxu0 %vm25612_vm0, %v31226_v12  ;;  %v25165_v34 = vld [vmem:[%s30869_s7 + $0xde0] sm:$0xff]  }
 0xa71   :  { %23654 = vmatmul.mubr.bf16.vlgmr.msra.gmra.mrb[72].mxu1 %v11909_v31  ;;  %22699 = vmatprep.subr.bf16.mxu0 %v31226_v12  ;;  %v25167_v31 = vld [vmem:[%s30869_s7 + $0xde8] sm:$0xff]  }
 0xa72   :  { %23678 = vmatpush3.bf16.msra.mxu1 %v25157_v11  ;;  %23693 = vmatprep.mubr.msk.bf16.mxu1 %vm25612_vm0, %v31226_v12  ;;  %v11663_v11 = vmul.f32 %v28384_v13, %v28368_v43  ;;  %v25169_v13 = vld [vmem:[%s30869_s7 + $0xdf0] sm:$0xff]  }
 0xa73   :  { %23679 = vmatprep.subr.bf16.mxu1 %v31226_v12 }
 0xa74   :  { %22700 = vmatpush3.bf16.msra.mxu0 %v25158_v39  ;;  %v11712_v39 = vmul.f32 %v28595_v2, %v28368_v43  ;;  %v25170_v2 = vld [vmem:[%s30869_s7 + $0x1b8] sm:$0xff]  }
 0xa75   :  { %22701 = vmatprep.subr.bf16.mxu0 %v31226_v12 }
 0xa76   :  { %23680 = vmatpush3.bf16.msra.mxu1 %v25159_v15  ;;  %v25168_v15 = vld [vmem:[%s30869_s7 + $0x1b0] sm:$0xff]  }
 0xa77   :  { %23681 = vmatprep.subr.bf16.mxu1 %v31226_v12 }
 0xa78   :  { %22702 = vmatpush3.bf16.msra.mxu0 %v25160_v40  ;;  %v11734_v40 = vadd.f32 %v28375_v9, %v11663_v11  ;;  %v25173_v11 = vld [vmem:[%s30869_s7 + $0xe40] sm:$0xff]  }
 0xa79   :  { %22703 = vmatprep.subr.bf16.mxu0 %v31226_v12 }
 0xa7a   :  { %23682 = vmatpush3.bf16.msra.mxu1 %v25161_v63  ;;  %v11783_v63 = vadd.f32 %v28375_v9, %v11712_v39  ;;  %v25174_v39 = vld [vmem:[%s30869_s7 + $0x1c8] sm:$0xff]  }
 0xa7b   :  { %23683 = vmatprep.subr.bf16.mxu1 %v31226_v12 }
 0xa7c   :  { %22704 = vmatpush3.bf16.msra.mxu0 %v25162_v3  ;;  %v11798_v3 = vmax.f32 %v11734_v40, 0.0  ;;  %v25176_v40 = vld [vmem:[%s30869_s7 + $0x1d0] sm:$0xff]  }
 0xa7d   :  { %22705 = vmatprep.subr.bf16.mxu0 %v31226_v12 }
 0xa7e   :  { %23684 = vmatpush3.bf16.msra.mxu1 %v25163_v54  ;;  %v25171_v54 = vld [vmem:[%s30869_s7 + $0xdf8] sm:$0xff]  }
 0xa7f   :  { %23685 = vmatprep.subr.bf16.mxu1 %v31226_v12 }
 0xa80   :  { %22706 = vmatpush3.bf16.msra.mxu0 %v25164_v49  ;;  %v11847_v49 = vmax.f32 %v11783_v63, 0.0  ;;  %v25178_v63 = vld [vmem:[%s30869_s7 + $0x1d8] sm:$0xff]  }
 0xa81   :  { %22707 = vmatprep.subr.bf16.mxu0 %v31226_v12 }
 0xa82   :  { %23686 = vmatpush3.bf16.msra.mxu1 %v25165_v34  ;;  %v25172_v34 = vld [vmem:[%s30869_s7 + $0x1c0] sm:$0xff]  }
 0xa83   :  { %23687 = vmatprep.subr.bf16.mxu1 %v31226_v12 }
 0xa84   :  { %22708 = vmatpush3.bf16.msra.mxu0 %v25166_v19  ;;  %v11862_v19 = vpack.c.bf16 %v11798_v3, %v11798_v3  ;;  %v25180_v3 = vld [vmem:[%s30869_s7 + $0x1e0] sm:$0xff]  }
 0xa85   :  { %22709 = vmatprep.subr.bf16.mxu0 %v31226_v12 }
 0xa86   :  { %23688 = vmatpush3.bf16.msra.mxu1 %v25167_v31  ;;  %v11911_v31 = vpack.c.bf16 %v11847_v49, %v11847_v49  ;;  %v25182_v49 = vld [vmem:[%s30869_s7 + $0x1e8] sm:$0xff]  }
 0xa87   :  { %23689 = vmatprep.subr.bf16.mxu1 %v31226_v12 }
 0xa88   :  { %22710 = vmatpush3.bf16.msra.mxu0 %v25168_v15  ;;  %v25175_v15 = vld [vmem:[%s30869_s7 + $0xe48] sm:$0xff]  }
 0xa89   :  { %22711 = vmatprep.subr.bf16.mxu0 %v31226_v12 }
 0xa8a   :  { %23690 = vmatpush3.bf16.msra.mxu1 %v25169_v13  ;;  %v25177_v13 = vld [vmem:[%s30869_s7 + $0xe50] sm:$0xff]  }
 0xa8b   :  { %23691 = vmatprep.subr.bf16.mxu1 %v31226_v12 }
 0xa8c   :  { %22712 = vmatpush3.bf16.msra.mxu0 %v25170_v2  ;;  %v25179_v2 = vld [vmem:[%s30869_s7 + $0xe58] sm:$0xff]  }
 0xa8d   :  { %22717 = vmatprep.subr.bf16.mxu0 %v31226_v12 }
 0xa8e   :  { %23692 = vmatpush3.bf16.msra.mxu1 %v25171_v54  ;;  %v25181_v54 = vld [vmem:[%s30869_s7 + $0xe60] sm:$0xff]  }
 0xa8f   :  { %22714 = vmatmul.mubr.bf16.vlgmr.msra.gmra.mrb[24].mxu0 %v11862_v19  ;;  %23717 = vmatprep.subr.bf16.mxu1 %v31226_v12 }
 0xa90   :  { %22718 = vmatpush3.bf16.msra.mxu0 %v25172_v34  ;;  %22733 = vmatprep.mubr.msk.bf16.mxu0 %vm25612_vm0, %v31226_v12  ;;  %v11664_v34 = vmul.f32 %v28388_v28, %v28368_v43  ;;  %v25184_v28 = vld [vmem:[%s30869_s7 + $0x1f0] sm:$0xff]  }
 0xa91   :  { %23694 = vmatmul.mubr.bf16.vlgmr.msra.gmra.mrb[76].mxu1 %v11911_v31  ;;  %22719 = vmatprep.subr.bf16.mxu0 %v31226_v12  ;;  %v11714_v31 = vmul.f32 %v28368_v43, %v28625_v22 }
 0xa92   :  { %23718 = vmatpush3.bf16.msra.mxu1 %v25173_v11  ;;  %23733 = vmatprep.mubr.msk.bf16.mxu1 %vm25612_vm0, %v31226_v12  ;;  %v25183_v11 = vld [vmem:[%s30869_s7 + $0xe68] sm:$0xff]  }
 0xa93   :  { %23719 = vmatprep.subr.bf16.mxu1 %v31226_v12  ;;  %v11785_v22 = vadd.f32 %v28375_v9, %v11714_v31  ;;  %v25189_v31 = vld [vmem:[%s30869_s7 + $0xec0] sm:$0xff]  }
 0xa94   :  { %22720 = vmatpush3.bf16.msra.mxu0 %v25174_v39 }
 0xa95   :  { %22721 = vmatprep.subr.bf16.mxu0 %v31226_v12 }
 0xa96   :  { %23720 = vmatpush3.bf16.msra.mxu1 %v25175_v15 }
 0xa97   :  { %23721 = vmatprep.subr.bf16.mxu1 %v31226_v12 }
 0xa98   :  { %22722 = vmatpush3.bf16.msra.mxu0 %v25176_v40  ;;  %v11735_v40 = vadd.f32 %v28375_v9, %v11664_v34  ;;  %v25188_v34 = vld [vmem:[%s30869_s7 + $0x200] sm:$0xff]  }
 0xa99   :  { %22723 = vmatprep.subr.bf16.mxu0 %v31226_v12 }
 0xa9a   :  { %23722 = vmatpush3.bf16.msra.mxu1 %v25177_v13 }
 0xa9b   :  { %23723 = vmatprep.subr.bf16.mxu1 %v31226_v12 }
 0xa9c   :  { %22724 = vmatpush3.bf16.msra.mxu0 %v25178_v63  ;;  %v25185_v63 = vld [vmem:[%s30869_s7 + $0xe70] sm:$0xff]  }
 0xa9d   :  { %22725 = vmatprep.subr.bf16.mxu0 %v31226_v12 }
 0xa9e   :  { %23724 = vmatpush3.bf16.msra.mxu1 %v25179_v2  ;;  %v25186_v2 = vld [vmem:[%s30869_s7 + $0x1f8] sm:$0xff]  }
 0xa9f   :  { %23725 = vmatprep.subr.bf16.mxu1 %v31226_v12 }
 0xaa0   :  { %22726 = vmatpush3.bf16.msra.mxu0 %v25180_v3  ;;  %v11799_v3 = vmax.f32 %v11735_v40, 0.0  ;;  %v25192_v40 = vld [vmem:[%s30869_s7 + $0x210] sm:$0xff]  }
 0xaa1   :  { %22727 = vmatprep.subr.bf16.mxu0 %v31226_v12 }
 0xaa2   :  { %23726 = vmatpush3.bf16.msra.mxu1 %v25181_v54  ;;  %v28878_v19 = vpop.f32.mrb[0].mxu0  ;;  %v25187_v54 = vld [vmem:[%s30869_s7 + $0xe78] sm:$0xff]  }
 0xaa3   :  { %v22595_v39 = vpop.f32.mrb[1].mxu0  ;;  %23727 = vmatprep.subr.bf16.mxu1 %v31226_v12 }
 0xaa4   :  { %22728 = vmatpush3.bf16.msra.mxu0 %v25182_v49  ;;  %v13029_v15 = vpop.f32.mrb[2].mxu0  ;;  %v11849_v49 = vmax.f32 %v11785_v22, 0.0  ;;  %v25195_v22 = vld [vmem:[%s30869_s7 + $0xed8] sm:$0xff]  }
 0xaa5   :  { %v22596_v13 = vpop.f32.mrb[3].mxu0  ;;  %22729 = vmatprep.subr.bf16.mxu0 %v31226_v12  ;;  %v25190_v15 = vld [vmem:[%s30869_s7 + $0x208] sm:$0xff]  }
 0xaa6   :  { %23728 = vmatpush3.bf16.msra.mxu1 %v25183_v11  ;;  %v11863_v11 = vpack.c.bf16 %v11799_v3, %v11799_v3  ;;  %v11913_v39 = vpack.c.bf16 %v11849_v49, %v11849_v49  ;;  %v25193_v13 = vld [vmem:[%s30869_s7 + $0xed0] sm:$0xff]   ;;  %v25197_v3 = vld [vmem:[%s30869_s7 + $0xee0] sm:$0xff]   ;;  %v11665_v49 = vmul.f32 %v28368_v43, %v28404_v18 }
 0xaa7   :  { %23729 = vmatprep.subr.bf16.mxu1 %v31226_v12  ;;  %v25200_v18 = vld [vmem:[%s30869_s7 + $0x230] sm:$0xff]  }
 0xaa8   :  { %22730 = vmatpush3.bf16.msra.mxu0 %v25184_v28  ;;  %v25191_v28 = vld [vmem:[%s30869_s7 + $0xec8] sm:$0xff]  }
 0xaa9   :  { %22731 = vmatprep.subr.bf16.mxu0 %v31226_v12 }
 0xaaa   :  { %23730 = vmatpush3.bf16.msra.mxu1 %v25185_v63  ;;  %v25194_v63 = vld [vmem:[%s30869_s7 + $0x218] sm:$0xff]  }
 0xaab   :  { %23731 = vmatprep.subr.bf16.mxu1 %v31226_v12 }
 0xaac   :  { %22732 = vmatpush3.bf16.msra.mxu0 %v25186_v2  ;;  %v25196_v2 = vld [vmem:[%s30869_s7 + $0x220] sm:$0xff]  }
 0xaad   :  { %22737 = vmatprep.subr.bf16.mxu0 %v31226_v12 }
 0xaae   :  { %23732 = vmatpush3.bf16.msra.mxu1 %v25187_v54  ;;  %v25198_v54 = vld [vmem:[%s30869_s7 + $0x228] sm:$0xff]  }
 0xaaf   :  { %22734 = vmatmul.mubr.bf16.vlgmr.msra.gmra.mrb[28].mxu0 %v11863_v11  ;;  %23757 = vmatprep.subr.bf16.mxu1 %v31226_v12  ;;  %v25199_v11 = vld [vmem:[%s30869_s7 + $0xee8] sm:$0xff]  }
 0xab0   :  { %22738 = vmatpush3.bf16.msra.mxu0 %v25188_v34  ;;  %22753 = vmatprep.mubr.msk.bf16.mxu0 %vm25612_vm0, %v31226_v12 }
 0xab1   :  { %23734 = vmatmul.mubr.bf16.vlgmr.msra.gmra.mrb[80].mxu1 %v11913_v39  ;;  %22739 = vmatprep.subr.bf16.mxu0 %v31226_v12 }
 0xab2   :  { %23758 = vmatpush3.bf16.msra.mxu1 %v25189_v31  ;;  %23773 = vmatprep.mubr.msk.bf16.mxu1 %vm25612_vm0, %v31226_v12  ;;  %v11716_v31 = vmul.f32 %v28622_v51, %v28368_v43  ;;  %v25201_v51 = vld [vmem:[%s30869_s7 + $0xef0] sm:$0xff]  }
 0xab3   :  { %23759 = vmatprep.subr.bf16.mxu1 %v31226_v12 }
 0xab4   :  { %22740 = vmatpush3.bf16.msra.mxu0 %v25190_v15 }
 0xab5   :  { %22741 = vmatprep.subr.bf16.mxu0 %v31226_v12 }
 0xab6   :  { %23760 = vmatpush3.bf16.msra.mxu1 %v25191_v28 }
 0xab7   :  { %23761 = vmatprep.subr.bf16.mxu1 %v31226_v12 }
 0xab8   :  { %22742 = vmatpush3.bf16.msra.mxu0 %v25192_v40  ;;  %v11736_v40 = vadd.f32 %v28375_v9, %v11665_v49  ;;  %v25205_v49 = vld [vmem:[%s30869_s7 + $0xf40] sm:$0xff]  }
 0xab9   :  { %22743 = vmatprep.subr.bf16.mxu0 %v31226_v12 }
 0xaba   :  { %23762 = vmatpush3.bf16.msra.mxu1 %v25193_v13 }
 0xabb   :  { %23763 = vmatprep.subr.bf16.mxu1 %v31226_v12 }
 0xabc   :  { %22744 = vmatpush3.bf16.msra.mxu0 %v25194_v63  ;;  %v25202_v63 = vld [vmem:[%s30869_s7 + $0x238] sm:$0xff]  }
 0xabd   :  { %22745 = vmatprep.subr.bf16.mxu0 %v31226_v12 }
 0xabe   :  { %23764 = vmatpush3.bf16.msra.mxu1 %v25195_v22  ;;  %v11800_v22 = vmax.f32 %v11736_v40, 0.0  ;;  %v25211_v40 = vld [vmem:[%s30869_s7 + $0xf58] sm:$0xff]  }
 0xabf   :  { %23765 = vmatprep.subr.bf16.mxu1 %v31226_v12 }
 0xac0   :  { %22746 = vmatpush3.bf16.msra.mxu0 %v25196_v2  ;;  %v25203_v2 = vld [vmem:[%s30869_s7 + $0xef8] sm:$0xff]  }
 0xac1   :  { %22747 = vmatprep.subr.bf16.mxu0 %v31226_v12 }
 0xac2   :  { %v13114_v34 = vpop.f32.mrb[4].mxu0  ;;  %23766 = vmatpush3.bf16.msra.mxu1 %v25197_v3 }
 0xac3   :  { %v28960_v39 = vadd.f32 %v13114_v34, %v28878_v19  ;;  %v22615_v15 = vpop.f32.mrb[5].mxu0  ;;  %23767 = vmatprep.subr.bf16.mxu1 %v31226_v12  ;;  %v11787_v19 = vadd.f32 %v28375_v9, %v11716_v31  ;;  %v25204_v9 = vld [vmem:[%s30869_s7 + $0x240] sm:$0xff]   ;;  %v25207_v31 = vld [vmem:[%s30869_s7 + $0xf48] sm:$0xff]  }
 0xac4   :  { %v13117_v28 = vpop.f32.mrb[6].mxu0  ;;  %22748 = vmatpush3.bf16.msra.mxu0 %v25198_v54  ;;  %v11864_v54 = vpack.c.bf16 %v11800_v22, %v11800_v22  ;;  %v25208_v15 = vld [vmem:[%s30869_s7 + $0x250] sm:$0xff]  }
 0xac5   :  { %v22616_v13 = vpop.f32.mrb[7].mxu0  ;;  %22749 = vmatprep.subr.bf16.mxu0 %v31226_v12  ;;  %v11851_v3 = vmax.f32 %v11787_v19, 0.0  ;;  %v25209_v28 = vld [vmem:[%s30869_s7 + $0xf50] sm:$0xff]   ;;  %v25214_v19 = vld [vmem:[%s30869_s7 + $0x268] sm:$0xff]  }
 0xac6   :  { %23768 = vmatpush3.bf16.msra.mxu1 %v25199_v11  ;;  %v25206_v11 = vld [vmem:[%s30869_s7 + $0x248] sm:$0xff]   ;;  %v25212_v13 = vld [vmem:[%s30869_s7 + $0x260] sm:$0xff]  }
 0xac7   :  { %23769 = vmatprep.subr.bf16.mxu1 %v31226_v12  ;;  %v11915_v34 = vpack.c.bf16 %v11851_v3, %v11851_v3  ;;  %v11718_v3 = vmul.f32 %v28368_v43, %v28649_v7  ;;  %v25217_v7 = vld [vmem:[%s30869_s7 + $0xf70] sm:$0xff]  }
 0xac8   :  { %22750 = vmatpush3.bf16.msra.mxu0 %v25200_v18  ;;  %v25210_v18 = vld [vmem:[%s30869_s7 + $0x258] sm:$0xff]  }
 0xac9   :  { %22751 = vmatprep.subr.bf16.mxu0 %v31226_v12 }
 0xaca   :  { %23770 = vmatpush3.bf16.msra.mxu1 %v25201_v51  ;;  %v25213_v51 = vld [vmem:[%s30869_s7 + $0xf60] sm:$0xff]  }
 0xacb   :  { %23771 = vmatprep.subr.bf16.mxu1 %v31226_v12 }
 0xacc   :  { %22752 = vmatpush3.bf16.msra.mxu0 %v25202_v63  ;;  %v11666_v63 = vmul.f32 %v28368_v43, %v28408_v38  ;;  %v25216_v38 = vld [vmem:[%s30869_s7 + $0x270] sm:$0xff]  }
 0xacd   :  { %22757 = vmatprep.subr.bf16.mxu0 %v31226_v12 }
 0xace   :  { %23772 = vmatpush3.bf16.msra.mxu1 %v25203_v2  ;;  %v25215_v2 = vld [vmem:[%s30869_s7 + $0xf68] sm:$0xff]  }
 0xacf   :  { %22754 = vmatmul.mubr.bf16.vlgmr.msra.gmra.mrb[32].mxu0 %v11864_v54  ;;  %23797 = vmatprep.subr.bf16.mxu1 %v31226_v12 }
 0xad0   :  { %22758 = vmatpush3.bf16.msra.mxu0 %v25204_v9  ;;  %22773 = vmatprep.mubr.msk.bf16.mxu0 %vm25612_vm0, %v31226_v12 }
 0xad1   :  { %23774 = vmatmul.mubr.bf16.vlgmr.msra.gmra.mrb[84].mxu1 %v11915_v34  ;;  %22759 = vmatprep.subr.bf16.mxu0 %v31226_v12  ;;  %v29046_v34 = vld [vmem:[%s30871_s6] ss:$0 sm:$0xff] }
 0xad2   :  { %23798 = vmatpush3.bf16.msra.mxu1 %v25205_v49  ;;  %23813 = vmatprep.mubr.msk.bf16.mxu1 %vm25612_vm0, %v31226_v12 }
 0xad3   :  { %23799 = vmatprep.subr.bf16.mxu1 %v31226_v12 }
 0xad4   :  { %22760 = vmatpush3.bf16.msra.mxu0 %v25206_v11  ;;  %v11737_v11 = vadd.f32 %v29046_v34, %v11666_v63  ;;  %v25222_v63 = vld [vmem:[%s30869_s7 + $0x288] sm:$0xff]  }
 0xad5   :  { %22761 = vmatprep.subr.bf16.mxu0 %v31226_v12 }
 0xad6   :  { %23800 = vmatpush3.bf16.msra.mxu1 %v25207_v31  ;;  %v25218_v31 = vld [vmem:[%s30869_s7 + $0x278] sm:$0xff]  }
 0xad7   :  { %23801 = vmatprep.subr.bf16.mxu1 %v31226_v12 }
 0xad8   :  { %22762 = vmatpush3.bf16.msra.mxu0 %v25208_v15  ;;  %v11801_v15 = vmax.f32 %v11737_v11, 0.0  ;;  %v25229_v11 = vld [vmem:[%s30869_s7 + $0xfe0] sm:$0xff]  }
 0xad9   :  { %22763 = vmatprep.subr.bf16.mxu0 %v31226_v12 }
 0xada   :  { %23802 = vmatpush3.bf16.msra.mxu1 %v25209_v28  ;;  %v25219_v28 = vld [vmem:[%s30869_s7 + $0xf78] sm:$0xff]  }
 0xadb   :  { %23803 = vmatprep.subr.bf16.mxu1 %v31226_v12 }
 0xadc   :  { %22764 = vmatpush3.bf16.msra.mxu0 %v25210_v18 }
 0xadd   :  { %22765 = vmatprep.subr.bf16.mxu0 %v31226_v12 }
 0xade   :  { %23804 = vmatpush3.bf16.msra.mxu1 %v25211_v40  ;;  %v25220_v40 = vld [vmem:[%s30869_s7 + $0x280] sm:$0xff]  }
 0xadf   :  { %23805 = vmatprep.subr.bf16.mxu1 %v31226_v12 }
 0xae0   :  { %22766 = vmatpush3.bf16.msra.mxu0 %v25212_v13  ;;  %v11865_v13 = vpack.c.bf16 %v11801_v15, %v11801_v15  ;;  %v25231_v15 = vld [vmem:[%s30869_s7 + $0xfe8] sm:$0xff]  }
 0xae1   :  { %22767 = vmatprep.subr.bf16.mxu0 %v31226_v12 }
 0xae2   :  { %v13202_v22 = vpop.f32.mrb[8].mxu0  ;;  %23806 = vmatpush3.bf16.msra.mxu1 %v25213_v51  ;;  %v25221_v51 = vld [vmem:[%s30869_s7 + $0xfc0] sm:$0xff]  }
 0xae3   :  { %v29037_v9 = vadd.f32 %v28960_v39, %v13202_v22  ;;  %v22635_v54 = vpop.f32.mrb[9].mxu0  ;;  %23807 = vmatprep.subr.bf16.mxu1 %v31226_v12  ;;  %v11789_v39 = vadd.f32 %v29046_v34, %v11718_v3  ;;  %v25223_v22 = vld [vmem:[%s30869_s7 + $0xfc8] sm:$0xff]   ;;  %v25225_v3 = vld [vmem:[%s30869_s7 + $0xfd0] sm:$0xff]  }
 0xae4   :  { %v13205_v49 = vpop.f32.mrb[10].mxu0  ;;  %22768 = vmatpush3.bf16.msra.mxu0 %v25214_v19  ;;  %v25226_v54 = vld [vmem:[%s30869_s7 + $0x298] sm:$0xff]  }
 0xae5   :  { %v22636_v43 = vpop.f32.mrb[11].mxu0  ;;  %22769 = vmatprep.subr.bf16.mxu0 %v31226_v12  ;;  %v11853_v18 = vmax.f32 %v11789_v39, 0.0  ;;  %v25227_v49 = vld [vmem:[%s30869_s7 + $0xfd8] sm:$0xff]  }
 0xae6   :  { %23808 = vmatpush3.bf16.msra.mxu1 %v25215_v2  ;;  %v25224_v2 = vld [vmem:[%s30869_s7 + $0x290] sm:$0xff]   ;;  %v25230_v43 = vld [vmem:[%s30869_s7 + $0x2a8] sm:$0xff]  }
 0xae7   :  { %23809 = vmatprep.subr.bf16.mxu1 %v31226_v12  ;;  %v11917_v19 = vpack.c.bf16 %v11853_v18, %v11853_v18 }
 0xae8   :  { %22770 = vmatpush3.bf16.msra.mxu0 %v25216_v38  ;;  %v25228_v38 = vld [vmem:[%s30869_s7 + $0x2a0] sm:$0xff]  }
 0xae9   :  { %22771 = vmatprep.subr.bf16.mxu0 %v31226_v12 }
 0xaea   :  { %23810 = vmatpush3.bf16.msra.mxu1 %v25217_v7  ;;  %v29113_v7 = vld [vmem:[%s30870_s5] ss:$0 sm:$0xff] }
 0xaeb   :  { %23811 = vmatprep.subr.bf16.mxu1 %v31226_v12  ;;  %v11667_v39 = vmul.f32 %v29113_v7, %v28401_v46  ;;  %v25232_v46 = vld [vmem:[%s30869_s7 + $0x2b0] sm:$0xff]  }
 0xaec   :  { %22772 = vmatpush3.bf16.msra.mxu0 %v25218_v31 }
 0xaed   :  { %22777 = vmatprep.subr.bf16.mxu0 %v31226_v12 }
 0xaee   :  { %23812 = vmatpush3.bf16.msra.mxu1 %v25219_v28  ;;  %v11720_v28 = vmul.f32 %v29113_v7, %v28646_v44 }
 0xaef   :  { %22774 = vmatmul.mubr.bf16.vlgmr.msra.gmra.mrb[36].mxu0 %v11865_v13  ;;  %23837 = vmatprep.subr.bf16.mxu1 %v31226_v12 }
 0xaf0   :  { %22778 = vmatpush3.bf16.msra.mxu0 %v25220_v40  ;;  %22793 = vmatprep.mubr.msk.bf16.mxu0 %vm25612_vm0, %v31226_v12 }
 0xaf1   :  { %23814 = vmatmul.mubr.bf16.vlgmr.msra.gmra.mrb[88].mxu1 %v11917_v19  ;;  %22779 = vmatprep.subr.bf16.mxu0 %v31226_v12  ;;  %v11738_v19 = vadd.f32 %v29046_v34, %v11667_v39 }
 0xaf2   :  { %23838 = vmatpush3.bf16.msra.mxu1 %v25221_v51  ;;  %23853 = vmatprep.mubr.msk.bf16.mxu1 %vm25612_vm0, %v31226_v12 }
 0xaf3   :  { %23839 = vmatprep.subr.bf16.mxu1 %v31226_v12 }
 0xaf4   :  { %22780 = vmatpush3.bf16.msra.mxu0 %v25222_v63 }
 0xaf5   :  { %22781 = vmatprep.subr.bf16.mxu0 %v31226_v12 }
 0xaf6   :  { %23840 = vmatpush3.bf16.msra.mxu1 %v25223_v22 }
 0xaf7   :  { %23841 = vmatprep.subr.bf16.mxu1 %v31226_v12 }
 0xaf8   :  { %22782 = vmatpush3.bf16.msra.mxu0 %v25224_v2  ;;  %v11791_v2 = vadd.f32 %v29046_v34, %v11720_v28  ;;  %v25238_v28 = vld [vmem:[%s30869_s7 + $0x2d0] sm:$0xff]  }
 0xaf9   :  { %22783 = vmatprep.subr.bf16.mxu0 %v31226_v12 }
 0xafa   :  { %23842 = vmatpush3.bf16.msra.mxu1 %v25225_v3 }
 0xafb   :  { %23843 = vmatprep.subr.bf16.mxu1 %v31226_v12 }
 0xafc   :  { %22784 = vmatpush3.bf16.msra.mxu0 %v25226_v54  ;;  %v25234_v54 = vld [vmem:[%s30869_s7 + $0x2b8] sm:$0xff]  }
 0xafd   :  { %22785 = vmatprep.subr.bf16.mxu0 %v31226_v12 }
 0xafe   :  { %23844 = vmatpush3.bf16.msra.mxu1 %v25227_v49  ;;  %v11802_v49 = vmax.f32 %v11738_v19, 0.0  ;;  %v11668_v19 = vmul.f32 %v29113_v7, %v28406_v36 }
 0xaff   :  { %23845 = vmatprep.subr.bf16.mxu1 %v31226_v12 }
 0xb00   :  { %22786 = vmatpush3.bf16.msra.mxu0 %v25228_v38  ;;  %v25235_v38 = vld [vmem:[%s30869_s7 + $0xff8] sm:$0xff]   ;;  %v11866_v39 = vpack.c.bf16 %v11802_v49, %v11802_v49 }
 0xb01   :  { %22787 = vmatprep.subr.bf16.mxu0 %v31226_v12 }
 0xb02   :  { %v13290_v31 = vpop.f32.mrb[12].mxu0  ;;  %23846 = vmatpush3.bf16.msra.mxu1 %v25229_v11  ;;  %v11855_v11 = vmax.f32 %v11791_v2, 0.0 }
 0xb03   :  { %v18578_v18 = vadd.f32 %v29037_v9, %v13290_v31  ;;  %v22655_v40 = vpop.f32.mrb[13].mxu0  ;;  %23847 = vmatprep.subr.bf16.mxu1 %v31226_v12  ;;  %v25233_v9 = vld [vmem:[%s30869_s7 + $0xff0] sm:$0xff]  }
 0xb04   :  { %v13293_v13 = vpop.f32.mrb[14].mxu0  ;;  %22788 = vmatpush3.bf16.msra.mxu0 %v25230_v43  ;;  %v29125_v51 = vpop.f32.mrb[64].mxu1  ;;  %v25236_v43 = vld [vmem:[%s30869_s7 + $0x2c0] sm:$0xff]   ;;  %v11919_v31 = vpack.c.bf16 %v11855_v11, %v11855_v11  ;;  %v25239_v40 = vld [vmem:[%s30869_s7 + $0x2d8] sm:$0xff]  }
 0xb05   :  { %v22656_v63 = vpop.f32.mrb[15].mxu0  ;;  %v23575_v22 = vpop.f32.mrb[65].mxu1  ;;  %22789 = vmatprep.subr.bf16.mxu0 %v31226_v12  ;;  %v25240_v13 = vld [vmem:[%s30869_s7 + $0x2e0] sm:$0xff]  }
 0xb06   :  { %23848 = vmatpush3.bf16.msra.mxu1 %v25231_v15  ;;  %v17341_v44 = vpop.f32.mrb[66].mxu1  ;;  %v25237_v15 = vld [vmem:[%s30869_s7 + $0x2c8] sm:$0xff]  }
 0xb07   :  { %v23576_v3 = vpop.f32.mrb[67].mxu1  ;;  %23849 = vmatprep.subr.bf16.mxu1 %v31226_v12 }
 0xb08   :  { %22790 = vmatpush3.bf16.msra.mxu0 %v25232_v46  ;;  %v25241_v46 = vld [vmem:[%s30869_s7 + $0x2e8] sm:$0xff]   ;;  %v25242_v3 = vld [vmem:[%s30869_s7 + $0x2f0] sm:$0xff]  }
 0xb09   :  { %22791 = vmatprep.subr.bf16.mxu0 %v31226_v12 }
 0xb0a   :  { %23850 = vmatpush3.bf16.msra.mxu1 %v25233_v9 }
 0xb0b   :  { %23851 = vmatprep.subr.bf16.mxu1 %v31226_v12 }
 0xb0c   :  { %22792 = vmatpush3.bf16.msra.mxu0 %v25234_v54  ;;  %v11739_v54 = vadd.f32 %v29046_v34, %v11668_v19  ;;  %v11669_v19 = vmul.f32 %v29113_v7, %v28420_v41 }
 0xb0d   :  { %22797 = vmatprep.subr.bf16.mxu0 %v31226_v12 }
 0xb0e   :  { %23852 = vmatpush3.bf16.msra.mxu1 %v25235_v38 }
 0xb0f   :  { %22794 = vmatmul.mubr.bf16.vlgmr.msra.gmra.mrb[40].mxu0 %v11866_v39  ;;  %v25244_v39 = vld [vmem:[%s30869_s7 + $0x300] sm:$0xff]  }
 0xb10   :  { %22798 = vmatpush3.bf16.msra.mxu0 %v25236_v43  ;;  %22813 = vmatprep.mubr.msk.bf16.mxu0 %vm25612_vm0, %v31226_v12  ;;  %v11803_v43 = vmax.f32 %v11739_v54, 0.0 }
 0xb11   :  { %23854 = vmatmul.mubr.bf16.vlgmr.msra.gmra.mrb[92].mxu1 %v11919_v31  ;;  %22799 = vmatprep.subr.bf16.mxu0 %v31226_v12 }
 0xb12   :  { %v11867_v31 = vpack.c.bf16 %v11803_v43, %v11803_v43 }
 0xb14   :  { %22800 = vmatpush3.bf16.msra.mxu0 %v25237_v15  ;;  %v25245_v15 = vld [vmem:[%s30869_s7 + $0x308] sm:$0xff]  }
 0xb15   :  { %22801 = vmatprep.subr.bf16.mxu0 %v31226_v12 }
 0xb18   :  { %22802 = vmatpush3.bf16.msra.mxu0 %v25238_v28  ;;  %v25246_v28 = vld [vmem:[%s30869_s7 + $0x310] sm:$0xff]  }
 0xb19   :  { %22803 = vmatprep.subr.bf16.mxu0 %v31226_v12 }
 0xb1c   :  { %22804 = vmatpush3.bf16.msra.mxu0 %v25239_v40  ;;  %v25247_v40 = vld [vmem:[%s30869_s7 + $0x318] sm:$0xff]  }
 0xb1d   :  { %22805 = vmatprep.subr.bf16.mxu0 %v31226_v12 }
 0xb20   :  { %22806 = vmatpush3.bf16.msra.mxu0 %v25240_v13  ;;  %v25248_v13 = vld [vmem:[%s30869_s7 + $0x320] sm:$0xff]  }
 0xb21   :  { %22807 = vmatprep.subr.bf16.mxu0 %v31226_v12 }
 0xb22   :  { %v13378_v63 = vpop.f32.mrb[16].mxu0 }
 0xb23   :  { %v18579_v22 = vadd.f32 %v18578_v18, %v13378_v63  ;;  %v22675_v44 = vpop.f32.mrb[17].mxu0  ;;  %v25243_v18 = vld [vmem:[%s30869_s7 + $0x2f8] sm:$0xff]  }
 0xb24   :  { %v13381_v9 = vpop.f32.mrb[18].mxu0  ;;  %22808 = vmatpush3.bf16.msra.mxu0 %v25241_v46  ;;  %v29173_v2 = vpop.f32.mrb[68].mxu1  ;;  %v25249_v46 = vld [vmem:[%s30869_s7 + $0x328] sm:$0xff]  }
 0xb25   :  { %v22676_v49 = vpop.f32.mrb[19].mxu0  ;;  %v23615_v38 = vpop.f32.mrb[69].mxu1  ;;  %22809 = vmatprep.subr.bf16.mxu0 %v31226_v12 }
 0xb26   :  { %v17517_v36 = vpop.f32.mrb[70].mxu1  ;;  %v25250_v49 = vld [vmem:[%s30869_s7 + $0x330] sm:$0xff]   ;;  %v11740_v38 = vadd.f32 %v29046_v34, %v11669_v19  ;;  %v11670_v19 = vmul.f32 %v29113_v7, %v28424_v57 }
 0xb27   :  { %v23616_v11 = vpop.f32.mrb[71].mxu1 }
 0xb28   :  { %22810 = vmatpush3.bf16.msra.mxu0 %v25242_v3  ;;  %v11804_v43 = vmax.f32 %v11740_v38, 0.0 }
 0xb29   :  { %22811 = vmatprep.subr.bf16.mxu0 %v31226_v12 }
 0xb2c   :  { %22812 = vmatpush3.bf16.msra.mxu0 %v25243_v18 }
 0xb2d   :  { %22817 = vmatprep.subr.bf16.mxu0 %v31226_v12 }
 0xb2f   :  { %22814 = vmatmul.mubr.bf16.vlgmr.msra.gmra.mrb[44].mxu0 %v11867_v31  ;;  %v11868_v31 = vpack.c.bf16 %v11804_v43, %v11804_v43 }
 0xb30   :  { %22818 = vmatpush3.bf16.msra.mxu0 %v25244_v39  ;;  %22833 = vmatprep.mubr.msk.bf16.mxu0 %vm25612_vm0, %v31226_v12  ;;  %v25252_v39 = vld [vmem:[%s30869_s7 + $0x340] sm:$0xff]  }
 0xb31   :  { %22819 = vmatprep.subr.bf16.mxu0 %v31226_v12 }
 0xb34   :  { %22820 = vmatpush3.bf16.msra.mxu0 %v25245_v15  ;;  %v25253_v15 = vld [vmem:[%s30869_s7 + $0x348] sm:$0xff]  }
 0xb35   :  { %22821 = vmatprep.subr.bf16.mxu0 %v31226_v12 }
 0xb38   :  { %22822 = vmatpush3.bf16.msra.mxu0 %v25246_v28  ;;  %v25254_v28 = vld [vmem:[%s30869_s7 + $0x350] sm:$0xff]  }
 0xb39   :  { %22823 = vmatprep.subr.bf16.mxu0 %v31226_v12 }
 0xb3c   :  { %22824 = vmatpush3.bf16.msra.mxu0 %v25247_v40  ;;  %v25255_v40 = vld [vmem:[%s30869_s7 + $0x358] sm:$0xff]  }
 0xb3d   :  { %22825 = vmatprep.subr.bf16.mxu0 %v31226_v12 }
 0xb40   :  { %22826 = vmatpush3.bf16.msra.mxu0 %v25248_v13  ;;  %v25256_v13 = vld [vmem:[%s30869_s7 + $0x360] sm:$0xff]  }
 0xb41   :  { %22827 = vmatprep.subr.bf16.mxu0 %v31226_v12 }
 0xb42   :  { %v13466_v63 = vpop.f32.mrb[20].mxu0 }
 0xb43   :  { %v18580_v44 = vadd.f32 %v18579_v22, %v13466_v63  ;;  %v22695_v9 = vpop.f32.mrb[21].mxu0  ;;  %v25251_v22 = vld [vmem:[%s30869_s7 + $0x338] sm:$0xff]  }
 0xb44   :  { %v13469_v3 = vpop.f32.mrb[22].mxu0  ;;  %22828 = vmatpush3.bf16.msra.mxu0 %v25249_v46  ;;  %v29212_v54 = vpop.f32.mrb[72].mxu1  ;;  %v25257_v46 = vld [vmem:[%s30869_s7 + $0x368] sm:$0xff]  }
 0xb45   :  { %v22696_v36 = vpop.f32.mrb[23].mxu0  ;;  %v23655_v11 = vpop.f32.mrb[73].mxu1  ;;  %22829 = vmatprep.subr.bf16.mxu0 %v31226_v12 }
 0xb46   :  { %v17693_v41 = vpop.f32.mrb[74].mxu1  ;;  %v25258_v36 = vld [vmem:[%s30869_s7 + $0x370] sm:$0xff]   ;;  %v11741_v11 = vadd.f32 %v29046_v34, %v11670_v19  ;;  %v11671_v19 = vmul.f32 %v29113_v7, %v28417_v17 }
 0xb47   :  { %v23656_v18 = vpop.f32.mrb[75].mxu1 }
 0xb48   :  { %22830 = vmatpush3.bf16.msra.mxu0 %v25250_v49  ;;  %v11805_v43 = vmax.f32 %v11741_v11, 0.0 }
 0xb49   :  { %22831 = vmatprep.subr.bf16.mxu0 %v31226_v12 }
 0xb4c   :  { %22832 = vmatpush3.bf16.msra.mxu0 %v25251_v22 }
 0xb4d   :  { %22837 = vmatprep.subr.bf16.mxu0 %v31226_v12 }
 0xb4f   :  { %22834 = vmatmul.mubr.bf16.vlgmr.msra.gmra.mrb[48].mxu0 %v11868_v31  ;;  %v11869_v31 = vpack.c.bf16 %v11805_v43, %v11805_v43 }
 0xb50   :  { %22838 = vmatpush3.bf16.msra.mxu0 %v25252_v39  ;;  %22853 = vmatprep.mubr.msk.bf16.mxu0 %vm25612_vm0, %v31226_v12  ;;  %v25260_v39 = vld [vmem:[%s30869_s7 + $0x380] sm:$0xff]  }
 0xb51   :  { %22839 = vmatprep.subr.bf16.mxu0 %v31226_v12 }
 0xb54   :  { %22840 = vmatpush3.bf16.msra.mxu0 %v25253_v15  ;;  %v25261_v15 = vld [vmem:[%s30869_s7 + $0x388] sm:$0xff]  }
 0xb55   :  { %22841 = vmatprep.subr.bf16.mxu0 %v31226_v12 }
 0xb58   :  { %22842 = vmatpush3.bf16.msra.mxu0 %v25254_v28  ;;  %v25262_v28 = vld [vmem:[%s30869_s7 + $0x390] sm:$0xff]  }
 0xb59   :  { %22843 = vmatprep.subr.bf16.mxu0 %v31226_v12 }
 0xb5c   :  { %22844 = vmatpush3.bf16.msra.mxu0 %v25255_v40  ;;  %v25263_v40 = vld [vmem:[%s30869_s7 + $0x398] sm:$0xff]  }
 0xb5d   :  { %22845 = vmatprep.subr.bf16.mxu0 %v31226_v12 }
 0xb60   :  { %22846 = vmatpush3.bf16.msra.mxu0 %v25256_v13  ;;  %v25264_v13 = vld [vmem:[%s30869_s7 + $0x3a0] sm:$0xff]  }
 0xb61   :  { %22847 = vmatprep.subr.bf16.mxu0 %v31226_v12 }
 0xb62   :  { %v13554_v63 = vpop.f32.mrb[24].mxu0 }
 0xb63   :  { %v18581_v9 = vadd.f32 %v18580_v44, %v13554_v63  ;;  %v22715_v3 = vpop.f32.mrb[25].mxu0  ;;  %v25259_v44 = vld [vmem:[%s30869_s7 + $0x378] sm:$0xff]  }
 0xb64   :  { %v13557_v49 = vpop.f32.mrb[26].mxu0  ;;  %22848 = vmatpush3.bf16.msra.mxu0 %v25257_v46  ;;  %v29251_v38 = vpop.f32.mrb[76].mxu1  ;;  %v25265_v46 = vld [vmem:[%s30869_s7 + $0x3a8] sm:$0xff]  }
 0xb65   :  { %v22716_v41 = vpop.f32.mrb[27].mxu0  ;;  %v23695_v18 = vpop.f32.mrb[77].mxu1  ;;  %22849 = vmatprep.subr.bf16.mxu0 %v31226_v12 }
 0xb66   :  { %v17869_v57 = vpop.f32.mrb[78].mxu1  ;;  %v25266_v41 = vld [vmem:[%s30869_s7 + $0x3b0] sm:$0xff]   ;;  %v11742_v18 = vadd.f32 %v29046_v34, %v11671_v19  ;;  %v11672_v19 = vmul.f32 %v29113_v7, %v28422_v50 }
 0xb67   :  { %v23696_v22 = vpop.f32.mrb[79].mxu1 }
 0xb68   :  { %22850 = vmatpush3.bf16.msra.mxu0 %v25258_v36  ;;  %v11806_v43 = vmax.f32 %v11742_v18, 0.0 }
 0xb69   :  { %22851 = vmatprep.subr.bf16.mxu0 %v31226_v12 }
 0xb6c   :  { %22852 = vmatpush3.bf16.msra.mxu0 %v25259_v44 }
 0xb6d   :  { %22857 = vmatprep.subr.bf16.mxu0 %v31226_v12 }
 0xb6f   :  { %22854 = vmatmul.mubr.bf16.vlgmr.msra.gmra.mrb[52].mxu0 %v11869_v31  ;;  %v11870_v31 = vpack.c.bf16 %v11806_v43, %v11806_v43 }
 0xb70   :  { %22858 = vmatpush3.bf16.msra.mxu0 %v25260_v39  ;;  %22873 = vmatprep.mubr.msk.bf16.mxu0 %vm25612_vm0, %v31226_v12  ;;  %v25268_v39 = vld [vmem:[%s30869_s7 + $0x3c0] sm:$0xff]  }
 0xb71   :  { %22859 = vmatprep.subr.bf16.mxu0 %v31226_v12 }
 0xb74   :  { %22860 = vmatpush3.bf16.msra.mxu0 %v25261_v15  ;;  %v25269_v15 = vld [vmem:[%s30869_s7 + $0x3c8] sm:$0xff]  }
 0xb75   :  { %22861 = vmatprep.subr.bf16.mxu0 %v31226_v12 }
 0xb78   :  { %22862 = vmatpush3.bf16.msra.mxu0 %v25262_v28  ;;  %v25270_v28 = vld [vmem:[%s30869_s7 + $0x3d0] sm:$0xff]  }
 0xb79   :  { %22863 = vmatprep.subr.bf16.mxu0 %v31226_v12 }
 0xb7c   :  { %22864 = vmatpush3.bf16.msra.mxu0 %v25263_v40  ;;  %v25271_v40 = vld [vmem:[%s30869_s7 + $0x3d8] sm:$0xff]  }
 0xb7d   :  { %22865 = vmatprep.subr.bf16.mxu0 %v31226_v12 }
 0xb80   :  { %22866 = vmatpush3.bf16.msra.mxu0 %v25264_v13  ;;  %v25272_v13 = vld [vmem:[%s30869_s7 + $0x3e0] sm:$0xff]  }
 0xb81   :  { %22867 = vmatprep.subr.bf16.mxu0 %v31226_v12 }
 0xb82   :  { %v13642_v63 = vpop.f32.mrb[28].mxu0 }
 0xb83   :  { %v18582_v3 = vadd.f32 %v18581_v9, %v13642_v63  ;;  %v22735_v49 = vpop.f32.mrb[29].mxu0  ;;  %v25267_v9 = vld [vmem:[%s30869_s7 + $0x3b8] sm:$0xff]  }
 0xb84   :  { %v13645_v36 = vpop.f32.mrb[30].mxu0  ;;  %22868 = vmatpush3.bf16.msra.mxu0 %v25265_v46  ;;  %v29290_v11 = vpop.f32.mrb[80].mxu1  ;;  %v25273_v46 = vld [vmem:[%s30869_s7 + $0x3e8] sm:$0xff]  }
 0xb85   :  { %v22736_v57 = vpop.f32.mrb[31].mxu0  ;;  %v23735_v22 = vpop.f32.mrb[81].mxu1  ;;  %22869 = vmatprep.subr.bf16.mxu0 %v31226_v12 }
 0xb86   :  { %v18045_v17 = vpop.f32.mrb[82].mxu1  ;;  %v25274_v57 = vld [vmem:[%s30869_s7 + $0x3f0] sm:$0xff]   ;;  %v11743_v22 = vadd.f32 %v29046_v34, %v11672_v19  ;;  %v11673_v19 = vmul.f32 %v29113_v7, %v28438_v45 }
 0xb87   :  { %v23736_v44 = vpop.f32.mrb[83].mxu1 }
 0xb88   :  { %22870 = vmatpush3.bf16.msra.mxu0 %v25266_v41  ;;  %v11807_v43 = vmax.f32 %v11743_v22, 0.0 }
 0xb89   :  { %22871 = vmatprep.subr.bf16.mxu0 %v31226_v12 }
 0xb8c   :  { %22872 = vmatpush3.bf16.msra.mxu0 %v25267_v9 }
 0xb8d   :  { %22877 = vmatprep.subr.bf16.mxu0 %v31226_v12 }
 0xb8f   :  { %22874 = vmatmul.mubr.bf16.vlgmr.msra.gmra.mrb[56].mxu0 %v11870_v31  ;;  %v11871_v31 = vpack.c.bf16 %v11807_v43, %v11807_v43 }
 0xb90   :  { %22878 = vmatpush3.bf16.msra.mxu0 %v25268_v39  ;;  %22893 = vmatprep.mubr.msk.bf16.mxu0 %vm25612_vm0, %v31226_v12  ;;  %v25276_v39 = vld [vmem:[%s30869_s7 + $0x400] sm:$0xff]  }
 0xb91   :  { %22879 = vmatprep.subr.bf16.mxu0 %v31226_v12 }
 0xb94   :  { %22880 = vmatpush3.bf16.msra.mxu0 %v25269_v15  ;;  %v25277_v15 = vld [vmem:[%s30869_s7 + $0x408] sm:$0xff]  }
 0xb95   :  { %22881 = vmatprep.subr.bf16.mxu0 %v31226_v12 }
 0xb98   :  { %22882 = vmatpush3.bf16.msra.mxu0 %v25270_v28  ;;  %v25278_v28 = vld [vmem:[%s30869_s7 + $0x410] sm:$0xff]  }
 0xb99   :  { %22883 = vmatprep.subr.bf16.mxu0 %v31226_v12 }
 0xb9c   :  { %22884 = vmatpush3.bf16.msra.mxu0 %v25271_v40  ;;  %v25279_v40 = vld [vmem:[%s30869_s7 + $0x418] sm:$0xff]  }
 0xb9d   :  { %22885 = vmatprep.subr.bf16.mxu0 %v31226_v12 }
 0xba0   :  { %22886 = vmatpush3.bf16.msra.mxu0 %v25272_v13  ;;  %v25280_v13 = vld [vmem:[%s30869_s7 + $0x420] sm:$0xff]  }
 0xba1   :  { %22887 = vmatprep.subr.bf16.mxu0 %v31226_v12 }
 0xba2   :  { %v13730_v63 = vpop.f32.mrb[32].mxu0 }
 0xba3   :  { %v18583_v49 = vadd.f32 %v18582_v3, %v13730_v63  ;;  %v22755_v36 = vpop.f32.mrb[33].mxu0  ;;  %v25275_v3 = vld [vmem:[%s30869_s7 + $0x3f8] sm:$0xff]  }
 0xba4   :  { %v13733_v41 = vpop.f32.mrb[34].mxu0  ;;  %22888 = vmatpush3.bf16.msra.mxu0 %v25273_v46  ;;  %v29329_v18 = vpop.f32.mrb[84].mxu1  ;;  %v25281_v46 = vld [vmem:[%s30869_s7 + $0x428] sm:$0xff]  }
 0xba5   :  { %v22756_v17 = vpop.f32.mrb[35].mxu0  ;;  %v23775_v44 = vpop.f32.mrb[85].mxu1  ;;  %22889 = vmatprep.subr.bf16.mxu0 %v31226_v12 }
 0xba6   :  { %v18221_v50 = vpop.f32.mrb[86].mxu1  ;;  %v25282_v17 = vld [vmem:[%s30869_s7 + $0x430] sm:$0xff]   ;;  %v11744_v44 = vadd.f32 %v29046_v34, %v11673_v19  ;;  %v11674_v19 = vmul.f32 %v29113_v7, %v28442_v20 }
 0xba7   :  { %v23776_v9 = vpop.f32.mrb[87].mxu1 }
 0xba8   :  { %22890 = vmatpush3.bf16.msra.mxu0 %v25274_v57  ;;  %v11808_v43 = vmax.f32 %v11744_v44, 0.0 }
 0xba9   :  { %22891 = vmatprep.subr.bf16.mxu0 %v31226_v12 }
 0xbac   :  { %22892 = vmatpush3.bf16.msra.mxu0 %v25275_v3 }
 0xbad   :  { %22897 = vmatprep.subr.bf16.mxu0 %v31226_v12 }
 0xbaf   :  { %22894 = vmatmul.mubr.bf16.vlgmr.msra.gmra.mrb[60].mxu0 %v11871_v31  ;;  %v11872_v31 = vpack.c.bf16 %v11808_v43, %v11808_v43 }
 0xbb0   :  { %22898 = vmatpush3.bf16.msra.mxu0 %v25276_v39  ;;  %22913 = vmatprep.mubr.msk.bf16.mxu0 %vm25612_vm0, %v31226_v12  ;;  %v25284_v39 = vld [vmem:[%s30869_s7 + $0x440] sm:$0xff]  }
 0xbb1   :  { %22899 = vmatprep.subr.bf16.mxu0 %v31226_v12 }
 0xbb4   :  { %22900 = vmatpush3.bf16.msra.mxu0 %v25277_v15  ;;  %v25285_v15 = vld [vmem:[%s30869_s7 + $0x448] sm:$0xff]  }
 0xbb5   :  { %22901 = vmatprep.subr.bf16.mxu0 %v31226_v12 }
 0xbb8   :  { %22902 = vmatpush3.bf16.msra.mxu0 %v25278_v28  ;;  %v25286_v28 = vld [vmem:[%s30869_s7 + $0x450] sm:$0xff]  }
 0xbb9   :  { %22903 = vmatprep.subr.bf16.mxu0 %v31226_v12 }
 0xbbc   :  { %22904 = vmatpush3.bf16.msra.mxu0 %v25279_v40  ;;  %v25287_v40 = vld [vmem:[%s30869_s7 + $0x458] sm:$0xff]  }
 0xbbd   :  { %22905 = vmatprep.subr.bf16.mxu0 %v31226_v12 }
 0xbc0   :  { %22906 = vmatpush3.bf16.msra.mxu0 %v25280_v13  ;;  %v25288_v13 = vld [vmem:[%s30869_s7 + $0x460] sm:$0xff]  }
 0xbc1   :  { %22907 = vmatprep.subr.bf16.mxu0 %v31226_v12 }
 0xbc2   :  { %v13818_v63 = vpop.f32.mrb[36].mxu0 }
 0xbc3   :  { %v18584_v36 = vadd.f32 %v18583_v49, %v13818_v63  ;;  %v22775_v41 = vpop.f32.mrb[37].mxu0  ;;  %v25283_v49 = vld [vmem:[%s30869_s7 + $0x438] sm:$0xff]  }
 0xbc4   :  { %v13821_v57 = vpop.f32.mrb[38].mxu0  ;;  %22908 = vmatpush3.bf16.msra.mxu0 %v25281_v46  ;;  %v29368_v22 = vpop.f32.mrb[88].mxu1  ;;  %v25289_v46 = vld [vmem:[%s30869_s7 + $0x468] sm:$0xff]  }
 0xbc5   :  { %v22776_v50 = vpop.f32.mrb[39].mxu0  ;;  %v23815_v9 = vpop.f32.mrb[89].mxu1  ;;  %22909 = vmatprep.subr.bf16.mxu0 %v31226_v12 }
 0xbc6   :  { %v18397_v45 = vpop.f32.mrb[90].mxu1  ;;  %v25290_v50 = vld [vmem:[%s30869_s7 + $0x470] sm:$0xff]   ;;  %v11745_v9 = vadd.f32 %v29046_v34, %v11674_v19  ;;  %v11675_v19 = vmul.f32 %v29113_v7, %v28435_v32  ;;  %v25299_v32 = vld [vmem:[%s30869_s7 + $0x4b8] sm:$0xff]  }
 0xbc7   :  { %v23816_v3 = vpop.f32.mrb[91].mxu1 }
 0xbc8   :  { %22910 = vmatpush3.bf16.msra.mxu0 %v25282_v17  ;;  %v11809_v43 = vmax.f32 %v11745_v9, 0.0  ;;  %v25298_v9 = vld [vmem:[%s30869_s7 + $0x4b0] sm:$0xff]  }
 0xbc9   :  { %22911 = vmatprep.subr.bf16.mxu0 %v31226_v12 }
 0xbcc   :  { %22912 = vmatpush3.bf16.msra.mxu0 %v25283_v49 }
 0xbcd   :  { %22917 = vmatprep.subr.bf16.mxu0 %v31226_v12 }
 0xbcf   :  { %22914 = vmatmul.mubr.bf16.vlgmr.msra.gmra.mrb[64].mxu0 %v11872_v31  ;;  %v11873_v31 = vpack.c.bf16 %v11809_v43, %v11809_v43  ;;  %v25302_v43 = vld [vmem:[%s30869_s7 + $0x4d0] sm:$0xff]  }
 0xbd0   :  { %22918 = vmatpush3.bf16.msra.mxu0 %v25284_v39  ;;  %22933 = vmatprep.mubr.msk.bf16.mxu0 %vm25612_vm0, %v31226_v12  ;;  %v25292_v39 = vld [vmem:[%s30869_s7 + $0x480] sm:$0xff]  }
 0xbd1   :  { %22919 = vmatprep.subr.bf16.mxu0 %v31226_v12 }
 0xbd4   :  { %22920 = vmatpush3.bf16.msra.mxu0 %v25285_v15  ;;  %v25293_v15 = vld [vmem:[%s30869_s7 + $0x488] sm:$0xff]  }
 0xbd5   :  { %22921 = vmatprep.subr.bf16.mxu0 %v31226_v12 }
 0xbd8   :  { %22922 = vmatpush3.bf16.msra.mxu0 %v25286_v28  ;;  %v25294_v28 = vld [vmem:[%s30869_s7 + $0x490] sm:$0xff]  }
 0xbd9   :  { %22923 = vmatprep.subr.bf16.mxu0 %v31226_v12 }
 0xbdc   :  { %22924 = vmatpush3.bf16.msra.mxu0 %v25287_v40  ;;  %v25295_v40 = vld [vmem:[%s30869_s7 + $0x498] sm:$0xff]  }
 0xbdd   :  { %22925 = vmatprep.subr.bf16.mxu0 %v31226_v12 }
 0xbe0   :  { %22926 = vmatpush3.bf16.msra.mxu0 %v25288_v13  ;;  %v25296_v13 = vld [vmem:[%s30869_s7 + $0x4a0] sm:$0xff]  }
 0xbe1   :  { %22927 = vmatprep.subr.bf16.mxu0 %v31226_v12 }
 0xbe2   :  { %v13906_v63 = vpop.f32.mrb[40].mxu0 }
 0xbe3   :  { %v18585_v41 = vadd.f32 %v18584_v36, %v13906_v63  ;;  %v22795_v57 = vpop.f32.mrb[41].mxu0  ;;  %v25291_v36 = vld [vmem:[%s30869_s7 + $0x478] sm:$0xff]  }
 0xbe4   :  { %v13909_v17 = vpop.f32.mrb[42].mxu0  ;;  %22928 = vmatpush3.bf16.msra.mxu0 %v25289_v46  ;;  %v29407_v44 = vpop.f32.mrb[92].mxu1  ;;  %v25297_v46 = vld [vmem:[%s30869_s7 + $0x4a8] sm:$0xff]  }
 0xbe5   :  { %v22796_v45 = vpop.f32.mrb[43].mxu0  ;;  %v23855_v3 = vpop.f32.mrb[93].mxu1  ;;  %22929 = vmatprep.subr.bf16.mxu0 %v31226_v12 }
 0xbe6   :  { %v18573_v20 = vpop.f32.mrb[94].mxu1  ;;  %v11746_v45 = vadd.f32 %v29046_v34, %v11675_v19 }
 0xbe7   :  { %v23856_v49 = vpop.f32.mrb[95].mxu1 }
 0xbe8   :  { %22930 = vmatpush3.bf16.msra.mxu0 %v25290_v50  ;;  %v11810_v20 = vmax.f32 %v11746_v45, 0.0 }
 0xbe9   :  { %22931 = vmatprep.subr.bf16.mxu0 %v31226_v12 }
 0xbea   :  { %v11874_v49 = vpack.c.bf16 %v11810_v20, %v11810_v20  ;;  %v25311_v20 = vld [vmem:[%s30869_s7 + $0x518] sm:$0xff]  }
 0xbec   :  { %22932 = vmatpush3.bf16.msra.mxu0 %v25291_v36  ;;  %v25301_v36 = vld [vmem:[%s30869_s7 + $0x4c8] sm:$0xff]  }
 0xbed   :  { %22937 = vmatprep.subr.bf16.mxu0 %v31226_v12 }
 0xbef   :  { %22934 = vmatmul.mubr.bf16.vlgmr.msra.gmra.mrb[68].mxu0 %v11873_v31  ;;  %v25304_v31 = vld [vmem:[%s30869_s7 + $0x4e0] sm:$0xff]  }
 0xbf0   :  { %22938 = vmatpush3.bf16.msra.mxu0 %v25292_v39  ;;  %22953 = vmatprep.mubr.msk.bf16.mxu0 %vm25612_vm0, %v31226_v12  ;;  %v25303_v39 = vld [vmem:[%s30869_s7 + $0x4d8] sm:$0xff]  }
 0xbf1   :  { %22939 = vmatprep.subr.bf16.mxu0 %v31226_v12 }
 0xbf4   :  { %22940 = vmatpush3.bf16.msra.mxu0 %v25293_v15  ;;  %v25305_v15 = vld [vmem:[%s30869_s7 + $0x4e8] sm:$0xff]  }
 0xbf5   :  { %22941 = vmatprep.subr.bf16.mxu0 %v31226_v12 }
 0xbf8   :  { %22942 = vmatpush3.bf16.msra.mxu0 %v25294_v28  ;;  %v11676_v28 = vmul.f32 %v29113_v7, %v28440_v21  ;;  %v25307_v21 = vld [vmem:[%s30869_s7 + $0x4f8] sm:$0xff]  }
 0xbf9   :  { %22943 = vmatprep.subr.bf16.mxu0 %v31226_v12 }
 0xbfc   :  { %22944 = vmatpush3.bf16.msra.mxu0 %v25295_v40 }
 0xbfd   :  { %22945 = vmatprep.subr.bf16.mxu0 %v31226_v12 }
 0xc00   :  { %22946 = vmatpush3.bf16.msra.mxu0 %v25296_v13 }
 0xc01   :  { %22947 = vmatprep.subr.bf16.mxu0 %v31226_v12 }
 0xc02   :  { %v13994_v63 = vpop.f32.mrb[44].mxu0 }
 0xc03   :  { %v18586_v57 = vadd.f32 %v18585_v41, %v13994_v63  ;;  %v22815_v17 = vpop.f32.mrb[45].mxu0  ;;  %v25300_v41 = vld [vmem:[%s30869_s7 + $0x4c0] sm:$0xff]   ;;  %v25306_v63 = vld [vmem:[%s30869_s7 + $0x4f0] sm:$0xff]  }
 0xc04   :  { %v13997_v50 = vpop.f32.mrb[46].mxu0  ;;  %22948 = vmatpush3.bf16.msra.mxu0 %v25297_v46  ;;  %v11747_v17 = vadd.f32 %v29046_v34, %v11676_v28  ;;  %v25314_v28 = vld [vmem:[%s30869_s7 + $0x530] sm:$0xff]  }
 0xc05   :  { %v22816_v3 = vpop.f32.mrb[47].mxu0  ;;  %22949 = vmatprep.subr.bf16.mxu0 %v31226_v12 }
 0xc06   :  { %v25309_v3 = vld [vmem:[%s30869_s7 + $0x508] sm:$0xff]  }
 0xc08   :  { %22950 = vmatpush3.bf16.msra.mxu0 %v25298_v9  ;;  %v11811_v9 = vmax.f32 %v11747_v17, 0.0  ;;  %v25317_v17 = vld [vmem:[%s30869_s7 + $0x548] sm:$0xff]  }
 0xc09   :  { %22951 = vmatprep.subr.bf16.mxu0 %v31226_v12 }
 0xc0a   :  { %v11875_v45 = vpack.c.bf16 %v11811_v9, %v11811_v9  ;;  %v25320_v9 = vld [vmem:[%s30869_s7 + $0x560] sm:$0xff]  }
 0xc0c   :  { %22952 = vmatpush3.bf16.msra.mxu0 %v25299_v32  ;;  %v25310_v32 = vld [vmem:[%s30869_s7 + $0x510] sm:$0xff]  }
 0xc0d   :  { %22957 = vmatprep.subr.bf16.mxu0 %v31226_v12 }
 0xc0f   :  { %22954 = vmatmul.mubr.bf16.vlgmr.msra.gmra.mrb[72].mxu0 %v11874_v49  ;;  %v25313_v49 = vld [vmem:[%s30869_s7 + $0x528] sm:$0xff]  }
 0xc10   :  { %22958 = vmatpush3.bf16.msra.mxu0 %v25300_v41  ;;  %22973 = vmatprep.mubr.msk.bf16.mxu0 %vm25612_vm0, %v31226_v12  ;;  %v25312_v41 = vld [vmem:[%s30869_s7 + $0x520] sm:$0xff]  }
 0xc11   :  { %22959 = vmatprep.subr.bf16.mxu0 %v31226_v12 }
 0xc14   :  { %22960 = vmatpush3.bf16.msra.mxu0 %v25301_v36  ;;  %v11677_v36 = vmul.f32 %v29113_v7, %v28454_v0  ;;  %v25315_v0 = vld [vmem:[%s30869_s7 + $0x538] sm:$0xff]  }
 0xc15   :  { %22961 = vmatprep.subr.bf16.mxu0 %v31226_v12 }
 0xc18   :  { %22962 = vmatpush3.bf16.msra.mxu0 %v25302_v43 }
 0xc19   :  { %22963 = vmatprep.subr.bf16.mxu0 %v31226_v12 }
 0xc1c   :  { %22964 = vmatpush3.bf16.msra.mxu0 %v25303_v39 }
 0xc1d   :  { %22965 = vmatprep.subr.bf16.mxu0 %v31226_v12 }
 0xc20   :  { %22966 = vmatpush3.bf16.msra.mxu0 %v25304_v31 }
 0xc21   :  { %22967 = vmatprep.subr.bf16.mxu0 %v31226_v12 }
 0xc22   :  { %v14082_v40 = vpop.f32.mrb[48].mxu0 }
 0xc23   :  { %v18587_v13 = vadd.f32 %v18586_v57, %v14082_v40  ;;  %v22835_v46 = vpop.f32.mrb[49].mxu0  ;;  %v25308_v57 = vld [vmem:[%s30869_s7 + $0x500] sm:$0xff]   ;;  %v11748_v40 = vadd.f32 %v29046_v34, %v11677_v36 }
 0xc24   :  { %v14085_v19 = vpop.f32.mrb[50].mxu0  ;;  %22968 = vmatpush3.bf16.msra.mxu0 %v25305_v15 }
 0xc25   :  { %v22836_v50 = vpop.f32.mrb[51].mxu0  ;;  %22969 = vmatprep.subr.bf16.mxu0 %v31226_v12  ;;  %v11812_v19 = vmax.f32 %v11748_v40, 0.0  ;;  %v25327_v40 = vld [vmem:[%s30869_s7 + $0x598] sm:$0xff]  }
 0xc26   :  { %v25318_v50 = vld [vmem:[%s30869_s7 + $0x550] sm:$0xff]  }
 0xc28   :  { %22970 = vmatpush3.bf16.msra.mxu0 %v25306_v63  ;;  %v11876_v63 = vpack.c.bf16 %v11812_v19, %v11812_v19  ;;  %v11679_v19 = vmul.f32 %v29113_v7, %v28451_v4  ;;  %v25331_v4 = vld [vmem:[%s30869_s7 + $0x5b8] sm:$0xff]  }
 0xc29   :  { %22971 = vmatprep.subr.bf16.mxu0 %v31226_v12 }
 0xc2c   :  { %22972 = vmatpush3.bf16.msra.mxu0 %v25307_v21  ;;  %v25319_v21 = vld [vmem:[%s30869_s7 + $0x558] sm:$0xff]  }
 0xc2d   :  { %22977 = vmatprep.subr.bf16.mxu0 %v31226_v12 }
 0xc2f   :  { %22974 = vmatmul.mubr.bf16.vlgmr.msra.gmra.mrb[76].mxu0 %v11875_v45  ;;  %v11678_v45 = vmul.f32 %v29113_v7, %v28458_v26  ;;  %v25323_v26 = vld [vmem:[%s30869_s7 + $0x578] sm:$0xff]  }
 0xc30   :  { %22978 = vmatpush3.bf16.msra.mxu0 %v25308_v57  ;;  %22993 = vmatprep.mubr.msk.bf16.mxu0 %vm25612_vm0, %v31226_v12  ;;  %v25321_v57 = vld [vmem:[%s30869_s7 + $0x568] sm:$0xff]  }
 0xc31   :  { %22979 = vmatprep.subr.bf16.mxu0 %v31226_v12  ;;  %v11749_v36 = vadd.f32 %v29046_v34, %v11678_v45  ;;  %v25325_v34 = vld [vmem:[%s30869_s7 + $0x588] sm:$0xff]  }
 0xc34   :  { %22980 = vmatpush3.bf16.msra.mxu0 %v25309_v3 }
 0xc35   :  { %22981 = vmatprep.subr.bf16.mxu0 %v31226_v12 }
 0xc38   :  { %22982 = vmatpush3.bf16.msra.mxu0 %v25310_v32 }
 0xc39   :  { %22983 = vmatprep.subr.bf16.mxu0 %v31226_v12 }
 0xc3c   :  { %22984 = vmatpush3.bf16.msra.mxu0 %v25311_v20 }
 0xc3d   :  { %22985 = vmatprep.subr.bf16.mxu0 %v31226_v12 }
 0xc40   :  { %22986 = vmatpush3.bf16.msra.mxu0 %v25312_v41 }
 0xc41   :  { %22987 = vmatprep.subr.bf16.mxu0 %v31226_v12 }
 0xc42   :  { %v14170_v43 = vpop.f32.mrb[52].mxu0 }
 0xc43   :  { %v18588_v39 = vadd.f32 %v18587_v13, %v14170_v43  ;;  %v22855_v31 = vpop.f32.mrb[53].mxu0  ;;  %v25316_v13 = vld [vmem:[%s30869_s7 + $0x540] sm:$0xff]  }
 0xc44   :  { %v14173_v15 = vpop.f32.mrb[54].mxu0  ;;  %22988 = vmatpush3.bf16.msra.mxu0 %v25313_v49  ;;  %v25322_v49 = vld [vmem:[%s30869_s7 + $0x570] sm:$0xff]   ;;  %v11813_v31 = vmax.f32 %v11749_v36, 0.0  ;;  %v25335_v36 = vld [vmem:[%s30869_s7 + $0x5d8] sm:$0xff]  }
 0xc45   :  { %v22856_v46 = vpop.f32.mrb[55].mxu0  ;;  %22989 = vmatprep.subr.bf16.mxu0 %v31226_v12 }
 0xc46   :  { %v11877_v15 = vpack.c.bf16 %v11813_v31, %v11813_v31  ;;  %v25328_v46 = vld [vmem:[%s30869_s7 + $0x5a0] sm:$0xff]   ;;  %v11680_v31 = vmul.f32 %v29113_v7, %v28456_v24  ;;  %v25339_v24 = vld [vmem:[%s30869_s7 + $0x5f8] sm:$0xff]  }
 0xc48   :  { %22990 = vmatpush3.bf16.msra.mxu0 %v25314_v28  ;;  %v25326_v28 = vld [vmem:[%s30869_s7 + $0x590] sm:$0xff]  }
 0xc49   :  { %22991 = vmatprep.subr.bf16.mxu0 %v31226_v12 }
 0xc4c   :  { %22992 = vmatpush3.bf16.msra.mxu0 %v25315_v0  ;;  %v25329_v0 = vld [vmem:[%s30869_s7 + $0x5a8] sm:$0xff]  }
 0xc4d   :  { %22997 = vmatprep.subr.bf16.mxu0 %v31226_v12 }
 0xc4f   :  { %22994 = vmatmul.mubr.bf16.vlgmr.msra.gmra.mrb[80].mxu0 %v11876_v63 }
 0xc50   :  { %22998 = vmatpush3.bf16.msra.mxu0 %v25316_v13  ;;  %23013 = vmatprep.mubr.msk.bf16.mxu0 %vm25612_vm0, %v31226_v12 }
 0xc51   :  { %22999 = vmatprep.subr.bf16.mxu0 %v31226_v12 }
 0xc54   :  { %23000 = vmatpush3.bf16.msra.mxu0 %v25317_v17 }
 0xc55   :  { %23001 = vmatprep.subr.bf16.mxu0 %v31226_v12 }
 0xc58   :  { %23002 = vmatpush3.bf16.msra.mxu0 %v25318_v50 }
 0xc59   :  { %23003 = vmatprep.subr.bf16.mxu0 %v31226_v12 }
 0xc5c   :  { %23004 = vmatpush3.bf16.msra.mxu0 %v25319_v21  ;;  %v25330_v21 = vld [vmem:[%s30869_s7 + $0x5b0] sm:$0xff]  }
 0xc5d   :  { %23005 = vmatprep.subr.bf16.mxu0 %v31226_v12 }
 0xc60   :  { %23006 = vmatpush3.bf16.msra.mxu0 %v25320_v9  ;;  %v29600_v9 = vld [vmem:[%s30871_s6] ss:$0 sm:$0xff] }
 0xc61   :  { %23007 = vmatprep.subr.bf16.mxu0 %v31226_v12 }
 0xc62   :  { %v14258_v3 = vpop.f32.mrb[56].mxu0 }
 0xc63   :  { %v18589_v32 = vadd.f32 %v18588_v39, %v14258_v3  ;;  %v22875_v20 = vpop.f32.mrb[57].mxu0  ;;  %v25324_v39 = vld [vmem:[%s30869_s7 + $0x580] sm:$0xff]  }
 0xc64   :  { %v14261_v41 = vpop.f32.mrb[58].mxu0  ;;  %23008 = vmatpush3.bf16.msra.mxu0 %v25321_v57  ;;  %v11750_v57 = vadd.f32 %v29600_v9, %v11679_v19  ;;  %v25340_v19 = vld [vmem:[%s30869_s7 + $0x600] sm:$0xff]  }
 0xc65   :  { %v22876_v43 = vpop.f32.mrb[59].mxu0  ;;  %23009 = vmatprep.subr.bf16.mxu0 %v31226_v12  ;;  %v25333_v41 = vld [vmem:[%s30869_s7 + $0x5c8] sm:$0xff]  }
 0xc66   :  { %v11814_v3 = vmax.f32 %v11750_v57, 0.0  ;;  %v25336_v43 = vld [vmem:[%s30869_s7 + $0x5e0] sm:$0xff]   ;;  %v25345_v57 = vld [vmem:[%s30869_s7 + $0x628] sm:$0xff]  }
 0xc68   :  { %23010 = vmatpush3.bf16.msra.mxu0 %v25322_v49  ;;  %v11878_v20 = vpack.c.bf16 %v11814_v3, %v11814_v3  ;;  %v25334_v49 = vld [vmem:[%s30869_s7 + $0x5d0] sm:$0xff]  }
 0xc69   :  { %23011 = vmatprep.subr.bf16.mxu0 %v31226_v12 }
 0xc6c   :  { %23012 = vmatpush3.bf16.msra.mxu0 %v25323_v26  ;;  %v25337_v26 = vld [vmem:[%s30869_s7 + $0x5e8] sm:$0xff]  }
 0xc6d   :  { %23017 = vmatprep.subr.bf16.mxu0 %v31226_v12 }
 0xc6f   :  { %23014 = vmatmul.mubr.bf16.vlgmr.msra.gmra.mrb[84].mxu0 %v11877_v15 }
 0xc70   :  { %23018 = vmatpush3.bf16.msra.mxu0 %v25324_v39  ;;  %23033 = vmatprep.mubr.msk.bf16.mxu0 %vm25612_vm0, %v31226_v12 }
 0xc71   :  { %23019 = vmatprep.subr.bf16.mxu0 %v31226_v12 }
 0xc74   :  { %23020 = vmatpush3.bf16.msra.mxu0 %v25325_v34 }
 0xc75   :  { %23021 = vmatprep.subr.bf16.mxu0 %v31226_v12 }
 0xc78   :  { %23022 = vmatpush3.bf16.msra.mxu0 %v25326_v28 }
 0xc79   :  { %23023 = vmatprep.subr.bf16.mxu0 %v31226_v12 }
 0xc7c   :  { %23024 = vmatpush3.bf16.msra.mxu0 %v25327_v40  ;;  %v25338_v40 = vld [vmem:[%s30869_s7 + $0x5f0] sm:$0xff]  }
 0xc7d   :  { %23025 = vmatprep.subr.bf16.mxu0 %v31226_v12 }
 0xc80   :  { %23026 = vmatpush3.bf16.msra.mxu0 %v25328_v46  ;;  %v11751_v46 = vadd.f32 %v29600_v9, %v11680_v31  ;;  %v25348_v31 = vld [vmem:[%s30869_s7 + $0x640] sm:$0xff]  }
 0xc81   :  { %23027 = vmatprep.subr.bf16.mxu0 %v31226_v12 }
 0xc82   :  { %v14346_v13 = vpop.f32.mrb[60].mxu0  ;;  %v11815_v7 = vmax.f32 %v11751_v46, 0.0  ;;  %v25353_v46 = vld [vmem:[%s30869_s7 + $0x668] sm:$0xff]  }
 0xc83   :  { %v18590_v63 = vadd.f32 %v18589_v32, %v14346_v13  ;;  %v22895_v17 = vpop.f32.mrb[61].mxu0  ;;  %v25332_v32 = vld [vmem:[%s30869_s7 + $0x5c0] sm:$0xff]  }
 0xc84   :  { %v14349_v50 = vpop.f32.mrb[62].mxu0  ;;  %23028 = vmatpush3.bf16.msra.mxu0 %v25329_v0  ;;  %v11879_v13 = vpack.c.bf16 %v11815_v7, %v11815_v7  ;;  %v25342_v17 = vld [vmem:[%s30869_s7 + $0x610] sm:$0xff]  }
 0xc85   :  { %v22896_v45 = vpop.f32.mrb[63].mxu0  ;;  %23029 = vmatprep.subr.bf16.mxu0 %v31226_v12  ;;  %v25343_v50 = vld [vmem:[%s30869_s7 + $0x618] sm:$0xff]  }
 0xc86   :  { %v29673_v45 = vld [vmem:[%s30870_s5] ss:$0 sm:$0xff] }
 0xc88   :  { %23030 = vmatpush3.bf16.msra.mxu0 %v25330_v21  ;;  %v25344_v21 = vld [vmem:[%s30869_s7 + $0x620] sm:$0xff]  }
 0xc89   :  { %23031 = vmatprep.subr.bf16.mxu0 %v31226_v12 }
 0xc8c   :  { %23032 = vmatpush3.bf16.msra.mxu0 %v25331_v4  ;;  %v11681_v4 = vmul.f32 %v29673_v45, %v28472_v61  ;;  %v25347_v61 = vld [vmem:[%s30869_s7 + $0x638] sm:$0xff]  }
 0xc8d   :  { %23037 = vmatprep.subr.bf16.mxu0 %v31226_v12 }
 0xc8f   :  { %23034 = vmatmul.mubr.bf16.vlgmr.msra.gmra.mrb[88].mxu0 %v11878_v20 }
 0xc90   :  { %23038 = vmatpush3.bf16.msra.mxu0 %v25332_v32  ;;  %23053 = vmatprep.mubr.msk.bf16.mxu0 %vm25612_vm0, %v31226_v12 }
 0xc91   :  { %23039 = vmatprep.subr.bf16.mxu0 %v31226_v12 }
 0xc94   :  { %23040 = vmatpush3.bf16.msra.mxu0 %v25333_v41 }
 0xc95   :  { %23041 = vmatprep.subr.bf16.mxu0 %v31226_v12 }
 0xc98   :  { %23042 = vmatpush3.bf16.msra.mxu0 %v25334_v49  ;;  %v25346_v49 = vld [vmem:[%s30869_s7 + $0x630] sm:$0xff]  }
 0xc99   :  { %23043 = vmatprep.subr.bf16.mxu0 %v31226_v12 }
 0xc9c   :  { %23044 = vmatpush3.bf16.msra.mxu0 %v25335_v36  ;;  %v11752_v36 = vadd.f32 %v29600_v9, %v11681_v4 }
 0xc9d   :  { %23045 = vmatprep.subr.bf16.mxu0 %v31226_v12 }
 0xca0   :  { %23046 = vmatpush3.bf16.msra.mxu0 %v25336_v43 }
 0xca1   :  { %23047 = vmatprep.subr.bf16.mxu0 %v31226_v12 }
 0xca2   :  { %v14434_v39 = vpop.f32.mrb[64].mxu0 }
 0xca3   :  { %v18591_v15 = vadd.f32 %v18590_v63, %v14434_v39  ;;  %v22915_v34 = vpop.f32.mrb[65].mxu0  ;;  %v25341_v63 = vld [vmem:[%s30869_s7 + $0x608] sm:$0xff]  }
 0xca4   :  { %v14437_v28 = vpop.f32.mrb[66].mxu0  ;;  %23048 = vmatpush3.bf16.msra.mxu0 %v25337_v26  ;;  %v11816_v26 = vmax.f32 %v11752_v36, 0.0  ;;  %v25350_v34 = vld [vmem:[%s30869_s7 + $0x650] sm:$0xff]   ;;  %v11683_v36 = vmul.f32 %v29673_v45, %v28469_v27  ;;  %v25363_v27 = vld [vmem:[%s30869_s7 + $0x6b8] sm:$0xff]  }
 0xca5   :  { %v22916_v0 = vpop.f32.mrb[67].mxu0  ;;  %23049 = vmatprep.subr.bf16.mxu0 %v31226_v12  ;;  %v25351_v28 = vld [vmem:[%s30869_s7 + $0x658] sm:$0xff]  }
 0xca6   :  { %v11880_v39 = vpack.c.bf16 %v11816_v26, %v11816_v26  ;;  %v11682_v0 = vmul.f32 %v29673_v45, %v28476_v58  ;;  %v25355_v58 = vld [vmem:[%s30869_s7 + $0x678] sm:$0xff]  }
 0xca8   :  { %23050 = vmatpush3.bf16.msra.mxu0 %v25338_v40  ;;  %v25352_v40 = vld [vmem:[%s30869_s7 + $0x660] sm:$0xff]  }
 0xca9   :  { %23051 = vmatprep.subr.bf16.mxu0 %v31226_v12 }
 0xcac   :  { %23052 = vmatpush3.bf16.msra.mxu0 %v25339_v24 }
 0xcad   :  { %23057 = vmatprep.subr.bf16.mxu0 %v31226_v12 }
 0xcaf   :  { %23054 = vmatmul.mubr.bf16.vlgmr.msra.gmra.mrb[92].mxu0 %v11879_v13 }
 0xcb0   :  { %23058 = vmatpush3.bf16.msra.mxu0 %v25340_v19  ;;  %23073 = vmatprep.mubr.msk.bf16.mxu0 %vm25612_vm0, %v31226_v12 }
 0xcb1   :  { %23059 = vmatprep.subr.bf16.mxu0 %v31226_v12 }
 0xcb4   :  { %23060 = vmatpush3.bf16.msra.mxu0 %v25341_v63  ;;  %v25354_v63 = vld [vmem:[%s30869_s7 + $0x670] sm:$0xff]  }
 0xcb5   :  { %23061 = vmatprep.subr.bf16.mxu0 %v31226_v12 }
 0xcb8   :  { %23062 = vmatpush3.bf16.msra.mxu0 %v25342_v17  ;;  %v11753_v17 = vadd.f32 %v29600_v9, %v11682_v0  ;;  %v25365_v0 = vld [vmem:[%s30869_s7 + $0x6c8] sm:$0xff]  }
 0xcb9   :  { %23063 = vmatprep.subr.bf16.mxu0 %v31226_v12 }
 0xcbc   :  { %23064 = vmatpush3.bf16.msra.mxu0 %v25343_v50 }
 0xcbd   :  { %23065 = vmatprep.subr.bf16.mxu0 %v31226_v12 }
 0xcc0   :  { %23066 = vmatpush3.bf16.msra.mxu0 %v25344_v21  ;;  %v11817_v21 = vmax.f32 %v11753_v17, 0.0 }
 0xcc1   :  { %23067 = vmatprep.subr.bf16.mxu0 %v31226_v12 }
 0xcc2   :  { %v14522_v3 = vpop.f32.mrb[68].mxu0  ;;  %v11881_v4 = vpack.c.bf16 %v11817_v21, %v11817_v21 }
 0xcc3   :  { %v18592_v32 = vadd.f32 %v18591_v15, %v14522_v3  ;;  %v22935_v20 = vpop.f32.mrb[69].mxu0  ;;  %v25349_v15 = vld [vmem:[%s30869_s7 + $0x648] sm:$0xff]  }
 0xcc4   :  { %v14525_v41 = vpop.f32.mrb[70].mxu0  ;;  %23068 = vmatpush3.bf16.msra.mxu0 %v25345_v57  ;;  %v25356_v57 = vld [vmem:[%s30869_s7 + $0x680] sm:$0xff]   ;;  %v25357_v3 = vld [vmem:[%s30869_s7 + $0x688] sm:$0xff]   ;;  %v25359_v20 = vld [vmem:[%s30869_s7 + $0x698] sm:$0xff]  }
 0xcc5   :  { %v22936_v43 = vpop.f32.mrb[71].mxu0  ;;  %23069 = vmatprep.subr.bf16.mxu0 %v31226_v12  ;;  %v25360_v41 = vld [vmem:[%s30869_s7 + $0x6a0] sm:$0xff]  }
 0xcc8   :  { %23070 = vmatpush3.bf16.msra.mxu0 %v25346_v49  ;;  %v25361_v49 = vld [vmem:[%s30869_s7 + $0x6a8] sm:$0xff]  }
 0xcc9   :  { %23071 = vmatprep.subr.bf16.mxu0 %v31226_v12 }
 0xccc   :  { %23072 = vmatpush3.bf16.msra.mxu0 %v25347_v61 }
 0xccd   :  { %23077 = vmatprep.subr.bf16.mxu0 %v31226_v12 }
 0xccf   :  { %23074 = vmatmul.mubr.bf16.vlgmr.msra.gmra.mrb[96].mxu0 %v11880_v39  ;;  %v25362_v39 = vld [vmem:[%s30869_s7 + $0x6b0] sm:$0xff]  }
 0xcd0   :  { %23078 = vmatpush3.bf16.msra.mxu0 %v25348_v31  ;;  %23093 = vmatprep.mubr.msk.bf16.mxu0 %vm25612_vm0, %v31226_v12 }
 0xcd1   :  { %23079 = vmatprep.subr.bf16.mxu0 %v31226_v12 }
 0xcd4   :  { %23080 = vmatpush3.bf16.msra.mxu0 %v25349_v15  ;;  %v11754_v15 = vadd.f32 %v29600_v9, %v11683_v36  ;;  %v25374_v36 = vld [vmem:[%s30869_s7 + $0x710] sm:$0xff]  }
 0xcd5   :  { %23081 = vmatprep.subr.bf16.mxu0 %v31226_v12 }
 0xcd8   :  { %23082 = vmatpush3.bf16.msra.mxu0 %v25350_v34 }
 0xcd9   :  { %23083 = vmatprep.subr.bf16.mxu0 %v31226_v12 }
 0xcdc   :  { %23084 = vmatpush3.bf16.msra.mxu0 %v25351_v28  ;;  %v11818_v28 = vmax.f32 %v11754_v15, 0.0 }
 0xcdd   :  { %23085 = vmatprep.subr.bf16.mxu0 %v31226_v12 }
 0xce0   :  { %23086 = vmatpush3.bf16.msra.mxu0 %v25352_v40  ;;  %v25364_v40 = vld [vmem:[%s30869_s7 + $0x6c0] sm:$0xff]  }
 0xce1   :  { %23087 = vmatprep.subr.bf16.mxu0 %v31226_v12 }
 0xce2   :  { %v14610_v24 = vpop.f32.mrb[72].mxu0 }
 0xce3   :  { %v18593_v7 = vadd.f32 %v18592_v32, %v14610_v24  ;;  %v22955_v19 = vpop.f32.mrb[73].mxu0  ;;  %v25358_v32 = vld [vmem:[%s30869_s7 + $0x690] sm:$0xff]  }
 0xce4   :  { %v14613_v13 = vpop.f32.mrb[74].mxu0  ;;  %23088 = vmatpush3.bf16.msra.mxu0 %v25353_v46  ;;  %v11882_v46 = vpack.c.bf16 %v11818_v28, %v11818_v28  ;;  %v25366_v24 = vld [vmem:[%s30869_s7 + $0x6d0] sm:$0xff]   ;;  %v25368_v19 = vld [vmem:[%s30869_s7 + $0x6e0] sm:$0xff]  }
 0xce5   :  { %v22956_v50 = vpop.f32.mrb[75].mxu0  ;;  %23089 = vmatprep.subr.bf16.mxu0 %v31226_v12  ;;  %v25369_v13 = vld [vmem:[%s30869_s7 + $0x6e8] sm:$0xff]   ;;  %v25378_v28 = vld [vmem:[%s30869_s7 + $0x730] sm:$0xff]  }
 0xce8   :  { %23090 = vmatpush3.bf16.msra.mxu0 %v25354_v63  ;;  %v11684_v63 = vmul.f32 %v29673_v45, %v28474_v29  ;;  %v25371_v29 = vld [vmem:[%s30869_s7 + $0x6f8] sm:$0xff]  }
 0xce9   :  { %23091 = vmatprep.subr.bf16.mxu0 %v31226_v12 }
 0xcec   :  { %23092 = vmatpush3.bf16.msra.mxu0 %v25355_v58 }
 0xced   :  { %23097 = vmatprep.subr.bf16.mxu0 %v31226_v12 }
 0xcef   :  { %23094 = vmatmul.mubr.bf16.vlgmr.msra.gmra.mrb[100].mxu0 %v11881_v4  ;;  %v11755_v4 = vadd.f32 %v29600_v9, %v11684_v63  ;;  %v25383_v63 = vld [vmem:[%s30869_s7 + $0x758] sm:$0xff]  }
 0xcf0   :  { %23098 = vmatpush3.bf16.msra.mxu0 %v25356_v57  ;;  %23113 = vmatprep.mubr.msk.bf16.mxu0 %vm25612_vm0, %v31226_v12  ;;  %v25370_v57 = vld [vmem:[%s30869_s7 + $0x6f0] sm:$0xff]  }
 0xcf1   :  { %23099 = vmatprep.subr.bf16.mxu0 %v31226_v12 }
 0xcf4   :  { %23100 = vmatpush3.bf16.msra.mxu0 %v25357_v3 }
 0xcf5   :  { %23101 = vmatprep.subr.bf16.mxu0 %v31226_v12 }
 0xcf8   :  { %23102 = vmatpush3.bf16.msra.mxu0 %v25358_v32  ;;  %v11819_v32 = vmax.f32 %v11755_v4, 0.0 }
 0xcf9   :  { %23103 = vmatprep.subr.bf16.mxu0 %v31226_v12 }
 0xcfc   :  { %23104 = vmatpush3.bf16.msra.mxu0 %v25359_v20  ;;  %v25372_v20 = vld [vmem:[%s30869_s7 + $0x700] sm:$0xff]  }
 0xcfd   :  { %23105 = vmatprep.subr.bf16.mxu0 %v31226_v12 }
 0xd00   :  { %23106 = vmatpush3.bf16.msra.mxu0 %v25360_v41  ;;  %v11883_v41 = vpack.c.bf16 %v11819_v32, %v11819_v32 }
 0xd01   :  { %23107 = vmatprep.subr.bf16.mxu0 %v31226_v12 }
 0xd02   :  { %v14698_v43 = vpop.f32.mrb[76].mxu0 }
 0xd03   :  { %v18594_v61 = vadd.f32 %v18593_v7, %v14698_v43  ;;  %v22975_v26 = vpop.f32.mrb[77].mxu0  ;;  %v25367_v7 = vld [vmem:[%s30869_s7 + $0x6d8] sm:$0xff]  }
 0xd04   :  { %v14701_v31 = vpop.f32.mrb[78].mxu0  ;;  %23108 = vmatpush3.bf16.msra.mxu0 %v25361_v49  ;;  %v25373_v49 = vld [vmem:[%s30869_s7 + $0x708] sm:$0xff]   ;;  %v25375_v43 = vld [vmem:[%s30869_s7 + $0x718] sm:$0xff]  }
 0xd05   :  { %v22976_v34 = vpop.f32.mrb[79].mxu0  ;;  %23109 = vmatprep.subr.bf16.mxu0 %v31226_v12  ;;  %v25377_v26 = vld [vmem:[%s30869_s7 + $0x728] sm:$0xff]   ;;  %v11685_v31 = vmul.f32 %v29673_v45, %v28488_v1  ;;  %v25379_v1 = vld [vmem:[%s30869_s7 + $0x738] sm:$0xff]  }
 0xd08   :  { %23110 = vmatpush3.bf16.msra.mxu0 %v25362_v39 }
 0xd09   :  { %23111 = vmatprep.subr.bf16.mxu0 %v31226_v12 }
 0xd0c   :  { %23112 = vmatpush3.bf16.msra.mxu0 %v25363_v27 }
 0xd0d   :  { %23117 = vmatprep.subr.bf16.mxu0 %v31226_v12 }
 0xd0f   :  { %23114 = vmatmul.mubr.bf16.vlgmr.msra.gmra.mrb[104].mxu0 %v11882_v46 }
 0xd10   :  { %23118 = vmatpush3.bf16.msra.mxu0 %v25364_v40  ;;  %23133 = vmatprep.mubr.msk.bf16.mxu0 %vm25612_vm0, %v31226_v12  ;;  %v11756_v40 = vadd.f32 %v29600_v9, %v11685_v31  ;;  %v25392_v31 = vld [vmem:[%s30869_s7 + $0x7a0] sm:$0xff]  }
 0xd11   :  { %23119 = vmatprep.subr.bf16.mxu0 %v31226_v12 }
 0xd14   :  { %23120 = vmatpush3.bf16.msra.mxu0 %v25365_v0  ;;  %v11820_v0 = vmax.f32 %v11756_v40, 0.0 }
 0xd15   :  { %23121 = vmatprep.subr.bf16.mxu0 %v31226_v12 }
 0xd18   :  { %23122 = vmatpush3.bf16.msra.mxu0 %v25366_v24  ;;  %v25380_v24 = vld [vmem:[%s30869_s7 + $0x740] sm:$0xff]  }
 0xd19   :  { %23123 = vmatprep.subr.bf16.mxu0 %v31226_v12 }
 0xd1c   :  { %23124 = vmatpush3.bf16.msra.mxu0 %v25367_v7  ;;  %v11884_v7 = vpack.c.bf16 %v11820_v0, %v11820_v0 }
 0xd1d   :  { %23125 = vmatprep.subr.bf16.mxu0 %v31226_v12 }
 0xd20   :  { %23126 = vmatpush3.bf16.msra.mxu0 %v25368_v19  ;;  %v25381_v19 = vld [vmem:[%s30869_s7 + $0x748] sm:$0xff]  }
 0xd21   :  { %23127 = vmatprep.subr.bf16.mxu0 %v31226_v12 }
 0xd22   :  { %v14786_v17 = vpop.f32.mrb[80].mxu0 }
 0xd23   :  { %v18595_v50 = vadd.f32 %v18594_v61, %v14786_v17  ;;  %v22995_v58 = vpop.f32.mrb[81].mxu0  ;;  %v25376_v61 = vld [vmem:[%s30869_s7 + $0x720] sm:$0xff]  }
 0xd24   :  { %v14789_v21 = vpop.f32.mrb[82].mxu0  ;;  %23128 = vmatpush3.bf16.msra.mxu0 %v25369_v13  ;;  %v25382_v13 = vld [vmem:[%s30869_s7 + $0x750] sm:$0xff]   ;;  %v25384_v17 = vld [vmem:[%s30869_s7 + $0x760] sm:$0xff]   ;;  %v11686_v58 = vmul.f32 %v29673_v45, %v28492_v16  ;;  %v25387_v16 = vld [vmem:[%s30869_s7 + $0x778] sm:$0xff]  }
 0xd25   :  { %v22996_v3 = vpop.f32.mrb[83].mxu0  ;;  %23129 = vmatprep.subr.bf16.mxu0 %v31226_v12 }
 0xd26   :  { %v11757_v32 = vadd.f32 %v29600_v9, %v11686_v58  ;;  %v25401_v58 = vld [vmem:[%s30869_s7 + $0x7e8] sm:$0xff]  }
 0xd28   :  { %23130 = vmatpush3.bf16.msra.mxu0 %v25370_v57 }
 0xd29   :  { %23131 = vmatprep.subr.bf16.mxu0 %v31226_v12 }
 0xd2c   :  { %23132 = vmatpush3.bf16.msra.mxu0 %v25371_v29  ;;  %v25386_v29 = vld [vmem:[%s30869_s7 + $0x770] sm:$0xff]  }
 0xd2d   :  { %23137 = vmatprep.subr.bf16.mxu0 %v31226_v12 }
 0xd2f   :  { %23134 = vmatmul.mubr.bf16.vlgmr.msra.gmra.mrb[108].mxu0 %v11883_v41  ;;  %v11821_v41 = vmax.f32 %v11757_v32, 0.0  ;;  %v25402_v32 = vld [vmem:[%s30869_s7 + $0x7f0] sm:$0xff]  }
 0xd30   :  { %23138 = vmatpush3.bf16.msra.mxu0 %v25372_v20  ;;  %23153 = vmatprep.mubr.msk.bf16.mxu0 %vm25612_vm0, %v31226_v12 }
 0xd31   :  { %23139 = vmatprep.subr.bf16.mxu0 %v31226_v12 }
 0xd34   :  { %23140 = vmatpush3.bf16.msra.mxu0 %v25373_v49  ;;  %v25388_v49 = vld [vmem:[%s30869_s7 + $0x780] sm:$0xff]  }
 0xd35   :  { %23141 = vmatprep.subr.bf16.mxu0 %v31226_v12 }
 0xd38   :  { %23142 = vmatpush3.bf16.msra.mxu0 %v25374_v36  ;;  %v11885_v36 = vpack.c.bf16 %v11821_v41, %v11821_v41 }
 0xd39   :  { %23143 = vmatprep.subr.bf16.mxu0 %v31226_v12 }
 0xd3c   :  { %23144 = vmatpush3.bf16.msra.mxu0 %v25375_v43  ;;  %v25389_v43 = vld [vmem:[%s30869_s7 + $0x788] sm:$0xff]  }
 0xd3d   :  { %23145 = vmatprep.subr.bf16.mxu0 %v31226_v12 }
 0xd40   :  { %23146 = vmatpush3.bf16.msra.mxu0 %v25376_v61  ;;  %v25390_v61 = vld [vmem:[%s30869_s7 + $0x790] sm:$0xff]  }
 0xd41   :  { %23147 = vmatprep.subr.bf16.mxu0 %v31226_v12 }
 0xd42   :  { %v14874_v39 = vpop.f32.mrb[84].mxu0 }
 0xd43   :  { %v18596_v15 = vadd.f32 %v18595_v50, %v14874_v39  ;;  %v23015_v34 = vpop.f32.mrb[85].mxu0  ;;  %v25385_v50 = vld [vmem:[%s30869_s7 + $0x768] sm:$0xff]  }
 0xd44   :  { %v14877_v27 = vpop.f32.mrb[86].mxu0  ;;  %23148 = vmatpush3.bf16.msra.mxu0 %v25377_v26  ;;  %v25391_v26 = vld [vmem:[%s30869_s7 + $0x798] sm:$0xff]   ;;  %v25393_v39 = vld [vmem:[%s30869_s7 + $0x7a8] sm:$0xff]  }
 0xd45   :  { %v23016_v46 = vpop.f32.mrb[87].mxu0  ;;  %23149 = vmatprep.subr.bf16.mxu0 %v31226_v12 }
 0xd46   :  { %v25394_v46 = vld [vmem:[%s30869_s7 + $0x7b0] sm:$0xff]  }
 0xd48   :  { %23150 = vmatpush3.bf16.msra.mxu0 %v25378_v28 }
 0xd49   :  { %23151 = vmatprep.subr.bf16.mxu0 %v31226_v12 }
 0xd4c   :  { %23152 = vmatpush3.bf16.msra.mxu0 %v25379_v1 }
 0xd4d   :  { %23157 = vmatprep.subr.bf16.mxu0 %v31226_v12 }
 0xd4f   :  { %23154 = vmatmul.mubr.bf16.vlgmr.msra.gmra.mrb[112].mxu0 %v11884_v7  ;;  %v25396_v7 = vld [vmem:[%s30869_s7 + $0x7c0] sm:$0xff]  }
 0xd50   :  { %23158 = vmatpush3.bf16.msra.mxu0 %v25380_v24  ;;  %23173 = vmatprep.mubr.msk.bf16.mxu0 %vm25612_vm0, %v31226_v12 }
 0xd51   :  { %23159 = vmatprep.subr.bf16.mxu0 %v31226_v12 }
 0xd54   :  { %23160 = vmatpush3.bf16.msra.mxu0 %v25381_v19 }
 0xd55   :  { %23161 = vmatprep.subr.bf16.mxu0 %v31226_v12 }
 0xd58   :  { %23162 = vmatpush3.bf16.msra.mxu0 %v25382_v13  ;;  %v25397_v13 = vld [vmem:[%s30869_s7 + $0x7c8] sm:$0xff]  }
 0xd59   :  { %23163 = vmatprep.subr.bf16.mxu0 %v31226_v12 }
 0xd5c   :  { %23164 = vmatpush3.bf16.msra.mxu0 %v25383_v63  ;;  %v25398_v63 = vld [vmem:[%s30869_s7 + $0x7d0] sm:$0xff]  }
 0xd5d   :  { %23165 = vmatprep.subr.bf16.mxu0 %v31226_v12 }
 0xd60   :  { %23166 = vmatpush3.bf16.msra.mxu0 %v25384_v17  ;;  %v25399_v17 = vld [vmem:[%s30869_s7 + $0x7d8] sm:$0xff]  }
 0xd61   :  { %23167 = vmatprep.subr.bf16.mxu0 %v31226_v12 }
 0xd62   :  { %v14962_v21 = vpop.f32.mrb[88].mxu0 }
 0xd63   :  { %v18597_v57 = vadd.f32 %v18596_v15, %v14962_v21  ;;  %v23035_v4 = vpop.f32.mrb[89].mxu0  ;;  %v11687_v15 = vmul.f32 %v29673_v45, %v28485_v10  ;;  %v25395_v10 = vld [vmem:[%s30869_s7 + $0x7b8] sm:$0xff]   ;;  %v11688_v21 = vmul.f32 %v29673_v45, %v28490_v59 }
 0xd64   :  { %v14965_v3 = vpop.f32.mrb[90].mxu0  ;;  %23168 = vmatpush3.bf16.msra.mxu0 %v25385_v50  ;;  %v25400_v50 = vld [vmem:[%s30869_s7 + $0x7e0] sm:$0xff]   ;;  %v25403_v59 = vld [vmem:[%s30869_s7 + $0x7f8] sm:$0xff]  }
 0xd65   :  { %v23036_v20 = vpop.f32.mrb[91].mxu0  ;;  %23169 = vmatprep.subr.bf16.mxu0 %v31226_v12  ;;  %v11758_v1 = vadd.f32 %v29600_v9, %v11687_v15  ;;  %v11689_v15 = vmul.f32 %v29673_v45, %v28507_v14  ;;  %v25411_v14 = vld [vmem:[%s30869_s7 + $0x838] sm:$0xff]  }
 0xd66   :  { %v11759_v20 = vadd.f32 %v29600_v9, %v11688_v21 }
 0xd67   :  { %v11822_v24 = vmax.f32 %v11758_v1, 0.0  ;;  %v11760_v1 = vadd.f32 %v29600_v9, %v11689_v15 }
 0xd68   :  { %23170 = vmatpush3.bf16.msra.mxu0 %v25386_v29  ;;  %v11823_v41 = vmax.f32 %v11759_v20, 0.0 }
 0xd69   :  { %23171 = vmatprep.subr.bf16.mxu0 %v31226_v12  ;;  %v11886_v19 = vpack.c.bf16 %v11822_v24, %v11822_v24  ;;  %v25412_v24 = vld [vmem:[%s30869_s7 + $0x840] sm:$0xff]  }
 0xd6c   :  { %23172 = vmatpush3.bf16.msra.mxu0 %v25387_v16 }
 0xd6d   :  { %23177 = vmatprep.subr.bf16.mxu0 %v31226_v12 }
 0xd6f   :  { %23174 = vmatmul.mubr.bf16.vlgmr.msra.gmra.mrb[116].mxu0 %v11885_v36  ;;  %v11887_v36 = vpack.c.bf16 %v11823_v41, %v11823_v41 }
 0xd70   :  { %23178 = vmatpush3.bf16.msra.mxu0 %v25388_v49  ;;  %23193 = vmatprep.mubr.msk.bf16.mxu0 %vm25612_vm0, %v31226_v12  ;;  %v25404_v49 = vld [vmem:[%s30869_s7 + $0x800] sm:$0xff]  }
 0xd71   :  { %23179 = vmatprep.subr.bf16.mxu0 %v31226_v12 }
 0xd74   :  { %23180 = vmatpush3.bf16.msra.mxu0 %v25389_v43  ;;  %v25405_v43 = vld [vmem:[%s30869_s7 + $0x808] sm:$0xff]  }
 0xd75   :  { %23181 = vmatprep.subr.bf16.mxu0 %v31226_v12 }
 0xd78   :  { %23182 = vmatpush3.bf16.msra.mxu0 %v25390_v61  ;;  %v25406_v61 = vld [vmem:[%s30869_s7 + $0x810] sm:$0xff]  }
 0xd79   :  { %23183 = vmatprep.subr.bf16.mxu0 %v31226_v12 }
 0xd7c   :  { %23184 = vmatpush3.bf16.msra.mxu0 %v25391_v26  ;;  %v25407_v26 = vld [vmem:[%s30869_s7 + $0x818] sm:$0xff]  }
 0xd7d   :  { %23185 = vmatprep.subr.bf16.mxu0 %v31226_v12 }
 0xd80   :  { %23186 = vmatpush3.bf16.msra.mxu0 %v25392_v31  ;;  %v25408_v31 = vld [vmem:[%s30869_s7 + $0x820] sm:$0xff]  }
 0xd81   :  { %23187 = vmatprep.subr.bf16.mxu0 %v31226_v12 }
 0xd82   :  { %v15050_v34 = vpop.f32.mrb[92].mxu0 }
 0xd83   :  { %v18598_v27 = vadd.f32 %v18597_v57, %v15050_v34  ;;  %v23055_v28 = vpop.f32.mrb[93].mxu0 }
 0xd84   :  { %v15053_v40 = vpop.f32.mrb[94].mxu0  ;;  %23188 = vmatpush3.bf16.msra.mxu0 %v25393_v39  ;;  %v25409_v39 = vld [vmem:[%s30869_s7 + $0x828] sm:$0xff]  }
 0xd85   :  { %v23056_v0 = vpop.f32.mrb[95].mxu0  ;;  %23189 = vmatprep.subr.bf16.mxu0 %v31226_v12 }
 0xd88   :  { %23190 = vmatpush3.bf16.msra.mxu0 %v25394_v46  ;;  %v25410_v46 = vld [vmem:[%s30869_s7 + $0x830] sm:$0xff]  }
 0xd89   :  { %23191 = vmatprep.subr.bf16.mxu0 %v31226_v12 }
 0xd8c   :  { %23192 = vmatpush3.bf16.msra.mxu0 %v25395_v10  ;;  %v11824_v10 = vmax.f32 %v11760_v1, 0.0 }
 0xd8d   :  { %23197 = vmatprep.subr.bf16.mxu0 %v31226_v12 }
 0xd8f   :  { %23194 = vmatmul.mubr.bf16.vlgmr.msra.gmra.mrb[120].mxu0 %v11886_v19  ;;  %v25413_v19 = vld [vmem:[%s30869_s7 + $0x848] sm:$0xff]  }
 0xd90   :  { %23198 = vmatpush3.bf16.msra.mxu0 %v25396_v7  ;;  %23213 = vmatprep.mubr.msk.bf16.mxu0 %vm25612_vm0, %v31226_v12  ;;  %v11888_v7 = vpack.c.bf16 %v11824_v10, %v11824_v10  ;;  %v25429_v10 = vld [vmem:[%s30869_s7 + $0x8c8] sm:$0xff]  }
 0xd91   :  { %23199 = vmatprep.subr.bf16.mxu0 %v31226_v12 }
 0xd94   :  { %23200 = vmatpush3.bf16.msra.mxu0 %v25397_v13  ;;  %v25414_v13 = vld [vmem:[%s30869_s7 + $0x850] sm:$0xff]  }
 0xd95   :  { %23201 = vmatprep.subr.bf16.mxu0 %v31226_v12 }
 0xd98   :  { %23202 = vmatpush3.bf16.msra.mxu0 %v25398_v63  ;;  %v25415_v63 = vld [vmem:[%s30869_s7 + $0x858] sm:$0xff]  }
 0xd99   :  { %23203 = vmatprep.subr.bf16.mxu0 %v31226_v12 }
 0xd9c   :  { %23204 = vmatpush3.bf16.msra.mxu0 %v25399_v17  ;;  %v25416_v17 = vld [vmem:[%s30869_s7 + $0x860] sm:$0xff]  }
 0xd9d   :  { %23205 = vmatprep.subr.bf16.mxu0 %v31226_v12 }
 0xda0   :  { %23206 = vmatpush3.bf16.msra.mxu0 %v25400_v50  ;;  %v25417_v50 = vld [vmem:[%s30869_s7 + $0x868] sm:$0xff]  }
 0xda1   :  { %23207 = vmatprep.subr.bf16.mxu0 %v31226_v12 }
 0xda2   :  { %v15138_v57 = vpop.f32.mrb[96].mxu0 }
 0xda3   :  { %v18599_v4 = vadd.f32 %v18598_v27, %v15138_v57  ;;  %v23075_v3 = vpop.f32.mrb[97].mxu0 }
 0xda4   :  { %v15141_v29 = vpop.f32.mrb[98].mxu0  ;;  %23208 = vmatpush3.bf16.msra.mxu0 %v25401_v58  ;;  %v11690_v58 = vmul.f32 %v29673_v45, %v28511_v37  ;;  %v25419_v37 = vld [vmem:[%s30869_s7 + $0x878] sm:$0xff]  }
 0xda5   :  { %v23076_v16 = vpop.f32.mrb[99].mxu0  ;;  %23209 = vmatprep.subr.bf16.mxu0 %v31226_v12  ;;  %v25418_v29 = vld [vmem:[%s30869_s7 + $0x870] sm:$0xff]  }
 0xda8   :  { %23210 = vmatpush3.bf16.msra.mxu0 %v25402_v32  ;;  %v11761_v32 = vadd.f32 %v29600_v9, %v11690_v58 }
 0xda9   :  { %23211 = vmatprep.subr.bf16.mxu0 %v31226_v12 }
 0xdaa   :  { %v11825_v16 = vmax.f32 %v11761_v32, 0.0  ;;  %v25436_v32 = vld [vmem:[%s30869_s7 + $0x900] sm:$0xff]  }
 0xdac   :  { %23212 = vmatpush3.bf16.msra.mxu0 %v25403_v59  ;;  %v25420_v59 = vld [vmem:[%s30869_s7 + $0x880] sm:$0xff]   ;;  %v11889_v41 = vpack.c.bf16 %v11825_v16, %v11825_v16  ;;  %v25438_v16 = vld [vmem:[%s30869_s7 + $0x910] sm:$0xff]  }
 0xdad   :  { %23217 = vmatprep.subr.bf16.mxu0 %v31226_v12 }
 0xdaf   :  { %23214 = vmatmul.mubr.bf16.vlgmr.msra.gmra.mrb[124].mxu0 %v11887_v36  ;;  %v25422_v36 = vld [vmem:[%s30869_s7 + $0x890] sm:$0xff]  }
 0xdb0   :  { %23218 = vmatpush3.bf16.msra.mxu0 %v25404_v49  ;;  %23233 = vmatprep.mubr.msk.bf16.mxu0 %vm25612_vm0, %v31226_v12  ;;  %v25421_v49 = vld [vmem:[%s30869_s7 + $0x888] sm:$0xff]  }
 0xdb1   :  { %23219 = vmatprep.subr.bf16.mxu0 %v31226_v12 }
 0xdb4   :  { %23220 = vmatpush3.bf16.msra.mxu0 %v25405_v43  ;;  %v25423_v43 = vld [vmem:[%s30869_s7 + $0x898] sm:$0xff]  }
 0xdb5   :  { %23221 = vmatprep.subr.bf16.mxu0 %v31226_v12 }
 0xdb8   :  { %23222 = vmatpush3.bf16.msra.mxu0 %v25406_v61  ;;  %v25424_v61 = vld [vmem:[%s30869_s7 + $0x8a0] sm:$0xff]  }
 0xdb9   :  { %23223 = vmatprep.subr.bf16.mxu0 %v31226_v12 }
 0xdbc   :  { %23224 = vmatpush3.bf16.msra.mxu0 %v25407_v26  ;;  %v25425_v26 = vld [vmem:[%s30869_s7 + $0x8a8] sm:$0xff]  }
 0xdbd   :  { %23225 = vmatprep.subr.bf16.mxu0 %v31226_v12 }
 0xdc0   :  { %23226 = vmatpush3.bf16.msra.mxu0 %v25408_v31  ;;  %v11691_v31 = vmul.f32 %v29673_v45, %v28504_v35  ;;  %v25427_v35 = vld [vmem:[%s30869_s7 + $0x8b8] sm:$0xff]  }
 0xdc1   :  { %23227 = vmatprep.subr.bf16.mxu0 %v31226_v12 }
 0xdc2   :  { %v15226_v34 = vpop.f32.mrb[100].mxu0 }
 0xdc3   :  { %v18600_v27 = vadd.f32 %v18599_v4, %v15226_v34  ;;  %v23095_v28 = vpop.f32.mrb[101].mxu0 }
 0xdc4   :  { %v15229_v40 = vpop.f32.mrb[102].mxu0  ;;  %23228 = vmatpush3.bf16.msra.mxu0 %v25409_v39  ;;  %v25426_v28 = vld [vmem:[%s30869_s7 + $0x8b0] sm:$0xff]  }
 0xdc5   :  { %v23096_v0 = vpop.f32.mrb[103].mxu0  ;;  %23229 = vmatprep.subr.bf16.mxu0 %v31226_v12  ;;  %v11762_v40 = vadd.f32 %v29600_v9, %v11691_v31 }
 0xdc6   :  { %v25428_v0 = vld [vmem:[%s30869_s7 + $0x8c0] sm:$0xff]  }
 0xdc7   :  { %v11826_v1 = vmax.f32 %v11762_v40, 0.0 }
 0xdc8   :  { %23230 = vmatpush3.bf16.msra.mxu0 %v25410_v46 }
 0xdc9   :  { %23231 = vmatprep.subr.bf16.mxu0 %v31226_v12 }
 0xdcc   :  { %23232 = vmatpush3.bf16.msra.mxu0 %v25411_v14  ;;  %v11890_v14 = vpack.c.bf16 %v11826_v1, %v11826_v1  ;;  %v25448_v1 = vld [vmem:[%s30869_s7 + $0x960] sm:$0xff]  }
 0xdcd   :  { %23237 = vmatprep.subr.bf16.mxu0 %v31226_v12 }
 0xdcf   :  { %23234 = vmatmul.mubr.bf16.vlgmr.msra.gmra.mrb[128].mxu0 %v11888_v7  ;;  %v25431_v7 = vld [vmem:[%s30869_s7 + $0x8d8] sm:$0xff]  }
 0xdd0   :  { %23238 = vmatpush3.bf16.msra.mxu0 %v25412_v24  ;;  %23253 = vmatprep.mubr.msk.bf16.mxu0 %vm25612_vm0, %v31226_v12  ;;  %v25430_v24 = vld [vmem:[%s30869_s7 + $0x8d0] sm:$0xff]  }
 0xdd1   :  { %23239 = vmatprep.subr.bf16.mxu0 %v31226_v12 }
 0xdd4   :  { %23240 = vmatpush3.bf16.msra.mxu0 %v25413_v19  ;;  %v25432_v19 = vld [vmem:[%s30869_s7 + $0x8e0] sm:$0xff]  }
 0xdd5   :  { %23241 = vmatprep.subr.bf16.mxu0 %v31226_v12 }
 0xdd8   :  { %23242 = vmatpush3.bf16.msra.mxu0 %v25414_v13  ;;  %v25433_v13 = vld [vmem:[%s30869_s7 + $0x8e8] sm:$0xff]  }
 0xdd9   :  { %23243 = vmatprep.subr.bf16.mxu0 %v31226_v12 }
 0xddc   :  { %23244 = vmatpush3.bf16.msra.mxu0 %v25415_v63  ;;  %v11692_v63 = vmul.f32 %v29673_v45, %v28509_v60  ;;  %v25435_v60 = vld [vmem:[%s30869_s7 + $0x8f8] sm:$0xff]  }
 0xddd   :  { %23245 = vmatprep.subr.bf16.mxu0 %v31226_v12 }
 0xde0   :  { %23246 = vmatpush3.bf16.msra.mxu0 %v25416_v17 }
 0xde1   :  { %23247 = vmatprep.subr.bf16.mxu0 %v31226_v12 }
 0xde2   :  { %v15314_v21 = vpop.f32.mrb[104].mxu0 }
 0xde3   :  { %v18601_v57 = vadd.f32 %v18600_v27, %v15314_v21  ;;  %v23115_v4 = vpop.f32.mrb[105].mxu0 }
 0xde4   :  { %v15317_v3 = vpop.f32.mrb[106].mxu0  ;;  %23248 = vmatpush3.bf16.msra.mxu0 %v25417_v50  ;;  %v11763_v4 = vadd.f32 %v29600_v9, %v11692_v63  ;;  %v30165_v63 = vld [vmem:[%s30871_s6] ss:$0 sm:$0xff] }
 0xde5   :  { %v23116_v20 = vpop.f32.mrb[107].mxu0  ;;  %23249 = vmatprep.subr.bf16.mxu0 %v31226_v12 }
 0xde8   :  { %23250 = vmatpush3.bf16.msra.mxu0 %v25418_v29  ;;  %v11827_v29 = vmax.f32 %v11763_v4, 0.0  ;;  %v25453_v4 = vld [vmem:[%s30869_s7 + $0x988] sm:$0xff]  }
 0xde9   :  { %23251 = vmatprep.subr.bf16.mxu0 %v31226_v12 }
 0xdea   :  { %v11891_v20 = vpack.c.bf16 %v11827_v29, %v11827_v29  ;;  %v25456_v29 = vld [vmem:[%s30869_s7 + $0x9a0] sm:$0xff]  }
 0xdec   :  { %23252 = vmatpush3.bf16.msra.mxu0 %v25419_v37  ;;  %v25437_v37 = vld [vmem:[%s30869_s7 + $0x908] sm:$0xff]  }
 0xded   :  { %23257 = vmatprep.subr.bf16.mxu0 %v31226_v12 }
 0xdef   :  { %23254 = vmatmul.mubr.bf16.vlgmr.msra.gmra.mrb[132].mxu0 %v11889_v41  ;;  %v25440_v41 = vld [vmem:[%s30869_s7 + $0x920] sm:$0xff]  }
 0xdf0   :  { %23258 = vmatpush3.bf16.msra.mxu0 %v25420_v59  ;;  %23273 = vmatprep.mubr.msk.bf16.mxu0 %vm25612_vm0, %v31226_v12  ;;  %v25439_v59 = vld [vmem:[%s30869_s7 + $0x918] sm:$0xff]  }
 0xdf1   :  { %23259 = vmatprep.subr.bf16.mxu0 %v31226_v12 }
 0xdf4   :  { %23260 = vmatpush3.bf16.msra.mxu0 %v25421_v49  ;;  %v25441_v49 = vld [vmem:[%s30869_s7 + $0x928] sm:$0xff]  }
 0xdf5   :  { %23261 = vmatprep.subr.bf16.mxu0 %v31226_v12 }
 0xdf8   :  { %23262 = vmatpush3.bf16.msra.mxu0 %v25422_v36  ;;  %v11693_v36 = vmul.f32 %v29673_v45, %v28523_v33  ;;  %v25443_v33 = vld [vmem:[%s30869_s7 + $0x938] sm:$0xff]  }
 0xdf9   :  { %23263 = vmatprep.subr.bf16.mxu0 %v31226_v12 }
 0xdfc   :  { %23264 = vmatpush3.bf16.msra.mxu0 %v25423_v43 }
 0xdfd   :  { %23265 = vmatprep.subr.bf16.mxu0 %v31226_v12 }
 0xe00   :  { %23266 = vmatpush3.bf16.msra.mxu0 %v25424_v61 }
 0xe01   :  { %23267 = vmatprep.subr.bf16.mxu0 %v31226_v12 }
 0xe02   :  { %v15402_v39 = vpop.f32.mrb[108].mxu0 }
 0xe03   :  { %v18602_v15 = vadd.f32 %v18601_v57, %v15402_v39  ;;  %v23135_v34 = vpop.f32.mrb[109].mxu0  ;;  %v25434_v57 = vld [vmem:[%s30869_s7 + $0x8f0] sm:$0xff]  }
 0xe04   :  { %v15405_v27 = vpop.f32.mrb[110].mxu0  ;;  %23268 = vmatpush3.bf16.msra.mxu0 %v25425_v26  ;;  %v25442_v39 = vld [vmem:[%s30869_s7 + $0x930] sm:$0xff]  }
 0xe05   :  { %v23136_v46 = vpop.f32.mrb[111].mxu0  ;;  %23269 = vmatprep.subr.bf16.mxu0 %v31226_v12 }
 0xe06   :  { %v25446_v46 = vld [vmem:[%s30869_s7 + $0x950] sm:$0xff]  }
 0xe08   :  { %23270 = vmatpush3.bf16.msra.mxu0 %v25426_v28  ;;  %v25444_v28 = vld [vmem:[%s30869_s7 + $0x940] sm:$0xff]  }
 0xe09   :  { %23271 = vmatprep.subr.bf16.mxu0 %v31226_v12 }
 0xe0c   :  { %23272 = vmatpush3.bf16.msra.mxu0 %v25427_v35  ;;  %v25447_v35 = vld [vmem:[%s30869_s7 + $0x958] sm:$0xff]  }
 0xe0d   :  { %23277 = vmatprep.subr.bf16.mxu0 %v31226_v12 }
 0xe0f   :  { %23274 = vmatmul.mubr.bf16.vlgmr.msra.gmra.mrb[136].mxu0 %v11890_v14  ;;  %v11694_v14 = vmul.f32 %v29673_v45, %v28527_v56  ;;  %v25451_v56 = vld [vmem:[%s30869_s7 + $0x978] sm:$0xff]  }
 0xe10   :  { %23278 = vmatpush3.bf16.msra.mxu0 %v25428_v0  ;;  %23293 = vmatprep.mubr.msk.bf16.mxu0 %vm25612_vm0, %v31226_v12  ;;  %v25449_v0 = vld [vmem:[%s30869_s7 + $0x968] sm:$0xff]  }
 0xe11   :  { %23279 = vmatprep.subr.bf16.mxu0 %v31226_v12 }
 0xe14   :  { %23280 = vmatpush3.bf16.msra.mxu0 %v25429_v10 }
 0xe15   :  { %23281 = vmatprep.subr.bf16.mxu0 %v31226_v12 }
 0xe18   :  { %23282 = vmatpush3.bf16.msra.mxu0 %v25430_v24 }
 0xe19   :  { %23283 = vmatprep.subr.bf16.mxu0 %v31226_v12 }
 0xe1c   :  { %23284 = vmatpush3.bf16.msra.mxu0 %v25431_v7 }
 0xe1d   :  { %23285 = vmatprep.subr.bf16.mxu0 %v31226_v12 }
 0xe20   :  { %23286 = vmatpush3.bf16.msra.mxu0 %v25432_v19 }
 0xe21   :  { %23287 = vmatprep.subr.bf16.mxu0 %v31226_v12 }
 0xe22   :  { %v15490_v17 = vpop.f32.mrb[112].mxu0 }
 0xe23   :  { %v18603_v50 = vadd.f32 %v18602_v15, %v15490_v17  ;;  %v23155_v58 = vpop.f32.mrb[113].mxu0  ;;  %v11764_v15 = vadd.f32 %v29600_v9, %v11693_v36  ;;  %v25445_v9 = vld [vmem:[%s30869_s7 + $0x948] sm:$0xff]   ;;  %v11765_v17 = vadd.f32 %v30165_v63, %v11694_v14 }
 0xe24   :  { %v15493_v21 = vpop.f32.mrb[114].mxu0  ;;  %23288 = vmatpush3.bf16.msra.mxu0 %v25433_v13  ;;  %v25450_v13 = vld [vmem:[%s30869_s7 + $0x970] sm:$0xff]  }
 0xe25   :  { %v23156_v3 = vpop.f32.mrb[115].mxu0  ;;  %23289 = vmatprep.subr.bf16.mxu0 %v31226_v12  ;;  %v11828_v27 = vmax.f32 %v11764_v15, 0.0  ;;  %v11829_v58 = vmax.f32 %v11765_v17, 0.0  ;;  %v25452_v21 = vld [vmem:[%s30869_s7 + $0x980] sm:$0xff]   ;;  %v25463_v15 = vld [vmem:[%s30869_s7 + $0x9d8] sm:$0xff]  }
 0xe26   :  { %v25454_v3 = vld [vmem:[%s30869_s7 + $0x990] sm:$0xff]   ;;  %v25471_v17 = vld [vmem:[%s30869_s7 + $0xa18] sm:$0xff]  }
 0xe27   :  { %v11892_v40 = vpack.c.bf16 %v11828_v27, %v11828_v27  ;;  %v30238_v27 = vld [vmem:[%s30870_s5] ss:$0 sm:$0xff] }
 0xe28   :  { %23290 = vmatpush3.bf16.msra.mxu0 %v25434_v57  ;;  %v11893_v57 = vpack.c.bf16 %v11829_v58, %v11829_v58  ;;  %v11697_v58 = vmul.f32 %v30238_v27, %v28541_v23  ;;  %v25475_v23 = vld [vmem:[%s30869_s7 + $0xa38] sm:$0xff]  }
 0xe29   :  { %23291 = vmatprep.subr.bf16.mxu0 %v31226_v12 }
 0xe2c   :  { %23292 = vmatpush3.bf16.msra.mxu0 %v25435_v60  ;;  %v25455_v60 = vld [vmem:[%s30869_s7 + $0x998] sm:$0xff]  }
 0xe2d   :  { %23297 = vmatprep.subr.bf16.mxu0 %v31226_v12 }
 0xe2f   :  { %23294 = vmatmul.mubr.bf16.vlgmr.msra.gmra.mrb[140].mxu0 %v11891_v20  ;;  %v11695_v20 = vmul.f32 %v29673_v45, %v28520_v5  ;;  %v25459_v5 = vld [vmem:[%s30869_s7 + $0x9b8] sm:$0xff]  }
 0xe30   :  { %23298 = vmatpush3.bf16.msra.mxu0 %v25436_v32  ;;  %23313 = vmatprep.mubr.msk.bf16.mxu0 %vm25612_vm0, %v31226_v12  ;;  %v25457_v32 = vld [vmem:[%s30869_s7 + $0x9a8] sm:$0xff]  }
 0xe31   :  { %23299 = vmatprep.subr.bf16.mxu0 %v31226_v12  ;;  %v11766_v36 = vadd.f32 %v30165_v63, %v11695_v20 }
 0xe33   :  { %v11830_v45 = vmax.f32 %v11766_v36, 0.0  ;;  %v25480_v36 = vld [vmem:[%s30869_s7 + $0xa60] sm:$0xff]  }
 0xe34   :  { %23300 = vmatpush3.bf16.msra.mxu0 %v25437_v37 }
 0xe35   :  { %23301 = vmatprep.subr.bf16.mxu0 %v31226_v12 }
 0xe38   :  { %23302 = vmatpush3.bf16.msra.mxu0 %v25438_v16 }
 0xe39   :  { %23303 = vmatprep.subr.bf16.mxu0 %v31226_v12 }
 0xe3c   :  { %23304 = vmatpush3.bf16.msra.mxu0 %v25439_v59 }
 0xe3d   :  { %23305 = vmatprep.subr.bf16.mxu0 %v31226_v12 }
 0xe40   :  { %23306 = vmatpush3.bf16.msra.mxu0 %v25440_v41 }
 0xe41   :  { %23307 = vmatprep.subr.bf16.mxu0 %v31226_v12 }
 0xe42   :  { %v15578_v43 = vpop.f32.mrb[116].mxu0 }
 0xe43   :  { %v18604_v61 = vadd.f32 %v18603_v50, %v15578_v43  ;;  %v23175_v26 = vpop.f32.mrb[117].mxu0 }
 0xe44   :  { %v15581_v31 = vpop.f32.mrb[118].mxu0  ;;  %23308 = vmatpush3.bf16.msra.mxu0 %v25441_v49  ;;  %v25458_v49 = vld [vmem:[%s30869_s7 + $0x9b0] sm:$0xff]   ;;  %v11894_v26 = vpack.c.bf16 %v11830_v45, %v11830_v45 }
 0xe45   :  { %v23176_v34 = vpop.f32.mrb[119].mxu0  ;;  %23309 = vmatprep.subr.bf16.mxu0 %v31226_v12  ;;  %v25461_v31 = vld [vmem:[%s30869_s7 + $0x9c8] sm:$0xff]  }
 0xe46   :  { %v25464_v34 = vld [vmem:[%s30869_s7 + $0x9e0] sm:$0xff]  }
 0xe48   :  { %23310 = vmatpush3.bf16.msra.mxu0 %v25442_v39  ;;  %v25462_v39 = vld [vmem:[%s30869_s7 + $0x9d0] sm:$0xff]  }
 0xe49   :  { %23311 = vmatprep.subr.bf16.mxu0 %v31226_v12 }
 0xe4c   :  { %23312 = vmatpush3.bf16.msra.mxu0 %v25443_v33  ;;  %v25465_v33 = vld [vmem:[%s30869_s7 + $0x9e8] sm:$0xff]  }
 0xe4d   :  { %23317 = vmatprep.subr.bf16.mxu0 %v31226_v12 }
 0xe4f   :  { %23314 = vmatmul.mubr.bf16.vlgmr.msra.gmra.mrb[144].mxu0 %v11892_v40 }
 0xe50   :  { %23318 = vmatpush3.bf16.msra.mxu0 %v25444_v28  ;;  %23333 = vmatprep.mubr.msk.bf16.mxu0 %vm25612_vm0, %v31226_v12  ;;  %v11696_v28 = vmul.f32 %v30238_v27, %v28525_v55  ;;  %v25467_v55 = vld [vmem:[%s30869_s7 + $0x9f8] sm:$0xff]  }
 0xe51   :  { %23319 = vmatprep.subr.bf16.mxu0 %v31226_v12 }
 0xe54   :  { %23320 = vmatpush3.bf16.msra.mxu0 %v25445_v9 }
 0xe55   :  { %23321 = vmatprep.subr.bf16.mxu0 %v31226_v12 }
 0xe58   :  { %23322 = vmatpush3.bf16.msra.mxu0 %v25446_v46 }
 0xe59   :  { %23323 = vmatprep.subr.bf16.mxu0 %v31226_v12 }
 0xe5c   :  { %23324 = vmatpush3.bf16.msra.mxu0 %v25447_v35 }
 0xe5d   :  { %23325 = vmatprep.subr.bf16.mxu0 %v31226_v12 }
 0xe60   :  { %23326 = vmatpush3.bf16.msra.mxu0 %v25448_v1  ;;  %v25466_v1 = vld [vmem:[%s30869_s7 + $0x9f0] sm:$0xff]  }
 0xe61   :  { %23327 = vmatprep.subr.bf16.mxu0 %v31226_v12 }
 0xe62   :  { %v15666_v10 = vpop.f32.mrb[120].mxu0 }
 0xe63   :  { %v18605_v24 = vadd.f32 %v18604_v61, %v15666_v10  ;;  %v23195_v7 = vpop.f32.mrb[121].mxu0  ;;  %v25460_v61 = vld [vmem:[%s30869_s7 + $0x9c0] sm:$0xff]  }
 0xe64   :  { %v15669_v19 = vpop.f32.mrb[122].mxu0  ;;  %23328 = vmatpush3.bf16.msra.mxu0 %v25449_v0  ;;  %v11767_v0 = vadd.f32 %v30165_v63, %v11696_v28  ;;  %v25484_v28 = vld [vmem:[%s30869_s7 + $0xa80] sm:$0xff]  }
 0xe65   :  { %v23196_v50 = vpop.f32.mrb[123].mxu0  ;;  %23329 = vmatprep.subr.bf16.mxu0 %v31226_v12  ;;  %v25469_v19 = vld [vmem:[%s30869_s7 + $0xa08] sm:$0xff]  }
 0xe66   :  { %v11831_v10 = vmax.f32 %v11767_v0, 0.0  ;;  %v25472_v50 = vld [vmem:[%s30869_s7 + $0xa20] sm:$0xff]   ;;  %v25489_v0 = vld [vmem:[%s30869_s7 + $0xaa8] sm:$0xff]  }
 0xe68   :  { %23330 = vmatpush3.bf16.msra.mxu0 %v25450_v13  ;;  %v11895_v7 = vpack.c.bf16 %v11831_v10, %v11831_v10  ;;  %v25470_v13 = vld [vmem:[%s30869_s7 + $0xa10] sm:$0xff]  }
 0xe69   :  { %23331 = vmatprep.subr.bf16.mxu0 %v31226_v12 }
 0xe6c   :  { %23332 = vmatpush3.bf16.msra.mxu0 %v25451_v56  ;;  %v25473_v56 = vld [vmem:[%s30869_s7 + $0xa28] sm:$0xff]  }
 0xe6d   :  { %23337 = vmatprep.subr.bf16.mxu0 %v31226_v12 }
 0xe6f   :  { %23334 = vmatmul.mubr.bf16.vlgmr.msra.gmra.mrb[148].mxu0 %v11893_v57 }
 0xe70   :  { %23338 = vmatpush3.bf16.msra.mxu0 %v25452_v21  ;;  %23353 = vmatprep.mubr.msk.bf16.mxu0 %vm25612_vm0, %v31226_v12 }
 0xe71   :  { %23339 = vmatprep.subr.bf16.mxu0 %v31226_v12 }
 0xe74   :  { %23340 = vmatpush3.bf16.msra.mxu0 %v25453_v4 }
 0xe75   :  { %23341 = vmatprep.subr.bf16.mxu0 %v31226_v12 }
 0xe78   :  { %23342 = vmatpush3.bf16.msra.mxu0 %v25454_v3 }
 0xe79   :  { %23343 = vmatprep.subr.bf16.mxu0 %v31226_v12 }
 0xe7c   :  { %23344 = vmatpush3.bf16.msra.mxu0 %v25455_v60  ;;  %v25474_v60 = vld [vmem:[%s30869_s7 + $0xa30] sm:$0xff]  }
 0xe7d   :  { %23345 = vmatprep.subr.bf16.mxu0 %v31226_v12 }
 0xe80   :  { %23346 = vmatpush3.bf16.msra.mxu0 %v25456_v29  ;;  %v11768_v29 = vadd.f32 %v30165_v63, %v11697_v58 }
 0xe81   :  { %23347 = vmatprep.subr.bf16.mxu0 %v31226_v12 }
 0xe82   :  { %v15754_v37 = vpop.f32.mrb[124].mxu0  ;;  %v11832_v20 = vmax.f32 %v11768_v29, 0.0  ;;  %v11700_v29 = vmul.f32 %v30238_v27, %v28543_v62  ;;  %v25499_v62 = vld [vmem:[%s30869_s7 + $0xaf8] sm:$0xff]  }
 0xe83   :  { %v18606_v16 = vadd.f32 %v18605_v24, %v15754_v37  ;;  %v23215_v59 = vpop.f32.mrb[125].mxu0  ;;  %v25468_v24 = vld [vmem:[%s30869_s7 + $0xa00] sm:$0xff]  }
 0xe84   :  { %v15757_v41 = vpop.f32.mrb[126].mxu0  ;;  %23348 = vmatpush3.bf16.msra.mxu0 %v25457_v32  ;;  %v25476_v37 = vld [vmem:[%s30869_s7 + $0xa40] sm:$0xff]   ;;  %v25477_v59 = vld [vmem:[%s30869_s7 + $0xa48] sm:$0xff]  }
 0xe85   :  { %v23216_v43 = vpop.f32.mrb[127].mxu0  ;;  %23349 = vmatprep.subr.bf16.mxu0 %v31226_v12  ;;  %v25478_v41 = vld [vmem:[%s30869_s7 + $0xa50] sm:$0xff]  }
 0xe86   :  { %v25481_v43 = vld [vmem:[%s30869_s7 + $0xa68] sm:$0xff]  }
 0xe88   :  { %23350 = vmatpush3.bf16.msra.mxu0 %v25458_v49  ;;  %v25479_v49 = vld [vmem:[%s30869_s7 + $0xa58] sm:$0xff]  }
 0xe89   :  { %23351 = vmatprep.subr.bf16.mxu0 %v31226_v12 }
 0xe8c   :  { %23352 = vmatpush3.bf16.msra.mxu0 %v25459_v5  ;;  %v11698_v5 = vmul.f32 %v30238_v27, %v28545_v48  ;;  %v25483_v48 = vld [vmem:[%s30869_s7 + $0xa78] sm:$0xff]  }
 0xe8d   :  { %23357 = vmatprep.subr.bf16.mxu0 %v31226_v12 }
 0xe8f   :  { %23354 = vmatmul.mubr.bf16.vlgmr.msra.gmra.mrb[152].mxu0 %v11894_v26 }
 0xe90   :  { %23358 = vmatpush3.bf16.msra.mxu0 %v25460_v61  ;;  %23373 = vmatprep.mubr.msk.bf16.mxu0 %vm25612_vm0, %v31226_v12 }
 0xe91   :  { %23359 = vmatprep.subr.bf16.mxu0 %v31226_v12 }
 0xe94   :  { %23360 = vmatpush3.bf16.msra.mxu0 %v25461_v31 }
 0xe95   :  { %23361 = vmatprep.subr.bf16.mxu0 %v31226_v12 }
 0xe98   :  { %23362 = vmatpush3.bf16.msra.mxu0 %v25462_v39  ;;  %v25482_v39 = vld [vmem:[%s30869_s7 + $0xa70] sm:$0xff]  }
 0xe99   :  { %23363 = vmatprep.subr.bf16.mxu0 %v31226_v12 }
 0xe9c   :  { %23364 = vmatpush3.bf16.msra.mxu0 %v25463_v15  ;;  %v11769_v15 = vadd.f32 %v30165_v63, %v11698_v5  ;;  %v25501_v5 = vld [vmem:[%s30869_s7 + $0xb08] sm:$0xff]  }
 0xe9d   :  { %23365 = vmatprep.subr.bf16.mxu0 %v31226_v12 }
 0xea0   :  { %23366 = vmatpush3.bf16.msra.mxu0 %v25464_v34 }
 0xea1   :  { %23367 = vmatprep.subr.bf16.mxu0 %v31226_v12 }
 0xea2   :  { %v15842_v40 = vpop.f32.mrb[128].mxu0 }
 0xea3   :  { %v18607_v9 = vadd.f32 %v18606_v16, %v15842_v40  ;;  %v23235_v46 = vpop.f32.mrb[129].mxu0  ;;  %v11896_v16 = vpack.c.bf16 %v11832_v20, %v11832_v20 }
 0xea4   :  { %v15845_v35 = vpop.f32.mrb[130].mxu0  ;;  %23368 = vmatpush3.bf16.msra.mxu0 %v25465_v33  ;;  %v11833_v33 = vmax.f32 %v11769_v15, 0.0  ;;  %v25486_v46 = vld [vmem:[%s30869_s7 + $0xa90] sm:$0xff]  }
 0xea5   :  { %v23236_v14 = vpop.f32.mrb[131].mxu0  ;;  %23369 = vmatprep.subr.bf16.mxu0 %v31226_v12  ;;  %v25487_v35 = vld [vmem:[%s30869_s7 + $0xa98] sm:$0xff]  }
 0xea6   :  { %v11897_v40 = vpack.c.bf16 %v11833_v33, %v11833_v33  ;;  %v11699_v14 = vmul.f32 %v30238_v27, %v28538_v8  ;;  %v25491_v8 = vld [vmem:[%s30869_s7 + $0xab8] sm:$0xff]  }
 0xea8   :  { %23370 = vmatpush3.bf16.msra.mxu0 %v25466_v1  ;;  %v25488_v1 = vld [vmem:[%s30869_s7 + $0xaa0] sm:$0xff]  }
 0xea9   :  { %23371 = vmatprep.subr.bf16.mxu0 %v31226_v12 }
 0xeac   :  { %23372 = vmatpush3.bf16.msra.mxu0 %v25467_v55 }
 0xead   :  { %23377 = vmatprep.subr.bf16.mxu0 %v31226_v12 }
 0xeaf   :  { %23374 = vmatmul.mubr.bf16.vlgmr.msra.gmra.mrb[156].mxu0 %v11895_v7 }
 0xeb0   :  { %23378 = vmatpush3.bf16.msra.mxu0 %v25468_v24  ;;  %23393 = vmatprep.mubr.msk.bf16.mxu0 %vm25612_vm0, %v31226_v12 }
 0xeb1   :  { %23379 = vmatprep.subr.bf16.mxu0 %v31226_v12 }
 0xeb4   :  { %23380 = vmatpush3.bf16.msra.mxu0 %v25469_v19  ;;  %v25490_v19 = vld [vmem:[%s30869_s7 + $0xab0] sm:$0xff]  }
 0xeb5   :  { %23381 = vmatprep.subr.bf16.mxu0 %v31226_v12 }
 0xeb8   :  { %23382 = vmatpush3.bf16.msra.mxu0 %v25470_v13  ;;  %v11770_v13 = vadd.f32 %v30165_v63, %v11699_v14  ;;  %v25510_v14 = vld [vmem:[%s30869_s7 + $0xb50] sm:$0xff]  }
 0xeb9   :  { %23383 = vmatprep.subr.bf16.mxu0 %v31226_v12 }
 0xebc   :  { %23384 = vmatpush3.bf16.msra.mxu0 %v25471_v17 }
 0xebd   :  { %23385 = vmatprep.subr.bf16.mxu0 %v31226_v12 }
 0xec0   :  { %23386 = vmatpush3.bf16.msra.mxu0 %v25472_v50  ;;  %v11834_v50 = vmax.f32 %v11770_v13, 0.0 }
 0xec1   :  { %23387 = vmatprep.subr.bf16.mxu0 %v31226_v12 }
 0xec2   :  { %v15930_v21 = vpop.f32.mrb[132].mxu0  ;;  %v11898_v58 = vpack.c.bf16 %v11834_v50, %v11834_v50  ;;  %v25514_v50 = vld [vmem:[%s30869_s7 + $0xb70] sm:$0xff]  }
 0xec3   :  { %v18608_v57 = vadd.f32 %v18607_v9, %v15930_v21  ;;  %v23255_v4 = vpop.f32.mrb[133].mxu0  ;;  %v25485_v9 = vld [vmem:[%s30869_s7 + $0xa88] sm:$0xff]  }
 0xec4   :  { %v15933_v3 = vpop.f32.mrb[134].mxu0  ;;  %23388 = vmatpush3.bf16.msra.mxu0 %v25473_v56  ;;  %v25492_v56 = vld [vmem:[%s30869_s7 + $0xac0] sm:$0xff]   ;;  %v25493_v21 = vld [vmem:[%s30869_s7 + $0xac8] sm:$0xff]   ;;  %v25495_v4 = vld [vmem:[%s30869_s7 + $0xad8] sm:$0xff]  }
 0xec5   :  { %v23256_v32 = vpop.f32.mrb[135].mxu0  ;;  %23389 = vmatprep.subr.bf16.mxu0 %v31226_v12  ;;  %v25496_v3 = vld [vmem:[%s30869_s7 + $0xae0] sm:$0xff]  }
 0xec8   :  { %23390 = vmatpush3.bf16.msra.mxu0 %v25474_v60  ;;  %v25497_v60 = vld [vmem:[%s30869_s7 + $0xae8] sm:$0xff]  }
 0xec9   :  { %23391 = vmatprep.subr.bf16.mxu0 %v31226_v12 }
 0xecc   :  { %23392 = vmatpush3.bf16.msra.mxu0 %v25475_v23 }
 0xecd   :  { %23397 = vmatprep.subr.bf16.mxu0 %v31226_v12 }
 0xecf   :  { %23394 = vmatmul.mubr.bf16.vlgmr.msra.gmra.mrb[160].mxu0 %v11896_v16  ;;  %v25498_v16 = vld [vmem:[%s30869_s7 + $0xaf0] sm:$0xff]  }
 0xed0   :  { %23398 = vmatpush3.bf16.msra.mxu0 %v25476_v37  ;;  %23413 = vmatprep.mubr.msk.bf16.mxu0 %vm25612_vm0, %v31226_v12 }
 0xed1   :  { %23399 = vmatprep.subr.bf16.mxu0 %v31226_v12 }
 0xed4   :  { %23400 = vmatpush3.bf16.msra.mxu0 %v25477_v59  ;;  %v11771_v59 = vadd.f32 %v30165_v63, %v11700_v29  ;;  %v25519_v29 = vld [vmem:[%s30869_s7 + $0xb98] sm:$0xff]  }
 0xed5   :  { %23401 = vmatprep.subr.bf16.mxu0 %v31226_v12 }
 0xed8   :  { %23402 = vmatpush3.bf16.msra.mxu0 %v25478_v41 }
 0xed9   :  { %23403 = vmatprep.subr.bf16.mxu0 %v31226_v12 }
 0xedc   :  { %23404 = vmatpush3.bf16.msra.mxu0 %v25479_v49  ;;  %v11835_v49 = vmax.f32 %v11771_v59, 0.0 }
 0xedd   :  { %23405 = vmatprep.subr.bf16.mxu0 %v31226_v12 }
 0xee0   :  { %23406 = vmatpush3.bf16.msra.mxu0 %v25480_v36  ;;  %v25500_v36 = vld [vmem:[%s30869_s7 + $0xb00] sm:$0xff]  }
 0xee1   :  { %23407 = vmatprep.subr.bf16.mxu0 %v31226_v12 }
 0xee2   :  { %v16018_v45 = vpop.f32.mrb[136].mxu0 }
 0xee3   :  { %v18609_v61 = vadd.f32 %v18608_v57, %v16018_v45  ;;  %v23275_v26 = vpop.f32.mrb[137].mxu0  ;;  %v25494_v57 = vld [vmem:[%s30869_s7 + $0xad0] sm:$0xff]  }
 0xee4   :  { %v16021_v31 = vpop.f32.mrb[138].mxu0  ;;  %23408 = vmatpush3.bf16.msra.mxu0 %v25481_v43  ;;  %v11899_v43 = vpack.c.bf16 %v11835_v49, %v11835_v49  ;;  %v25502_v45 = vld [vmem:[%s30869_s7 + $0xb10] sm:$0xff]   ;;  %v25504_v26 = vld [vmem:[%s30869_s7 + $0xb20] sm:$0xff]  }
 0xee5   :  { %v23276_v34 = vpop.f32.mrb[139].mxu0  ;;  %23409 = vmatprep.subr.bf16.mxu0 %v31226_v12  ;;  %v25505_v31 = vld [vmem:[%s30869_s7 + $0xb28] sm:$0xff]  }
 0xee8   :  { %23410 = vmatpush3.bf16.msra.mxu0 %v25482_v39  ;;  %v11701_v39 = vmul.f32 %v30238_v27, %v28557_v53  ;;  %v25507_v53 = vld [vmem:[%s30869_s7 + $0xb38] sm:$0xff]  }
 0xee9   :  { %23411 = vmatprep.subr.bf16.mxu0 %v31226_v12 }
 0xeec   :  { %23412 = vmatpush3.bf16.msra.mxu0 %v25483_v48 }
 0xeed   :  { %23417 = vmatprep.subr.bf16.mxu0 %v31226_v12 }
 0xeef   :  { %23414 = vmatmul.mubr.bf16.vlgmr.msra.gmra.mrb[164].mxu0 %v11897_v40  ;;  %v11772_v40 = vadd.f32 %v30165_v63, %v11701_v39  ;;  %v25528_v39 = vld [vmem:[%s30869_s7 + $0xbe0] sm:$0xff]  }
 0xef0   :  { %23418 = vmatpush3.bf16.msra.mxu0 %v25484_v28  ;;  %23433 = vmatprep.mubr.msk.bf16.mxu0 %vm25612_vm0, %v31226_v12  ;;  %v25506_v28 = vld [vmem:[%s30869_s7 + $0xb30] sm:$0xff]  }
 0xef1   :  { %23419 = vmatprep.subr.bf16.mxu0 %v31226_v12 }
 0xef4   :  { %23420 = vmatpush3.bf16.msra.mxu0 %v25485_v9 }
 0xef5   :  { %23421 = vmatprep.subr.bf16.mxu0 %v31226_v12 }
 0xef8   :  { %23422 = vmatpush3.bf16.msra.mxu0 %v25486_v46  ;;  %v11836_v46 = vmax.f32 %v11772_v40, 0.0 }
 0xef9   :  { %23423 = vmatprep.subr.bf16.mxu0 %v31226_v12 }
 0xefc   :  { %23424 = vmatpush3.bf16.msra.mxu0 %v25487_v35  ;;  %v25508_v35 = vld [vmem:[%s30869_s7 + $0xb40] sm:$0xff]  }
 0xefd   :  { %23425 = vmatprep.subr.bf16.mxu0 %v31226_v12 }
 0xf00   :  { %23426 = vmatpush3.bf16.msra.mxu0 %v25488_v1  ;;  %v11900_v1 = vpack.c.bf16 %v11836_v46, %v11836_v46 }
 0xf01   :  { %23427 = vmatprep.subr.bf16.mxu0 %v31226_v12 }
 0xf02   :  { %v16106_v55 = vpop.f32.mrb[140].mxu0 }
 0xf03   :  { %v18610_v10 = vadd.f32 %v18609_v61, %v16106_v55  ;;  %v23295_v24 = vpop.f32.mrb[141].mxu0  ;;  %v25503_v61 = vld [vmem:[%s30869_s7 + $0xb18] sm:$0xff]  }
 0xf04   :  { %v16109_v7 = vpop.f32.mrb[142].mxu0  ;;  %23428 = vmatpush3.bf16.msra.mxu0 %v25489_v0  ;;  %v25509_v0 = vld [vmem:[%s30869_s7 + $0xb48] sm:$0xff]   ;;  %v25511_v55 = vld [vmem:[%s30869_s7 + $0xb58] sm:$0xff]  }
 0xf05   :  { %v23296_v17 = vpop.f32.mrb[143].mxu0  ;;  %23429 = vmatprep.subr.bf16.mxu0 %v31226_v12  ;;  %v25513_v24 = vld [vmem:[%s30869_s7 + $0xb68] sm:$0xff]   ;;  %v11702_v7 = vmul.f32 %v30238_v27, %v28561_v47  ;;  %v25515_v47 = vld [vmem:[%s30869_s7 + $0xb78] sm:$0xff]  }
 0xf08   :  { %23430 = vmatpush3.bf16.msra.mxu0 %v25490_v19 }
 0xf09   :  { %23431 = vmatprep.subr.bf16.mxu0 %v31226_v12 }
 0xf0c   :  { %23432 = vmatpush3.bf16.msra.mxu0 %v25491_v8 }
 0xf0d   :  { %23437 = vmatprep.subr.bf16.mxu0 %v31226_v12 }
 0xf0f   :  { %23434 = vmatmul.mubr.bf16.vlgmr.msra.gmra.mrb[168].mxu0 %v11898_v58 }
 0xf10   :  { %23438 = vmatpush3.bf16.msra.mxu0 %v25492_v56  ;;  %23453 = vmatprep.mubr.msk.bf16.mxu0 %vm25612_vm0, %v31226_v12  ;;  %v11773_v56 = vadd.f32 %v30165_v63, %v11702_v7  ;;  %v25537_v7 = vld [vmem:[%s30869_s7 + $0xc28] sm:$0xff]  }
 0xf11   :  { %23439 = vmatprep.subr.bf16.mxu0 %v31226_v12 }
 0xf14   :  { %23440 = vmatpush3.bf16.msra.mxu0 %v25493_v21  ;;  %v11837_v21 = vmax.f32 %v11773_v56, 0.0  ;;  %v25538_v56 = vld [vmem:[%s30869_s7 + $0xc30] sm:$0xff]  }
 0xf15   :  { %23441 = vmatprep.subr.bf16.mxu0 %v31226_v12 }
 0xf18   :  { %23442 = vmatpush3.bf16.msra.mxu0 %v25494_v57  ;;  %v25516_v57 = vld [vmem:[%s30869_s7 + $0xb80] sm:$0xff]  }
 0xf19   :  { %23443 = vmatprep.subr.bf16.mxu0 %v31226_v12 }
 0xf1c   :  { %23444 = vmatpush3.bf16.msra.mxu0 %v25495_v4  ;;  %v11901_v4 = vpack.c.bf16 %v11837_v21, %v11837_v21 }
 0xf1d   :  { %23445 = vmatprep.subr.bf16.mxu0 %v31226_v12 }
 0xf20   :  { %23446 = vmatpush3.bf16.msra.mxu0 %v25496_v3  ;;  %v25517_v3 = vld [vmem:[%s30869_s7 + $0xb88] sm:$0xff]  }
 0xf21   :  { %23447 = vmatprep.subr.bf16.mxu0 %v31226_v12 }
 0xf22   :  { %v16194_v32 = vpop.f32.mrb[144].mxu0 }
 0xf23   :  { %v18611_v23 = vadd.f32 %v18610_v10, %v16194_v32  ;;  %v23315_v20 = vpop.f32.mrb[145].mxu0  ;;  %v25512_v10 = vld [vmem:[%s30869_s7 + $0xb60] sm:$0xff]  }
 0xf24   :  { %v16197_v37 = vpop.f32.mrb[146].mxu0  ;;  %23448 = vmatpush3.bf16.msra.mxu0 %v25497_v60  ;;  %v25518_v60 = vld [vmem:[%s30869_s7 + $0xb90] sm:$0xff]   ;;  %v25520_v32 = vld [vmem:[%s30869_s7 + $0xba0] sm:$0xff]   ;;  %v11703_v20 = vmul.f32 %v30238_v27, %v28554_v6  ;;  %v25523_v6 = vld [vmem:[%s30869_s7 + $0xbb8] sm:$0xff]  }
 0xf25   :  { %v23316_v41 = vpop.f32.mrb[147].mxu0  ;;  %23449 = vmatprep.subr.bf16.mxu0 %v31226_v12 }
 0xf26   :  { %v11774_v49 = vadd.f32 %v30165_v63, %v11703_v20  ;;  %v11707_v20 = vmul.f32 %v30238_v27, %v28573_v30  ;;  %v25547_v30 = vld [vmem:[%s30869_s7 + $0xcb8] sm:$0xff]  }
 0xf28   :  { %23450 = vmatpush3.bf16.msra.mxu0 %v25498_v16 }
 0xf29   :  { %23451 = vmatprep.subr.bf16.mxu0 %v31226_v12 }
 0xf2c   :  { %23452 = vmatpush3.bf16.msra.mxu0 %v25499_v62  ;;  %v25522_v62 = vld [vmem:[%s30869_s7 + $0xbb0] sm:$0xff]  }
 0xf2d   :  { %23457 = vmatprep.subr.bf16.mxu0 %v31226_v12 }
 0xf2f   :  { %23454 = vmatmul.mubr.bf16.vlgmr.msra.gmra.mrb[172].mxu0 %v11899_v43  ;;  %v11838_v43 = vmax.f32 %v11774_v49, 0.0  ;;  %v11778_v49 = vadd.f32 %v30165_v63, %v11707_v20 }
 0xf30   :  { %23458 = vmatpush3.bf16.msra.mxu0 %v25500_v36  ;;  %23473 = vmatprep.mubr.msk.bf16.mxu0 %vm25612_vm0, %v31226_v12 }
 0xf31   :  { %23459 = vmatprep.subr.bf16.mxu0 %v31226_v12 }
 0xf34   :  { %23460 = vmatpush3.bf16.msra.mxu0 %v25501_v5  ;;  %v25524_v5 = vld [vmem:[%s30869_s7 + $0xbc0] sm:$0xff]  }
 0xf35   :  { %23461 = vmatprep.subr.bf16.mxu0 %v31226_v12 }
 0xf38   :  { %23462 = vmatpush3.bf16.msra.mxu0 %v25502_v45  ;;  %v11902_v45 = vpack.c.bf16 %v11838_v43, %v11838_v43  ;;  %v25548_v43 = vld [vmem:[%s30869_s7 + $0xd00] sm:$0xff]  }
 0xf39   :  { %23463 = vmatprep.subr.bf16.mxu0 %v31226_v12 }
 0xf3c   :  { %23464 = vmatpush3.bf16.msra.mxu0 %v25503_v61  ;;  %v25525_v61 = vld [vmem:[%s30869_s7 + $0xbc8] sm:$0xff]  }
 0xf3d   :  { %23465 = vmatprep.subr.bf16.mxu0 %v31226_v12 }
 0xf40   :  { %23466 = vmatpush3.bf16.msra.mxu0 %v25504_v26  ;;  %v25526_v26 = vld [vmem:[%s30869_s7 + $0xbd0] sm:$0xff]  }
 0xf41   :  { %23467 = vmatprep.subr.bf16.mxu0 %v31226_v12 }
 0xf42   :  { %v16282_v15 = vpop.f32.mrb[148].mxu0 }
 0xf43   :  { %v18612_v34 = vadd.f32 %v18611_v23, %v16282_v15  ;;  %v23335_v48 = vpop.f32.mrb[149].mxu0  ;;  %v25521_v23 = vld [vmem:[%s30869_s7 + $0xba8] sm:$0xff]  }
 0xf44   :  { %v16285_v33 = vpop.f32.mrb[150].mxu0  ;;  %23468 = vmatpush3.bf16.msra.mxu0 %v25505_v31  ;;  %v25527_v31 = vld [vmem:[%s30869_s7 + $0xbd8] sm:$0xff]   ;;  %v25529_v15 = vld [vmem:[%s30869_s7 + $0xbe8] sm:$0xff]  }
 0xf45   :  { %v23336_v9 = vpop.f32.mrb[151].mxu0  ;;  %23469 = vmatprep.subr.bf16.mxu0 %v31226_v12 }
 0xf46   :  { %v25530_v9 = vld [vmem:[%s30869_s7 + $0xbf0] sm:$0xff]  }
 0xf48   :  { %23470 = vmatpush3.bf16.msra.mxu0 %v25506_v28 }
 0xf49   :  { %23471 = vmatprep.subr.bf16.mxu0 %v31226_v12 }
 0xf4c   :  { %23472 = vmatpush3.bf16.msra.mxu0 %v25507_v53 }
 0xf4d   :  { %23477 = vmatprep.subr.bf16.mxu0 %v31226_v12 }
 0xf4f   :  { %23474 = vmatmul.mubr.bf16.vlgmr.msra.gmra.mrb[176].mxu0 %v11900_v1  ;;  %v25532_v1 = vld [vmem:[%s30869_s7 + $0xc00] sm:$0xff]  }
 0xf50   :  { %23478 = vmatpush3.bf16.msra.mxu0 %v25508_v35  ;;  %23493 = vmatprep.mubr.msk.bf16.mxu0 %vm25612_vm0, %v31226_v12 }
 0xf51   :  { %23479 = vmatprep.subr.bf16.mxu0 %v31226_v12 }
 0xf54   :  { %23480 = vmatpush3.bf16.msra.mxu0 %v25509_v0 }
 0xf55   :  { %23481 = vmatprep.subr.bf16.mxu0 %v31226_v12 }
 0xf58   :  { %23482 = vmatpush3.bf16.msra.mxu0 %v25510_v14  ;;  %v25533_v14 = vld [vmem:[%s30869_s7 + $0xc08] sm:$0xff]  }
 0xf59   :  { %23483 = vmatprep.subr.bf16.mxu0 %v31226_v12 }
 0xf5c   :  { %23484 = vmatpush3.bf16.msra.mxu0 %v25511_v55  ;;  %v25534_v55 = vld [vmem:[%s30869_s7 + $0xc10] sm:$0xff]  }
 0xf5d   :  { %23485 = vmatprep.subr.bf16.mxu0 %v31226_v12 }
 0xf60   :  { %23486 = vmatpush3.bf16.msra.mxu0 %v25512_v10  ;;  %v25535_v10 = vld [vmem:[%s30869_s7 + $0xc18] sm:$0xff]  }
 0xf61   :  { %23487 = vmatprep.subr.bf16.mxu0 %v31226_v12 }
 0xf62   :  { %v16370_v19 = vpop.f32.mrb[152].mxu0 }
 0xf63   :  { %v18613_v13 = vadd.f32 %v18612_v34, %v16370_v19  ;;  %v23355_v17 = vpop.f32.mrb[153].mxu0  ;;  %v11704_v34 = vmul.f32 %v30238_v27, %v28559_v42  ;;  %v25531_v42 = vld [vmem:[%s30869_s7 + $0xbf8] sm:$0xff]   ;;  %v11705_v19 = vmul.f32 %v30238_v27, %v28576_v52 }
 0xf64   :  { %v16373_v8 = vpop.f32.mrb[154].mxu0  ;;  %23488 = vmatpush3.bf16.msra.mxu0 %v25513_v24  ;;  %v25536_v24 = vld [vmem:[%s30869_s7 + $0xc20] sm:$0xff]   ;;  %v25539_v52 = vld [vmem:[%s30869_s7 + $0xc38] sm:$0xff]  }
 0xf65   :  { %v23356_v58 = vpop.f32.mrb[155].mxu0  ;;  %23489 = vmatprep.subr.bf16.mxu0 %v31226_v12  ;;  %v11775_v53 = vadd.f32 %v30165_v63, %v11704_v34 }
 0xf66   :  { %v11776_v58 = vadd.f32 %v30165_v63, %v11705_v19 }
 0xf67   :  { %v11839_v35 = vmax.f32 %v11775_v53, 0.0 }
 0xf68   :  { %23490 = vmatpush3.bf16.msra.mxu0 %v25514_v50  ;;  %v11840_v21 = vmax.f32 %v11776_v58, 0.0 }
 0xf69   :  { %23491 = vmatprep.subr.bf16.mxu0 %v31226_v12  ;;  %v11903_v0 = vpack.c.bf16 %v11839_v35, %v11839_v35 }
 0xf6c   :  { %23492 = vmatpush3.bf16.msra.mxu0 %v25515_v47 }
 0xf6d   :  { %23497 = vmatprep.subr.bf16.mxu0 %v31226_v12 }
 0xf6f   :  { %23494 = vmatmul.mubr.bf16.vlgmr.msra.gmra.mrb[180].mxu0 %v11901_v4  ;;  %v11904_v4 = vpack.c.bf16 %v11840_v21, %v11840_v21  ;;  %v25564_v21 = vld [vmem:[%s30869_s7 + $0xe00] sm:$0xff]  }
 0xf70   :  { %23498 = vmatpush3.bf16.msra.mxu0 %v25516_v57  ;;  %23513 = vmatprep.mubr.msk.bf16.mxu0 %vm25612_vm0, %v31226_v12  ;;  %v25540_v57 = vld [vmem:[%s30869_s7 + $0xc80] sm:$0xff]  }
 0xf71   :  { %23499 = vmatprep.subr.bf16.mxu0 %v31226_v12 }
 0xf74   :  { %23500 = vmatpush3.bf16.msra.mxu0 %v25517_v3  ;;  %v25541_v3 = vld [vmem:[%s30869_s7 + $0xc88] sm:$0xff]  }
 0xf75   :  { %23501 = vmatprep.subr.bf16.mxu0 %v31226_v12 }
 0xf78   :  { %23502 = vmatpush3.bf16.msra.mxu0 %v25518_v60  ;;  %v25542_v60 = vld [vmem:[%s30869_s7 + $0xc90] sm:$0xff]  }
 0xf79   :  { %23503 = vmatprep.subr.bf16.mxu0 %v31226_v12 }
 0xf7c   :  { %23504 = vmatpush3.bf16.msra.mxu0 %v25519_v29  ;;  %v25543_v29 = vld [vmem:[%s30869_s7 + $0xc98] sm:$0xff]  }
 0xf7d   :  { %23505 = vmatprep.subr.bf16.mxu0 %v31226_v12 }
 0xf80   :  { %23506 = vmatpush3.bf16.msra.mxu0 %v25520_v32  ;;  %v25544_v32 = vld [vmem:[%s30869_s7 + $0xca0] sm:$0xff]  }
 0xf81   :  { %23507 = vmatprep.subr.bf16.mxu0 %v31226_v12 }
 0xf82   :  { %v16458_v37 = vpop.f32.mrb[156].mxu0 }
 0xf83   :  { %v18614_v16 = vadd.f32 %v18613_v13, %v16458_v37  ;;  %v23375_v59 = vpop.f32.mrb[157].mxu0 }
 0xf84   :  { %v16461_v41 = vpop.f32.mrb[158].mxu0  ;;  %23508 = vmatpush3.bf16.msra.mxu0 %v25521_v23  ;;  %v25545_v23 = vld [vmem:[%s30869_s7 + $0xca8] sm:$0xff]  }
 0xf85   :  { %v23376_v36 = vpop.f32.mrb[159].mxu0  ;;  %23509 = vmatprep.subr.bf16.mxu0 %v31226_v12 }
 0xf88   :  { %23510 = vmatpush3.bf16.msra.mxu0 %v25522_v62  ;;  %v25546_v62 = vld [vmem:[%s30869_s7 + $0xcb0] sm:$0xff]  }
 0xf89   :  { %23511 = vmatprep.subr.bf16.mxu0 %v31226_v12 }
 0xf8c   :  { %23512 = vmatpush3.bf16.msra.mxu0 %v25523_v6  ;;  %v11842_v6 = vmax.f32 %v11778_v49, 0.0 }
 0xf8d   :  { %23517 = vmatprep.subr.bf16.mxu0 %v31226_v12 }
 0xf8f   :  { %23514 = vmatmul.mubr.bf16.vlgmr.msra.gmra.mrb[184].mxu0 %v11902_v45  ;;  %v25549_v45 = vld [vmem:[%s30869_s7 + $0xd08] sm:$0xff]  }
 0xf90   :  { %23518 = vmatpush3.bf16.msra.mxu0 %v25524_v5  ;;  %23533 = vmatprep.mubr.msk.bf16.mxu0 %vm25612_vm0, %v31226_v12  ;;  %v11906_v5 = vpack.c.bf16 %v11842_v6, %v11842_v6 }
 0xf91   :  { %23519 = vmatprep.subr.bf16.mxu0 %v31226_v12 }
 0xf94   :  { %23520 = vmatpush3.bf16.msra.mxu0 %v25525_v61  ;;  %v25550_v61 = vld [vmem:[%s30869_s7 + $0xd10] sm:$0xff]  }
 0xf95   :  { %23521 = vmatprep.subr.bf16.mxu0 %v31226_v12 }
 0xf98   :  { %23522 = vmatpush3.bf16.msra.mxu0 %v25526_v26  ;;  %v25551_v26 = vld [vmem:[%s30869_s7 + $0xd18] sm:$0xff]  }
 0xf99   :  { %23523 = vmatprep.subr.bf16.mxu0 %v31226_v12 }
 0xf9c   :  { %23524 = vmatpush3.bf16.msra.mxu0 %v25527_v31  ;;  %v25552_v31 = vld [vmem:[%s30869_s7 + $0xd20] sm:$0xff]  }
 0xf9d   :  { %23525 = vmatprep.subr.bf16.mxu0 %v31226_v12 }
 0xfa0   :  { %23526 = vmatpush3.bf16.msra.mxu0 %v25528_v39  ;;  %v25553_v39 = vld [vmem:[%s30869_s7 + $0xd28] sm:$0xff]  }
 0xfa1   :  { %23527 = vmatprep.subr.bf16.mxu0 %v31226_v12 }
 0xfa2   :  { %v16546_v48 = vpop.f32.mrb[160].mxu0 }
 0xfa3   :  { %v18615_v33 = vadd.f32 %v18614_v16, %v16546_v48  ;;  %v23395_v28 = vpop.f32.mrb[161].mxu0 }
 0xfa4   :  { %v16549_v40 = vpop.f32.mrb[162].mxu0  ;;  %23528 = vmatpush3.bf16.msra.mxu0 %v25529_v15  ;;  %v11709_v15 = vmul.f32 %v30238_v27, %v28590_v25  ;;  %v25555_v25 = vld [vmem:[%s30869_s7 + $0xd38] sm:$0xff]  }
 0xfa5   :  { %v23396_v46 = vpop.f32.mrb[163].mxu0  ;;  %23529 = vmatprep.subr.bf16.mxu0 %v31226_v12  ;;  %v25554_v40 = vld [vmem:[%s30869_s7 + $0xd30] sm:$0xff]  }
 0xfa8   :  { %23530 = vmatpush3.bf16.msra.mxu0 %v25530_v9  ;;  %v11780_v9 = vadd.f32 %v30165_v63, %v11709_v15  ;;  %v31655_v15 = vld [vmem:[#allocation145_spill] sm:$0xff] }
 0xfa9   :  { %23531 = vmatprep.subr.bf16.mxu0 %v31226_v12 }
 0xfaa   :  { %v11844_v46 = vmax.f32 %v11780_v9, 0.0  ;;  %v25578_v9 = vld [vmem:[%s30869_s7 + $0xeb0] sm:$0xff]  }
 0xfac   :  { %23532 = vmatpush3.bf16.msra.mxu0 %v25531_v42  ;;  %v25556_v42 = vld [vmem:[%s30869_s7 + $0xd80] sm:$0xff]   ;;  %v11908_v35 = vpack.c.bf16 %v11844_v46, %v11844_v46 }
 0xfad   :  { %23537 = vmatprep.subr.bf16.mxu0 %v31226_v12 }
 0xfaf   :  { %23534 = vmatmul.mubr.bf16.vlgmr.msra.gmra.mrb[188].mxu0 %v11903_v0  ;;  %v25558_v0 = vld [vmem:[%s30869_s7 + $0xd90] sm:$0xff]  }
 0xfb0   :  { %23538 = vmatpush3.bf16.msra.mxu0 %v25532_v1  ;;  %23553 = vmatprep.mubr.msk.bf16.mxu0 %vm25612_vm0, %v31226_v12  ;;  %v25557_v1 = vld [vmem:[%s30869_s7 + $0xd88] sm:$0xff]  }
 0xfb1   :  { %23539 = vmatprep.subr.bf16.mxu0 %v31226_v12 }
 0xfb4   :  { %23540 = vmatpush3.bf16.msra.mxu0 %v25533_v14  ;;  %v25559_v14 = vld [vmem:[%s30869_s7 + $0xd98] sm:$0xff]  }
 0xfb5   :  { %23541 = vmatprep.subr.bf16.mxu0 %v31226_v12 }
 0xfb8   :  { %23542 = vmatpush3.bf16.msra.mxu0 %v25534_v55  ;;  %v25560_v55 = vld [vmem:[%s30869_s7 + $0xda0] sm:$0xff]  }
 0xfb9   :  { %23543 = vmatprep.subr.bf16.mxu0 %v31226_v12 }
 0xfbc   :  { %23544 = vmatpush3.bf16.msra.mxu0 %v25535_v10  ;;  %v25561_v10 = vld [vmem:[%s30869_s7 + $0xda8] sm:$0xff]  }
 0xfbd   :  { %23545 = vmatprep.subr.bf16.mxu0 %v31226_v12 }
 0xfc0   :  { %23546 = vmatpush3.bf16.msra.mxu0 %v25536_v24  ;;  %v31653_v24 = vld [vmem:[#allocation143_spill] sm:$0xff] }
 0xfc1   :  { %23547 = vmatprep.subr.bf16.mxu0 %v31226_v12 }
 0xfc2   :  { %v16634_v13 = vpop.f32.mrb[164].mxu0 }
 0xfc3   :  { %v18616_v17 = vadd.f32 %v18615_v33, %v16634_v13  ;;  %v23415_v8 = vpop.f32.mrb[165].mxu0 }
 0xfc4   :  { %v16637_v50 = vpop.f32.mrb[166].mxu0  ;;  %23548 = vmatpush3.bf16.msra.mxu0 %v25537_v7  ;;  %v11711_v7 = vmul.f32 %v30238_v27, %v31653_v24  ;;  %v25609_v24 = vld [vmem:[%s30870_s5] ss:$0 sm:$0xff] }
 0xfc5   :  { %v23416_v47 = vpop.f32.mrb[167].mxu0  ;;  %23549 = vmatprep.subr.bf16.mxu0 %v31226_v12  ;;  %v25562_v50 = vld [vmem:[%s30869_s7 + $0xdb0] sm:$0xff]  }
 0xfc6   :  { %v25563_v47 = vld [vmem:[%s30869_s7 + $0xdb8] sm:$0xff]  }
 0xfc8   :  { %23550 = vmatpush3.bf16.msra.mxu0 %v25538_v56  ;;  %v11782_v56 = vadd.f32 %v30165_v63, %v11711_v7  ;;  %v25565_v63 = vld [vmem:[%s30869_s7 + $0xe08] sm:$0xff]   ;;  %v31656_v7 = vld [vmem:[#allocation155_spill] sm:$0xff] }
 0xfc9   :  { %23551 = vmatprep.subr.bf16.mxu0 %v31226_v12 }
 0xfcc   :  { %23552 = vmatpush3.bf16.msra.mxu0 %v25539_v52  ;;  %v11846_v52 = vmax.f32 %v11782_v56, 0.0  ;;  %v25586_v56 = vld [vmem:[%s30869_s7 + $0xf30] sm:$0xff]  }
 0xfcd   :  { %23577 = vmatprep.subr.bf16.mxu0 %v31226_v12 }
 0xfcf   :  { %23554 = vmatmul.mubr.bf16.vlgmr.msra.gmra.mrb[192].mxu0 %v11904_v4  ;;  %v25566_v4 = vld [vmem:[%s30869_s7 + $0xe10] sm:$0xff]  }
 0xfd0   :  { %23578 = vmatpush3.bf16.msra.mxu0 %v25540_v57  ;;  %23593 = vmatprep.mubr.msk.bf16.mxu0 %vm25612_vm0, %v31226_v12  ;;  %v11910_v57 = vpack.c.bf16 %v11846_v52, %v11846_v52  ;;  %v25587_v52 = vld [vmem:[%s30869_s7 + $0xf38] sm:$0xff]  }
 0xfd1   :  { %23579 = vmatprep.subr.bf16.mxu0 %v31226_v12 }
 0xfd4   :  { %23580 = vmatpush3.bf16.msra.mxu0 %v25541_v3  ;;  %v25567_v3 = vld [vmem:[%s30869_s7 + $0xe18] sm:$0xff]  }
 0xfd5   :  { %23581 = vmatprep.subr.bf16.mxu0 %v31226_v12 }
 0xfd8   :  { %23582 = vmatpush3.bf16.msra.mxu0 %v25542_v60  ;;  %v25568_v60 = vld [vmem:[%s30869_s7 + $0xe20] sm:$0xff]  }
 0xfd9   :  { %23583 = vmatprep.subr.bf16.mxu0 %v31226_v12 }
 0xfdc   :  { %23584 = vmatpush3.bf16.msra.mxu0 %v25543_v29  ;;  %v25569_v29 = vld [vmem:[%s30869_s7 + $0xe28] sm:$0xff]  }
 0xfdd   :  { %23585 = vmatprep.subr.bf16.mxu0 %v31226_v12 }
 0xfe0   :  { %23586 = vmatpush3.bf16.msra.mxu0 %v25544_v32  ;;  %v31654_v32 = vld [vmem:[#allocation147_spill] sm:$0xff] }
 0xfe1   :  { %23587 = vmatprep.subr.bf16.mxu0 %v31226_v12 }
 0xfe2   :  { %v16722_v37 = vpop.f32.mrb[168].mxu0 }
 0xfe3   :  { %v18617_v16 = vadd.f32 %v18616_v17, %v16722_v37  ;;  %v23435_v59 = vpop.f32.mrb[169].mxu0 }
 0xfe4   :  { %v16725_v41 = vpop.f32.mrb[170].mxu0  ;;  %23588 = vmatpush3.bf16.msra.mxu0 %v25545_v23  ;;  %v11713_v23 = vmul.f32 %v30238_v27, %v31654_v32  ;;  %v25593_v32 = vld [vmem:[%s30869_s7 + $0xfa8] sm:$0xff]  }
 0xfe5   :  { %v23436_v36 = vpop.f32.mrb[171].mxu0  ;;  %23589 = vmatprep.subr.bf16.mxu0 %v31226_v12  ;;  %v25570_v41 = vld [vmem:[%s30869_s7 + $0xe30] sm:$0xff]  }
 0xfe8   :  { %23590 = vmatpush3.bf16.msra.mxu0 %v25546_v62  ;;  %v30730_v62 = vld [vmem:[%s30871_s6] ss:$0 sm:$0xff] }
 0xfe9   :  { %23591 = vmatprep.subr.bf16.mxu0 %v31226_v12  ;;  %v11784_v49 = vadd.f32 %v30730_v62, %v11713_v23  ;;  %v31657_v23 = vld [vmem:[#allocation148_spill] sm:$0xff] }
 0xfeb   :  { %v11848_v6 = vmax.f32 %v11784_v49, 0.0  ;;  %v25594_v49 = vld [vmem:[%s30869_s7 + $0xfb0] sm:$0xff]  }
 0xfec   :  { %23592 = vmatpush3.bf16.msra.mxu0 %v25547_v30  ;;  %v25571_v30 = vld [vmem:[%s30869_s7 + $0xe38] sm:$0xff]  }
 0xfed   :  { %23617 = vmatprep.subr.bf16.mxu0 %v31226_v12 }
 0xfef   :  { %23594 = vmatmul.mubr.bf16.vlgmr.msra.gmra.mrb[196].mxu0 %v11906_v5  ;;  %v11912_v5 = vpack.c.bf16 %v11848_v6, %v11848_v6 }
 0xff0   :  { %23618 = vmatpush3.bf16.msra.mxu0 %v25548_v43  ;;  %23633 = vmatprep.mubr.msk.bf16.mxu0 %vm25612_vm0, %v31226_v12  ;;  %v25572_v43 = vld [vmem:[%s30869_s7 + $0xe80] sm:$0xff]  }
 0xff1   :  { %23619 = vmatprep.subr.bf16.mxu0 %v31226_v12 }
 0xff4   :  { %23620 = vmatpush3.bf16.msra.mxu0 %v25549_v45  ;;  %v25573_v45 = vld [vmem:[%s30869_s7 + $0xe88] sm:$0xff]  }
 0xff5   :  { %23621 = vmatprep.subr.bf16.mxu0 %v31226_v12 }
 0xff8   :  { %23622 = vmatpush3.bf16.msra.mxu0 %v25550_v61  ;;  %v25574_v61 = vld [vmem:[%s30869_s7 + $0xe90] sm:$0xff]  }
 0xff9   :  { %23623 = vmatprep.subr.bf16.mxu0 %v31226_v12 }
 0xffc   :  { %23624 = vmatpush3.bf16.msra.mxu0 %v25551_v26  ;;  %v25575_v26 = vld [vmem:[%s30869_s7 + $0xe98] sm:$0xff]  }
 0xffd   :  { %23625 = vmatprep.subr.bf16.mxu0 %v31226_v12 }
0x1000   :  { %23626 = vmatpush3.bf16.msra.mxu0 %v25552_v31  ;;  %v25576_v31 = vld [vmem:[%s30869_s7 + $0xea0] sm:$0xff]  }
0x1001   :  { %23627 = vmatprep.subr.bf16.mxu0 %v31226_v12 }
0x1002   :  { %v16810_v34 = vpop.f32.mrb[172].mxu0 }
0x1003   :  { %v18618_v48 = vadd.f32 %v18617_v16, %v16810_v34  ;;  %v23455_v33 = vpop.f32.mrb[173].mxu0  ;;  %v11715_v34 = vmul.f32 %v30238_v27, %v31655_v15  ;;  %v25579_v27 = vld [vmem:[%s30869_s7 + $0xeb8] sm:$0xff]  }
0x1004   :  { %v16813_v28 = vpop.f32.mrb[174].mxu0  ;;  %23628 = vmatpush3.bf16.msra.mxu0 %v25553_v39  ;;  %v25577_v39 = vld [vmem:[%s30869_s7 + $0xea8] sm:$0xff]  }
0x1005   :  { %v23456_v53 = vpop.f32.mrb[175].mxu0  ;;  %23629 = vmatprep.subr.bf16.mxu0 %v31226_v12 }
0x1006   :  { %v11786_v53 = vadd.f32 %v30730_v62, %v11715_v34 }
0x1008   :  { %23630 = vmatpush3.bf16.msra.mxu0 %v25554_v40  ;;  %v11850_v46 = vmax.f32 %v11786_v53, 0.0 }
0x1009   :  { %23631 = vmatprep.subr.bf16.mxu0 %v31226_v12 }
0x100c   :  { %23632 = vmatpush3.bf16.msra.mxu0 %v25555_v25 }
0x100d   :  { %23657 = vmatprep.subr.bf16.mxu0 %v31226_v12 }
0x100f   :  { %23634 = vmatmul.mubr.bf16.vlgmr.msra.gmra.mrb[200].mxu0 %v11908_v35  ;;  %v11914_v35 = vpack.c.bf16 %v11850_v46, %v11850_v46 }
0x1010   :  { %23658 = vmatpush3.bf16.msra.mxu0 %v25556_v42  ;;  %23673 = vmatprep.mubr.msk.bf16.mxu0 %vm25612_vm0, %v31226_v12  ;;  %v25580_v42 = vld [vmem:[%s30869_s7 + $0xf00] sm:$0xff]  }
0x1011   :  { %23659 = vmatprep.subr.bf16.mxu0 %v31226_v12 }
0x1014   :  { %23660 = vmatpush3.bf16.msra.mxu0 %v25557_v1  ;;  %v25581_v1 = vld [vmem:[%s30869_s7 + $0xf08] sm:$0xff]  }
0x1015   :  { %23661 = vmatprep.subr.bf16.mxu0 %v31226_v12 }
0x1018   :  { %23662 = vmatpush3.bf16.msra.mxu0 %v25558_v0  ;;  %v25582_v0 = vld [vmem:[%s30869_s7 + $0xf10] sm:$0xff]  }
0x1019   :  { %23663 = vmatprep.subr.bf16.mxu0 %v31226_v12 }
0x101c   :  { %23664 = vmatpush3.bf16.msra.mxu0 %v25559_v14  ;;  %v25583_v14 = vld [vmem:[%s30869_s7 + $0xf18] sm:$0xff]  }
0x101d   :  { %23665 = vmatprep.subr.bf16.mxu0 %v31226_v12 }
0x1020   :  { %23666 = vmatpush3.bf16.msra.mxu0 %v25560_v55  ;;  %v25584_v55 = vld [vmem:[%s30869_s7 + $0xf20] sm:$0xff]  }
0x1021   :  { %23667 = vmatprep.subr.bf16.mxu0 %v31226_v12 }
0x1022   :  { %v16898_v19 = vpop.f32.mrb[176].mxu0 }
0x1023   :  { %v18619_v13 = vadd.f32 %v18618_v48, %v16898_v19  ;;  %v23475_v17 = vpop.f32.mrb[177].mxu0  ;;  %v11717_v19 = vmul.f32 %v25609_v24, %v31656_v7 }
0x1024   :  { %v16901_v8 = vpop.f32.mrb[178].mxu0  ;;  %23668 = vmatpush3.bf16.msra.mxu0 %v25561_v10  ;;  %v25585_v10 = vld [vmem:[%s30869_s7 + $0xf28] sm:$0xff]  }
0x1025   :  { %v23476_v58 = vpop.f32.mrb[179].mxu0  ;;  %23669 = vmatprep.subr.bf16.mxu0 %v31226_v12 }
0x1026   :  { %v11788_v58 = vadd.f32 %v30730_v62, %v11717_v19 }
0x1028   :  { %23670 = vmatpush3.bf16.msra.mxu0 %v25562_v50 }
0x1029   :  { %23671 = vmatprep.subr.bf16.mxu0 %v31226_v12 }
0x102c   :  { %23672 = vmatpush3.bf16.msra.mxu0 %v25563_v47 }
0x102d   :  { %23697 = vmatprep.subr.bf16.mxu0 %v31226_v12 }
0x102f   :  { %23674 = vmatmul.mubr.bf16.vlgmr.msra.gmra.mrb[204].mxu0 %v11910_v57  ;;  %v25588_v57 = vld [vmem:[%s30869_s7 + $0xf80] sm:$0xff]  }
0x1030   :  { %23698 = vmatpush3.bf16.msra.mxu0 %v25564_v21  ;;  %23713 = vmatprep.mubr.msk.bf16.mxu0 %vm25612_vm0, %v31226_v12  ;;  %v11852_v21 = vmax.f32 %v11788_v58, 0.0 }
0x1031   :  { %23699 = vmatprep.subr.bf16.mxu0 %v31226_v12 }
0x1034   :  { %23700 = vmatpush3.bf16.msra.mxu0 %v25565_v63  ;;  %v11916_v63 = vpack.c.bf16 %v11852_v21, %v11852_v21 }
0x1035   :  { %23701 = vmatprep.subr.bf16.mxu0 %v31226_v12 }
0x1038   :  { %23702 = vmatpush3.bf16.msra.mxu0 %v25566_v4  ;;  %v25589_v4 = vld [vmem:[%s30869_s7 + $0xf88] sm:$0xff]  }
0x1039   :  { %23703 = vmatprep.subr.bf16.mxu0 %v31226_v12 }
0x103c   :  { %23704 = vmatpush3.bf16.msra.mxu0 %v25567_v3  ;;  %v25590_v3 = vld [vmem:[%s30869_s7 + $0xf90] sm:$0xff]  }
0x103d   :  { %23705 = vmatprep.subr.bf16.mxu0 %v31226_v12 }
0x1040   :  { %23706 = vmatpush3.bf16.msra.mxu0 %v25568_v60  ;;  %v25591_v60 = vld [vmem:[%s30869_s7 + $0xf98] sm:$0xff]  }
0x1041   :  { %23707 = vmatprep.subr.bf16.mxu0 %v31226_v12 }
0x1042   :  { %v16986_v20 = vpop.f32.mrb[180].mxu0 }
0x1043   :  { %v18620_v37 = vadd.f32 %v18619_v13, %v16986_v20  ;;  %v23495_v16 = vpop.f32.mrb[181].mxu0  ;;  %v11719_v20 = vmul.f32 %v25609_v24, %v31657_v23 }
0x1044   :  { %v16989_v59 = vpop.f32.mrb[182].mxu0  ;;  %23708 = vmatpush3.bf16.msra.mxu0 %v25569_v29  ;;  %v25592_v29 = vld [vmem:[%s30869_s7 + $0xfa0] sm:$0xff]  }
0x1045   :  { %v23496_v36 = vpop.f32.mrb[183].mxu0  ;;  %23709 = vmatprep.subr.bf16.mxu0 %v31226_v12 }
0x1046   :  { %v11790_v36 = vadd.f32 %v30730_v62, %v11719_v20 }
0x1048   :  { %23710 = vmatpush3.bf16.msra.mxu0 %v25570_v41 }
0x1049   :  { %23711 = vmatprep.subr.bf16.mxu0 %v31226_v12 }
0x104c   :  { %23712 = vmatpush3.bf16.msra.mxu0 %v25571_v30 }
0x104d   :  { %23737 = vmatprep.subr.bf16.mxu0 %v31226_v12 }
0x104f   :  { %23714 = vmatmul.mubr.bf16.vlgmr.msra.gmra.mrb[208].mxu0 %v11912_v5  ;;  %v11854_v5 = vmax.f32 %v11790_v36, 0.0 }
0x1050   :  { %23738 = vmatpush3.bf16.msra.mxu0 %v25572_v43  ;;  %23753 = vmatprep.mubr.msk.bf16.mxu0 %vm25612_vm0, %v31226_v12  ;;  %v25595_v43 = vld [vmem:[%s30869_s7 + $0xfb8] sm:$0xff]  }
0x1051   :  { %23739 = vmatprep.subr.bf16.mxu0 %v31226_v12 }
0x1054   :  { %23740 = vmatpush3.bf16.msra.mxu0 %v25573_v45  ;;  %v11918_v45 = vpack.c.bf16 %v11854_v5, %v11854_v5 }
0x1055   :  { %23741 = vmatprep.subr.bf16.mxu0 %v31226_v12 }
0x1058   :  { %23742 = vmatpush3.bf16.msra.mxu0 %v25574_v61 }
0x1059   :  { %23743 = vmatprep.subr.bf16.mxu0 %v31226_v12 }
0x105c   :  { %23744 = vmatpush3.bf16.msra.mxu0 %v25575_v26 }
0x105d   :  { %23745 = vmatprep.subr.bf16.mxu0 %v31226_v12 }
0x1060   :  { %23746 = vmatpush3.bf16.msra.mxu0 %v25576_v31 }
0x1061   :  { %23747 = vmatprep.subr.bf16.mxu0 %v31226_v12 }
0x1062   :  { %v17074_v48 = vpop.f32.mrb[184].mxu0 }
0x1063   :  { %v18621_v33 = vadd.f32 %v18620_v37, %v17074_v48  ;;  %v23515_v28 = vpop.f32.mrb[185].mxu0 }
0x1064   :  { %v17077_v40 = vpop.f32.mrb[186].mxu0  ;;  %23748 = vmatpush3.bf16.msra.mxu0 %v25577_v39 }
0x1065   :  { %v23516_v25 = vpop.f32.mrb[187].mxu0  ;;  %23749 = vmatprep.subr.bf16.mxu0 %v31226_v12 }
0x1068   :  { %23750 = vmatpush3.bf16.msra.mxu0 %v25578_v9 }
0x1069   :  { %23751 = vmatprep.subr.bf16.mxu0 %v31226_v12 }
0x106c   :  { %23752 = vmatpush3.bf16.msra.mxu0 %v25579_v27 }
0x106d   :  { %23777 = vmatprep.subr.bf16.mxu0 %v31226_v12 }
0x106f   :  { %23754 = vmatmul.mubr.bf16.vlgmr.msra.gmra.mrb[212].mxu0 %v11914_v35 }
0x1070   :  { %23778 = vmatpush3.bf16.msra.mxu0 %v25580_v42  ;;  %23793 = vmatprep.mubr.msk.bf16.mxu0 %vm25612_vm0, %v31226_v12 }
0x1071   :  { %23779 = vmatprep.subr.bf16.mxu0 %v31226_v12 }
0x1074   :  { %23780 = vmatpush3.bf16.msra.mxu0 %v25581_v1 }
0x1075   :  { %23781 = vmatprep.subr.bf16.mxu0 %v31226_v12 }
0x1078   :  { %23782 = vmatpush3.bf16.msra.mxu0 %v25582_v0 }
0x1079   :  { %23783 = vmatprep.subr.bf16.mxu0 %v31226_v12 }
0x107c   :  { %23784 = vmatpush3.bf16.msra.mxu0 %v25583_v14 }
0x107d   :  { %23785 = vmatprep.subr.bf16.mxu0 %v31226_v12 }
0x1080   :  { %23786 = vmatpush3.bf16.msra.mxu0 %v25584_v55 }
0x1081   :  { %23787 = vmatprep.subr.bf16.mxu0 %v31226_v12 }
0x1082   :  { %v17162_v13 = vpop.f32.mrb[188].mxu0 }
0x1083   :  { %v18622_v17 = vadd.f32 %v18621_v33, %v17162_v13  ;;  %v23535_v8 = vpop.f32.mrb[189].mxu0 }
0x1084   :  { %v17165_v50 = vpop.f32.mrb[190].mxu0  ;;  %23788 = vmatpush3.bf16.msra.mxu0 %v25585_v10 }
0x1085   :  { %v23536_v47 = vpop.f32.mrb[191].mxu0  ;;  %23789 = vmatprep.subr.bf16.mxu0 %v31226_v12 }
0x1088   :  { %23790 = vmatpush3.bf16.msra.mxu0 %v25586_v56 }
0x1089   :  { %23791 = vmatprep.subr.bf16.mxu0 %v31226_v12 }
0x108c   :  { %23792 = vmatpush3.bf16.msra.mxu0 %v25587_v52 }
0x108d   :  { %23817 = vmatprep.subr.bf16.mxu0 %v31226_v12 }
0x108f   :  { %23794 = vmatmul.mubr.bf16.vlgmr.msra.gmra.mrb[216].mxu0 %v11916_v63 }
0x1090   :  { %23818 = vmatpush3.bf16.msra.mxu0 %v25588_v57  ;;  %23833 = vmatprep.mubr.msk.bf16.mxu0 %vm25612_vm0, %v31226_v12 }
0x1091   :  { %23819 = vmatprep.subr.bf16.mxu0 %v31226_v12 }
0x1094   :  { %23820 = vmatpush3.bf16.msra.mxu0 %v25589_v4 }
0x1095   :  { %23821 = vmatprep.subr.bf16.mxu0 %v31226_v12 }
0x1098   :  { %23822 = vmatpush3.bf16.msra.mxu0 %v25590_v3 }
0x1099   :  { %23823 = vmatprep.subr.bf16.mxu0 %v31226_v12 }
0x109c   :  { %23824 = vmatpush3.bf16.msra.mxu0 %v25591_v60 }
0x109d   :  { %23825 = vmatprep.subr.bf16.mxu0 %v31226_v12 }
0x10a0   :  { %23826 = vmatpush3.bf16.msra.mxu0 %v25592_v29 }
0x10a1   :  { %23827 = vmatprep.subr.bf16.mxu0 %v31226_v12 }
0x10a2   :  { %v17250_v37 = vpop.f32.mrb[192].mxu0 }
0x10a3   :  { %v18623_v16 = vadd.f32 %v18622_v17, %v17250_v37  ;;  %v23555_v59 = vpop.f32.mrb[193].mxu0 }
0x10a4   :  { %v17253_v41 = vpop.f32.mrb[194].mxu0  ;;  %23828 = vmatpush3.bf16.msra.mxu0 %v25593_v32 }
0x10a5   :  { %v23556_v30 = vpop.f32.mrb[195].mxu0  ;;  %23829 = vmatprep.subr.bf16.mxu0 %v31226_v12  ;;  %v18624_v6 = vadd.f32 %v18623_v16, %v29125_v51 }
0x10a8   :  { %23830 = vmatpush3.bf16.msra.mxu0 %v25594_v49 }
0x10a9   :  { %23831 = vmatprep.subr.bf16.mxu0 %v31226_v12 }
0x10ac   :  { %23832 = vmatpush3.bf16.msra.mxu0 %v25595_v43 }
0x10af   :  { %23834 = vmatmul.mubr.bf16.vlgmr.msra.gmra.mrb[220].mxu0 %v11918_v45 }
0x10c2   :  { %v17426_v61 = vpop.f32.mrb[196].mxu0 }
0x10c3   :  { %v18625_v26 = vadd.f32 %v18624_v6, %v17426_v61  ;;  %v23595_v31 = vpop.f32.mrb[197].mxu0 }
0x10c4   :  { %v17429_v62 = vpop.f32.mrb[198].mxu0 }
0x10c5   :  { %v23596_v39 = vpop.f32.mrb[199].mxu0  ;;  %v18626_v15 = vadd.f32 %v18625_v26, %v29173_v2 }
0x10e2   :  { %v17602_v34 = vpop.f32.mrb[200].mxu0 }
0x10e3   :  { %v18627_v51 = vadd.f32 %v18626_v15, %v17602_v34  ;;  %v23635_v48 = vpop.f32.mrb[201].mxu0 }
0x10e4   :  { %v17605_v33 = vpop.f32.mrb[202].mxu0 }
0x10e5   :  { %v23636_v28 = vpop.f32.mrb[203].mxu0  ;;  %v18628_v40 = vadd.f32 %v18627_v51, %v29212_v54 }
0x1102   :  { %v17778_v9 = vpop.f32.mrb[204].mxu0 }
0x1103   :  { %v18629_v53 = vadd.f32 %v18628_v40, %v17778_v9  ;;  %v23675_v12 = vpop.f32.mrb[205].mxu0 }
0x1104   :  { %v17781_v25 = vpop.f32.mrb[206].mxu0 }
0x1105   :  { %v23676_v27 = vpop.f32.mrb[207].mxu0  ;;  %v18630_v46 = vadd.f32 %v18629_v53, %v29251_v38 }
0x1122   :  { %v17954_v42 = vpop.f32.mrb[208].mxu0 }
0x1123   :  { %v18631_v35 = vadd.f32 %v18630_v46, %v17954_v42  ;;  %v23715_v1 = vpop.f32.mrb[209].mxu0 }
0x1124   :  { %v17957_v0 = vpop.f32.mrb[210].mxu0 }
0x1125   :  { %v23716_v14 = vpop.f32.mrb[211].mxu0  ;;  %v18632_v2 = vadd.f32 %v18631_v35, %v29290_v11  ;;  %v19672_v11 = vld [vmem:[%s30872_s8] ss:$0 sm:$0xff] }
0x1142   :  { %v18130_v55 = vpop.f32.mrb[212].mxu0 }
0x1143   :  { %v18633_v10 = vadd.f32 %v18632_v2, %v18130_v55  ;;  %v23755_v24 = vpop.f32.mrb[213].mxu0 }
0x1144   :  { %v18133_v7 = vpop.f32.mrb[214].mxu0 }
0x1145   :  { %v23756_v19 = vpop.f32.mrb[215].mxu0  ;;  %v18634_v54 = vadd.f32 %v18633_v10, %v29329_v18 }
0x1162   :  { %v18306_v13 = vpop.f32.mrb[216].mxu0 }
0x1163   :  { %v18635_v17 = vadd.f32 %v18634_v54, %v18306_v13  ;;  %v23795_v8 = vpop.f32.mrb[217].mxu0 }
0x1164   :  { %v18309_v50 = vpop.f32.mrb[218].mxu0 }
0x1165   :  { %v23796_v56 = vpop.f32.mrb[219].mxu0  ;;  %v18636_v38 = vadd.f32 %v18635_v17, %v29368_v22 }
0x1182   :  { %v18482_v58 = vpop.f32.mrb[220].mxu0 }
0x1183   :  { %v18637_v47 = vadd.f32 %v18636_v38, %v18482_v58  ;;  %v23835_v52 = vpop.f32.mrb[221].mxu0 }
0x1184   :  { %v18485_v21 = vpop.f32.mrb[222].mxu0 }
0x1185   :  { %v18638_v57 = vadd.f32 %v18637_v47, %v29407_v44  ;;  %v23836_v63 = vpop.f32.mrb[223].mxu0 }
0x1187   :  { %v18646_v4 = vadd.f32 %v19672_v11, %v18638_v57 }
0x1189   :  { %18647 = vst [vmem:[%s30873_s9] sm:$0xff] %v18646_v4 }

</bundles_post_ra>
